<compile_context>
chip_gen: v5e
topology: v5e:2x2
jax: 0.10.0
libtpu: 0.0.40
codegen_flags: <defaults>
</compile_context>

<pallas_src>
import functools

import jax
import jax.numpy as jnp
from jax.experimental import pallas as pl
from jax.experimental.pallas import tpu as pltpu

BN_EPS = 1e-5


def _round_up(x, m):
    return ((x + m - 1) // m) * m


# ---------------------------------------------------------------------------
# Pallas kernels
# ---------------------------------------------------------------------------
def _mm_affine_kernel(a_ref, b_ref, s_ref, bi_ref, o_ref, acc_ref, *, relu):
    """K-tiled (tm,tk)@(tk,tn) accumulate; epilogue scale/bias (+ReLU) on last K step."""
    @pl.when(pl.program_id(2) == 0)
    def _():
        acc_ref[...] = jnp.zeros_like(acc_ref)

    acc_ref[...] += jnp.dot(a_ref[...], b_ref[...],
                            preferred_element_type=jnp.float32)

    @pl.when(pl.program_id(2) == pl.num_programs(2) - 1)
    def _():
        out = acc_ref[...] * s_ref[...] + bi_ref[...]
        if relu:
            out = jnp.maximum(out, 0.0)
        o_ref[...] = out.astype(o_ref.dtype)


def _mm_affine_res_kernel(a_ref, b_ref, s_ref, bi_ref, r_ref, o_ref, acc_ref, *, relu):
    """Same as _mm_affine_kernel, plus a fused residual add before the ReLU."""
    @pl.when(pl.program_id(2) == 0)
    def _():
        acc_ref[...] = jnp.zeros_like(acc_ref)

    acc_ref[...] += jnp.dot(a_ref[...], b_ref[...],
                            preferred_element_type=jnp.float32)

    @pl.when(pl.program_id(2) == pl.num_programs(2) - 1)
    def _():
        out = acc_ref[...] * s_ref[...] + bi_ref[...] + r_ref[...].astype(jnp.float32)
        if relu:
            out = jnp.maximum(out, 0.0)
        o_ref[...] = out.astype(o_ref.dtype)


def _maxpool_kernel(x_ref, o_ref):
    # x_ref: (9, tm, C) -> max over the 9 pooling taps
    o_ref[...] = jnp.max(x_ref[...], axis=0)


def _avgpool_kernel(x_ref, o_ref):
    # x_ref: (1, HW, C) -> mean over spatial axis
    o_ref[...] = jnp.mean(x_ref[...], axis=1, keepdims=True)


# ---------------------------------------------------------------------------
# Pallas wrappers
# ---------------------------------------------------------------------------
def matmul_affine(a, bT, scale, bias, *, n_out, relu, residual=None,
                  out_dtype=jnp.bfloat16):
    """out[:M,:n_out] = maybe_relu((A @ B) * scale + bias (+ residual)).

    A is cast to bf16; bT/scale/bias are pre-packed/padded (Kp x Np, 1 x Np)."""
    M, K = a.shape
    Kp, Np = bT.shape
    Mp = _round_up(max(M, 8), 8)

    tm = 256 if Mp % 256 == 0 else (128 if Mp % 128 == 0 else Mp)
    tn = 256 if Np % 256 == 0 else 128
    tk = next((t for t in (512, 256, 128) if Kp % t == 0), Kp)

    a_p = jnp.pad(a.astype(jnp.bfloat16), ((0, Mp - M), (0, Kp - K)))
    args = [a_p, bT, scale, bias]
    in_specs = [
        pl.BlockSpec((tm, tk), lambda i, j, k: (i, k)),
        pl.BlockSpec((tk, tn), lambda i, j, k: (k, j)),
        pl.BlockSpec((1, tn), lambda i, j, k: (0, j)),
        pl.BlockSpec((1, tn), lambda i, j, k: (0, j)),
    ]
    if residual is not None:
        r_p = jnp.pad(residual, ((0, Mp - M), (0, Np - residual.shape[1])))
        args.append(r_p)
        in_specs.append(pl.BlockSpec((tm, tn), lambda i, j, k: (i, j)))
        kernel = functools.partial(_mm_affine_res_kernel, relu=relu)
    else:
        kernel = functools.partial(_mm_affine_kernel, relu=relu)

    out = pl.pallas_call(
        kernel,
        out_shape=jax.ShapeDtypeStruct((Mp, Np), out_dtype),
        grid=(Mp // tm, Np // tn, Kp // tk),
        in_specs=in_specs,
        out_specs=pl.BlockSpec((tm, tn), lambda i, j, k: (i, j)),
        scratch_shapes=[pltpu.VMEM((tm, tn), jnp.float32)],
        compiler_params=pltpu.CompilerParams(
            dimension_semantics=("parallel", "parallel", "arbitrary"),
        ),
    )(*args)
    return out[:M, :n_out]


def conv_bn(x, pw, *, relu, residual=None):
    """Conv2d (no bias) + folded eval-mode BatchNorm (+ residual + ReLU).  x: NHWC."""
    nb, h, w, cin = x.shape
    kh, kw, stride, padding = pw["kh"], pw["kw"], pw["stride"], pw["padding"]
    cout = pw["cout"]
    ho = (h + 2 * padding - (kh - 1) - 1) // stride + 1
    wo = (w + 2 * padding - (kw - 1) - 1) // stride + 1

    if kh == 1 and kw == 1 and padding == 0:
        a = x[:, ::stride, ::stride, :].reshape(nb * ho * wo, cin)
    else:
        # TODO(synk): im2col still materializes a kh*kw-times-blown-up activation in
        # HBM; for large images a tap-axis manual-DMA pipeline would avoid it.
        xp = jnp.pad(x, ((0, 0), (padding, padding), (padding, padding), (0, 0)))
        cols = [
            xp[:, dy:dy + (ho - 1) * stride + 1:stride,
                  dx:dx + (wo - 1) * stride + 1:stride, :]
            for dy in range(kh) for dx in range(kw)
        ]
        a = jnp.stack(cols, axis=3).reshape(nb * ho * wo, kh * kw * cin)

    res = None if residual is None else residual.reshape(nb * ho * wo, cout)
    out = matmul_affine(a, pw["bT"], pw["scale"], pw["bias"], n_out=cout,
                        relu=relu, residual=res, out_dtype=jnp.bfloat16)
    return out.reshape(nb, ho, wo, cout)


def maxpool_3x3_s2_p1(x):
    """nn.MaxPool2d(kernel_size=3, stride=2, padding=1) on NHWC input (bf16)."""
    nb, h, w, c = x.shape
    ho = (h + 2 - 3) // 2 + 1
    wo = (w + 2 - 3) // 2 + 1
    # TODO(synk): the 9x tap stack is still materialized; strided in-kernel reads of
    # the padded input would remove that HBM round trip for realistic image sizes.
    xp = jnp.pad(x, ((0, 0), (1, 1), (1, 1), (0, 0)), constant_values=-jnp.inf)
    taps = [
        xp[:, dy:dy + (ho - 1) * 2 + 1:2, dx:dx + (wo - 1) * 2 + 1:2, :]
        for dy in range(3) for dx in range(3)
    ]
    m = nb * ho * wo
    tm = min(_round_up(m, 8), 512)
    mp = _round_up(m, tm)
    stacked = jnp.stack(taps, 0).reshape(9, m, c)
    if mp > m:
        stacked = jnp.pad(stacked, ((0, 0), (0, mp - m), (0, 0)),
                          constant_values=-jnp.inf)

    out = pl.pallas_call(
        _maxpool_kernel,
        out_shape=jax.ShapeDtypeStruct((mp, c), x.dtype),
        grid=(mp // tm,),
        in_specs=[pl.BlockSpec((9, tm, c), lambda i: (0, i, 0))],
        out_specs=pl.BlockSpec((tm, c), lambda i: (i, 0)),
        compiler_params=pltpu.CompilerParams(dimension_semantics=("parallel",)),
    )(stacked)
    return out[:m].reshape(nb, ho, wo, c)


def global_avgpool(x):
    """nn.AdaptiveAvgPool2d((1,1)) on NHWC input -> (N, C) float32."""
    nb, h, w, c = x.shape
    hw = h * w
    xr = x.reshape(nb, hw, c).astype(jnp.float32)
    out = pl.pallas_call(
        _avgpool_kernel,
        out_shape=jax.ShapeDtypeStruct((nb, 1, c), jnp.float32),
        grid=(nb,),
        in_specs=[pl.BlockSpec((1, hw, c), lambda i: (i, 0, 0))],
        out_specs=pl.BlockSpec((1, 1, c), lambda i: (i, 0, 0)),
        compiler_params=pltpu.CompilerParams(dimension_semantics=("parallel",)),
    )(xr)
    return out.reshape(nb, c)


# ---------------------------------------------------------------------------
# Parameter construction (deterministic; mirrors the module's __init__)
# ---------------------------------------------------------------------------
def _kaiming_conv(key, shape):
    # kaiming_normal_(mode='fan_out', nonlinearity='relu'); shape = (Cout, Cin, kh, kw)
    fan_out = shape[0] * shape[2] * shape[3]
    std = (2.0 / fan_out) ** 0.5
    return std * jax.random.normal(key, shape, jnp.float32)


def _bn_fold(c):
    # gamma=1, beta=0, running_mean=0, running_var=1 (eval-mode BN fold)
    scale = jnp.full((c,), 1.0 / (1.0 + BN_EPS) ** 0.5, jnp.float32)
    bias = jnp.zeros((c,), jnp.float32)
    return scale, bias


def _pack_conv(w, bn_scale, bn_bias, *, stride, padding):
    """Pack OIHW conv weight + folded BN into matmul-ready padded bf16 RHS (once)."""
    cout, cin, kh, kw = w.shape
    k = kh * kw * cin
    kp = _round_up(k, 128)
    np_ = _round_up(cout, 128)
    bT = jnp.transpose(w, (2, 3, 1, 0)).reshape(k, cout)
    bT = jnp.pad(bT, ((0, kp - k), (0, np_ - cout))).astype(jnp.bfloat16)
    s = jnp.pad(bn_scale, (0, np_ - cout)).reshape(1, np_).astype(jnp.float32)
    b = jnp.pad(bn_bias, (0, np_ - cout)).reshape(1, np_).astype(jnp.float32)
    return dict(bT=bT, scale=s, bias=b, cout=cout, kh=kh, kw=kw,
                stride=stride, padding=padding)


def make_resnet_params(key, layers=(1, 1, 1, 1), num_classes=10):
    params = {}
    keys = iter(jax.random.split(key, 64))

    w = _kaiming_conv(next(keys), (64, 1, 7, 7))
    s, b = _bn_fold(64)
    params["conv1"] = _pack_conv(w, s, b, stride=2, padding=3)

    inplanes = 64
    stages = []
    for planes, blocks, stride in zip((64, 128, 256, 512), layers, (1, 2, 2, 2)):
        stage = []
        for bidx in range(blocks):
            st = stride if bidx == 0 else 1
            blk = {}
            w1 = _kaiming_conv(next(keys), (planes, inplanes, 3, 3))
            s1, b1 = _bn_fold(planes)
            blk["conv1"] = _pack_conv(w1, s1, b1, stride=st, padding=1)
            w2 = _kaiming_conv(next(keys), (planes, planes, 3, 3))
            s2, b2 = _bn_fold(planes)
            blk["conv2"] = _pack_conv(w2, s2, b2, stride=1, padding=1)
            if st != 1 or inplanes != planes:  # BasicBlock.expansion == 1
                wd = _kaiming_conv(next(keys), (planes, inplanes, 1, 1))
                sd, bd = _bn_fold(planes)
                blk["downsample"] = _pack_conv(wd, sd, bd, stride=st, padding=0)
            else:
                blk["downsample"] = None
            inplanes = planes
            stage.append(blk)
        stages.append(stage)
    params["stages"] = stages

    bound = 1.0 / (512 ** 0.5)  # default nn.Linear init
    k_w, k_b = jax.random.split(next(keys))
    fc_w = jax.random.uniform(k_w, (num_classes, 512), jnp.float32, -bound, bound)
    fc_b = jax.random.uniform(k_b, (num_classes,), jnp.float32, -bound, bound)
    np_ = _round_up(num_classes, 128)
    params["fc"] = dict(
        bT=jnp.pad(fc_w.T, ((0, 0), (0, np_ - num_classes))).astype(jnp.bfloat16),
        scale=jnp.pad(jnp.ones((num_classes,), jnp.float32),
                      (0, np_ - num_classes)).reshape(1, np_),
        bias=jnp.pad(fc_b, (0, np_ - num_classes)).reshape(1, np_),
        cout=num_classes,
    )
    return params


# ---------------------------------------------------------------------------
# Forward pass
# ---------------------------------------------------------------------------
def basic_block_forward(x, blk):
    identity = x
    out = conv_bn(x, blk["conv1"], relu=True)
    if blk["downsample"] is not None:
        identity = conv_bn(x, blk["downsample"], relu=False)
    # conv2 + bn2 + residual add + relu fused into one Pallas kernel epilogue
    return conv_bn(out, blk["conv2"], relu=True, residual=identity)


def resnet_forward(params, x_nchw):
    x = jnp.transpose(x_nchw, (0, 2, 3, 1)).astype(jnp.bfloat16)  # NCHW -> NHWC
    x = conv_bn(x, params["conv1"], relu=True)
    x = maxpool_3x3_s2_p1(x)
    for stage in params["stages"]:
        for blk in stage:
            x = basic_block_forward(x, blk)
    x = global_avgpool(x)  # (N, 512) f32 == torch.flatten(avgpool(x), 1)
    fc = params["fc"]
    logits = matmul_affine(x, fc["bT"], fc["scale"], fc["bias"],
                           n_out=fc["cout"], relu=False, out_dtype=jnp.float32)
    return logits


if __name__ == "__main__":
    key = jax.random.PRNGKey(0)
    k_param, k_x = jax.random.split(key)
    params = make_resnet_params(k_param, layers=(1, 1, 1, 1), num_classes=10)
    # conv1 expects a single input channel (nn.Conv2d(1, 64, ...)); 32x32 spatial
    # survives the /32 total downsampling of the network.
    x = jax.random.normal(k_x, (2, 1, 32, 32), jnp.float32)

    fwd = jax.jit(lambda xx: resnet_forward(params, xx))
    logits = jax.block_until_ready(fwd(x))
    assert logits.shape == (2, 10)
    assert bool(jnp.all(jnp.isfinite(logits)))
    print("KERNEL_OK")
</pallas_src>

<mosaic_0001>
module attributes {stable_mosaic.version = 11 : i64} {
  func.func @_mm_affine_kernel(%arg0: i32, %arg1: i32, %arg2: i32, %arg3: memref<256x128xbf16, #tpu.memory_space<vmem>>, %arg4: memref<128x128xbf16, #tpu.memory_space<vmem>>, %arg5: memref<1x128xf32, #tpu.memory_space<vmem>>, %arg6: memref<1x128xf32, #tpu.memory_space<vmem>>, %arg7: memref<256x128xbf16, #tpu.memory_space<vmem>>, %arg8: memref<256x128xf32, #tpu.memory_space<vmem>>) attributes {dimension_semantics = [#tpu.dimension_semantics<parallel>, #tpu.dimension_semantics<parallel>, #tpu.dimension_semantics<arbitrary>], iteration_bounds = array<i64: 2, 1, 1>, scalar_prefetch = 0 : i64, scratch_operands = 1 : i64, tpu.core_type = #tpu.core_type<tc>, window_params = [{transform_indices = @transform_0, window_bounds = array<i64: 256, 128>}, {transform_indices = @transform_1, window_bounds = array<i64: 128, 128>}, {transform_indices = @transform_2, window_bounds = array<i64: 1, 128>}, {transform_indices = @transform_3, window_bounds = array<i64: 1, 128>}, {transform_indices = @transform_4, window_bounds = array<i64: 256, 128>}]} {
    %c0_i32 = arith.constant 0 : i32
    %0 = arith.cmpi eq, %arg2, %c0_i32 : i32
    %1 = arith.extui %0 : i1 to i32
    %c0_i32_0 = arith.constant 0 : i32
    %2 = arith.cmpi ne, %1, %c0_i32_0 : i32
    scf.if %2 {
      %cst_10 = arith.constant 0.000000e+00 : f32
      %12 = vector.broadcast %cst_10 : f32 to vector<256x128xf32>
      %c0_11 = arith.constant 0 : index
      %c0_12 = arith.constant 0 : index
      %13 = vector.load %arg8[%c0_11, %c0_12] : memref<256x128xf32, #tpu.memory_space<vmem>>, vector<256x128xf32>
      tpu.vector_store %arg8[%c0_11, %c0_12], %12 {strides = array<i32>} : memref<256x128xf32, #tpu.memory_space<vmem>>, vector<256x128xf32>,
    } else {
    }
    %c0 = arith.constant 0 : index
    %c0_1 = arith.constant 0 : index
    %3 = vector.load %arg8[%c0, %c0_1] : memref<256x128xf32, #tpu.memory_space<vmem>>, vector<256x128xf32>
    %c0_2 = arith.constant 0 : index
    %c0_3 = arith.constant 0 : index
    %4 = vector.load %arg3[%c0_2, %c0_3] : memref<256x128xbf16, #tpu.memory_space<vmem>>, vector<256x128xbf16>
    %c0_4 = arith.constant 0 : index
    %c0_5 = arith.constant 0 : index
    %5 = vector.load %arg4[%c0_4, %c0_5] : memref<128x128xbf16, #tpu.memory_space<vmem>>, vector<128x128xbf16>
    %cst = arith.constant dense<0.000000e+00> : vector<256x128xf32>
    %6 = tpu.matmul %4, %5, %cst {dimension_numbers = #tpu.dot_dimension_numbers<[1], [0], [0], [1], [0, 0, 1, 1], [], []>} : vector<256x128xbf16>, vector<128x128xbf16>, vector<256x128xf32> -> vector<256x128xf32>
    %7 = arith.addf %3, %6 : vector<256x128xf32>
    %c0_6 = arith.constant 0 : index
    %c0_7 = arith.constant 0 : index
    %8 = vector.load %arg8[%c0_6, %c0_7] : memref<256x128xf32, #tpu.memory_space<vmem>>, vector<256x128xf32>
    tpu.vector_store %arg8[%c0_6, %c0_7], %7 {strides = array<i32>} : memref<256x128xf32, #tpu.memory_space<vmem>>, vector<256x128xf32>,
    %c0_i32_8 = arith.constant 0 : i32
    %9 = arith.cmpi eq, %arg2, %c0_i32_8 : i32
    %10 = arith.extui %9 : i1 to i32
    %c0_i32_9 = arith.constant 0 : i32
    %11 = arith.cmpi ne, %10, %c0_i32_9 : i32
    scf.if %11 {
      %c0_10 = arith.constant 0 : index
      %c0_11 = arith.constant 0 : index
      %12 = vector.load %arg8[%c0_10, %c0_11] : memref<256x128xf32, #tpu.memory_space<vmem>>, vector<256x128xf32>
      %c0_12 = arith.constant 0 : index
      %c0_13 = arith.constant 0 : index
      %13 = vector.load %arg5[%c0_12, %c0_13] : memref<1x128xf32, #tpu.memory_space<vmem>>, vector<1x128xf32>
      %14 = vector.broadcast %13 : vector<1x128xf32> to vector<256x128xf32>
      %15 = arith.mulf %12, %14 : vector<256x128xf32>
      %c0_14 = arith.constant 0 : index
      %c0_15 = arith.constant 0 : index
      %16 = vector.load %arg6[%c0_14, %c0_15] : memref<1x128xf32, #tpu.memory_space<vmem>>, vector<1x128xf32>
      %17 = vector.broadcast %16 : vector<1x128xf32> to vector<256x128xf32>
      %18 = arith.addf %15, %17 : vector<256x128xf32>
      %cst_16 = arith.constant 0.000000e+00 : f32
      %19 = vector.broadcast %cst_16 : f32 to vector<256x128xf32>
      %20 = arith.maximumf %18, %19 : vector<256x128xf32>
      %21 = arith.truncf %20 : vector<256x128xf32> to vector<256x128xbf16>
      %c0_17 = arith.constant 0 : index
      %c0_18 = arith.constant 0 : index
      %22 = vector.load %arg7[%c0_17, %c0_18] : memref<256x128xbf16, #tpu.memory_space<vmem>>, vector<256x128xbf16>
      tpu.vector_store %arg7[%c0_17, %c0_18], %21 {strides = array<i32>} : memref<256x128xbf16, #tpu.memory_space<vmem>>, vector<256x128xbf16>,
    } else {
    }
    return
  }
  func.func @transform_0(%arg0: i32, %arg1: i32, %arg2: i32) -> (i32, i32) {
    %c0_i32 = arith.constant 0 : i32
    return %arg0, %arg2 : i32, i32
  }
  func.func @transform_1(%arg0: i32, %arg1: i32, %arg2: i32) -> (i32, i32) {
    %c0_i32 = arith.constant 0 : i32
    return %arg2, %arg1 : i32, i32
  }
  func.func @transform_2(%arg0: i32, %arg1: i32, %arg2: i32) -> (i32, i32) {
    %c0_i32 = arith.constant 0 : i32
    %c0_i32_0 = arith.constant 0 : i32
    return %c0_i32, %arg1 : i32, i32
  }
  func.func @transform_3(%arg0: i32, %arg1: i32, %arg2: i32) -> (i32, i32) {
    %c0_i32 = arith.constant 0 : i32
    %c0_i32_0 = arith.constant 0 : i32
    return %c0_i32, %arg1 : i32, i32
  }
  func.func @transform_4(%arg0: i32, %arg1: i32, %arg2: i32) -> (i32, i32) {
    %c0_i32 = arith.constant 0 : i32
    return %arg0, %arg1 : i32, i32
  }
}

module attributes {stable_mosaic.version = 11 : i64} {
  func.func @_maxpool_kernel(%arg0: i32, %arg1: memref<9x128x64xbf16, #tpu.memory_space<vmem>>, %arg2: memref<128x64xbf16, #tpu.memory_space<vmem>>) attributes {dimension_semantics = [#tpu.dimension_semantics<parallel>], iteration_bounds = array<i64: 1>, scalar_prefetch = 0 : i64, scratch_operands = 0 : i64, tpu.core_type = #tpu.core_type<tc>, window_params = [{transform_indices = @transform_0, window_bounds = array<i64: 9, 128, 64>}, {transform_indices = @transform_1, window_bounds = array<i64: 128, 64>}]} {
    %c0 = arith.constant 0 : index
    %c0_0 = arith.constant 0 : index
    %c0_1 = arith.constant 0 : index
    %0 = vector.load %arg1[%c0, %c0_0, %c0_1] : memref<9x128x64xbf16, #tpu.memory_space<vmem>>, vector<9x128x64xbf16>
    %cst = arith.constant dense<0xFF80> : vector<128x64xbf16>
    %1 = vector.multi_reduction <maximumf>, %0, %cst [0] : vector<9x128x64xbf16> to vector<128x64xbf16>
    %c0_2 = arith.constant 0 : index
    %c0_3 = arith.constant 0 : index
    %2 = vector.load %arg2[%c0_2, %c0_3] : memref<128x64xbf16, #tpu.memory_space<vmem>>, vector<128x64xbf16>
    tpu.vector_store %arg2[%c0_2, %c0_3], %1 {strides = array<i32>} : memref<128x64xbf16, #tpu.memory_space<vmem>>, vector<128x64xbf16>,
    return
  }
  func.func @transform_0(%arg0: i32) -> (i32, i32, i32) {
    %c0_i32 = arith.constant 0 : i32
    %c0_i32_0 = arith.constant 0 : i32
    %c0_i32_1 = arith.constant 0 : i32
    return %c0_i32, %arg0, %c0_i32_0 : i32, i32, i32
  }
  func.func @transform_1(%arg0: i32) -> (i32, i32) {
    %c0_i32 = arith.constant 0 : i32
    %c0_i32_0 = arith.constant 0 : i32
    return %arg0, %c0_i32 : i32, i32
  }
}

module attributes {stable_mosaic.version = 11 : i64} {
  func.func @_mm_affine_kernel(%arg0: i32, %arg1: i32, %arg2: i32, %arg3: memref<128x128xbf16, #tpu.memory_space<vmem>>, %arg4: memref<128x128xbf16, #tpu.memory_space<vmem>>, %arg5: memref<1x128xf32, #tpu.memory_space<vmem>>, %arg6: memref<1x128xf32, #tpu.memory_space<vmem>>, %arg7: memref<128x128xbf16, #tpu.memory_space<vmem>>, %arg8: memref<128x128xf32, #tpu.memory_space<vmem>>) attributes {dimension_semantics = [#tpu.dimension_semantics<parallel>, #tpu.dimension_semantics<parallel>, #tpu.dimension_semantics<arbitrary>], iteration_bounds = array<i64: 1, 1, 5>, scalar_prefetch = 0 : i64, scratch_operands = 1 : i64, tpu.core_type = #tpu.core_type<tc>, window_params = [{transform_indices = @transform_0, window_bounds = array<i64: 128, 128>}, {transform_indices = @transform_1, window_bounds = array<i64: 128, 128>}, {transform_indices = @transform_2, window_bounds = array<i64: 1, 128>}, {transform_indices = @transform_3, window_bounds = array<i64: 1, 128>}, {transform_indices = @transform_4, window_bounds = array<i64: 128, 128>}]} {
    %c0_i32 = arith.constant 0 : i32
    %0 = arith.cmpi eq, %arg2, %c0_i32 : i32
    %1 = arith.extui %0 : i1 to i32
    %c0_i32_0 = arith.constant 0 : i32
    %2 = arith.cmpi ne, %1, %c0_i32_0 : i32
    scf.if %2 {
      %cst_9 = arith.constant 0.000000e+00 : f32
      %12 = vector.broadcast %cst_9 : f32 to vector<128x128xf32>
      %c0_10 = arith.constant 0 : index
      %c0_11 = arith.constant 0 : index
      %13 = vector.load %arg8[%c0_10, %c0_11] : memref<128x128xf32, #tpu.memory_space<vmem>>, vector<128x128xf32>
      tpu.vector_store %arg8[%c0_10, %c0_11], %12 {strides = array<i32>} : memref<128x128xf32, #tpu.memory_space<vmem>>, vector<128x128xf32>,
    } else {
    }
    %c0 = arith.constant 0 : index
    %c0_1 = arith.constant 0 : index
    %3 = vector.load %arg8[%c0, %c0_1] : memref<128x128xf32, #tpu.memory_space<vmem>>, vector<128x128xf32>
    %c0_2 = arith.constant 0 : index
    %c0_3 = arith.constant 0 : index
    %4 = vector.load %arg3[%c0_2, %c0_3] : memref<128x128xbf16, #tpu.memory_space<vmem>>, vector<128x128xbf16>
    %c0_4 = arith.constant 0 : index
    %c0_5 = arith.constant 0 : index
    %5 = vector.load %arg4[%c0_4, %c0_5] : memref<128x128xbf16, #tpu.memory_space<vmem>>, vector<128x128xbf16>
    %cst = arith.constant dense<0.000000e+00> : vector<128x128xf32>
    %6 = tpu.matmul %4, %5, %cst {dimension_numbers = #tpu.dot_dimension_numbers<[1], [0], [0], [1], [0, 0, 1, 1], [], []>} : vector<128x128xbf16>, vector<128x128xbf16>, vector<128x128xf32> -> vector<128x128xf32>
    %7 = arith.addf %3, %6 : vector<128x128xf32>
    %c0_6 = arith.constant 0 : index
    %c0_7 = arith.constant 0 : index
    %8 = vector.load %arg8[%c0_6, %c0_7] : memref<128x128xf32, #tpu.memory_space<vmem>>, vector<128x128xf32>
    tpu.vector_store %arg8[%c0_6, %c0_7], %7 {strides = array<i32>} : memref<128x128xf32, #tpu.memory_space<vmem>>, vector<128x128xf32>,
    %c4_i32 = arith.constant 4 : i32
    %9 = arith.cmpi eq, %arg2, %c4_i32 : i32
    %10 = arith.extui %9 : i1 to i32
    %c0_i32_8 = arith.constant 0 : i32
    %11 = arith.cmpi ne, %10, %c0_i32_8 : i32
    scf.if %11 {
      %c0_9 = arith.constant 0 : index
      %c0_10 = arith.constant 0 : index
      %12 = vector.load %arg8[%c0_9, %c0_10] : memref<128x128xf32, #tpu.memory_space<vmem>>, vector<128x128xf32>
      %c0_11 = arith.constant 0 : index
      %c0_12 = arith.constant 0 : index
      %13 = vector.load %arg5[%c0_11, %c0_12] : memref<1x128xf32, #tpu.memory_space<vmem>>, vector<1x128xf32>
      %14 = vector.broadcast %13 : vector<1x128xf32> to vector<128x128xf32>
      %15 = arith.mulf %12, %14 : vector<128x128xf32>
      %c0_13 = arith.constant 0 : index
      %c0_14 = arith.constant 0 : index
      %16 = vector.load %arg6[%c0_13, %c0_14] : memref<1x128xf32, #tpu.memory_space<vmem>>, vector<1x128xf32>
      %17 = vector.broadcast %16 : vector<1x128xf32> to vector<128x128xf32>
      %18 = arith.addf %15, %17 : vector<128x128xf32>
      %cst_15 = arith.constant 0.000000e+00 : f32
      %19 = vector.broadcast %cst_15 : f32 to vector<128x128xf32>
      %20 = arith.maximumf %18, %19 : vector<128x128xf32>
      %21 = arith.truncf %20 : vector<128x128xf32> to vector<128x128xbf16>
      %c0_16 = arith.constant 0 : index
      %c0_17 = arith.constant 0 : index
      %22 = vector.load %arg7[%c0_16, %c0_17] : memref<128x128xbf16, #tpu.memory_space<vmem>>, vector<128x128xbf16>
      tpu.vector_store %arg7[%c0_16, %c0_17], %21 {strides = array<i32>} : memref<128x128xbf16, #tpu.memory_space<vmem>>, vector<128x128xbf16>,
    } else {
    }
    return
  }
  func.func @transform_0(%arg0: i32, %arg1: i32, %arg2: i32) -> (i32, i32) {
    %c0_i32 = arith.constant 0 : i32
    return %arg0, %arg2 : i32, i32
  }
  func.func @transform_1(%arg0: i32, %arg1: i32, %arg2: i32) -> (i32, i32) {
    %c0_i32 = arith.constant 0 : i32
    return %arg2, %arg1 : i32, i32
  }
  func.func @transform_2(%arg0: i32, %arg1: i32, %arg2: i32) -> (i32, i32) {
    %c0_i32 = arith.constant 0 : i32
    %c0_i32_0 = arith.constant 0 : i32
    return %c0_i32, %arg1 : i32, i32
  }
  func.func @transform_3(%arg0: i32, %arg1: i32, %arg2: i32) -> (i32, i32) {
    %c0_i32 = arith.constant 0 : i32
    %c0_i32_0 = arith.constant 0 : i32
    return %c0_i32, %arg1 : i32, i32
  }
  func.func @transform_4(%arg0: i32, %arg1: i32, %arg2: i32) -> (i32, i32) {
    %c0_i32 = arith.constant 0 : i32
    return %arg0, %arg1 : i32, i32
  }
}

module attributes {stable_mosaic.version = 11 : i64} {
  func.func @_mm_affine_res_kernel(%arg0: i32, %arg1: i32, %arg2: i32, %arg3: memref<128x128xbf16, #tpu.memory_space<vmem>>, %arg4: memref<128x128xbf16, #tpu.memory_space<vmem>>, %arg5: memref<1x128xf32, #tpu.memory_space<vmem>>, %arg6: memref<1x128xf32, #tpu.memory_space<vmem>>, %arg7: memref<128x128xbf16, #tpu.memory_space<vmem>>, %arg8: memref<128x128xbf16, #tpu.memory_space<vmem>>, %arg9: memref<128x128xf32, #tpu.memory_space<vmem>>) attributes {dimension_semantics = [#tpu.dimension_semantics<parallel>, #tpu.dimension_semantics<parallel>, #tpu.dimension_semantics<arbitrary>], iteration_bounds = array<i64: 1, 1, 5>, scalar_prefetch = 0 : i64, scratch_operands = 1 : i64, tpu.core_type = #tpu.core_type<tc>, window_params = [{transform_indices = @transform_0, window_bounds = array<i64: 128, 128>}, {transform_indices = @transform_1, window_bounds = array<i64: 128, 128>}, {transform_indices = @transform_2, window_bounds = array<i64: 1, 128>}, {transform_indices = @transform_3, window_bounds = array<i64: 1, 128>}, {transform_indices = @transform_4, window_bounds = array<i64: 128, 128>}, {transform_indices = @transform_5, window_bounds = array<i64: 128, 128>}]} {
    %c0_i32 = arith.constant 0 : i32
    %0 = arith.cmpi eq, %arg2, %c0_i32 : i32
    %1 = arith.extui %0 : i1 to i32
    %c0_i32_0 = arith.constant 0 : i32
    %2 = arith.cmpi ne, %1, %c0_i32_0 : i32
    scf.if %2 {
      %cst_9 = arith.constant 0.000000e+00 : f32
      %12 = vector.broadcast %cst_9 : f32 to vector<128x128xf32>
      %c0_10 = arith.constant 0 : index
      %c0_11 = arith.constant 0 : index
      %13 = vector.load %arg9[%c0_10, %c0_11] : memref<128x128xf32, #tpu.memory_space<vmem>>, vector<128x128xf32>
      tpu.vector_store %arg9[%c0_10, %c0_11], %12 {strides = array<i32>} : memref<128x128xf32, #tpu.memory_space<vmem>>, vector<128x128xf32>,
    } else {
    }
    %c0 = arith.constant 0 : index
    %c0_1 = arith.constant 0 : index
    %3 = vector.load %arg9[%c0, %c0_1] : memref<128x128xf32, #tpu.memory_space<vmem>>, vector<128x128xf32>
    %c0_2 = arith.constant 0 : index
    %c0_3 = arith.constant 0 : index
    %4 = vector.load %arg3[%c0_2, %c0_3] : memref<128x128xbf16, #tpu.memory_space<vmem>>, vector<128x128xbf16>
    %c0_4 = arith.constant 0 : index
    %c0_5 = arith.constant 0 : index
    %5 = vector.load %arg4[%c0_4, %c0_5] : memref<128x128xbf16, #tpu.memory_space<vmem>>, vector<128x128xbf16>
    %cst = arith.constant dense<0.000000e+00> : vector<128x128xf32>
    %6 = tpu.matmul %4, %5, %cst {dimension_numbers = #tpu.dot_dimension_numbers<[1], [0], [0], [1], [0, 0, 1, 1], [], []>} : vector<128x128xbf16>, vector<128x128xbf16>, vector<128x128xf32> -> vector<128x128xf32>
    %7 = arith.addf %3, %6 : vector<128x128xf32>
    %c0_6 = arith.constant 0 : index
    %c0_7 = arith.constant 0 : index
    %8 = vector.load %arg9[%c0_6, %c0_7] : memref<128x128xf32, #tpu.memory_space<vmem>>, vector<128x128xf32>
    tpu.vector_store %arg9[%c0_6, %c0_7], %7 {strides = array<i32>} : memref<128x128xf32, #tpu.memory_space<vmem>>, vector<128x128xf32>,
    %c4_i32 = arith.constant 4 : i32
    %9 = arith.cmpi eq, %arg2, %c4_i32 : i32
    %10 = arith.extui %9 : i1 to i32
    %c0_i32_8 = arith.constant 0 : i32
    %11 = arith.cmpi ne, %10, %c0_i32_8 : i32
    scf.if %11 {
      %c0_9 = arith.constant 0 : index
      %c0_10 = arith.constant 0 : index
      %12 = vector.load %arg9[%c0_9, %c0_10] : memref<128x128xf32, #tpu.memory_space<vmem>>, vector<128x128xf32>
      %c0_11 = arith.constant 0 : index
      %c0_12 = arith.constant 0 : index
      %13 = vector.load %arg5[%c0_11, %c0_12] : memref<1x128xf32, #tpu.memory_space<vmem>>, vector<1x128xf32>
      %14 = vector.broadcast %13 : vector<1x128xf32> to vector<128x128xf32>
      %15 = arith.mulf %12, %14 : vector<128x128xf32>
      %c0_13 = arith.constant 0 : index
      %c0_14 = arith.constant 0 : index
      %16 = vector.load %arg6[%c0_13, %c0_14] : memref<1x128xf32, #tpu.memory_space<vmem>>, vector<1x128xf32>
      %17 = vector.broadcast %16 : vector<1x128xf32> to vector<128x128xf32>
      %18 = arith.addf %15, %17 : vector<128x128xf32>
      %c0_15 = arith.constant 0 : index
      %c0_16 = arith.constant 0 : index
      %19 = vector.load %arg7[%c0_15, %c0_16] : memref<128x128xbf16, #tpu.memory_space<vmem>>, vector<128x128xbf16>
      %20 = arith.extf %19 : vector<128x128xbf16> to vector<128x128xf32>
      %21 = arith.addf %18, %20 : vector<128x128xf32>
      %cst_17 = arith.constant 0.000000e+00 : f32
      %22 = vector.broadcast %cst_17 : f32 to vector<128x128xf32>
      %23 = arith.maximumf %21, %22 : vector<128x128xf32>
      %24 = arith.truncf %23 : vector<128x128xf32> to vector<128x128xbf16>
      %c0_18 = arith.constant 0 : index
      %c0_19 = arith.constant 0 : index
      %25 = vector.load %arg8[%c0_18, %c0_19] : memref<128x128xbf16, #tpu.memory_space<vmem>>, vector<128x128xbf16>
      tpu.vector_store %arg8[%c0_18, %c0_19], %24 {strides = array<i32>} : memref<128x128xbf16, #tpu.memory_space<vmem>>, vector<128x128xbf16>,
    } else {
    }
    return
  }
  func.func @transform_0(%arg0: i32, %arg1: i32, %arg2: i32) -> (i32, i32) {
    %c0_i32 = arith.constant 0 : i32
    return %arg0, %arg2 : i32, i32
  }
  func.func @transform_1(%arg0: i32, %arg1: i32, %arg2: i32) -> (i32, i32) {
    %c0_i32 = arith.constant 0 : i32
    return %arg2, %arg1 : i32, i32
  }
  func.func @transform_2(%arg0: i32, %arg1: i32, %arg2: i32) -> (i32, i32) {
    %c0_i32 = arith.constant 0 : i32
    %c0_i32_0 = arith.constant 0 : i32
    return %c0_i32, %arg1 : i32, i32
  }
  func.func @transform_3(%arg0: i32, %arg1: i32, %arg2: i32) -> (i32, i32) {
    %c0_i32 = arith.constant 0 : i32
    %c0_i32_0 = arith.constant 0 : i32
    return %c0_i32, %arg1 : i32, i32
  }
  func.func @transform_4(%arg0: i32, %arg1: i32, %arg2: i32) -> (i32, i32) {
    %c0_i32 = arith.constant 0 : i32
    return %arg0, %arg1 : i32, i32
  }
  func.func @transform_5(%arg0: i32, %arg1: i32, %arg2: i32) -> (i32, i32) {
    %c0_i32 = arith.constant 0 : i32
    return %arg0, %arg1 : i32, i32
  }
}

module attributes {stable_mosaic.version = 11 : i64} {
  func.func @_mm_affine_kernel(%arg0: i32, %arg1: i32, %arg2: i32, %arg3: memref<32x128xbf16, #tpu.memory_space<vmem>>, %arg4: memref<128x128xbf16, #tpu.memory_space<vmem>>, %arg5: memref<1x128xf32, #tpu.memory_space<vmem>>, %arg6: memref<1x128xf32, #tpu.memory_space<vmem>>, %arg7: memref<32x128xbf16, #tpu.memory_space<vmem>>, %arg8: memref<32x128xf32, #tpu.memory_space<vmem>>) attributes {dimension_semantics = [#tpu.dimension_semantics<parallel>, #tpu.dimension_semantics<parallel>, #tpu.dimension_semantics<arbitrary>], iteration_bounds = array<i64: 1, 1, 5>, scalar_prefetch = 0 : i64, scratch_operands = 1 : i64, tpu.core_type = #tpu.core_type<tc>, window_params = [{transform_indices = @transform_0, window_bounds = array<i64: 32, 128>}, {transform_indices = @transform_1, window_bounds = array<i64: 128, 128>}, {transform_indices = @transform_2, window_bounds = array<i64: 1, 128>}, {transform_indices = @transform_3, window_bounds = array<i64: 1, 128>}, {transform_indices = @transform_4, window_bounds = array<i64: 32, 128>}]} {
    %c0_i32 = arith.constant 0 : i32
    %0 = arith.cmpi eq, %arg2, %c0_i32 : i32
    %1 = arith.extui %0 : i1 to i32
    %c0_i32_0 = arith.constant 0 : i32
    %2 = arith.cmpi ne, %1, %c0_i32_0 : i32
    scf.if %2 {
      %cst_9 = arith.constant 0.000000e+00 : f32
      %12 = vector.broadcast %cst_9 : f32 to vector<32x128xf32>
      %c0_10 = arith.constant 0 : index
      %c0_11 = arith.constant 0 : index
      %13 = vector.load %arg8[%c0_10, %c0_11] : memref<32x128xf32, #tpu.memory_space<vmem>>, vector<32x128xf32>
      tpu.vector_store %arg8[%c0_10, %c0_11], %12 {strides = array<i32>} : memref<32x128xf32, #tpu.memory_space<vmem>>, vector<32x128xf32>,
    } else {
    }
    %c0 = arith.constant 0 : index
    %c0_1 = arith.constant 0 : index
    %3 = vector.load %arg8[%c0, %c0_1] : memref<32x128xf32, #tpu.memory_space<vmem>>, vector<32x128xf32>
    %c0_2 = arith.constant 0 : index
    %c0_3 = arith.constant 0 : index
    %4 = vector.load %arg3[%c0_2, %c0_3] : memref<32x128xbf16, #tpu.memory_space<vmem>>, vector<32x128xbf16>
    %c0_4 = arith.constant 0 : index
    %c0_5 = arith.constant 0 : index
    %5 = vector.load %arg4[%c0_4, %c0_5] : memref<128x128xbf16, #tpu.memory_space<vmem>>, vector<128x128xbf16>
    %cst = arith.constant dense<0.000000e+00> : vector<32x128xf32>
    %6 = tpu.matmul %4, %5, %cst {dimension_numbers = #tpu.dot_dimension_numbers<[1], [0], [0], [1], [0, 0, 1, 1], [], []>} : vector<32x128xbf16>, vector<128x128xbf16>, vector<32x128xf32> -> vector<32x128xf32>
    %7 = arith.addf %3, %6 : vector<32x128xf32>
    %c0_6 = arith.constant 0 : index
    %c0_7 = arith.constant 0 : index
    %8 = vector.load %arg8[%c0_6, %c0_7] : memref<32x128xf32, #tpu.memory_space<vmem>>, vector<32x128xf32>
    tpu.vector_store %arg8[%c0_6, %c0_7], %7 {strides = array<i32>} : memref<32x128xf32, #tpu.memory_space<vmem>>, vector<32x128xf32>,
    %c4_i32 = arith.constant 4 : i32
    %9 = arith.cmpi eq, %arg2, %c4_i32 : i32
    %10 = arith.extui %9 : i1 to i32
    %c0_i32_8 = arith.constant 0 : i32
    %11 = arith.cmpi ne, %10, %c0_i32_8 : i32
    scf.if %11 {
      %c0_9 = arith.constant 0 : index
      %c0_10 = arith.constant 0 : index
      %12 = vector.load %arg8[%c0_9, %c0_10] : memref<32x128xf32, #tpu.memory_space<vmem>>, vector<32x128xf32>
      %c0_11 = arith.constant 0 : index
      %c0_12 = arith.constant 0 : index
      %13 = vector.load %arg5[%c0_11, %c0_12] : memref<1x128xf32, #tpu.memory_space<vmem>>, vector<1x128xf32>
      %14 = vector.broadcast %13 : vector<1x128xf32> to vector<32x128xf32>
      %15 = arith.mulf %12, %14 : vector<32x128xf32>
      %c0_13 = arith.constant 0 : index
      %c0_14 = arith.constant 0 : index
      %16 = vector.load %arg6[%c0_13, %c0_14] : memref<1x128xf32, #tpu.memory_space<vmem>>, vector<1x128xf32>
      %17 = vector.broadcast %16 : vector<1x128xf32> to vector<32x128xf32>
      %18 = arith.addf %15, %17 : vector<32x128xf32>
      %cst_15 = arith.constant 0.000000e+00 : f32
      %19 = vector.broadcast %cst_15 : f32 to vector<32x128xf32>
      %20 = arith.maximumf %18, %19 : vector<32x128xf32>
      %21 = arith.truncf %20 : vector<32x128xf32> to vector<32x128xbf16>
      %c0_16 = arith.constant 0 : index
      %c0_17 = arith.constant 0 : index
      %22 = vector.load %arg7[%c0_16, %c0_17] : memref<32x128xbf16, #tpu.memory_space<vmem>>, vector<32x128xbf16>
      tpu.vector_store %arg7[%c0_16, %c0_17], %21 {strides = array<i32>} : memref<32x128xbf16, #tpu.memory_space<vmem>>, vector<32x128xbf16>,
    } else {
    }
    return
  }
  func.func @transform_0(%arg0: i32, %arg1: i32, %arg2: i32) -> (i32, i32) {
    %c0_i32 = arith.constant 0 : i32
    return %arg0, %arg2 : i32, i32
  }
  func.func @transform_1(%arg0: i32, %arg1: i32, %arg2: i32) -> (i32, i32) {
    %c0_i32 = arith.constant 0 : i32
    return %arg2, %arg1 : i32, i32
  }
  func.func @transform_2(%arg0: i32, %arg1: i32, %arg2: i32) -> (i32, i32) {
    %c0_i32 = arith.constant 0 : i32
    %c0_i32_0 = arith.constant 0 : i32
    return %c0_i32, %arg1 : i32, i32
  }
  func.func @transform_3(%arg0: i32, %arg1: i32, %arg2: i32) -> (i32, i32) {
    %c0_i32 = arith.constant 0 : i32
    %c0_i32_0 = arith.constant 0 : i32
    return %c0_i32, %arg1 : i32, i32
  }
  func.func @transform_4(%arg0: i32, %arg1: i32, %arg2: i32) -> (i32, i32) {
    %c0_i32 = arith.constant 0 : i32
    return %arg0, %arg1 : i32, i32
  }
}

module attributes {stable_mosaic.version = 11 : i64} {
  func.func @_mm_affine_res_kernel(%arg0: i32, %arg1: i32, %arg2: i32, %arg3: memref<32x128xbf16, #tpu.memory_space<vmem>>, %arg4: memref<128x128xbf16, #tpu.memory_space<vmem>>, %arg5: memref<1x128xf32, #tpu.memory_space<vmem>>, %arg6: memref<1x128xf32, #tpu.memory_space<vmem>>, %arg7: memref<32x128xbf16, #tpu.memory_space<vmem>>, %arg8: memref<32x128xbf16, #tpu.memory_space<vmem>>, %arg9: memref<32x128xf32, #tpu.memory_space<vmem>>) attributes {dimension_semantics = [#tpu.dimension_semantics<parallel>, #tpu.dimension_semantics<parallel>, #tpu.dimension_semantics<arbitrary>], iteration_bounds = array<i64: 1, 1, 9>, scalar_prefetch = 0 : i64, scratch_operands = 1 : i64, tpu.core_type = #tpu.core_type<tc>, window_params = [{transform_indices = @transform_0, window_bounds = array<i64: 32, 128>}, {transform_indices = @transform_1, window_bounds = array<i64: 128, 128>}, {transform_indices = @transform_2, window_bounds = array<i64: 1, 128>}, {transform_indices = @transform_3, window_bounds = array<i64: 1, 128>}, {transform_indices = @transform_4, window_bounds = array<i64: 32, 128>}, {transform_indices = @transform_5, window_bounds = array<i64: 32, 128>}]} {
    %c0_i32 = arith.constant 0 : i32
    %0 = arith.cmpi eq, %arg2, %c0_i32 : i32
    %1 = arith.extui %0 : i1 to i32
    %c0_i32_0 = arith.constant 0 : i32
    %2 = arith.cmpi ne, %1, %c0_i32_0 : i32
    scf.if %2 {
      %cst_9 = arith.constant 0.000000e+00 : f32
      %12 = vector.broadcast %cst_9 : f32 to vector<32x128xf32>
      %c0_10 = arith.constant 0 : index
      %c0_11 = arith.constant 0 : index
      %13 = vector.load %arg9[%c0_10, %c0_11] : memref<32x128xf32, #tpu.memory_space<vmem>>, vector<32x128xf32>
      tpu.vector_store %arg9[%c0_10, %c0_11], %12 {strides = array<i32>} : memref<32x128xf32, #tpu.memory_space<vmem>>, vector<32x128xf32>,
    } else {
    }
    %c0 = arith.constant 0 : index
    %c0_1 = arith.constant 0 : index
    %3 = vector.load %arg9[%c0, %c0_1] : memref<32x128xf32, #tpu.memory_space<vmem>>, vector<32x128xf32>
    %c0_2 = arith.constant 0 : index
    %c0_3 = arith.constant 0 : index
    %4 = vector.load %arg3[%c0_2, %c0_3] : memref<32x128xbf16, #tpu.memory_space<vmem>>, vector<32x128xbf16>
    %c0_4 = arith.constant 0 : index
    %c0_5 = arith.constant 0 : index
    %5 = vector.load %arg4[%c0_4, %c0_5] : memref<128x128xbf16, #tpu.memory_space<vmem>>, vector<128x128xbf16>
    %cst = arith.constant dense<0.000000e+00> : vector<32x128xf32>
    %6 = tpu.matmul %4, %5, %cst {dimension_numbers = #tpu.dot_dimension_numbers<[1], [0], [0], [1], [0, 0, 1, 1], [], []>} : vector<32x128xbf16>, vector<128x128xbf16>, vector<32x128xf32> -> vector<32x128xf32>
    %7 = arith.addf %3, %6 : vector<32x128xf32>
    %c0_6 = arith.constant 0 : index
    %c0_7 = arith.constant 0 : index
    %8 = vector.load %arg9[%c0_6, %c0_7] : memref<32x128xf32, #tpu.memory_space<vmem>>, vector<32x128xf32>
    tpu.vector_store %arg9[%c0_6, %c0_7], %7 {strides = array<i32>} : memref<32x128xf32, #tpu.memory_space<vmem>>, vector<32x128xf32>,
    %c8_i32 = arith.constant 8 : i32
    %9 = arith.cmpi eq, %arg2, %c8_i32 : i32
    %10 = arith.extui %9 : i1 to i32
    %c0_i32_8 = arith.constant 0 : i32
    %11 = arith.cmpi ne, %10, %c0_i32_8 : i32
    scf.if %11 {
      %c0_9 = arith.constant 0 : index
      %c0_10 = arith.constant 0 : index
      %12 = vector.load %arg9[%c0_9, %c0_10] : memref<32x128xf32, #tpu.memory_space<vmem>>, vector<32x128xf32>
      %c0_11 = arith.constant 0 : index
      %c0_12 = arith.constant 0 : index
      %13 = vector.load %arg5[%c0_11, %c0_12] : memref<1x128xf32, #tpu.memory_space<vmem>>, vector<1x128xf32>
      %14 = vector.broadcast %13 : vector<1x128xf32> to vector<32x128xf32>
      %15 = arith.mulf %12, %14 : vector<32x128xf32>
      %c0_13 = arith.constant 0 : index
      %c0_14 = arith.constant 0 : index
      %16 = vector.load %arg6[%c0_13, %c0_14] : memref<1x128xf32, #tpu.memory_space<vmem>>, vector<1x128xf32>
      %17 = vector.broadcast %16 : vector<1x128xf32> to vector<32x128xf32>
      %18 = arith.addf %15, %17 : vector<32x128xf32>
      %c0_15 = arith.constant 0 : index
      %c0_16 = arith.constant 0 : index
      %19 = vector.load %arg7[%c0_15, %c0_16] : memref<32x128xbf16, #tpu.memory_space<vmem>>, vector<32x128xbf16>
      %20 = arith.extf %19 : vector<32x128xbf16> to vector<32x128xf32>
      %21 = arith.addf %18, %20 : vector<32x128xf32>
      %cst_17 = arith.constant 0.000000e+00 : f32
      %22 = vector.broadcast %cst_17 : f32 to vector<32x128xf32>
      %23 = arith.maximumf %21, %22 : vector<32x128xf32>
      %24 = arith.truncf %23 : vector<32x128xf32> to vector<32x128xbf16>
      %c0_18 = arith.constant 0 : index
      %c0_19 = arith.constant 0 : index
      %25 = vector.load %arg8[%c0_18, %c0_19] : memref<32x128xbf16, #tpu.memory_space<vmem>>, vector<32x128xbf16>
      tpu.vector_store %arg8[%c0_18, %c0_19], %24 {strides = array<i32>} : memref<32x128xbf16, #tpu.memory_space<vmem>>, vector<32x128xbf16>,
    } else {
    }
    return
  }
  func.func @transform_0(%arg0: i32, %arg1: i32, %arg2: i32) -> (i32, i32) {
    %c0_i32 = arith.constant 0 : i32
    return %arg0, %arg2 : i32, i32
  }
  func.func @transform_1(%arg0: i32, %arg1: i32, %arg2: i32) -> (i32, i32) {
    %c0_i32 = arith.constant 0 : i32
    return %arg2, %arg1 : i32, i32
  }
  func.func @transform_2(%arg0: i32, %arg1: i32, %arg2: i32) -> (i32, i32) {
    %c0_i32 = arith.constant 0 : i32
    %c0_i32_0 = arith.constant 0 : i32
    return %c0_i32, %arg1 : i32, i32
  }
  func.func @transform_3(%arg0: i32, %arg1: i32, %arg2: i32) -> (i32, i32) {
    %c0_i32 = arith.constant 0 : i32
    %c0_i32_0 = arith.constant 0 : i32
    return %c0_i32, %arg1 : i32, i32
  }
  func.func @transform_4(%arg0: i32, %arg1: i32, %arg2: i32) -> (i32, i32) {
    %c0_i32 = arith.constant 0 : i32
    return %arg0, %arg1 : i32, i32
  }
  func.func @transform_5(%arg0: i32, %arg1: i32, %arg2: i32) -> (i32, i32) {
    %c0_i32 = arith.constant 0 : i32
    return %arg0, %arg1 : i32, i32
  }
}

module attributes {stable_mosaic.version = 11 : i64} {
  func.func @_mm_affine_kernel(%arg0: i32, %arg1: i32, %arg2: i32, %arg3: memref<32x128xbf16, #tpu.memory_space<vmem>>, %arg4: memref<128x128xbf16, #tpu.memory_space<vmem>>, %arg5: memref<1x128xf32, #tpu.memory_space<vmem>>, %arg6: memref<1x128xf32, #tpu.memory_space<vmem>>, %arg7: memref<32x128xbf16, #tpu.memory_space<vmem>>, %arg8: memref<32x128xf32, #tpu.memory_space<vmem>>) attributes {dimension_semantics = [#tpu.dimension_semantics<parallel>, #tpu.dimension_semantics<parallel>, #tpu.dimension_semantics<arbitrary>], iteration_bounds = array<i64: 1, 1, 1>, scalar_prefetch = 0 : i64, scratch_operands = 1 : i64, tpu.core_type = #tpu.core_type<tc>, window_params = [{transform_indices = @transform_0, window_bounds = array<i64: 32, 128>}, {transform_indices = @transform_1, window_bounds = array<i64: 128, 128>}, {transform_indices = @transform_2, window_bounds = array<i64: 1, 128>}, {transform_indices = @transform_3, window_bounds = array<i64: 1, 128>}, {transform_indices = @transform_4, window_bounds = array<i64: 32, 128>}]} {
    %c0_i32 = arith.constant 0 : i32
    %0 = arith.cmpi eq, %arg2, %c0_i32 : i32
    %1 = arith.extui %0 : i1 to i32
    %c0_i32_0 = arith.constant 0 : i32
    %2 = arith.cmpi ne, %1, %c0_i32_0 : i32
    scf.if %2 {
      %cst_10 = arith.constant 0.000000e+00 : f32
      %12 = vector.broadcast %cst_10 : f32 to vector<32x128xf32>
      %c0_11 = arith.constant 0 : index
      %c0_12 = arith.constant 0 : index
      %13 = vector.load %arg8[%c0_11, %c0_12] : memref<32x128xf32, #tpu.memory_space<vmem>>, vector<32x128xf32>
      tpu.vector_store %arg8[%c0_11, %c0_12], %12 {strides = array<i32>} : memref<32x128xf32, #tpu.memory_space<vmem>>, vector<32x128xf32>,
    } else {
    }
    %c0 = arith.constant 0 : index
    %c0_1 = arith.constant 0 : index
    %3 = vector.load %arg8[%c0, %c0_1] : memref<32x128xf32, #tpu.memory_space<vmem>>, vector<32x128xf32>
    %c0_2 = arith.constant 0 : index
    %c0_3 = arith.constant 0 : index
    %4 = vector.load %arg3[%c0_2, %c0_3] : memref<32x128xbf16, #tpu.memory_space<vmem>>, vector<32x128xbf16>
    %c0_4 = arith.constant 0 : index
    %c0_5 = arith.constant 0 : index
    %5 = vector.load %arg4[%c0_4, %c0_5] : memref<128x128xbf16, #tpu.memory_space<vmem>>, vector<128x128xbf16>
    %cst = arith.constant dense<0.000000e+00> : vector<32x128xf32>
    %6 = tpu.matmul %4, %5, %cst {dimension_numbers = #tpu.dot_dimension_numbers<[1], [0], [0], [1], [0, 0, 1, 1], [], []>} : vector<32x128xbf16>, vector<128x128xbf16>, vector<32x128xf32> -> vector<32x128xf32>
    %7 = arith.addf %3, %6 : vector<32x128xf32>
    %c0_6 = arith.constant 0 : index
    %c0_7 = arith.constant 0 : index
    %8 = vector.load %arg8[%c0_6, %c0_7] : memref<32x128xf32, #tpu.memory_space<vmem>>, vector<32x128xf32>
    tpu.vector_store %arg8[%c0_6, %c0_7], %7 {strides = array<i32>} : memref<32x128xf32, #tpu.memory_space<vmem>>, vector<32x128xf32>,
    %c0_i32_8 = arith.constant 0 : i32
    %9 = arith.cmpi eq, %arg2, %c0_i32_8 : i32
    %10 = arith.extui %9 : i1 to i32
    %c0_i32_9 = arith.constant 0 : i32
    %11 = arith.cmpi ne, %10, %c0_i32_9 : i32
    scf.if %11 {
      %c0_10 = arith.constant 0 : index
      %c0_11 = arith.constant 0 : index
      %12 = vector.load %arg8[%c0_10, %c0_11] : memref<32x128xf32, #tpu.memory_space<vmem>>, vector<32x128xf32>
      %c0_12 = arith.constant 0 : index
      %c0_13 = arith.constant 0 : index
      %13 = vector.load %arg5[%c0_12, %c0_13] : memref<1x128xf32, #tpu.memory_space<vmem>>, vector<1x128xf32>
      %14 = vector.broadcast %13 : vector<1x128xf32> to vector<32x128xf32>
      %15 = arith.mulf %12, %14 : vector<32x128xf32>
      %c0_14 = arith.constant 0 : index
      %c0_15 = arith.constant 0 : index
      %16 = vector.load %arg6[%c0_14, %c0_15] : memref<1x128xf32, #tpu.memory_space<vmem>>, vector<1x128xf32>
      %17 = vector.broadcast %16 : vector<1x128xf32> to vector<32x128xf32>
      %18 = arith.addf %15, %17 : vector<32x128xf32>
      %19 = arith.truncf %18 : vector<32x128xf32> to vector<32x128xbf16>
      %c0_16 = arith.constant 0 : index
      %c0_17 = arith.constant 0 : index
      %20 = vector.load %arg7[%c0_16, %c0_17] : memref<32x128xbf16, #tpu.memory_space<vmem>>, vector<32x128xbf16>
      tpu.vector_store %arg7[%c0_16, %c0_17], %19 {strides = array<i32>} : memref<32x128xbf16, #tpu.memory_space<vmem>>, vector<32x128xbf16>,
    } else {
    }
    return
  }
  func.func @transform_0(%arg0: i32, %arg1: i32, %arg2: i32) -> (i32, i32) {
    %c0_i32 = arith.constant 0 : i32
    return %arg0, %arg2 : i32, i32
  }
  func.func @transform_1(%arg0: i32, %arg1: i32, %arg2: i32) -> (i32, i32) {
    %c0_i32 = arith.constant 0 : i32
    return %arg2, %arg1 : i32, i32
  }
  func.func @transform_2(%arg0: i32, %arg1: i32, %arg2: i32) -> (i32, i32) {
    %c0_i32 = arith.constant 0 : i32
    %c0_i32_0 = arith.constant 0 : i32
    return %c0_i32, %arg1 : i32, i32
  }
  func.func @transform_3(%arg0: i32, %arg1: i32, %arg2: i32) -> (i32, i32) {
    %c0_i32 = arith.constant 0 : i32
    %c0_i32_0 = arith.constant 0 : i32
    return %c0_i32, %arg1 : i32, i32
  }
  func.func @transform_4(%arg0: i32, %arg1: i32, %arg2: i32) -> (i32, i32) {
    %c0_i32 = arith.constant 0 : i32
    return %arg0, %arg1 : i32, i32
  }
}

module attributes {stable_mosaic.version = 11 : i64} {
  func.func @_mm_affine_kernel(%arg0: i32, %arg1: i32, %arg2: i32, %arg3: memref<8x128xbf16, #tpu.memory_space<vmem>>, %arg4: memref<128x256xbf16, #tpu.memory_space<vmem>>, %arg5: memref<1x256xf32, #tpu.memory_space<vmem>>, %arg6: memref<1x256xf32, #tpu.memory_space<vmem>>, %arg7: memref<8x256xbf16, #tpu.memory_space<vmem>>, %arg8: memref<8x256xf32, #tpu.memory_space<vmem>>) attributes {dimension_semantics = [#tpu.dimension_semantics<parallel>, #tpu.dimension_semantics<parallel>, #tpu.dimension_semantics<arbitrary>], iteration_bounds = array<i64: 1, 1, 9>, scalar_prefetch = 0 : i64, scratch_operands = 1 : i64, tpu.core_type = #tpu.core_type<tc>, window_params = [{transform_indices = @transform_0, window_bounds = array<i64: 8, 128>}, {transform_indices = @transform_1, window_bounds = array<i64: 128, 256>}, {transform_indices = @transform_2, window_bounds = array<i64: 1, 256>}, {transform_indices = @transform_3, window_bounds = array<i64: 1, 256>}, {transform_indices = @transform_4, window_bounds = array<i64: 8, 256>}]} {
    %c0_i32 = arith.constant 0 : i32
    %0 = arith.cmpi eq, %arg2, %c0_i32 : i32
    %1 = arith.extui %0 : i1 to i32
    %c0_i32_0 = arith.constant 0 : i32
    %2 = arith.cmpi ne, %1, %c0_i32_0 : i32
    scf.if %2 {
      %cst_9 = arith.constant 0.000000e+00 : f32
      %12 = vector.broadcast %cst_9 : f32 to vector<8x256xf32>
      %c0_10 = arith.constant 0 : index
      %c0_11 = arith.constant 0 : index
      %13 = vector.load %arg8[%c0_10, %c0_11] : memref<8x256xf32, #tpu.memory_space<vmem>>, vector<8x256xf32>
      tpu.vector_store %arg8[%c0_10, %c0_11], %12 {strides = array<i32>} : memref<8x256xf32, #tpu.memory_space<vmem>>, vector<8x256xf32>,
    } else {
    }
    %c0 = arith.constant 0 : index
    %c0_1 = arith.constant 0 : index
    %3 = vector.load %arg8[%c0, %c0_1] : memref<8x256xf32, #tpu.memory_space<vmem>>, vector<8x256xf32>
    %c0_2 = arith.constant 0 : index
    %c0_3 = arith.constant 0 : index
    %4 = vector.load %arg3[%c0_2, %c0_3] : memref<8x128xbf16, #tpu.memory_space<vmem>>, vector<8x128xbf16>
    %c0_4 = arith.constant 0 : index
    %c0_5 = arith.constant 0 : index
    %5 = vector.load %arg4[%c0_4, %c0_5] : memref<128x256xbf16, #tpu.memory_space<vmem>>, vector<128x256xbf16>
    %cst = arith.constant dense<0.000000e+00> : vector<8x256xf32>
    %6 = tpu.matmul %4, %5, %cst {dimension_numbers = #tpu.dot_dimension_numbers<[1], [0], [0], [1], [0, 0, 1, 1], [], []>} : vector<8x128xbf16>, vector<128x256xbf16>, vector<8x256xf32> -> vector<8x256xf32>
    %7 = arith.addf %3, %6 : vector<8x256xf32>
    %c0_6 = arith.constant 0 : index
    %c0_7 = arith.constant 0 : index
    %8 = vector.load %arg8[%c0_6, %c0_7] : memref<8x256xf32, #tpu.memory_space<vmem>>, vector<8x256xf32>
    tpu.vector_store %arg8[%c0_6, %c0_7], %7 {strides = array<i32>} : memref<8x256xf32, #tpu.memory_space<vmem>>, vector<8x256xf32>,
    %c8_i32 = arith.constant 8 : i32
    %9 = arith.cmpi eq, %arg2, %c8_i32 : i32
    %10 = arith.extui %9 : i1 to i32
    %c0_i32_8 = arith.constant 0 : i32
    %11 = arith.cmpi ne, %10, %c0_i32_8 : i32
    scf.if %11 {
      %c0_9 = arith.constant 0 : index
      %c0_10 = arith.constant 0 : index
      %12 = vector.load %arg8[%c0_9, %c0_10] : memref<8x256xf32, #tpu.memory_space<vmem>>, vector<8x256xf32>
      %c0_11 = arith.constant 0 : index
      %c0_12 = arith.constant 0 : index
      %13 = vector.load %arg5[%c0_11, %c0_12] : memref<1x256xf32, #tpu.memory_space<vmem>>, vector<1x256xf32>
      %14 = vector.broadcast %13 : vector<1x256xf32> to vector<8x256xf32>
      %15 = arith.mulf %12, %14 : vector<8x256xf32>
      %c0_13 = arith.constant 0 : index
      %c0_14 = arith.constant 0 : index
      %16 = vector.load %arg6[%c0_13, %c0_14] : memref<1x256xf32, #tpu.memory_space<vmem>>, vector<1x256xf32>
      %17 = vector.broadcast %16 : vector<1x256xf32> to vector<8x256xf32>
      %18 = arith.addf %15, %17 : vector<8x256xf32>
      %cst_15 = arith.constant 0.000000e+00 : f32
      %19 = vector.broadcast %cst_15 : f32 to vector<8x256xf32>
      %20 = arith.maximumf %18, %19 : vector<8x256xf32>
      %21 = arith.truncf %20 : vector<8x256xf32> to vector<8x256xbf16>
      %c0_16 = arith.constant 0 : index
      %c0_17 = arith.constant 0 : index
      %22 = vector.load %arg7[%c0_16, %c0_17] : memref<8x256xbf16, #tpu.memory_space<vmem>>, vector<8x256xbf16>
      tpu.vector_store %arg7[%c0_16, %c0_17], %21 {strides = array<i32>} : memref<8x256xbf16, #tpu.memory_space<vmem>>, vector<8x256xbf16>,
    } else {
    }
    return
  }
  func.func @transform_0(%arg0: i32, %arg1: i32, %arg2: i32) -> (i32, i32) {
    %c0_i32 = arith.constant 0 : i32
    return %arg0, %arg2 : i32, i32
  }
  func.func @transform_1(%arg0: i32, %arg1: i32, %arg2: i32) -> (i32, i32) {
    %c0_i32 = arith.constant 0 : i32
    return %arg2, %arg1 : i32, i32
  }
  func.func @transform_2(%arg0: i32, %arg1: i32, %arg2: i32) -> (i32, i32) {
    %c0_i32 = arith.constant 0 : i32
    %c0_i32_0 = arith.constant 0 : i32
    return %c0_i32, %arg1 : i32, i32
  }
  func.func @transform_3(%arg0: i32, %arg1: i32, %arg2: i32) -> (i32, i32) {
    %c0_i32 = arith.constant 0 : i32
    %c0_i32_0 = arith.constant 0 : i32
    return %c0_i32, %arg1 : i32, i32
  }
  func.func @transform_4(%arg0: i32, %arg1: i32, %arg2: i32) -> (i32, i32) {
    %c0_i32 = arith.constant 0 : i32
    return %arg0, %arg1 : i32, i32
  }
}

module attributes {stable_mosaic.version = 11 : i64} {
  func.func @_mm_affine_kernel(%arg0: i32, %arg1: i32, %arg2: i32, %arg3: memref<8x128xbf16, #tpu.memory_space<vmem>>, %arg4: memref<128x256xbf16, #tpu.memory_space<vmem>>, %arg5: memref<1x256xf32, #tpu.memory_space<vmem>>, %arg6: memref<1x256xf32, #tpu.memory_space<vmem>>, %arg7: memref<8x256xbf16, #tpu.memory_space<vmem>>, %arg8: memref<8x256xf32, #tpu.memory_space<vmem>>) attributes {dimension_semantics = [#tpu.dimension_semantics<parallel>, #tpu.dimension_semantics<parallel>, #tpu.dimension_semantics<arbitrary>], iteration_bounds = array<i64: 1, 1, 1>, scalar_prefetch = 0 : i64, scratch_operands = 1 : i64, tpu.core_type = #tpu.core_type<tc>, window_params = [{transform_indices = @transform_0, window_bounds = array<i64: 8, 128>}, {transform_indices = @transform_1, window_bounds = array<i64: 128, 256>}, {transform_indices = @transform_2, window_bounds = array<i64: 1, 256>}, {transform_indices = @transform_3, window_bounds = array<i64: 1, 256>}, {transform_indices = @transform_4, window_bounds = array<i64: 8, 256>}]} {
    %c0_i32 = arith.constant 0 : i32
    %0 = arith.cmpi eq, %arg2, %c0_i32 : i32
    %1 = arith.extui %0 : i1 to i32
    %c0_i32_0 = arith.constant 0 : i32
    %2 = arith.cmpi ne, %1, %c0_i32_0 : i32
    scf.if %2 {
      %cst_10 = arith.constant 0.000000e+00 : f32
      %12 = vector.broadcast %cst_10 : f32 to vector<8x256xf32>
      %c0_11 = arith.constant 0 : index
      %c0_12 = arith.constant 0 : index
      %13 = vector.load %arg8[%c0_11, %c0_12] : memref<8x256xf32, #tpu.memory_space<vmem>>, vector<8x256xf32>
      tpu.vector_store %arg8[%c0_11, %c0_12], %12 {strides = array<i32>} : memref<8x256xf32, #tpu.memory_space<vmem>>, vector<8x256xf32>,
    } else {
    }
    %c0 = arith.constant 0 : index
    %c0_1 = arith.constant 0 : index
    %3 = vector.load %arg8[%c0, %c0_1] : memref<8x256xf32, #tpu.memory_space<vmem>>, vector<8x256xf32>
    %c0_2 = arith.constant 0 : index
    %c0_3 = arith.constant 0 : index
    %4 = vector.load %arg3[%c0_2, %c0_3] : memref<8x128xbf16, #tpu.memory_space<vmem>>, vector<8x128xbf16>
    %c0_4 = arith.constant 0 : index
    %c0_5 = arith.constant 0 : index
    %5 = vector.load %arg4[%c0_4, %c0_5] : memref<128x256xbf16, #tpu.memory_space<vmem>>, vector<128x256xbf16>
    %cst = arith.constant dense<0.000000e+00> : vector<8x256xf32>
    %6 = tpu.matmul %4, %5, %cst {dimension_numbers = #tpu.dot_dimension_numbers<[1], [0], [0], [1], [0, 0, 1, 1], [], []>} : vector<8x128xbf16>, vector<128x256xbf16>, vector<8x256xf32> -> vector<8x256xf32>
    %7 = arith.addf %3, %6 : vector<8x256xf32>
    %c0_6 = arith.constant 0 : index
    %c0_7 = arith.constant 0 : index
    %8 = vector.load %arg8[%c0_6, %c0_7] : memref<8x256xf32, #tpu.memory_space<vmem>>, vector<8x256xf32>
    tpu.vector_store %arg8[%c0_6, %c0_7], %7 {strides = array<i32>} : memref<8x256xf32, #tpu.memory_space<vmem>>, vector<8x256xf32>,
    %c0_i32_8 = arith.constant 0 : i32
    %9 = arith.cmpi eq, %arg2, %c0_i32_8 : i32
    %10 = arith.extui %9 : i1 to i32
    %c0_i32_9 = arith.constant 0 : i32
    %11 = arith.cmpi ne, %10, %c0_i32_9 : i32
    scf.if %11 {
      %c0_10 = arith.constant 0 : index
      %c0_11 = arith.constant 0 : index
      %12 = vector.load %arg8[%c0_10, %c0_11] : memref<8x256xf32, #tpu.memory_space<vmem>>, vector<8x256xf32>
      %c0_12 = arith.constant 0 : index
      %c0_13 = arith.constant 0 : index
      %13 = vector.load %arg5[%c0_12, %c0_13] : memref<1x256xf32, #tpu.memory_space<vmem>>, vector<1x256xf32>
      %14 = vector.broadcast %13 : vector<1x256xf32> to vector<8x256xf32>
      %15 = arith.mulf %12, %14 : vector<8x256xf32>
      %c0_14 = arith.constant 0 : index
      %c0_15 = arith.constant 0 : index
      %16 = vector.load %arg6[%c0_14, %c0_15] : memref<1x256xf32, #tpu.memory_space<vmem>>, vector<1x256xf32>
      %17 = vector.broadcast %16 : vector<1x256xf32> to vector<8x256xf32>
      %18 = arith.addf %15, %17 : vector<8x256xf32>
      %19 = arith.truncf %18 : vector<8x256xf32> to vector<8x256xbf16>
      %c0_16 = arith.constant 0 : index
      %c0_17 = arith.constant 0 : index
      %20 = vector.load %arg7[%c0_16, %c0_17] : memref<8x256xbf16, #tpu.memory_space<vmem>>, vector<8x256xbf16>
      tpu.vector_store %arg7[%c0_16, %c0_17], %19 {strides = array<i32>} : memref<8x256xbf16, #tpu.memory_space<vmem>>, vector<8x256xbf16>,
    } else {
    }
    return
  }
  func.func @transform_0(%arg0: i32, %arg1: i32, %arg2: i32) -> (i32, i32) {
    %c0_i32 = arith.constant 0 : i32
    return %arg0, %arg2 : i32, i32
  }
  func.func @transform_1(%arg0: i32, %arg1: i32, %arg2: i32) -> (i32, i32) {
    %c0_i32 = arith.constant 0 : i32
    return %arg2, %arg1 : i32, i32
  }
  func.func @transform_2(%arg0: i32, %arg1: i32, %arg2: i32) -> (i32, i32) {
    %c0_i32 = arith.constant 0 : i32
    %c0_i32_0 = arith.constant 0 : i32
    return %c0_i32, %arg1 : i32, i32
  }
  func.func @transform_3(%arg0: i32, %arg1: i32, %arg2: i32) -> (i32, i32) {
    %c0_i32 = arith.constant 0 : i32
    %c0_i32_0 = arith.constant 0 : i32
    return %c0_i32, %arg1 : i32, i32
  }
  func.func @transform_4(%arg0: i32, %arg1: i32, %arg2: i32) -> (i32, i32) {
    %c0_i32 = arith.constant 0 : i32
    return %arg0, %arg1 : i32, i32
  }
}

module attributes {stable_mosaic.version = 11 : i64} {
  func.func @_mm_affine_res_kernel(%arg0: i32, %arg1: i32, %arg2: i32, %arg3: memref<8x256xbf16, #tpu.memory_space<vmem>>, %arg4: memref<256x256xbf16, #tpu.memory_space<vmem>>, %arg5: memref<1x256xf32, #tpu.memory_space<vmem>>, %arg6: memref<1x256xf32, #tpu.memory_space<vmem>>, %arg7: memref<8x256xbf16, #tpu.memory_space<vmem>>, %arg8: memref<8x256xbf16, #tpu.memory_space<vmem>>, %arg9: memref<8x256xf32, #tpu.memory_space<vmem>>) attributes {dimension_semantics = [#tpu.dimension_semantics<parallel>, #tpu.dimension_semantics<parallel>, #tpu.dimension_semantics<arbitrary>], iteration_bounds = array<i64: 1, 1, 9>, scalar_prefetch = 0 : i64, scratch_operands = 1 : i64, tpu.core_type = #tpu.core_type<tc>, window_params = [{transform_indices = @transform_0, window_bounds = array<i64: 8, 256>}, {transform_indices = @transform_1, window_bounds = array<i64: 256, 256>}, {transform_indices = @transform_2, window_bounds = array<i64: 1, 256>}, {transform_indices = @transform_3, window_bounds = array<i64: 1, 256>}, {transform_indices = @transform_4, window_bounds = array<i64: 8, 256>}, {transform_indices = @transform_5, window_bounds = array<i64: 8, 256>}]} {
    %c0_i32 = arith.constant 0 : i32
    %0 = arith.cmpi eq, %arg2, %c0_i32 : i32
    %1 = arith.extui %0 : i1 to i32
    %c0_i32_0 = arith.constant 0 : i32
    %2 = arith.cmpi ne, %1, %c0_i32_0 : i32
    scf.if %2 {
      %cst_9 = arith.constant 0.000000e+00 : f32
      %12 = vector.broadcast %cst_9 : f32 to vector<8x256xf32>
      %c0_10 = arith.constant 0 : index
      %c0_11 = arith.constant 0 : index
      %13 = vector.load %arg9[%c0_10, %c0_11] : memref<8x256xf32, #tpu.memory_space<vmem>>, vector<8x256xf32>
      tpu.vector_store %arg9[%c0_10, %c0_11], %12 {strides = array<i32>} : memref<8x256xf32, #tpu.memory_space<vmem>>, vector<8x256xf32>,
    } else {
    }
    %c0 = arith.constant 0 : index
    %c0_1 = arith.constant 0 : index
    %3 = vector.load %arg9[%c0, %c0_1] : memref<8x256xf32, #tpu.memory_space<vmem>>, vector<8x256xf32>
    %c0_2 = arith.constant 0 : index
    %c0_3 = arith.constant 0 : index
    %4 = vector.load %arg3[%c0_2, %c0_3] : memref<8x256xbf16, #tpu.memory_space<vmem>>, vector<8x256xbf16>
    %c0_4 = arith.constant 0 : index
    %c0_5 = arith.constant 0 : index
    %5 = vector.load %arg4[%c0_4, %c0_5] : memref<256x256xbf16, #tpu.memory_space<vmem>>, vector<256x256xbf16>
    %cst = arith.constant dense<0.000000e+00> : vector<8x256xf32>
    %6 = tpu.matmul %4, %5, %cst {dimension_numbers = #tpu.dot_dimension_numbers<[1], [0], [0], [1], [0, 0, 1, 1], [], []>} : vector<8x256xbf16>, vector<256x256xbf16>, vector<8x256xf32> -> vector<8x256xf32>
    %7 = arith.addf %3, %6 : vector<8x256xf32>
    %c0_6 = arith.constant 0 : index
    %c0_7 = arith.constant 0 : index
    %8 = vector.load %arg9[%c0_6, %c0_7] : memref<8x256xf32, #tpu.memory_space<vmem>>, vector<8x256xf32>
    tpu.vector_store %arg9[%c0_6, %c0_7], %7 {strides = array<i32>} : memref<8x256xf32, #tpu.memory_space<vmem>>, vector<8x256xf32>,
    %c8_i32 = arith.constant 8 : i32
    %9 = arith.cmpi eq, %arg2, %c8_i32 : i32
    %10 = arith.extui %9 : i1 to i32
    %c0_i32_8 = arith.constant 0 : i32
    %11 = arith.cmpi ne, %10, %c0_i32_8 : i32
    scf.if %11 {
      %c0_9 = arith.constant 0 : index
      %c0_10 = arith.constant 0 : index
      %12 = vector.load %arg9[%c0_9, %c0_10] : memref<8x256xf32, #tpu.memory_space<vmem>>, vector<8x256xf32>
      %c0_11 = arith.constant 0 : index
      %c0_12 = arith.constant 0 : index
      %13 = vector.load %arg5[%c0_11, %c0_12] : memref<1x256xf32, #tpu.memory_space<vmem>>, vector<1x256xf32>
      %14 = vector.broadcast %13 : vector<1x256xf32> to vector<8x256xf32>
      %15 = arith.mulf %12, %14 : vector<8x256xf32>
      %c0_13 = arith.constant 0 : index
      %c0_14 = arith.constant 0 : index
      %16 = vector.load %arg6[%c0_13, %c0_14] : memref<1x256xf32, #tpu.memory_space<vmem>>, vector<1x256xf32>
      %17 = vector.broadcast %16 : vector<1x256xf32> to vector<8x256xf32>
      %18 = arith.addf %15, %17 : vector<8x256xf32>
      %c0_15 = arith.constant 0 : index
      %c0_16 = arith.constant 0 : index
      %19 = vector.load %arg7[%c0_15, %c0_16] : memref<8x256xbf16, #tpu.memory_space<vmem>>, vector<8x256xbf16>
      %20 = arith.extf %19 : vector<8x256xbf16> to vector<8x256xf32>
      %21 = arith.addf %18, %20 : vector<8x256xf32>
      %cst_17 = arith.constant 0.000000e+00 : f32
      %22 = vector.broadcast %cst_17 : f32 to vector<8x256xf32>
      %23 = arith.maximumf %21, %22 : vector<8x256xf32>
      %24 = arith.truncf %23 : vector<8x256xf32> to vector<8x256xbf16>
      %c0_18 = arith.constant 0 : index
      %c0_19 = arith.constant 0 : index
      %25 = vector.load %arg8[%c0_18, %c0_19] : memref<8x256xbf16, #tpu.memory_space<vmem>>, vector<8x256xbf16>
      tpu.vector_store %arg8[%c0_18, %c0_19], %24 {strides = array<i32>} : memref<8x256xbf16, #tpu.memory_space<vmem>>, vector<8x256xbf16>,
    } else {
    }
    return
  }
  func.func @transform_0(%arg0: i32, %arg1: i32, %arg2: i32) -> (i32, i32) {
    %c0_i32 = arith.constant 0 : i32
    return %arg0, %arg2 : i32, i32
  }
  func.func @transform_1(%arg0: i32, %arg1: i32, %arg2: i32) -> (i32, i32) {
    %c0_i32 = arith.constant 0 : i32
    return %arg2, %arg1 : i32, i32
  }
  func.func @transform_2(%arg0: i32, %arg1: i32, %arg2: i32) -> (i32, i32) {
    %c0_i32 = arith.constant 0 : i32
    %c0_i32_0 = arith.constant 0 : i32
    return %c0_i32, %arg1 : i32, i32
  }
  func.func @transform_3(%arg0: i32, %arg1: i32, %arg2: i32) -> (i32, i32) {
    %c0_i32 = arith.constant 0 : i32
    %c0_i32_0 = arith.constant 0 : i32
    return %c0_i32, %arg1 : i32, i32
  }
  func.func @transform_4(%arg0: i32, %arg1: i32, %arg2: i32) -> (i32, i32) {
    %c0_i32 = arith.constant 0 : i32
    return %arg0, %arg1 : i32, i32
  }
  func.func @transform_5(%arg0: i32, %arg1: i32, %arg2: i32) -> (i32, i32) {
    %c0_i32 = arith.constant 0 : i32
    return %arg0, %arg1 : i32, i32
  }
}

module attributes {stable_mosaic.version = 11 : i64} {
  func.func @_mm_affine_kernel(%arg0: i32, %arg1: i32, %arg2: i32, %arg3: memref<8x256xbf16, #tpu.memory_space<vmem>>, %arg4: memref<256x256xbf16, #tpu.memory_space<vmem>>, %arg5: memref<1x256xf32, #tpu.memory_space<vmem>>, %arg6: memref<1x256xf32, #tpu.memory_space<vmem>>, %arg7: memref<8x256xbf16, #tpu.memory_space<vmem>>, %arg8: memref<8x256xf32, #tpu.memory_space<vmem>>) attributes {dimension_semantics = [#tpu.dimension_semantics<parallel>, #tpu.dimension_semantics<parallel>, #tpu.dimension_semantics<arbitrary>], iteration_bounds = array<i64: 1, 2, 9>, scalar_prefetch = 0 : i64, scratch_operands = 1 : i64, tpu.core_type = #tpu.core_type<tc>, window_params = [{transform_indices = @transform_0, window_bounds = array<i64: 8, 256>}, {transform_indices = @transform_1, window_bounds = array<i64: 256, 256>}, {transform_indices = @transform_2, window_bounds = array<i64: 1, 256>}, {transform_indices = @transform_3, window_bounds = array<i64: 1, 256>}, {transform_indices = @transform_4, window_bounds = array<i64: 8, 256>}]} {
    %c0_i32 = arith.constant 0 : i32
    %0 = arith.cmpi eq, %arg2, %c0_i32 : i32
    %1 = arith.extui %0 : i1 to i32
    %c0_i32_0 = arith.constant 0 : i32
    %2 = arith.cmpi ne, %1, %c0_i32_0 : i32
    scf.if %2 {
      %cst_9 = arith.constant 0.000000e+00 : f32
      %12 = vector.broadcast %cst_9 : f32 to vector<8x256xf32>
      %c0_10 = arith.constant 0 : index
      %c0_11 = arith.constant 0 : index
      %13 = vector.load %arg8[%c0_10, %c0_11] : memref<8x256xf32, #tpu.memory_space<vmem>>, vector<8x256xf32>
      tpu.vector_store %arg8[%c0_10, %c0_11], %12 {strides = array<i32>} : memref<8x256xf32, #tpu.memory_space<vmem>>, vector<8x256xf32>,
    } else {
    }
    %c0 = arith.constant 0 : index
    %c0_1 = arith.constant 0 : index
    %3 = vector.load %arg8[%c0, %c0_1] : memref<8x256xf32, #tpu.memory_space<vmem>>, vector<8x256xf32>
    %c0_2 = arith.constant 0 : index
    %c0_3 = arith.constant 0 : index
    %4 = vector.load %arg3[%c0_2, %c0_3] : memref<8x256xbf16, #tpu.memory_space<vmem>>, vector<8x256xbf16>
    %c0_4 = arith.constant 0 : index
    %c0_5 = arith.constant 0 : index
    %5 = vector.load %arg4[%c0_4, %c0_5] : memref<256x256xbf16, #tpu.memory_space<vmem>>, vector<256x256xbf16>
    %cst = arith.constant dense<0.000000e+00> : vector<8x256xf32>
    %6 = tpu.matmul %4, %5, %cst {dimension_numbers = #tpu.dot_dimension_numbers<[1], [0], [0], [1], [0, 0, 1, 1], [], []>} : vector<8x256xbf16>, vector<256x256xbf16>, vector<8x256xf32> -> vector<8x256xf32>
    %7 = arith.addf %3, %6 : vector<8x256xf32>
    %c0_6 = arith.constant 0 : index
    %c0_7 = arith.constant 0 : index
    %8 = vector.load %arg8[%c0_6, %c0_7] : memref<8x256xf32, #tpu.memory_space<vmem>>, vector<8x256xf32>
    tpu.vector_store %arg8[%c0_6, %c0_7], %7 {strides = array<i32>} : memref<8x256xf32, #tpu.memory_space<vmem>>, vector<8x256xf32>,
    %c8_i32 = arith.constant 8 : i32
    %9 = arith.cmpi eq, %arg2, %c8_i32 : i32
    %10 = arith.extui %9 : i1 to i32
    %c0_i32_8 = arith.constant 0 : i32
    %11 = arith.cmpi ne, %10, %c0_i32_8 : i32
    scf.if %11 {
      %c0_9 = arith.constant 0 : index
      %c0_10 = arith.constant 0 : index
      %12 = vector.load %arg8[%c0_9, %c0_10] : memref<8x256xf32, #tpu.memory_space<vmem>>, vector<8x256xf32>
      %c0_11 = arith.constant 0 : index
      %c0_12 = arith.constant 0 : index
      %13 = vector.load %arg5[%c0_11, %c0_12] : memref<1x256xf32, #tpu.memory_space<vmem>>, vector<1x256xf32>
      %14 = vector.broadcast %13 : vector<1x256xf32> to vector<8x256xf32>
      %15 = arith.mulf %12, %14 : vector<8x256xf32>
      %c0_13 = arith.constant 0 : index
      %c0_14 = arith.constant 0 : index
      %16 = vector.load %arg6[%c0_13, %c0_14] : memref<1x256xf32, #tpu.memory_space<vmem>>, vector<1x256xf32>
      %17 = vector.broadcast %16 : vector<1x256xf32> to vector<8x256xf32>
      %18 = arith.addf %15, %17 : vector<8x256xf32>
      %cst_15 = arith.constant 0.000000e+00 : f32
      %19 = vector.broadcast %cst_15 : f32 to vector<8x256xf32>
      %20 = arith.maximumf %18, %19 : vector<8x256xf32>
      %21 = arith.truncf %20 : vector<8x256xf32> to vector<8x256xbf16>
      %c0_16 = arith.constant 0 : index
      %c0_17 = arith.constant 0 : index
      %22 = vector.load %arg7[%c0_16, %c0_17] : memref<8x256xbf16, #tpu.memory_space<vmem>>, vector<8x256xbf16>
      tpu.vector_store %arg7[%c0_16, %c0_17], %21 {strides = array<i32>} : memref<8x256xbf16, #tpu.memory_space<vmem>>, vector<8x256xbf16>,
    } else {
    }
    return
  }
  func.func @transform_0(%arg0: i32, %arg1: i32, %arg2: i32) -> (i32, i32) {
    %c0_i32 = arith.constant 0 : i32
    return %arg0, %arg2 : i32, i32
  }
  func.func @transform_1(%arg0: i32, %arg1: i32, %arg2: i32) -> (i32, i32) {
    %c0_i32 = arith.constant 0 : i32
    return %arg2, %arg1 : i32, i32
  }
  func.func @transform_2(%arg0: i32, %arg1: i32, %arg2: i32) -> (i32, i32) {
    %c0_i32 = arith.constant 0 : i32
    %c0_i32_0 = arith.constant 0 : i32
    return %c0_i32, %arg1 : i32, i32
  }
  func.func @transform_3(%arg0: i32, %arg1: i32, %arg2: i32) -> (i32, i32) {
    %c0_i32 = arith.constant 0 : i32
    %c0_i32_0 = arith.constant 0 : i32
    return %c0_i32, %arg1 : i32, i32
  }
  func.func @transform_4(%arg0: i32, %arg1: i32, %arg2: i32) -> (i32, i32) {
    %c0_i32 = arith.constant 0 : i32
    return %arg0, %arg1 : i32, i32
  }
}

module attributes {stable_mosaic.version = 11 : i64} {
  func.func @_mm_affine_res_kernel(%arg0: i32, %arg1: i32, %arg2: i32, %arg3: memref<8x512xbf16, #tpu.memory_space<vmem>>, %arg4: memref<512x256xbf16, #tpu.memory_space<vmem>>, %arg5: memref<1x256xf32, #tpu.memory_space<vmem>>, %arg6: memref<1x256xf32, #tpu.memory_space<vmem>>, %arg7: memref<8x256xbf16, #tpu.memory_space<vmem>>, %arg8: memref<8x256xbf16, #tpu.memory_space<vmem>>, %arg9: memref<8x256xf32, #tpu.memory_space<vmem>>) attributes {dimension_semantics = [#tpu.dimension_semantics<parallel>, #tpu.dimension_semantics<parallel>, #tpu.dimension_semantics<arbitrary>], iteration_bounds = array<i64: 1, 2, 9>, scalar_prefetch = 0 : i64, scratch_operands = 1 : i64, tpu.core_type = #tpu.core_type<tc>, window_params = [{transform_indices = @transform_0, window_bounds = array<i64: 8, 512>}, {transform_indices = @transform_1, window_bounds = array<i64: 512, 256>}, {transform_indices = @transform_2, window_bounds = array<i64: 1, 256>}, {transform_indices = @transform_3, window_bounds = array<i64: 1, 256>}, {transform_indices = @transform_4, window_bounds = array<i64: 8, 256>}, {transform_indices = @transform_5, window_bounds = array<i64: 8, 256>}]} {
    %c0_i32 = arith.constant 0 : i32
    %0 = arith.cmpi eq, %arg2, %c0_i32 : i32
    %1 = arith.extui %0 : i1 to i32
    %c0_i32_0 = arith.constant 0 : i32
    %2 = arith.cmpi ne, %1, %c0_i32_0 : i32
    scf.if %2 {
      %cst_9 = arith.constant 0.000000e+00 : f32
      %12 = vector.broadcast %cst_9 : f32 to vector<8x256xf32>
      %c0_10 = arith.constant 0 : index
      %c0_11 = arith.constant 0 : index
      %13 = vector.load %arg9[%c0_10, %c0_11] : memref<8x256xf32, #tpu.memory_space<vmem>>, vector<8x256xf32>
      tpu.vector_store %arg9[%c0_10, %c0_11], %12 {strides = array<i32>} : memref<8x256xf32, #tpu.memory_space<vmem>>, vector<8x256xf32>,
    } else {
    }
    %c0 = arith.constant 0 : index
    %c0_1 = arith.constant 0 : index
    %3 = vector.load %arg9[%c0, %c0_1] : memref<8x256xf32, #tpu.memory_space<vmem>>, vector<8x256xf32>
    %c0_2 = arith.constant 0 : index
    %c0_3 = arith.constant 0 : index
    %4 = vector.load %arg3[%c0_2, %c0_3] : memref<8x512xbf16, #tpu.memory_space<vmem>>, vector<8x512xbf16>
    %c0_4 = arith.constant 0 : index
    %c0_5 = arith.constant 0 : index
    %5 = vector.load %arg4[%c0_4, %c0_5] : memref<512x256xbf16, #tpu.memory_space<vmem>>, vector<512x256xbf16>
    %cst = arith.constant dense<0.000000e+00> : vector<8x256xf32>
    %6 = tpu.matmul %4, %5, %cst {dimension_numbers = #tpu.dot_dimension_numbers<[1], [0], [0], [1], [0, 0, 1, 1], [], []>} : vector<8x512xbf16>, vector<512x256xbf16>, vector<8x256xf32> -> vector<8x256xf32>
    %7 = arith.addf %3, %6 : vector<8x256xf32>
    %c0_6 = arith.constant 0 : index
    %c0_7 = arith.constant 0 : index
    %8 = vector.load %arg9[%c0_6, %c0_7] : memref<8x256xf32, #tpu.memory_space<vmem>>, vector<8x256xf32>
    tpu.vector_store %arg9[%c0_6, %c0_7], %7 {strides = array<i32>} : memref<8x256xf32, #tpu.memory_space<vmem>>, vector<8x256xf32>,
    %c8_i32 = arith.constant 8 : i32
    %9 = arith.cmpi eq, %arg2, %c8_i32 : i32
    %10 = arith.extui %9 : i1 to i32
    %c0_i32_8 = arith.constant 0 : i32
    %11 = arith.cmpi ne, %10, %c0_i32_8 : i32
    scf.if %11 {
      %c0_9 = arith.constant 0 : index
      %c0_10 = arith.constant 0 : index
      %12 = vector.load %arg9[%c0_9, %c0_10] : memref<8x256xf32, #tpu.memory_space<vmem>>, vector<8x256xf32>
      %c0_11 = arith.constant 0 : index
      %c0_12 = arith.constant 0 : index
      %13 = vector.load %arg5[%c0_11, %c0_12] : memref<1x256xf32, #tpu.memory_space<vmem>>, vector<1x256xf32>
      %14 = vector.broadcast %13 : vector<1x256xf32> to vector<8x256xf32>
      %15 = arith.mulf %12, %14 : vector<8x256xf32>
      %c0_13 = arith.constant 0 : index
      %c0_14 = arith.constant 0 : index
      %16 = vector.load %arg6[%c0_13, %c0_14] : memref<1x256xf32, #tpu.memory_space<vmem>>, vector<1x256xf32>
      %17 = vector.broadcast %16 : vector<1x256xf32> to vector<8x256xf32>
      %18 = arith.addf %15, %17 : vector<8x256xf32>
      %c0_15 = arith.constant 0 : index
      %c0_16 = arith.constant 0 : index
      %19 = vector.load %arg7[%c0_15, %c0_16] : memref<8x256xbf16, #tpu.memory_space<vmem>>, vector<8x256xbf16>
      %20 = arith.extf %19 : vector<8x256xbf16> to vector<8x256xf32>
      %21 = arith.addf %18, %20 : vector<8x256xf32>
      %cst_17 = arith.constant 0.000000e+00 : f32
      %22 = vector.broadcast %cst_17 : f32 to vector<8x256xf32>
      %23 = arith.maximumf %21, %22 : vector<8x256xf32>
      %24 = arith.truncf %23 : vector<8x256xf32> to vector<8x256xbf16>
      %c0_18 = arith.constant 0 : index
      %c0_19 = arith.constant 0 : index
      %25 = vector.load %arg8[%c0_18, %c0_19] : memref<8x256xbf16, #tpu.memory_space<vmem>>, vector<8x256xbf16>
      tpu.vector_store %arg8[%c0_18, %c0_19], %24 {strides = array<i32>} : memref<8x256xbf16, #tpu.memory_space<vmem>>, vector<8x256xbf16>,
    } else {
    }
    return
  }
  func.func @transform_0(%arg0: i32, %arg1: i32, %arg2: i32) -> (i32, i32) {
    %c0_i32 = arith.constant 0 : i32
    return %arg0, %arg2 : i32, i32
  }
  func.func @transform_1(%arg0: i32, %arg1: i32, %arg2: i32) -> (i32, i32) {
    %c0_i32 = arith.constant 0 : i32
    return %arg2, %arg1 : i32, i32
  }
  func.func @transform_2(%arg0: i32, %arg1: i32, %arg2: i32) -> (i32, i32) {
    %c0_i32 = arith.constant 0 : i32
    %c0_i32_0 = arith.constant 0 : i32
    return %c0_i32, %arg1 : i32, i32
  }
  func.func @transform_3(%arg0: i32, %arg1: i32, %arg2: i32) -> (i32, i32) {
    %c0_i32 = arith.constant 0 : i32
    %c0_i32_0 = arith.constant 0 : i32
    return %c0_i32, %arg1 : i32, i32
  }
  func.func @transform_4(%arg0: i32, %arg1: i32, %arg2: i32) -> (i32, i32) {
    %c0_i32 = arith.constant 0 : i32
    return %arg0, %arg1 : i32, i32
  }
  func.func @transform_5(%arg0: i32, %arg1: i32, %arg2: i32) -> (i32, i32) {
    %c0_i32 = arith.constant 0 : i32
    return %arg0, %arg1 : i32, i32
  }
}

module attributes {stable_mosaic.version = 11 : i64} {
  func.func @_mm_affine_kernel(%arg0: i32, %arg1: i32, %arg2: i32, %arg3: memref<8x256xbf16, #tpu.memory_space<vmem>>, %arg4: memref<256x256xbf16, #tpu.memory_space<vmem>>, %arg5: memref<1x256xf32, #tpu.memory_space<vmem>>, %arg6: memref<1x256xf32, #tpu.memory_space<vmem>>, %arg7: memref<8x256xbf16, #tpu.memory_space<vmem>>, %arg8: memref<8x256xf32, #tpu.memory_space<vmem>>) attributes {dimension_semantics = [#tpu.dimension_semantics<parallel>, #tpu.dimension_semantics<parallel>, #tpu.dimension_semantics<arbitrary>], iteration_bounds = array<i64: 1, 2, 1>, scalar_prefetch = 0 : i64, scratch_operands = 1 : i64, tpu.core_type = #tpu.core_type<tc>, window_params = [{transform_indices = @transform_0, window_bounds = array<i64: 8, 256>}, {transform_indices = @transform_1, window_bounds = array<i64: 256, 256>}, {transform_indices = @transform_2, window_bounds = array<i64: 1, 256>}, {transform_indices = @transform_3, window_bounds = array<i64: 1, 256>}, {transform_indices = @transform_4, window_bounds = array<i64: 8, 256>}]} {
    %c0_i32 = arith.constant 0 : i32
    %0 = arith.cmpi eq, %arg2, %c0_i32 : i32
    %1 = arith.extui %0 : i1 to i32
    %c0_i32_0 = arith.constant 0 : i32
    %2 = arith.cmpi ne, %1, %c0_i32_0 : i32
    scf.if %2 {
      %cst_10 = arith.constant 0.000000e+00 : f32
      %12 = vector.broadcast %cst_10 : f32 to vector<8x256xf32>
      %c0_11 = arith.constant 0 : index
      %c0_12 = arith.constant 0 : index
      %13 = vector.load %arg8[%c0_11, %c0_12] : memref<8x256xf32, #tpu.memory_space<vmem>>, vector<8x256xf32>
      tpu.vector_store %arg8[%c0_11, %c0_12], %12 {strides = array<i32>} : memref<8x256xf32, #tpu.memory_space<vmem>>, vector<8x256xf32>,
    } else {
    }
    %c0 = arith.constant 0 : index
    %c0_1 = arith.constant 0 : index
    %3 = vector.load %arg8[%c0, %c0_1] : memref<8x256xf32, #tpu.memory_space<vmem>>, vector<8x256xf32>
    %c0_2 = arith.constant 0 : index
    %c0_3 = arith.constant 0 : index
    %4 = vector.load %arg3[%c0_2, %c0_3] : memref<8x256xbf16, #tpu.memory_space<vmem>>, vector<8x256xbf16>
    %c0_4 = arith.constant 0 : index
    %c0_5 = arith.constant 0 : index
    %5 = vector.load %arg4[%c0_4, %c0_5] : memref<256x256xbf16, #tpu.memory_space<vmem>>, vector<256x256xbf16>
    %cst = arith.constant dense<0.000000e+00> : vector<8x256xf32>
    %6 = tpu.matmul %4, %5, %cst {dimension_numbers = #tpu.dot_dimension_numbers<[1], [0], [0], [1], [0, 0, 1, 1], [], []>} : vector<8x256xbf16>, vector<256x256xbf16>, vector<8x256xf32> -> vector<8x256xf32>
    %7 = arith.addf %3, %6 : vector<8x256xf32>
    %c0_6 = arith.constant 0 : index
    %c0_7 = arith.constant 0 : index
    %8 = vector.load %arg8[%c0_6, %c0_7] : memref<8x256xf32, #tpu.memory_space<vmem>>, vector<8x256xf32>
    tpu.vector_store %arg8[%c0_6, %c0_7], %7 {strides = array<i32>} : memref<8x256xf32, #tpu.memory_space<vmem>>, vector<8x256xf32>,
    %c0_i32_8 = arith.constant 0 : i32
    %9 = arith.cmpi eq, %arg2, %c0_i32_8 : i32
    %10 = arith.extui %9 : i1 to i32
    %c0_i32_9 = arith.constant 0 : i32
    %11 = arith.cmpi ne, %10, %c0_i32_9 : i32
    scf.if %11 {
      %c0_10 = arith.constant 0 : index
      %c0_11 = arith.constant 0 : index
      %12 = vector.load %arg8[%c0_10, %c0_11] : memref<8x256xf32, #tpu.memory_space<vmem>>, vector<8x256xf32>
      %c0_12 = arith.constant 0 : index
      %c0_13 = arith.constant 0 : index
      %13 = vector.load %arg5[%c0_12, %c0_13] : memref<1x256xf32, #tpu.memory_space<vmem>>, vector<1x256xf32>
      %14 = vector.broadcast %13 : vector<1x256xf32> to vector<8x256xf32>
      %15 = arith.mulf %12, %14 : vector<8x256xf32>
      %c0_14 = arith.constant 0 : index
      %c0_15 = arith.constant 0 : index
      %16 = vector.load %arg6[%c0_14, %c0_15] : memref<1x256xf32, #tpu.memory_space<vmem>>, vector<1x256xf32>
      %17 = vector.broadcast %16 : vector<1x256xf32> to vector<8x256xf32>
      %18 = arith.addf %15, %17 : vector<8x256xf32>
      %19 = arith.truncf %18 : vector<8x256xf32> to vector<8x256xbf16>
      %c0_16 = arith.constant 0 : index
      %c0_17 = arith.constant 0 : index
      %20 = vector.load %arg7[%c0_16, %c0_17] : memref<8x256xbf16, #tpu.memory_space<vmem>>, vector<8x256xbf16>
      tpu.vector_store %arg7[%c0_16, %c0_17], %19 {strides = array<i32>} : memref<8x256xbf16, #tpu.memory_space<vmem>>, vector<8x256xbf16>,
    } else {
    }
    return
  }
  func.func @transform_0(%arg0: i32, %arg1: i32, %arg2: i32) -> (i32, i32) {
    %c0_i32 = arith.constant 0 : i32
    return %arg0, %arg2 : i32, i32
  }
  func.func @transform_1(%arg0: i32, %arg1: i32, %arg2: i32) -> (i32, i32) {
    %c0_i32 = arith.constant 0 : i32
    return %arg2, %arg1 : i32, i32
  }
  func.func @transform_2(%arg0: i32, %arg1: i32, %arg2: i32) -> (i32, i32) {
    %c0_i32 = arith.constant 0 : i32
    %c0_i32_0 = arith.constant 0 : i32
    return %c0_i32, %arg1 : i32, i32
  }
  func.func @transform_3(%arg0: i32, %arg1: i32, %arg2: i32) -> (i32, i32) {
    %c0_i32 = arith.constant 0 : i32
    %c0_i32_0 = arith.constant 0 : i32
    return %c0_i32, %arg1 : i32, i32
  }
  func.func @transform_4(%arg0: i32, %arg1: i32, %arg2: i32) -> (i32, i32) {
    %c0_i32 = arith.constant 0 : i32
    return %arg0, %arg1 : i32, i32
  }
}

module attributes {stable_mosaic.version = 11 : i64} {
  func.func @_avgpool_kernel(%arg0: i32, %arg1: memref<1x1x512xf32, #tpu.memory_space<vmem>>, %arg2: memref<1x1x512xf32, #tpu.memory_space<vmem>>) attributes {dimension_semantics = [#tpu.dimension_semantics<parallel>], iteration_bounds = array<i64: 2>, scalar_prefetch = 0 : i64, scratch_operands = 0 : i64, tpu.core_type = #tpu.core_type<tc>, window_params = [{transform_indices = @transform_0, window_bounds = array<i64: 1, 1, 512>}, {transform_indices = @transform_1, window_bounds = array<i64: 1, 1, 512>}]} {
    %c0 = arith.constant 0 : index
    %c0_0 = arith.constant 0 : index
    %c0_1 = arith.constant 0 : index
    %0 = vector.load %arg1[%c0, %c0_0, %c0_1] : memref<1x1x512xf32, #tpu.memory_space<vmem>>, vector<1x1x512xf32>
    %cst = arith.constant dense<0.000000e+00> : vector<1x512xf32>
    %1 = vector.multi_reduction <add>, %0, %cst [1] : vector<1x1x512xf32> to vector<1x512xf32>
    %2 = vector.shape_cast %1 : vector<1x512xf32> to vector<1x1x512xf32>
    %cst_2 = arith.constant 1.000000e+00 : f32
    %3 = vector.broadcast %cst_2 : f32 to vector<1x1x512xf32>
    %4 = arith.divf %2, %3 : vector<1x1x512xf32>
    %c0_3 = arith.constant 0 : index
    %c0_4 = arith.constant 0 : index
    %c0_5 = arith.constant 0 : index
    %5 = vector.load %arg2[%c0_3, %c0_4, %c0_5] : memref<1x1x512xf32, #tpu.memory_space<vmem>>, vector<1x1x512xf32>
    tpu.vector_store %arg2[%c0_3, %c0_4, %c0_5], %4 {strides = array<i32>} : memref<1x1x512xf32, #tpu.memory_space<vmem>>, vector<1x1x512xf32>,
    return
  }
  func.func @transform_0(%arg0: i32) -> (i32, i32, i32) {
    %c0_i32 = arith.constant 0 : i32
    %c0_i32_0 = arith.constant 0 : i32
    %c0_i32_1 = arith.constant 0 : i32
    return %arg0, %c0_i32, %c0_i32_0 : i32, i32, i32
  }
  func.func @transform_1(%arg0: i32) -> (i32, i32, i32) {
    %c0_i32 = arith.constant 0 : i32
    %c0_i32_0 = arith.constant 0 : i32
    %c0_i32_1 = arith.constant 0 : i32
    return %arg0, %c0_i32, %c0_i32_0 : i32, i32, i32
  }
}

module attributes {stable_mosaic.version = 11 : i64} {
  func.func @_mm_affine_kernel(%arg0: i32, %arg1: i32, %arg2: i32, %arg3: memref<8x512xbf16, #tpu.memory_space<vmem>>, %arg4: memref<512x128xbf16, #tpu.memory_space<vmem>>, %arg5: memref<1x128xf32, #tpu.memory_space<vmem>>, %arg6: memref<1x128xf32, #tpu.memory_space<vmem>>, %arg7: memref<8x128xf32, #tpu.memory_space<vmem>>, %arg8: memref<8x128xf32, #tpu.memory_space<vmem>>) attributes {dimension_semantics = [#tpu.dimension_semantics<parallel>, #tpu.dimension_semantics<parallel>, #tpu.dimension_semantics<arbitrary>], iteration_bounds = array<i64: 1, 1, 1>, scalar_prefetch = 0 : i64, scratch_operands = 1 : i64, tpu.core_type = #tpu.core_type<tc>, window_params = [{transform_indices = @transform_0, window_bounds = array<i64: 8, 512>}, {transform_indices = @transform_1, window_bounds = array<i64: 512, 128>}, {transform_indices = @transform_2, window_bounds = array<i64: 1, 128>}, {transform_indices = @transform_3, window_bounds = array<i64: 1, 128>}, {transform_indices = @transform_4, window_bounds = array<i64: 8, 128>}]} {
    %c0_i32 = arith.constant 0 : i32
    %0 = arith.cmpi eq, %arg2, %c0_i32 : i32
    %1 = arith.extui %0 : i1 to i32
    %c0_i32_0 = arith.constant 0 : i32
    %2 = arith.cmpi ne, %1, %c0_i32_0 : i32
    scf.if %2 {
      %cst_10 = arith.constant 0.000000e+00 : f32
      %12 = vector.broadcast %cst_10 : f32 to vector<8x128xf32>
      %c0_11 = arith.constant 0 : index
      %c0_12 = arith.constant 0 : index
      %13 = vector.load %arg8[%c0_11, %c0_12] : memref<8x128xf32, #tpu.memory_space<vmem>>, vector<8x128xf32>
      tpu.vector_store %arg8[%c0_11, %c0_12], %12 {strides = array<i32>} : memref<8x128xf32, #tpu.memory_space<vmem>>, vector<8x128xf32>,
    } else {
    }
    %c0 = arith.constant 0 : index
    %c0_1 = arith.constant 0 : index
    %3 = vector.load %arg8[%c0, %c0_1] : memref<8x128xf32, #tpu.memory_space<vmem>>, vector<8x128xf32>
    %c0_2 = arith.constant 0 : index
    %c0_3 = arith.constant 0 : index
    %4 = vector.load %arg3[%c0_2, %c0_3] : memref<8x512xbf16, #tpu.memory_space<vmem>>, vector<8x512xbf16>
    %c0_4 = arith.constant 0 : index
    %c0_5 = arith.constant 0 : index
    %5 = vector.load %arg4[%c0_4, %c0_5] : memref<512x128xbf16, #tpu.memory_space<vmem>>, vector<512x128xbf16>
    %cst = arith.constant dense<0.000000e+00> : vector<8x128xf32>
    %6 = tpu.matmul %4, %5, %cst {dimension_numbers = #tpu.dot_dimension_numbers<[1], [0], [0], [1], [0, 0, 1, 1], [], []>} : vector<8x512xbf16>, vector<512x128xbf16>, vector<8x128xf32> -> vector<8x128xf32>
    %7 = arith.addf %3, %6 : vector<8x128xf32>
    %c0_6 = arith.constant 0 : index
    %c0_7 = arith.constant 0 : index
    %8 = vector.load %arg8[%c0_6, %c0_7] : memref<8x128xf32, #tpu.memory_space<vmem>>, vector<8x128xf32>
    tpu.vector_store %arg8[%c0_6, %c0_7], %7 {strides = array<i32>} : memref<8x128xf32, #tpu.memory_space<vmem>>, vector<8x128xf32>,
    %c0_i32_8 = arith.constant 0 : i32
    %9 = arith.cmpi eq, %arg2, %c0_i32_8 : i32
    %10 = arith.extui %9 : i1 to i32
    %c0_i32_9 = arith.constant 0 : i32
    %11 = arith.cmpi ne, %10, %c0_i32_9 : i32
    scf.if %11 {
      %c0_10 = arith.constant 0 : index
      %c0_11 = arith.constant 0 : index
      %12 = vector.load %arg8[%c0_10, %c0_11] : memref<8x128xf32, #tpu.memory_space<vmem>>, vector<8x128xf32>
      %c0_12 = arith.constant 0 : index
      %c0_13 = arith.constant 0 : index
      %13 = vector.load %arg5[%c0_12, %c0_13] : memref<1x128xf32, #tpu.memory_space<vmem>>, vector<1x128xf32>
      %14 = vector.broadcast %13 : vector<1x128xf32> to vector<8x128xf32>
      %15 = arith.mulf %12, %14 : vector<8x128xf32>
      %c0_14 = arith.constant 0 : index
      %c0_15 = arith.constant 0 : index
      %16 = vector.load %arg6[%c0_14, %c0_15] : memref<1x128xf32, #tpu.memory_space<vmem>>, vector<1x128xf32>
      %17 = vector.broadcast %16 : vector<1x128xf32> to vector<8x128xf32>
      %18 = arith.addf %15, %17 : vector<8x128xf32>
      %c0_16 = arith.constant 0 : index
      %c0_17 = arith.constant 0 : index
      %19 = vector.load %arg7[%c0_16, %c0_17] : memref<8x128xf32, #tpu.memory_space<vmem>>, vector<8x128xf32>
      tpu.vector_store %arg7[%c0_16, %c0_17], %18 {strides = array<i32>} : memref<8x128xf32, #tpu.memory_space<vmem>>, vector<8x128xf32>,
    } else {
    }
    return
  }
  func.func @transform_0(%arg0: i32, %arg1: i32, %arg2: i32) -> (i32, i32) {
    %c0_i32 = arith.constant 0 : i32
    return %arg0, %arg2 : i32, i32
  }
  func.func @transform_1(%arg0: i32, %arg1: i32, %arg2: i32) -> (i32, i32) {
    %c0_i32 = arith.constant 0 : i32
    return %arg2, %arg1 : i32, i32
  }
  func.func @transform_2(%arg0: i32, %arg1: i32, %arg2: i32) -> (i32, i32) {
    %c0_i32 = arith.constant 0 : i32
    %c0_i32_0 = arith.constant 0 : i32
    return %c0_i32, %arg1 : i32, i32
  }
  func.func @transform_3(%arg0: i32, %arg1: i32, %arg2: i32) -> (i32, i32) {
    %c0_i32 = arith.constant 0 : i32
    %c0_i32_0 = arith.constant 0 : i32
    return %c0_i32, %arg1 : i32, i32
  }
  func.func @transform_4(%arg0: i32, %arg1: i32, %arg2: i32) -> (i32, i32) {
    %c0_i32 = arith.constant 0 : i32
    return %arg0, %arg1 : i32, i32
  }
}

</mosaic_0001>

<bundles_post_ra>
// kernel: _lambda_.15
= control target key start
LH: loop header
LB: loop body
LE: loop exit
PB: predicated region body
PF: predicated region fallthrough
CT: control target
= control target key end

     0   :  { %9 = vsyncpa [#allocation4], 0  ;;  %s1643_s0 = inlined_call_operand.vmem [shape: bf16[512,128], index: 0, kind: input, shape index: {}]   ;;  %s1644_s1 = inlined_call_operand.hbm [shape: bf16[128,128], index: 1, kind: input, shape index: {}]   ;;  %s1645_s2 = inlined_call_operand.hbm [shape: f32[1,128], index: 2, kind: input, shape index: {}]   ;;  %s1646_s3 = inlined_call_operand.vmem [shape: f32[1,128], index: 3, kind: input, shape index: {}]   ;;  %s1647_s4 = inlined_call_operand.vmem [shape: bf16[512,128], index: 4, kind: output, shape index: {}]  }
   0x1   :  { %10 = vsyncpa [#allocation6], 0  ;;  %s1464_s15 = smov 0   ;;  %s1466_s16 = smov 0  }
   0x2   :  { %s1468_s17 = smov 0  }
   0x3 LB: > { %s1039_s18 = sadd.s32 4294967295, %s1433_s17   ;;  %s35_s19 = sadd.s32 1, %s1429_s16  ;;  %s1433_s17 = sphi %s1468_s17, %s16_s17   ;;  %s1429_s16 = sphi %s1466_s16, %s1651_s16   ;;  %s1425_s15 = sphi %s1464_s15, %s1650_s15  }
   0x4   : > { %p37_p0 = scmp.ge.s32.totalorder %s35_s19, 2  ;;  %p1041_p1 = scmp.ge.s32.totalorder %s1433_s17, 1 }
   0x5   : > { %p176_p2 = scmp.lt.s32.totalorder %s1433_s17, 3  ;;  %p1489_p4 = scmp.eq.s32.totalorder %s1039_s18, 0 }
   0x6   : > { %s1653_s19 = smov (%p37_p0, %s35_s19), 0  ;;  %s191_s24 = sshll.u32 %s1644_s1, 4  ;;  %s192_s24 = int_to_ptr.hbm [resolvable:$true] %s191_s24 }
   0x7   : > { %p1485_p3 = pnand %p1041_p1, %p176_p2  ;;  %s1435_s25 = smov [#allocation3]  }
   0x8   : > { %s193_s26 = sshll.u32 %s1435_s25, 4  ;;  %s207_s29 = sshll.u32 %s1645_s2, 4  ;;  %s194_s26 = int_to_ptr.vmem [resolvable:$true] %s193_s26  ;;  %s208_s29 = int_to_ptr.hbm [resolvable:$true] %s207_s29 }
   0x9   : > { %p1302_p5 = pneg %p1485_p3  ;;  %s1436_s30 = smov 64  }
   0xa   : > { %s1437_s5 = smov 4   ;;  %s1438_s6 = smov [#allocation5]  }
   0xb   : > { %p1303_p6 = pnand %p1489_p4, %p1302_p5  ;;  %s209_s7 = sshll.u32 %s1438_s6, 4  ;;  %s210_s7 = int_to_ptr.vmem [resolvable:$true] %s209_s7 }
   0xc   : > { %240 = sbr.rel (%p1485_p3) target bundleno = 251 (0xfb), region = 36 }
   0xd   : > { %1305 = dma.hbm_to_vmem [thread:$0]  (!%p1303_p6), %s192_s24, 1024, %s194_s26, [#allocation4], %s1436_s30, %s1436_s30, %s1437_s5  }
   0xe   : > { %1308 = dma.hbm_to_vmem [thread:$0]  (!%p1303_p6), %s208_s29, 16, %s210_s7, [#allocation6]  }
  0x11   : > { %1416 = dma.done.wait (%p1489_p4), [#allocation4], 1024  }
  0x12   : > { %1418 = vsyncadd (%p1489_p4), [#allocation4], 4294966272 }
  0x13   : > { %1420 = dma.done.wait (%p1489_p4), [#allocation6], 16  }
  0x14   : > { %1422 = vsyncadd (%p1489_p4), [#allocation6], 4294967280  ;;  %v1174_v0 = vld [vmem:[#allocation3 + $0x38] sm:$0xff]  ;;  %v1173_v1 = vld [vmem:[#allocation3 + $0x30] sm:$0xff]  ;;  %s1049_s8 = sshll.u32 %s1425_s15, 5 }
  0x15   : > { %563 = vmatpush.bf16.msra.mxu0 %v1174_v0  ;;  %1270 = vmatpush.bf16.msra.mxu1 %v1174_v0  ;;  %v1172_v2 = vld [vmem:[#allocation3 + $0x28] sm:$0xff]  ;;  %v1171_v3 = vld [vmem:[#allocation3 + $0x20] sm:$0xff]  ;;  %v1170_v4 = vld [vmem:[#allocation3 + $0x18] sm:$0xff]  ;;  %p282_p7 = scmp.lt.s32.totalorder %s1049_s8, 63 }
  0x16   : > { %1271 = vmatpush.bf16.msra.mxu2 %v1174_v0  ;;  %1272 = vmatpush.bf16.msra.mxu3 %v1174_v0  ;;  %v1169_v5 = vld [vmem:[#allocation3 + $0x10] sm:$0xff]  ;;  %v1168_v6 = vld [vmem:[#allocation3 + $0x8] sm:$0xff]  ;;  %v1167_v7 = vld [vmem:[#allocation3] sm:$0xff] }
  0x17   : > { %s1655_s8 = smov (!%p282_p7, %s1049_s8), 63  ;;  %v1540_v26 = vld [vmem:[#allocation5] ss:$0 sm:$0xff] }
  0x18   : > { %s1050_s9 = sshll.u32 %s1655_s8, 2  ;;  %v1546_v28 = vld [vmem:[%s1646_s3] ss:$0 sm:$0xff] }
  0x19   : > { %564 = vmatpush.bf16.msra.mxu0 %v1173_v1  ;;  %1273 = vmatpush.bf16.msra.mxu1 %v1173_v1  ;;  %s1522_s12 = scalar_lea.vmem %s1643_s0, %s1050_s9  ;;  %s1562_s20 = scalar_lea.vmem %s1647_s4, %s1050_s9 }
  0x1a   : > { %1274 = vmatpush.bf16.msra.mxu2 %v1173_v1  ;;  %1275 = vmatpush.bf16.msra.mxu3 %v1173_v1  ;;  %v1151_v8 = vld [vmem:[%s1522_s12] sm:$0xff]  ;;  %v1152_v12 = vld [vmem:[%s1522_s12 + $0x8] sm:$0xff]  ;;  %v1153_v16 = vld [vmem:[%s1522_s12 + $0x10] sm:$0xff] }
  0x1b   : > { %v1155_v9 = vld [vmem:[%s1522_s12 + $0x20] sm:$0xff]  ;;  %v1156_v13 = vld [vmem:[%s1522_s12 + $0x28] sm:$0xff]  ;;  %v1157_v17 = vld [vmem:[%s1522_s12 + $0x30] sm:$0xff] }
  0x1c   : > { %v1159_v10 = vld [vmem:[%s1522_s12 + $0x40] sm:$0xff]  ;;  %v1160_v14 = vld [vmem:[%s1522_s12 + $0x48] sm:$0xff]  ;;  %v1161_v18 = vld [vmem:[%s1522_s12 + $0x50] sm:$0xff] }
  0x1d   : > { %565 = vmatpush.bf16.msra.mxu0 %v1172_v2  ;;  %1276 = vmatpush.bf16.msra.mxu1 %v1172_v2  ;;  %v1163_v11 = vld [vmem:[%s1522_s12 + $0x60] sm:$0xff]  ;;  %v1164_v15 = vld [vmem:[%s1522_s12 + $0x68] sm:$0xff]  ;;  %v1165_v19 = vld [vmem:[%s1522_s12 + $0x70] sm:$0xff] }
  0x1e   : > { %1277 = vmatpush.bf16.msra.mxu2 %v1172_v2  ;;  %1278 = vmatpush.bf16.msra.mxu3 %v1172_v2  ;;  %v1154_v20 = vld [vmem:[%s1522_s12 + $0x18] sm:$0xff] }
  0x1f   : > { %v1158_v21 = vld [vmem:[%s1522_s12 + $0x38] sm:$0xff] }
  0x20   : > { %v1162_v22 = vld [vmem:[%s1522_s12 + $0x58] sm:$0xff] }
  0x21   : > { %566 = vmatpush.bf16.msra.mxu0 %v1171_v3  ;;  %1279 = vmatpush.bf16.msra.mxu1 %v1171_v3  ;;  %v1166_v23 = vld [vmem:[%s1522_s12 + $0x78] sm:$0xff] }
  0x22   : > { %1280 = vmatpush.bf16.msra.mxu2 %v1171_v3  ;;  %1281 = vmatpush.bf16.msra.mxu3 %v1171_v3 }
  0x25   : > { %567 = vmatpush.bf16.msra.mxu0 %v1170_v4  ;;  %1282 = vmatpush.bf16.msra.mxu1 %v1170_v4 }
  0x26   : > { %1283 = vmatpush.bf16.msra.mxu2 %v1170_v4  ;;  %1284 = vmatpush.bf16.msra.mxu3 %v1170_v4 }
  0x29   : > { %568 = vmatpush.bf16.msra.mxu0 %v1169_v5  ;;  %1285 = vmatpush.bf16.msra.mxu1 %v1169_v5 }
  0x2a   : > { %1286 = vmatpush.bf16.msra.mxu2 %v1169_v5  ;;  %1287 = vmatpush.bf16.msra.mxu3 %v1169_v5 }
  0x2d   : > { %569 = vmatpush.bf16.msra.mxu0 %v1168_v6  ;;  %1288 = vmatpush.bf16.msra.mxu1 %v1168_v6 }
  0x2e   : > { %1289 = vmatpush.bf16.msra.mxu2 %v1168_v6  ;;  %1290 = vmatpush.bf16.msra.mxu3 %v1168_v6 }
  0x31   : > { %570 = vmatpush.bf16.msra.mxu0 %v1167_v7  ;;  %1291 = vmatpush.bf16.msra.mxu1 %v1167_v7 }
  0x32   : > { %1292 = vmatpush.bf16.msra.mxu2 %v1167_v7  ;;  %1293 = vmatpush.bf16.msra.mxu3 %v1167_v7 }
  0x34   : > { %571 = vmatmul.bf16.vlgmr.msra.gmra.mxu0 %v1151_v8  ;;  %591 = vmatmul.bf16.vlgmr.msra.gmra.mxu1 %v1155_v9 }
  0x35   : > { %611 = vmatmul.bf16.vlgmr.msra.gmra.mxu2 %v1159_v10  ;;  %631 = vmatmul.bf16.vlgmr.msra.gmra.mxu3 %v1163_v11 }
  0x44   : > { %576 = vmatmul.bf16.gmra.mxu0 %v1152_v12  ;;  %596 = vmatmul.bf16.gmra.mxu1 %v1156_v13 }
  0x45   : > { %616 = vmatmul.bf16.gmra.mxu2 %v1160_v14  ;;  %636 = vmatmul.bf16.gmra.mxu3 %v1164_v15 }
  0x54   : > { %581 = vmatmul.bf16.gmra.mxu0 %v1153_v16  ;;  %601 = vmatmul.bf16.gmra.mxu1 %v1157_v17 }
  0x55   : > { %621 = vmatmul.bf16.gmra.mxu2 %v1161_v18  ;;  %641 = vmatmul.bf16.gmra.mxu3 %v1165_v19 }
  0x64   : > { %586 = vmatmul.bf16.gmra.mxu0 %v1154_v20  ;;  %606 = vmatmul.bf16.gmra.mxu1 %v1158_v21 }
  0x65   : > { %626 = vmatmul.bf16.gmra.mxu2 %v1162_v22  ;;  %646 = vmatmul.bf16.gmra.mxu3 %v1166_v23 }
  0xb1   : > { %v572_v24 = vpop.f32.mrf.mxu0  ;;  %v592_v25 = vpop.f32.mrf.mxu1 }
  0xb2   : > { %v755_v27 = vmul.f32 %v1540_v26, %v572_v24  ;;  %v763_v29 = vmul.f32 %v1540_v26, %v592_v25 }
  0xb4   : > { %v791_v34 = vadd.f32 %v1546_v28, %v755_v27  ;;  %v799_v35 = vadd.f32 %v1546_v28, %v763_v29 }
  0xb6   : > { %v823_v42 = vmax.f32 %v791_v34, 0.0  ;;  %v831_v43 = vmax.f32 %v799_v35, 0.0 }
  0xb8   : > { %v612_v30 = vpop.f32.mrf.mxu2  ;;  %v632_v31 = vpop.f32.mrf.mxu3 }
  0xb9   : > { %v574_v32 = vpop.f32.mrf.mxu0  ;;  %v594_v33 = vpop.f32.mrf.mxu1  ;;  %v771_v40 = vmul.f32 %v1540_v26, %v612_v30  ;;  %v779_v41 = vmul.f32 %v1540_v26, %v632_v31 }
  0xba   : > { %v756_v36 = vmul.f32 %v1540_v26, %v574_v32  ;;  %v764_v37 = vmul.f32 %v1540_v26, %v594_v33 }
  0xbb   : > { %v807_v50 = vadd.f32 %v1546_v28, %v771_v40  ;;  %v815_v51 = vadd.f32 %v1546_v28, %v779_v41 }
  0xbc   : > { %v792_v38 = vadd.f32 %v1546_v28, %v756_v36  ;;  %v800_v39 = vadd.f32 %v1546_v28, %v764_v37 }
  0xbd   : > { %v839_v58 = vmax.f32 %v807_v50, 0.0  ;;  %v847_v59 = vmax.f32 %v815_v51, 0.0 }
  0xbe   : > { %v824_v44 = vmax.f32 %v792_v38, 0.0  ;;  %v832_v45 = vmax.f32 %v800_v39, 0.0 }
  0xc0   : > { %v1178_v46 = vpack.c.bf16 %v824_v44, %v823_v42  ;;  %v1198_v47 = vpack.c.bf16 %v832_v45, %v831_v43  ;;  %v614_v48 = vpop.f32.mrf.mxu2  ;;  %v634_v49 = vpop.f32.mrf.mxu3 }
  0xc1   : > { %v772_v52 = vmul.f32 %v1540_v26, %v614_v48  ;;  %v780_v53 = vmul.f32 %v1540_v26, %v634_v49  ;;  %v577_v54 = vpop.f32.mrf.mxu0  ;;  %v597_v55 = vpop.f32.mrf.mxu1 }
  0xc2   : > { %1179 = vst [vmem:[%s1562_s20] sm:$0xff] %v1178_v46   ;;  %v757_v62 = vmul.f32 %v1540_v26, %v577_v54  ;;  %v765_v63 = vmul.f32 %v1540_v26, %v597_v55 }
  0xc3   : > { %1258 = vst [vmem:[%s1562_s20 + $0x20] sm:$0xff] %v1198_v47   ;;  %v808_v56 = vadd.f32 %v1546_v28, %v772_v52  ;;  %v816_v57 = vadd.f32 %v1546_v28, %v780_v53 }
  0xc4   : > { %v793_v6 = vadd.f32 %v1546_v28, %v757_v62  ;;  %v801_v7 = vadd.f32 %v1546_v28, %v765_v63 }
  0xc5   : > { %v840_v60 = vmax.f32 %v808_v56, 0.0  ;;  %v848_v61 = vmax.f32 %v816_v57, 0.0 }
  0xc6   : > { %v825_v14 = vmax.f32 %v793_v6, 0.0  ;;  %v833_v15 = vmax.f32 %v801_v7, 0.0 }
  0xc7   : > { %v1218_v0 = vpack.c.bf16 %v840_v60, %v839_v58  ;;  %v1238_v1 = vpack.c.bf16 %v848_v61, %v847_v59 }
  0xc8   : > { %v617_v2 = vpop.f32.mrf.mxu2  ;;  %v637_v3 = vpop.f32.mrf.mxu3 }
  0xc9   : > { %1262 = vst [vmem:[%s1562_s20 + $0x40] sm:$0xff] %v1218_v0   ;;  %v579_v4 = vpop.f32.mrf.mxu0  ;;  %v599_v5 = vpop.f32.mrf.mxu1  ;;  %v773_v12 = vmul.f32 %v1540_v26, %v617_v2  ;;  %v781_v13 = vmul.f32 %v1540_v26, %v637_v3 }
  0xca   : > { %1266 = vst [vmem:[%s1562_s20 + $0x60] sm:$0xff] %v1238_v1   ;;  %v758_v8 = vmul.f32 %v1540_v26, %v579_v4  ;;  %v766_v9 = vmul.f32 %v1540_v26, %v599_v5 }
  0xcb   : > { %v809_v22 = vadd.f32 %v1546_v28, %v773_v12  ;;  %v817_v23 = vadd.f32 %v1546_v28, %v781_v13 }
  0xcc   : > { %v794_v10 = vadd.f32 %v1546_v28, %v758_v8  ;;  %v802_v11 = vadd.f32 %v1546_v28, %v766_v9 }
  0xcd   : > { %v841_v32 = vmax.f32 %v809_v22, 0.0  ;;  %v849_v33 = vmax.f32 %v817_v23, 0.0 }
  0xce   : > { %v826_v16 = vmax.f32 %v794_v10, 0.0  ;;  %v834_v17 = vmax.f32 %v802_v11, 0.0 }
  0xd0   : > { %v1183_v18 = vpack.c.bf16 %v826_v16, %v825_v14  ;;  %v1203_v19 = vpack.c.bf16 %v834_v17, %v833_v15  ;;  %v619_v20 = vpop.f32.mrf.mxu2  ;;  %v639_v21 = vpop.f32.mrf.mxu3 }
  0xd1   : > { %v774_v24 = vmul.f32 %v1540_v26, %v619_v20  ;;  %v782_v25 = vmul.f32 %v1540_v26, %v639_v21  ;;  %v582_v27 = vpop.f32.mrf.mxu0  ;;  %v602_v29 = vpop.f32.mrf.mxu1 }
  0xd2   : > { %1255 = vst [vmem:[%s1562_s20 + $0x8] sm:$0xff] %v1183_v18   ;;  %v759_v36 = vmul.f32 %v1540_v26, %v582_v27  ;;  %v767_v37 = vmul.f32 %v1540_v26, %v602_v29 }
  0xd3   : > { %1259 = vst [vmem:[%s1562_s20 + $0x28] sm:$0xff] %v1203_v19   ;;  %v810_v30 = vadd.f32 %v1546_v28, %v774_v24  ;;  %v818_v31 = vadd.f32 %v1546_v28, %v782_v25 }
  0xd4   : > { %v795_v44 = vadd.f32 %v1546_v28, %v759_v36  ;;  %v803_v45 = vadd.f32 %v1546_v28, %v767_v37 }
  0xd5   : > { %v842_v34 = vmax.f32 %v810_v30, 0.0  ;;  %v850_v35 = vmax.f32 %v818_v31, 0.0 }
  0xd6   : > { %v827_v52 = vmax.f32 %v795_v44, 0.0  ;;  %v835_v53 = vmax.f32 %v803_v45, 0.0 }
  0xd7   : > { %v1223_v38 = vpack.c.bf16 %v842_v34, %v841_v32  ;;  %v1243_v39 = vpack.c.bf16 %v850_v35, %v849_v33 }
  0xd8   : > { %v622_v40 = vpop.f32.mrf.mxu2  ;;  %v642_v41 = vpop.f32.mrf.mxu3 }
  0xd9   : > { %1263 = vst [vmem:[%s1562_s20 + $0x48] sm:$0xff] %v1223_v38   ;;  %v584_v42 = vpop.f32.mrf.mxu0  ;;  %v604_v43 = vpop.f32.mrf.mxu1  ;;  %v775_v50 = vmul.f32 %v1540_v26, %v622_v40  ;;  %v783_v51 = vmul.f32 %v1540_v26, %v642_v41 }
  0xda   : > { %1267 = vst [vmem:[%s1562_s20 + $0x68] sm:$0xff] %v1243_v39   ;;  %v760_v46 = vmul.f32 %v1540_v26, %v584_v42  ;;  %v768_v47 = vmul.f32 %v1540_v26, %v604_v43 }
  0xdb   : > { %v811_v60 = vadd.f32 %v1546_v28, %v775_v50  ;;  %v819_v61 = vadd.f32 %v1546_v28, %v783_v51 }
  0xdc   : > { %v796_v48 = vadd.f32 %v1546_v28, %v760_v46  ;;  %v804_v49 = vadd.f32 %v1546_v28, %v768_v47 }
  0xdd   : > { %v843_v4 = vmax.f32 %v811_v60, 0.0  ;;  %v851_v5 = vmax.f32 %v819_v61, 0.0 }
  0xde   : > { %v828_v54 = vmax.f32 %v796_v48, 0.0  ;;  %v836_v55 = vmax.f32 %v804_v49, 0.0 }
  0xe0   : > { %v1188_v56 = vpack.c.bf16 %v828_v54, %v827_v52  ;;  %v1208_v57 = vpack.c.bf16 %v836_v55, %v835_v53  ;;  %v624_v58 = vpop.f32.mrf.mxu2  ;;  %v644_v59 = vpop.f32.mrf.mxu3 }
  0xe1   : > { %v776_v62 = vmul.f32 %v1540_v26, %v624_v58  ;;  %v784_v63 = vmul.f32 %v1540_v26, %v644_v59  ;;  %v587_v0 = vpop.f32.mrf.mxu0  ;;  %v607_v1 = vpop.f32.mrf.mxu1 }
  0xe2   : > { %1256 = vst [vmem:[%s1562_s20 + $0x10] sm:$0xff] %v1188_v56   ;;  %v761_v8 = vmul.f32 %v1540_v26, %v587_v0  ;;  %v769_v9 = vmul.f32 %v1540_v26, %v607_v1 }
  0xe3   : > { %1260 = vst [vmem:[%s1562_s20 + $0x30] sm:$0xff] %v1208_v57   ;;  %v812_v2 = vadd.f32 %v1546_v28, %v776_v62  ;;  %v820_v3 = vadd.f32 %v1546_v28, %v784_v63 }
  0xe4   : > { %v797_v16 = vadd.f32 %v1546_v28, %v761_v8  ;;  %v805_v17 = vadd.f32 %v1546_v28, %v769_v9 }
  0xe5   : > { %v844_v6 = vmax.f32 %v812_v2, 0.0  ;;  %v852_v7 = vmax.f32 %v820_v3, 0.0 }
  0xe6   : > { %v829_v24 = vmax.f32 %v797_v16, 0.0  ;;  %v837_v25 = vmax.f32 %v805_v17, 0.0 }
  0xe7   : > { %v1228_v10 = vpack.c.bf16 %v844_v6, %v843_v4  ;;  %v1248_v11 = vpack.c.bf16 %v852_v7, %v851_v5 }
  0xe8   : > { %v627_v12 = vpop.f32.mrf.mxu2  ;;  %v647_v13 = vpop.f32.mrf.mxu3 }
  0xe9   : > { %1264 = vst [vmem:[%s1562_s20 + $0x50] sm:$0xff] %v1228_v10   ;;  %v589_v14 = vpop.f32.mrf.mxu0  ;;  %v609_v15 = vpop.f32.mrf.mxu1  ;;  %v777_v22 = vmul.f32 %v1540_v26, %v627_v12  ;;  %v785_v23 = vmul.f32 %v1540_v26, %v647_v13 }
  0xea   : > { %1268 = vst [vmem:[%s1562_s20 + $0x70] sm:$0xff] %v1248_v11   ;;  %v762_v18 = vmul.f32 %v1540_v26, %v589_v14  ;;  %v770_v19 = vmul.f32 %v1540_v26, %v609_v15 }
  0xeb   : > { %v813_v34 = vadd.f32 %v1546_v28, %v777_v22  ;;  %v821_v35 = vadd.f32 %v1546_v28, %v785_v23 }
  0xec   : > { %v798_v20 = vadd.f32 %v1546_v28, %v762_v18  ;;  %v806_v21 = vadd.f32 %v1546_v28, %v770_v19 }
  0xed   : > { %v845_v40 = vmax.f32 %v813_v34, 0.0  ;;  %v853_v41 = vmax.f32 %v821_v35, 0.0 }
  0xee   : > { %v830_v27 = vmax.f32 %v798_v20, 0.0  ;;  %v838_v29 = vmax.f32 %v806_v21, 0.0 }
  0xf0   : > { %v1193_v30 = vpack.c.bf16 %v830_v27, %v829_v24  ;;  %v1213_v31 = vpack.c.bf16 %v838_v29, %v837_v25  ;;  %v629_v32 = vpop.f32.mrf.mxu2  ;;  %v649_v33 = vpop.f32.mrf.mxu3 }
  0xf1   : > { %v778_v36 = vmul.f32 %v1540_v26, %v629_v32  ;;  %v786_v37 = vmul.f32 %v1540_v26, %v649_v33 }
  0xf2   : > { %1257 = vst [vmem:[%s1562_s20 + $0x18] sm:$0xff] %v1193_v30  }
  0xf3   : > { %1261 = vst [vmem:[%s1562_s20 + $0x38] sm:$0xff] %v1213_v31   ;;  %v814_v38 = vadd.f32 %v1546_v28, %v778_v36  ;;  %v822_v39 = vadd.f32 %v1546_v28, %v786_v37 }
  0xf5   : > { %v846_v42 = vmax.f32 %v814_v38, 0.0  ;;  %v854_v43 = vmax.f32 %v822_v39, 0.0 }
  0xf7   : > { %v1233_v44 = vpack.c.bf16 %v846_v42, %v845_v40  ;;  %v1253_v45 = vpack.c.bf16 %v854_v43, %v853_v41 }
  0xf9   : > { %1265 = vst [vmem:[%s1562_s20 + $0x58] sm:$0xff] %v1233_v44  }
  0xfa   : > { %1269 = vst [vmem:[%s1562_s20 + $0x78] sm:$0xff] %v1253_v45  }
  0xfb PF: > { %s16_s17 = sadd.s32 1, %s1433_s17   ;;  %s1650_s15 = smov %s1429_s16 }
  0xfc   : > { %p13_p8 = scmp.ge.s32.totalorder %s16_s17, 4   ;;  %s1651_s16 = smov %s1653_s19 }
  0xfe   :  { %15 = sbr.rel (!%p13_p8) target bundleno = 3 (0x3), region = 88 }
 0x103   :  { %947 = vsyncpa [#allocation4], 1 }
 0x104   :  { %949 = vsyncpa [#allocation4 + $0x1], 1 }
 0x105   :  { %950 = vsyncpa [#allocation6], 1 }

// kernel: _lambda_.16
= control target key start
LH: loop header
LB: loop body
LE: loop exit
PB: predicated region body
PF: predicated region fallthrough
CT: control target
= control target key end

     0   :  { %vm296_vm0 = vcmask 523264   ;;  %vm585_vm1 = vcmask 519168   ;;  %s1539_s0 = inlined_call_operand.vmem [shape: bf16[9,128,64], index: 0, kind: input, shape index: {}]   ;;  %s1540_s1 = inlined_call_operand.vmem [shape: bf16[128,64], index: 1, kind: output, shape index: {}]  }
   0x1   :  { %v607_v0 = vld [vmem:[%s1539_s0] sm:$0xff]   ;;  %v1018_v35 = vld [vmem:[%s1539_s0 + $0x8] sm:$0xff]  }
   0x2   :  { %v901_v1 = vld [vmem:[%s1539_s0 + $0x40] sm:$0xff]   ;;  %v608_v3 = vunpack.c.l.bf16 %v607_v0  ;;  %v609_v19 = vunpack.c.h.bf16 %v607_v0  ;;  %v1023_v36 = vld [vmem:[%s1539_s0 + $0x48] sm:$0xff]   ;;  %v612_v49 = vunpack.c.l.bf16 %v1018_v35 }
   0x3   :  { %v909_v2 = vld [vmem:[%s1539_s0 + $0x80] sm:$0xff]   ;;  %v640_v4 = vunpack.c.l.bf16 %v901_v1  ;;  %v641_v20 = vunpack.c.h.bf16 %v901_v1  ;;  %v910_v41 = vld [vmem:[%s1539_s0 + $0x88] sm:$0xff]   ;;  %v644_v50 = vunpack.c.l.bf16 %v1023_v36 }
   0x4   :  { %v672_v5 = vunpack.c.l.bf16 %v909_v2  ;;  %v917_v6 = vld [vmem:[%s1539_s0 + $0xc0] sm:$0xff]   ;;  %v297_v16 = vsel %vm296_vm0, %v608_v3, -inf  ;;  %v673_v25 = vunpack.c.h.bf16 %v909_v2  ;;  %v314_v32 = vsel %vm296_vm0, %v609_v19, -inf  ;;  %v1031_v42 = vld [vmem:[%s1539_s0 + $0xc8] sm:$0xff]  }
   0x5   :  { %v925_v7 = vld [vmem:[%s1539_s0 + $0x100] sm:$0xff]   ;;  %v704_v9 = vunpack.c.l.bf16 %v917_v6  ;;  %v298_v17 = vsel %vm296_vm0, %v640_v4, -inf  ;;  %v705_v26 = vunpack.c.h.bf16 %v917_v6  ;;  %v315_v33 = vsel %vm296_vm0, %v641_v20, -inf  ;;  %v1041_v51 = vld [vmem:[%s1539_s0 + $0x108] sm:$0xff]  }
   0x6   :  { %v933_v8 = vld [vmem:[%s1539_s0 + $0x140] sm:$0xff]   ;;  %v736_v12 = vunpack.c.l.bf16 %v925_v7  ;;  %v300_v18 = vsel %vm296_vm0, %v672_v5, -inf  ;;  %v299_v22 = vmax.f32 %v297_v16, %v298_v17  ;;  %v737_v31 = vunpack.c.h.bf16 %v925_v7  ;;  %v1051_v60 = vld [vmem:[%s1539_s0 + $0x148] sm:$0xff]  }
   0x7   :  { %v941_v10 = vld [vmem:[%s1539_s0 + $0x180] sm:$0xff]   ;;  %v768_v13 = vunpack.c.l.bf16 %v933_v8  ;;  %v302_v24 = vsel %vm296_vm0, %v704_v9, -inf  ;;  %v317_v34 = vsel %vm296_vm0, %v673_v25, -inf  ;;  %v769_v38 = vunpack.c.h.bf16 %v933_v8  ;;  %v1056_v61 = vld [vmem:[%s1539_s0 + $0x188] sm:$0xff]  }
   0x8   :  { %v949_v11 = vld [vmem:[%s1539_s0 + $0x1c0] sm:$0xff]   ;;  %v800_v14 = vunpack.c.l.bf16 %v941_v10  ;;  %v301_v27 = vmax.f32 %v299_v22, %v300_v18  ;;  %v304_v28 = vsel %vm296_vm0, %v736_v12, -inf  ;;  %v801_v39 = vunpack.c.h.bf16 %v941_v10  ;;  %v1061_v62 = vld [vmem:[%s1539_s0 + $0x1c8] sm:$0xff]  }
   0x9   :  { %v1002_v15 = vld [vmem:[%s1539_s0 + $0x200] sm:$0xff]   ;;  %v832_v21 = vunpack.c.l.bf16 %v949_v11  ;;  %v306_v29 = vsel %vm296_vm0, %v768_v13, -inf  ;;  %v316_v40 = vmax.f32 %v314_v32, %v315_v33  ;;  %v833_v45 = vunpack.c.h.bf16 %v949_v11  ;;  %v1074_v10 = vld [vmem:[%s1539_s0 + $0x208] sm:$0xff]   ;;  %v1090_v32 = vld [vmem:[%s1539_s0 + $0x10] sm:$0xff]  }
   0xa   :  { %v864_v23 = vunpack.c.l.bf16 %v1002_v15  ;;  %v308_v30 = vsel %vm296_vm0, %v800_v14, -inf  ;;  %v303_v37 = vmax.f32 %v301_v27, %v302_v24  ;;  %v319_v46 = vsel %vm296_vm0, %v705_v26, -inf }
   0xb   :  { %v310_v43 = vsel %vm296_vm0, %v832_v21, -inf  ;;  %v318_v48 = vmax.f32 %v316_v40, %v317_v34  ;;  %v865_v52 = vunpack.c.h.bf16 %v1002_v15  ;;  %v321_v53 = vsel %vm296_vm0, %v737_v31, -inf }
   0xc   :  { %v312_v44 = vsel %vm296_vm0, %v864_v23, -inf  ;;  %v305_v47 = vmax.f32 %v303_v37, %v304_v28  ;;  %v676_v54 = vunpack.c.l.bf16 %v910_v41  ;;  %v708_v55 = vunpack.c.l.bf16 %v1031_v42  ;;  %v903_v37 = vld [vmem:[%s1539_s0 + $0x50] sm:$0xff]  }
   0xd   :  { %v320_v57 = vmax.f32 %v318_v48, %v319_v46  ;;  %v323_v58 = vsel %vm296_vm0, %v769_v38, -inf  ;;  %v325_v59 = vsel %vm296_vm0, %v801_v39, -inf  ;;  %v740_v63 = vunpack.c.l.bf16 %v1041_v51 }
   0xe   :  { %v307_v56 = vmax.f32 %v305_v47, %v306_v29  ;;  %v331_v0 = vsel %vm296_vm0, %v612_v49, -inf  ;;  %v332_v1 = vsel %vm296_vm0, %v644_v50, -inf  ;;  %v334_v2 = vsel %vm296_vm0, %v676_v54, -inf }
   0xf   :  { %v322_v4 = vmax.f32 %v320_v57, %v321_v53  ;;  %v327_v5 = vsel %vm296_vm0, %v833_v45, -inf  ;;  %v333_v6 = vmax.f32 %v331_v0, %v332_v1  ;;  %v772_v7 = vunpack.c.l.bf16 %v1051_v60  ;;  %v1142_v0 = vld [vmem:[%s1539_s0 + $0x1d0] sm:$0xff]  }
  0x10   :  { %v309_v3 = vmax.f32 %v307_v56, %v308_v30  ;;  %v804_v8 = vunpack.c.l.bf16 %v1056_v61  ;;  %v836_v9 = vunpack.c.l.bf16 %v1061_v62  ;;  %v336_v11 = vsel %vm296_vm0, %v708_v55, -inf }
  0x11   :  { %v324_v13 = vmax.f32 %v322_v4, %v323_v58  ;;  %v329_v14 = vsel %vm296_vm0, %v865_v52, -inf  ;;  %v335_v15 = vmax.f32 %v333_v6, %v334_v2  ;;  %v338_v16 = vsel %vm296_vm0, %v740_v63, -inf  ;;  %v1119_v52 = vld [vmem:[%s1539_s0 + $0x110] sm:$0xff]  }
  0x12   :  { %v311_v12 = vmax.f32 %v309_v3, %v310_v43  ;;  %v613_v17 = vunpack.c.h.bf16 %v1018_v35  ;;  %v645_v18 = vunpack.c.h.bf16 %v1023_v36  ;;  %v677_v19 = vunpack.c.h.bf16 %v910_v41  ;;  %v1110_v43 = vld [vmem:[%s1539_s0 + $0xd0] sm:$0xff]  }
  0x13   :  { %v326_v21 = vmax.f32 %v324_v13, %v325_v59  ;;  %v868_v22 = vunpack.c.l.bf16 %v1074_v10  ;;  %v337_v23 = vmax.f32 %v335_v15, %v336_v11  ;;  %v340_v24 = vsel %vm296_vm0, %v772_v7, -inf  ;;  %v959_v11 = vld [vmem:[%s1539_s0 + $0x210] sm:$0xff]  }
  0x14   :  { %v313_v20 = vmax.f32 %v311_v12, %v312_v44  ;;  %v342_v25 = vsel %vm296_vm0, %v804_v8, -inf  ;;  %v344_v26 = vsel %vm296_vm0, %v836_v9, -inf  ;;  %v709_v27 = vunpack.c.h.bf16 %v1031_v42  ;;  %v911_v42 = vld [vmem:[%s1539_s0 + $0x90] sm:$0xff]  }
  0x15   :  { %v328_v29 = vmax.f32 %v326_v21, %v327_v5  ;;  %v339_v30 = vmax.f32 %v337_v23, %v338_v16  ;;  %v348_v31 = vsel %vm296_vm0, %v613_v17, -inf  ;;  %v741_v33 = vunpack.c.h.bf16 %v1041_v51 }
  0x16   :  { %v569_v28 = vpack.c.bf16 %v313_v20, %v313_v20  ;;  %v773_v34 = vunpack.c.h.bf16 %v1051_v60  ;;  %v349_v35 = vsel %vm296_vm0, %v645_v18, -inf  ;;  %v351_v36 = vsel %vm296_vm0, %v677_v19, -inf }
  0x17   :  { %v330_v38 = vmax.f32 %v328_v29, %v329_v14  ;;  %v341_v39 = vmax.f32 %v339_v30, %v340_v24  ;;  %v805_v40 = vunpack.c.h.bf16 %v1056_v61  ;;  %v350_v41 = vmax.f32 %v348_v31, %v349_v35  ;;  %v935_v61 = vld [vmem:[%s1539_s0 + $0x150] sm:$0xff]  }
  0x18   :  { %586 = vst.msk [vmem:[%s1540_s1] sm:$0xf] %vm585_vm1, %v569_v28  ;;  %v346_v44 = vsel %vm296_vm0, %v868_v22, -inf  ;;  %v837_v45 = vunpack.c.h.bf16 %v1061_v62  ;;  %v353_v46 = vsel %vm296_vm0, %v709_v27, -inf  ;;  %v616_v47 = vunpack.c.l.bf16 %v1090_v32  ;;  %v1136_v62 = vld [vmem:[%s1539_s0 + $0x190] sm:$0xff]  }
  0x19   :  { %v570_v48 = vpack.c.bf16 %v330_v38, %v330_v38  ;;  %v343_v49 = vmax.f32 %v341_v39, %v342_v25  ;;  %v352_v50 = vmax.f32 %v350_v41, %v351_v36  ;;  %v648_v51 = vunpack.c.l.bf16 %v903_v37  ;;  %v912_v39 = vld [vmem:[%s1539_s0 + $0x98] sm:$0xff]  }
  0x1a   :  { %v869_v53 = vunpack.c.h.bf16 %v1074_v10  ;;  %v355_v54 = vsel %vm296_vm0, %v741_v33, -inf  ;;  %v680_v55 = vunpack.c.l.bf16 %v911_v42  ;;  %v712_v56 = vunpack.c.l.bf16 %v1110_v43  ;;  %v896_v33 = vld [vmem:[%s1539_s0 + $0x18] sm:$0xff]  }
  0x1b   :  { %587 = vst.msk [vmem:[%s1540_s1 + $0x4] sm:$0xf] %vm585_vm1, %v570_v48  ;;  %v345_v57 = vmax.f32 %v343_v49, %v344_v26  ;;  %v354_v58 = vmax.f32 %v352_v50, %v353_v46  ;;  %v357_v59 = vsel %vm296_vm0, %v773_v34, -inf  ;;  %v359_v60 = vsel %vm296_vm0, %v805_v40, -inf  ;;  %v904_v34 = vld [vmem:[%s1539_s0 + $0x58] sm:$0xff]  }
  0x1c   :  { %v744_v63 = vunpack.c.l.bf16 %v1119_v52  ;;  %v365_v1 = vsel %vm296_vm0, %v616_v47, -inf  ;;  %v366_v2 = vsel %vm296_vm0, %v648_v51, -inf  ;;  %v368_v3 = vsel %vm296_vm0, %v680_v55, -inf }
  0x1d   :  { %v347_v4 = vmax.f32 %v345_v57, %v346_v44  ;;  %v356_v5 = vmax.f32 %v354_v58, %v355_v54  ;;  %v361_v6 = vsel %vm296_vm0, %v837_v45, -inf  ;;  %v367_v7 = vmax.f32 %v365_v1, %v366_v2  ;;  %v1184_v44 = vld [vmem:[%s1539_s0 + $0xd8] sm:$0xff]  }
  0x1e   :  { %v363_v8 = vsel %vm296_vm0, %v869_v53, -inf  ;;  %v776_v9 = vunpack.c.l.bf16 %v935_v61  ;;  %v808_v10 = vunpack.c.l.bf16 %v1136_v62  ;;  %v370_v12 = vsel %vm296_vm0, %v712_v56, -inf  ;;  %v928_v53 = vld [vmem:[%s1539_s0 + $0x118] sm:$0xff]  }
  0x1f   :  { %v571_v13 = vpack.c.bf16 %v347_v4, %v347_v4  ;;  %v358_v14 = vmax.f32 %v356_v5, %v357_v59  ;;  %v840_v15 = vunpack.c.l.bf16 %v1142_v0  ;;  %v369_v16 = vmax.f32 %v367_v7, %v368_v3  ;;  %v1196_v58 = vld [vmem:[%s1539_s0 + $0x158] sm:$0xff]  }
  0x20   :  { %v372_v17 = vsel %vm296_vm0, %v744_v63, -inf  ;;  %v617_v18 = vunpack.c.h.bf16 %v1090_v32  ;;  %v649_v19 = vunpack.c.h.bf16 %v903_v37  ;;  %v681_v20 = vunpack.c.h.bf16 %v911_v42  ;;  %v1201_v59 = vld [vmem:[%s1539_s0 + $0x198] sm:$0xff]  }
  0x21   :  { %588 = vst.msk [vmem:[%s1540_s1 + $0x8] sm:$0xf] %vm585_vm1, %v571_v13  ;;  %v360_v21 = vmax.f32 %v358_v14, %v359_v60  ;;  %v872_v22 = vunpack.c.l.bf16 %v959_v11  ;;  %v371_v23 = vmax.f32 %v369_v16, %v370_v12  ;;  %v713_v24 = vunpack.c.h.bf16 %v1110_v43  ;;  %v1212_v63 = vld [vmem:[%s1539_s0 + $0x1d8] sm:$0xff]  }
  0x22   :  { %v374_v25 = vsel %vm296_vm0, %v776_v9, -inf  ;;  %v376_v26 = vsel %vm296_vm0, %v808_v10, -inf  ;;  %v745_v27 = vunpack.c.h.bf16 %v1119_v52  ;;  %v382_v28 = vsel %vm296_vm0, %v617_v18, -inf  ;;  %v1224_v12 = vld [vmem:[%s1539_s0 + $0x218] sm:$0xff]  }
  0x23   :  { %v362_v29 = vmax.f32 %v360_v21, %v361_v6  ;;  %v373_v30 = vmax.f32 %v371_v23, %v372_v17  ;;  %v383_v31 = vsel %vm296_vm0, %v649_v19, -inf  ;;  %v385_v32 = vsel %vm296_vm0, %v681_v20, -inf }
  0x24   :  { %v378_v35 = vsel %vm296_vm0, %v840_v15, -inf  ;;  %v777_v36 = vunpack.c.h.bf16 %v935_v61  ;;  %v809_v37 = vunpack.c.h.bf16 %v1136_v62  ;;  %v384_v38 = vmax.f32 %v382_v28, %v383_v31 }
  0x25   :  { %v364_v40 = vmax.f32 %v362_v29, %v363_v8  ;;  %v375_v41 = vmax.f32 %v373_v30, %v374_v25  ;;  %v841_v42 = vunpack.c.h.bf16 %v1142_v0  ;;  %v387_v43 = vsel %vm296_vm0, %v713_v24, -inf }
  0x26   :  { %v873_v45 = vunpack.c.h.bf16 %v959_v11  ;;  %v386_v46 = vmax.f32 %v384_v38, %v385_v32  ;;  %v620_v47 = vunpack.c.l.bf16 %v896_v33  ;;  %v652_v48 = vunpack.c.l.bf16 %v904_v34 }
  0x27   :  { %v572_v49 = vpack.c.bf16 %v364_v40, %v364_v40  ;;  %v377_v50 = vmax.f32 %v375_v41, %v376_v26  ;;  %v389_v51 = vsel %vm296_vm0, %v745_v27, -inf  ;;  %v684_v52 = vunpack.c.l.bf16 %v912_v39  ;;  %v1255_v41 = vld [vmem:[%s1539_s0 + $0xe0] sm:$0xff]  }
  0x28   :  { %v380_v54 = vsel %vm296_vm0, %v872_v22, -inf  ;;  %v388_v55 = vmax.f32 %v386_v46, %v387_v43  ;;  %v391_v56 = vsel %vm296_vm0, %v777_v36, -inf  ;;  %v716_v57 = vunpack.c.l.bf16 %v1184_v44  ;;  %v913_v36 = vld [vmem:[%s1539_s0 + $0xa0] sm:$0xff]  }
  0x29   :  { %589 = vst.msk [vmem:[%s1540_s1 + $0xc] sm:$0xf] %vm585_vm1, %v572_v49  ;;  %v379_v60 = vmax.f32 %v377_v50, %v378_v35  ;;  %v393_v61 = vsel %vm296_vm0, %v809_v37, -inf  ;;  %v395_v62 = vsel %vm296_vm0, %v841_v42, -inf  ;;  %v399_v0 = vsel %vm296_vm0, %v620_v47, -inf  ;;  %v905_v35 = vld [vmem:[%s1539_s0 + $0x60] sm:$0xff]  }
  0x2a   :  { %v390_v1 = vmax.f32 %v388_v55, %v389_v51  ;;  %v748_v2 = vunpack.c.l.bf16 %v928_v53  ;;  %v400_v3 = vsel %vm296_vm0, %v652_v48, -inf  ;;  %v402_v4 = vsel %vm296_vm0, %v684_v52, -inf  ;;  %v1262_v46 = vld [vmem:[%s1539_s0 + $0x120] sm:$0xff]  }
  0x2b   :  { %v381_v5 = vmax.f32 %v379_v60, %v380_v54  ;;  %v397_v6 = vsel %vm296_vm0, %v873_v45, -inf  ;;  %v780_v7 = vunpack.c.l.bf16 %v1196_v58  ;;  %v401_v8 = vmax.f32 %v399_v0, %v400_v3  ;;  %v1269_v55 = vld [vmem:[%s1539_s0 + $0x160] sm:$0xff]  }
  0x2c   :  { %v392_v9 = vmax.f32 %v390_v1, %v391_v56  ;;  %v812_v10 = vunpack.c.l.bf16 %v1201_v59  ;;  %v844_v11 = vunpack.c.l.bf16 %v1212_v63  ;;  %v404_v13 = vsel %vm296_vm0, %v716_v57, -inf  ;;  %v1282_v60 = vld [vmem:[%s1539_s0 + $0x1a0] sm:$0xff]  }
  0x2d   :  { %v573_v14 = vpack.c.bf16 %v381_v5, %v381_v5  ;;  %v403_v15 = vmax.f32 %v401_v8, %v402_v4  ;;  %v621_v16 = vunpack.c.h.bf16 %v896_v33  ;;  %v653_v17 = vunpack.c.h.bf16 %v904_v34  ;;  %v897_v34 = vld [vmem:[%s1539_s0 + $0x20] sm:$0xff]  }
  0x2e   :  { %v394_v18 = vmax.f32 %v392_v9, %v393_v61  ;;  %v406_v19 = vsel %vm296_vm0, %v748_v2, -inf  ;;  %v685_v20 = vunpack.c.h.bf16 %v912_v39  ;;  %v717_v21 = vunpack.c.h.bf16 %v1184_v44  ;;  %v961_v9 = vld [vmem:[%s1539_s0 + $0x220] sm:$0xff]  }
  0x2f   :  { %590 = vst.msk [vmem:[%s1540_s1 + $0x10] sm:$0xf] %vm585_vm1, %v573_v14  ;;  %v876_v22 = vunpack.c.l.bf16 %v1224_v12  ;;  %v405_v23 = vmax.f32 %v403_v15, %v404_v13  ;;  %v408_v24 = vsel %vm296_vm0, %v780_v7, -inf  ;;  %v749_v25 = vunpack.c.h.bf16 %v928_v53 }
  0x30   :  { %v396_v26 = vmax.f32 %v394_v18, %v395_v62  ;;  %v410_v27 = vsel %vm296_vm0, %v812_v10, -inf  ;;  %v416_v28 = vsel %vm296_vm0, %v621_v16, -inf  ;;  %v417_v29 = vsel %vm296_vm0, %v653_v17, -inf }
  0x31   :  { %v407_v30 = vmax.f32 %v405_v23, %v406_v19  ;;  %v412_v31 = vsel %vm296_vm0, %v844_v11, -inf  ;;  %v418_v32 = vmax.f32 %v416_v28, %v417_v29  ;;  %v419_v33 = vsel %vm296_vm0, %v685_v20, -inf }
  0x32   :  { %v398_v37 = vmax.f32 %v396_v26, %v397_v6  ;;  %v781_v38 = vunpack.c.h.bf16 %v1196_v58  ;;  %v813_v39 = vunpack.c.h.bf16 %v1201_v59  ;;  %v421_v40 = vsel %vm296_vm0, %v717_v21, -inf }
  0x33   :  { %v409_v42 = vmax.f32 %v407_v30, %v408_v24  ;;  %v845_v43 = vunpack.c.h.bf16 %v1212_v63  ;;  %v420_v44 = vmax.f32 %v418_v32, %v419_v33  ;;  %v423_v45 = vsel %vm296_vm0, %v749_v25, -inf  ;;  %v1287_v63 = vld [vmem:[%s1539_s0 + $0x1e0] sm:$0xff]  }
  0x34   :  { %v574_v47 = vpack.c.bf16 %v398_v37, %v398_v37  ;;  %v624_v48 = vunpack.c.l.bf16 %v897_v34  ;;  %v656_v49 = vunpack.c.l.bf16 %v905_v35  ;;  %v688_v50 = vunpack.c.l.bf16 %v913_v36  ;;  %v914_v37 = vld [vmem:[%s1539_s0 + $0xa8] sm:$0xff]  }
  0x35   :  { %v411_v51 = vmax.f32 %v409_v42, %v410_v27  ;;  %v414_v52 = vsel %vm296_vm0, %v876_v22, -inf  ;;  %v422_v53 = vmax.f32 %v420_v44, %v421_v40  ;;  %v720_v54 = vunpack.c.l.bf16 %v1255_v41  ;;  %v1330_v42 = vld [vmem:[%s1539_s0 + $0xe8] sm:$0xff]  }
  0x36   :  { %591 = vst.msk [vmem:[%s1540_s1 + $0x14] sm:$0xf] %vm585_vm1, %v574_v47  ;;  %v877_v56 = vunpack.c.h.bf16 %v1224_v12  ;;  %v425_v57 = vsel %vm296_vm0, %v781_v38, -inf  ;;  %v427_v58 = vsel %vm296_vm0, %v813_v39, -inf  ;;  %v752_v59 = vunpack.c.l.bf16 %v1262_v46 }
  0x37   :  { %v413_v61 = vmax.f32 %v411_v51, %v412_v31  ;;  %v424_v62 = vmax.f32 %v422_v53, %v423_v45  ;;  %v433_v0 = vsel %vm296_vm0, %v624_v48, -inf  ;;  %v434_v1 = vsel %vm296_vm0, %v656_v49, -inf  ;;  %v898_v31 = vld [vmem:[%s1539_s0 + $0x28] sm:$0xff]  }
  0x38   :  { %v429_v2 = vsel %vm296_vm0, %v845_v43, -inf  ;;  %v784_v3 = vunpack.c.l.bf16 %v1269_v55  ;;  %v435_v4 = vmax.f32 %v433_v0, %v434_v1  ;;  %v436_v5 = vsel %vm296_vm0, %v688_v50, -inf  ;;  %v930_v51 = vld [vmem:[%s1539_s0 + $0x128] sm:$0xff]  }
  0x39   :  { %v415_v6 = vmax.f32 %v413_v61, %v414_v52  ;;  %v426_v7 = vmax.f32 %v424_v62, %v425_v57  ;;  %v816_v8 = vunpack.c.l.bf16 %v1282_v60  ;;  %v438_v10 = vsel %vm296_vm0, %v720_v54, -inf  ;;  %v1358_v61 = vld [vmem:[%s1539_s0 + $0x1e8] sm:$0xff]  }
  0x3a   :  { %v848_v11 = vunpack.c.l.bf16 %v1287_v63  ;;  %v437_v12 = vmax.f32 %v435_v4, %v436_v5  ;;  %v440_v13 = vsel %vm296_vm0, %v752_v59, -inf  ;;  %v625_v14 = vunpack.c.h.bf16 %v897_v34 }
  0x3b   :  { %v575_v15 = vpack.c.bf16 %v415_v6, %v415_v6  ;;  %v428_v16 = vmax.f32 %v426_v7, %v427_v58  ;;  %v657_v17 = vunpack.c.h.bf16 %v905_v35  ;;  %v689_v18 = vunpack.c.h.bf16 %v913_v36  ;;  %v906_v36 = vld [vmem:[%s1539_s0 + $0x68] sm:$0xff]  }
  0x3c   :  { %v431_v19 = vsel %vm296_vm0, %v877_v56, -inf  ;;  %v880_v20 = vunpack.c.l.bf16 %v961_v9  ;;  %v439_v21 = vmax.f32 %v437_v12, %v438_v10  ;;  %v721_v22 = vunpack.c.h.bf16 %v1255_v41  ;;  %v1346_v56 = vld [vmem:[%s1539_s0 + $0x168] sm:$0xff]  }
  0x3d   :  { %592 = vst.msk [vmem:[%s1540_s1 + $0x18] sm:$0xf] %vm585_vm1, %v575_v15  ;;  %v430_v23 = vmax.f32 %v428_v16, %v429_v2  ;;  %v442_v24 = vsel %vm296_vm0, %v784_v3, -inf  ;;  %v444_v25 = vsel %vm296_vm0, %v816_v8, -inf  ;;  %v753_v26 = vunpack.c.h.bf16 %v1262_v46  ;;  %v1370_v10 = vld [vmem:[%s1539_s0 + $0x228] sm:$0xff]  }
  0x3e   :  { %v441_v27 = vmax.f32 %v439_v21, %v440_v13  ;;  %v450_v28 = vsel %vm296_vm0, %v625_v14, -inf  ;;  %v451_v29 = vsel %vm296_vm0, %v657_v17, -inf  ;;  %v453_v30 = vsel %vm296_vm0, %v689_v18, -inf }
  0x3f   :  { %v432_v32 = vmax.f32 %v430_v23, %v431_v19  ;;  %v446_v33 = vsel %vm296_vm0, %v848_v11, -inf  ;;  %v785_v34 = vunpack.c.h.bf16 %v1269_v55  ;;  %v452_v35 = vmax.f32 %v450_v28, %v451_v29 }
  0x40   :  { %v443_v38 = vmax.f32 %v441_v27, %v442_v24  ;;  %v817_v39 = vunpack.c.h.bf16 %v1282_v60  ;;  %v849_v40 = vunpack.c.h.bf16 %v1287_v63  ;;  %v455_v41 = vsel %vm296_vm0, %v721_v22, -inf  ;;  %v1353_v60 = vld [vmem:[%s1539_s0 + $0x1a8] sm:$0xff]  }
  0x41   :  { %v576_v43 = vpack.c.bf16 %v432_v32, %v432_v32  ;;  %v881_v44 = vunpack.c.h.bf16 %v961_v9  ;;  %v454_v45 = vmax.f32 %v452_v35, %v453_v30  ;;  %v628_v46 = vunpack.c.l.bf16 %v898_v31  ;;  %v899_v32 = vld [vmem:[%s1539_s0 + $0x30] sm:$0xff]  }
  0x42   :  { %v445_v47 = vmax.f32 %v443_v38, %v444_v25  ;;  %v457_v48 = vsel %vm296_vm0, %v753_v26, -inf  ;;  %v660_v49 = vunpack.c.l.bf16 %v906_v36  ;;  %v692_v50 = vunpack.c.l.bf16 %v914_v37 }
  0x43   :  { %593 = vst.msk [vmem:[%s1540_s1 + $0x1c] sm:$0xf] %vm585_vm1, %v576_v43  ;;  %v448_v52 = vsel %vm296_vm0, %v880_v20, -inf  ;;  %v456_v53 = vmax.f32 %v454_v45, %v455_v41  ;;  %v459_v54 = vsel %vm296_vm0, %v785_v34, -inf  ;;  %v724_v55 = vunpack.c.l.bf16 %v1330_v42  ;;  %v915_v34 = vld [vmem:[%s1539_s0 + $0xb0] sm:$0xff]  }
  0x44   :  { %v447_v57 = vmax.f32 %v445_v47, %v446_v33  ;;  %v461_v58 = vsel %vm296_vm0, %v817_v39, -inf  ;;  %v463_v59 = vsel %vm296_vm0, %v849_v40, -inf  ;;  %v467_v62 = vsel %vm296_vm0, %v628_v46, -inf  ;;  %v907_v33 = vld [vmem:[%s1539_s0 + $0x70] sm:$0xff]  }
  0x45   :  { %v458_v63 = vmax.f32 %v456_v53, %v457_v48  ;;  %v756_v0 = vunpack.c.l.bf16 %v930_v51  ;;  %v468_v1 = vsel %vm296_vm0, %v660_v49, -inf  ;;  %v470_v2 = vsel %vm296_vm0, %v692_v50, -inf  ;;  %v1401_v39 = vld [vmem:[%s1539_s0 + $0xf0] sm:$0xff]  }
  0x46   :  { %v449_v3 = vmax.f32 %v447_v57, %v448_v52  ;;  %v465_v4 = vsel %vm296_vm0, %v881_v44, -inf  ;;  %v788_v5 = vunpack.c.l.bf16 %v1346_v56  ;;  %v469_v6 = vmax.f32 %v467_v62, %v468_v1  ;;  %v1408_v44 = vld [vmem:[%s1539_s0 + $0x130] sm:$0xff]  }
  0x47   :  { %v460_v7 = vmax.f32 %v458_v63, %v459_v54  ;;  %v820_v8 = vunpack.c.l.bf16 %v1353_v60  ;;  %v852_v9 = vunpack.c.l.bf16 %v1358_v61  ;;  %v472_v11 = vsel %vm296_vm0, %v724_v55, -inf }
  0x48   :  { %v577_v12 = vpack.c.bf16 %v449_v3, %v449_v3  ;;  %v471_v13 = vmax.f32 %v469_v6, %v470_v2  ;;  %v629_v14 = vunpack.c.h.bf16 %v898_v31  ;;  %v661_v15 = vunpack.c.h.bf16 %v906_v36 }
  0x49   :  { %v462_v16 = vmax.f32 %v460_v7, %v461_v58  ;;  %v474_v17 = vsel %vm296_vm0, %v756_v0, -inf  ;;  %v693_v18 = vunpack.c.h.bf16 %v914_v37  ;;  %v725_v19 = vunpack.c.h.bf16 %v1330_v42 }
  0x4a   :  { %594 = vst.msk [vmem:[%s1540_s1 + $0x20] sm:$0xf] %vm585_vm1, %v577_v12  ;;  %v884_v20 = vunpack.c.l.bf16 %v1370_v10  ;;  %v473_v21 = vmax.f32 %v471_v13, %v472_v11  ;;  %v476_v22 = vsel %vm296_vm0, %v788_v5, -inf  ;;  %v757_v23 = vunpack.c.h.bf16 %v930_v51  ;;  %v1438_v5 = vld [vmem:[%s1539_s0 + $0x1f0] sm:$0xff]  }
  0x4b   :  { %v464_v24 = vmax.f32 %v462_v16, %v463_v59  ;;  %v478_v25 = vsel %vm296_vm0, %v820_v8, -inf  ;;  %v484_v26 = vsel %vm296_vm0, %v629_v14, -inf  ;;  %v485_v27 = vsel %vm296_vm0, %v661_v15, -inf  ;;  %v1427_v59 = vld [vmem:[%s1539_s0 + $0x1b0] sm:$0xff]  }
  0x4c   :  { %v475_v28 = vmax.f32 %v473_v21, %v474_v17  ;;  %v480_v29 = vsel %vm296_vm0, %v852_v9, -inf  ;;  %v486_v30 = vmax.f32 %v484_v26, %v485_v27  ;;  %v487_v31 = vsel %vm296_vm0, %v693_v18, -inf  ;;  %v1448_v17 = vld [vmem:[%s1539_s0 + $0x230] sm:$0xff]   ;;  %v900_v27 = vld [vmem:[%s1539_s0 + $0x38] sm:$0xff]  }
  0x4d   :  { %v466_v35 = vmax.f32 %v464_v24, %v465_v4  ;;  %v789_v36 = vunpack.c.h.bf16 %v1346_v56  ;;  %v821_v37 = vunpack.c.h.bf16 %v1353_v60  ;;  %v489_v38 = vsel %vm296_vm0, %v725_v19, -inf  ;;  %v1422_v56 = vld [vmem:[%s1539_s0 + $0x170] sm:$0xff]  }
  0x4e   :  { %v477_v40 = vmax.f32 %v475_v28, %v476_v22  ;;  %v853_v41 = vunpack.c.h.bf16 %v1358_v61  ;;  %v488_v42 = vmax.f32 %v486_v30, %v487_v31  ;;  %v491_v43 = vsel %vm296_vm0, %v757_v23, -inf }
  0x4f   :  { %v578_v45 = vpack.c.bf16 %v466_v35, %v466_v35  ;;  %v632_v46 = vunpack.c.l.bf16 %v899_v32  ;;  %v664_v47 = vunpack.c.l.bf16 %v907_v33  ;;  %v696_v48 = vunpack.c.l.bf16 %v915_v34 }
  0x50   :  { %v479_v49 = vmax.f32 %v477_v40, %v478_v25  ;;  %v490_v50 = vmax.f32 %v488_v42, %v489_v38  ;;  %v728_v51 = vunpack.c.l.bf16 %v1401_v39  ;;  %v482_v52 = vsel %vm296_vm0, %v884_v20, -inf  ;;  %v924_v38 = vld [vmem:[%s1539_s0 + $0xf8] sm:$0xff]  }
  0x51   :  { %595 = vst.msk [vmem:[%s1540_s1 + $0x24] sm:$0xf] %vm585_vm1, %v578_v45  ;;  %v885_v53 = vunpack.c.h.bf16 %v1370_v10  ;;  %v493_v54 = vsel %vm296_vm0, %v789_v36, -inf  ;;  %v760_v55 = vunpack.c.l.bf16 %v1408_v44  ;;  %v501_v60 = vsel %vm296_vm0, %v632_v46, -inf }
  0x52   :  { %v481_v57 = vmax.f32 %v479_v49, %v480_v29  ;;  %v492_v58 = vmax.f32 %v490_v50, %v491_v43  ;;  %v502_v61 = vsel %vm296_vm0, %v664_v47, -inf  ;;  %v495_v62 = vsel %vm296_vm0, %v821_v37, -inf  ;;  %v932_v47 = vld [vmem:[%s1539_s0 + $0x138] sm:$0xff]  }
  0x53   :  { %v497_v63 = vsel %vm296_vm0, %v853_v41, -inf  ;;  %v503_v0 = vmax.f32 %v501_v60, %v502_v61  ;;  %v504_v1 = vsel %vm296_vm0, %v696_v48, -inf  ;;  %v792_v4 = vunpack.c.l.bf16 %v1422_v56 }
  0x54   :  { %v483_v2 = vmax.f32 %v481_v57, %v482_v52  ;;  %v494_v3 = vmax.f32 %v492_v58, %v493_v54  ;;  %v506_v6 = vsel %vm296_vm0, %v728_v51, -inf  ;;  %v824_v7 = vunpack.c.l.bf16 %v1427_v59  ;;  %v940_v52 = vld [vmem:[%s1539_s0 + $0x178] sm:$0xff]  }
  0x55   :  { %v505_v8 = vmax.f32 %v503_v0, %v504_v1  ;;  %v508_v9 = vsel %vm296_vm0, %v760_v55, -inf  ;;  %v633_v10 = vunpack.c.h.bf16 %v899_v32  ;;  %v665_v13 = vunpack.c.h.bf16 %v907_v33  ;;  %v908_v32 = vld [vmem:[%s1539_s0 + $0x78] sm:$0xff]  }
  0x56   :  { %v579_v11 = vpack.c.bf16 %v483_v2, %v483_v2  ;;  %v496_v12 = vmax.f32 %v494_v3, %v495_v62  ;;  %v697_v14 = vunpack.c.h.bf16 %v915_v34  ;;  %v499_v15 = vsel %vm296_vm0, %v885_v53, -inf  ;;  %v916_v33 = vld [vmem:[%s1539_s0 + $0xb8] sm:$0xff]  }
  0x57   :  { %v856_v16 = vunpack.c.l.bf16 %v1438_v5  ;;  %v507_v18 = vmax.f32 %v505_v8, %v506_v6  ;;  %v729_v19 = vunpack.c.h.bf16 %v1401_v39  ;;  %v510_v21 = vsel %vm296_vm0, %v792_v4, -inf }
  0x58   :  { %596 = vst.msk [vmem:[%s1540_s1 + $0x28] sm:$0xf] %vm585_vm1, %v579_v11  ;;  %v498_v20 = vmax.f32 %v496_v12, %v497_v63  ;;  %v761_v22 = vunpack.c.h.bf16 %v1408_v44  ;;  %v518_v24 = vsel %vm296_vm0, %v633_v10, -inf  ;;  %v519_v25 = vsel %vm296_vm0, %v665_v13, -inf  ;;  %v964_v12 = vld [vmem:[%s1539_s0 + $0x238] sm:$0xff]  }
  0x59   :  { %v509_v23 = vmax.f32 %v507_v18, %v508_v9  ;;  %v521_v26 = vsel %vm296_vm0, %v697_v14, -inf  ;;  %v888_v29 = vunpack.c.l.bf16 %v1448_v17  ;;  %v512_v30 = vsel %vm296_vm0, %v824_v7, -inf }
  0x5a   :  { %v500_v28 = vmax.f32 %v498_v20, %v499_v15  ;;  %v520_v31 = vmax.f32 %v518_v24, %v519_v25  ;;  %v514_v35 = vsel %vm296_vm0, %v856_v16, -inf  ;;  %v793_v36 = vunpack.c.h.bf16 %v1422_v56  ;;  %v948_v56 = vld [vmem:[%s1539_s0 + $0x1b8] sm:$0xff]  }
  0x5b   :  { %v511_v34 = vmax.f32 %v509_v23, %v510_v21  ;;  %v523_v37 = vsel %vm296_vm0, %v729_v19, -inf  ;;  %v825_v40 = vunpack.c.h.bf16 %v1427_v59  ;;  %v636_v42 = vunpack.c.l.bf16 %v900_v27 }
  0x5c   :  { %v580_v39 = vpack.c.bf16 %v500_v28, %v500_v28  ;;  %v522_v41 = vmax.f32 %v520_v31, %v521_v26  ;;  %v525_v44 = vsel %vm296_vm0, %v761_v22, -inf  ;;  %v668_v45 = vunpack.c.l.bf16 %v908_v32 }
  0x5d   :  { %v513_v43 = vmax.f32 %v511_v34, %v512_v30  ;;  %v700_v46 = vunpack.c.l.bf16 %v916_v33  ;;  %v516_v48 = vsel %vm296_vm0, %v888_v29, -inf  ;;  %v857_v49 = vunpack.c.h.bf16 %v1438_v5  ;;  %v956_v5 = vld [vmem:[%s1539_s0 + $0x1f8] sm:$0xff]  }
  0x5e   :  { %597 = vst.msk [vmem:[%s1540_s1 + $0x2c] sm:$0xf] %vm585_vm1, %v580_v39  ;;  %v524_v50 = vmax.f32 %v522_v41, %v523_v37  ;;  %v732_v51 = vunpack.c.l.bf16 %v924_v38  ;;  %v889_v54 = vunpack.c.h.bf16 %v1448_v17  ;;  %v527_v55 = vsel %vm296_vm0, %v793_v36, -inf }
  0x5f   :  { %v515_v53 = vmax.f32 %v513_v43, %v514_v35  ;;  %v535_v57 = vsel %vm296_vm0, %v636_v42, -inf  ;;  %v764_v59 = vunpack.c.l.bf16 %v932_v47  ;;  %v536_v60 = vsel %vm296_vm0, %v668_v45, -inf }
  0x60   :  { %v526_v58 = vmax.f32 %v524_v50, %v525_v44  ;;  %v538_v61 = vsel %vm296_vm0, %v700_v46, -inf  ;;  %v529_v63 = vsel %vm296_vm0, %v825_v40, -inf  ;;  %v796_v0 = vunpack.c.l.bf16 %v940_v52 }
  0x61   :  { %v517_v62 = vmax.f32 %v515_v53, %v516_v48  ;;  %v537_v1 = vmax.f32 %v535_v57, %v536_v60  ;;  %v531_v3 = vsel %vm296_vm0, %v857_v49, -inf  ;;  %v828_v4 = vunpack.c.l.bf16 %v948_v56 }
  0x62   :  { %v528_v2 = vmax.f32 %v526_v58, %v527_v55  ;;  %v540_v6 = vsel %vm296_vm0, %v732_v51, -inf  ;;  %v637_v9 = vunpack.c.h.bf16 %v900_v27  ;;  %v669_v10 = vunpack.c.h.bf16 %v908_v32 }
  0x63   :  { %v581_v7 = vpack.c.bf16 %v517_v62, %v517_v62  ;;  %v539_v8 = vmax.f32 %v537_v1, %v538_v61  ;;  %v542_v13 = vsel %vm296_vm0, %v764_v59, -inf  ;;  %v701_v14 = vunpack.c.h.bf16 %v916_v33 }
  0x64   :  { %v530_v11 = vmax.f32 %v528_v2, %v529_v63  ;;  %v733_v15 = vunpack.c.h.bf16 %v924_v38  ;;  %v533_v16 = vsel %vm296_vm0, %v889_v54, -inf  ;;  %v860_v17 = vunpack.c.l.bf16 %v956_v5 }
  0x65   :  { %598 = vst.msk [vmem:[%s1540_s1 + $0x30] sm:$0xf] %vm585_vm1, %v581_v7  ;;  %v541_v18 = vmax.f32 %v539_v8, %v540_v6  ;;  %v544_v19 = vsel %vm296_vm0, %v796_v0, -inf  ;;  %v765_v21 = vunpack.c.h.bf16 %v932_v47  ;;  %v552_v22 = vsel %vm296_vm0, %v637_v9, -inf }
  0x66   :  { %v532_v20 = vmax.f32 %v530_v11, %v531_v3  ;;  %v553_v23 = vsel %vm296_vm0, %v669_v10, -inf  ;;  %v892_v24 = vunpack.c.l.bf16 %v964_v12  ;;  %v555_v27 = vsel %vm296_vm0, %v701_v14, -inf }
  0x67   :  { %v543_v25 = vmax.f32 %v541_v18, %v542_v13  ;;  %v554_v26 = vmax.f32 %v552_v22, %v553_v23  ;;  %v546_v29 = vsel %vm296_vm0, %v828_v4, -inf  ;;  %v797_v30 = vunpack.c.h.bf16 %v940_v52 }
  0x68   :  { %v534_v28 = vmax.f32 %v532_v20, %v533_v16  ;;  %v557_v31 = vsel %vm296_vm0, %v733_v15, -inf  ;;  %v548_v35 = vsel %vm296_vm0, %v860_v17, -inf  ;;  %v829_v36 = vunpack.c.h.bf16 %v948_v56 }
  0x69   :  { %v545_v32 = vmax.f32 %v543_v25, %v544_v19  ;;  %v556_v33 = vmax.f32 %v554_v26, %v555_v27  ;;  %v559_v37 = vsel %vm296_vm0, %v765_v21, -inf  ;;  %v550_v40 = vsel %vm296_vm0, %v892_v24, -inf }
  0x6a   :  { %v582_v34 = vpack.c.bf16 %v534_v28, %v534_v28  ;;  %v861_v41 = vunpack.c.h.bf16 %v956_v5  ;;  %v561_v42 = vsel %vm296_vm0, %v797_v30, -inf  ;;  %v893_v45 = vunpack.c.h.bf16 %v964_v12 }
  0x6b   :  { %v547_v38 = vmax.f32 %v545_v32, %v546_v29  ;;  %v558_v39 = vmax.f32 %v556_v33, %v557_v31  ;;  %v563_v46 = vsel %vm296_vm0, %v829_v36, -inf }
  0x6c   :  { %599 = vst.msk [vmem:[%s1540_s1 + $0x34] sm:$0xf] %vm585_vm1, %v582_v34  ;;  %v565_v49 = vsel %vm296_vm0, %v861_v41, -inf  ;;  %v567_v52 = vsel %vm296_vm0, %v893_v45, -inf }
  0x6d   :  { %v549_v43 = vmax.f32 %v547_v38, %v548_v35  ;;  %v560_v44 = vmax.f32 %v558_v39, %v559_v37 }
  0x6f   :  { %v551_v47 = vmax.f32 %v549_v43, %v550_v40  ;;  %v562_v48 = vmax.f32 %v560_v44, %v561_v42 }
  0x71   :  { %v583_v50 = vpack.c.bf16 %v551_v47, %v551_v47  ;;  %v564_v51 = vmax.f32 %v562_v48, %v563_v46 }
  0x73   :  { %600 = vst.msk [vmem:[%s1540_s1 + $0x38] sm:$0xf] %vm585_vm1, %v583_v50  ;;  %v566_v53 = vmax.f32 %v564_v51, %v565_v49 }
  0x75   :  { %v568_v54 = vmax.f32 %v566_v53, %v567_v52 }
  0x77   :  { %v584_v55 = vpack.c.bf16 %v568_v54, %v568_v54 }
  0x79   :  { %601 = vst.msk [vmem:[%s1540_s1 + $0x3c] sm:$0xf] %vm585_vm1, %v584_v55 }

// kernel: _lambda_.17
= control target key start
LH: loop header
LB: loop body
LE: loop exit
PB: predicated region body
PF: predicated region fallthrough
CT: control target
= control target key end

     0   :  { %s1148_s15 = smov 0   ;;  %s1150_s16 = smov 0   ;;  %s1301_s0 = inlined_call_operand.vmem [shape: bf16[128,640], index: 0, kind: input, shape index: {}]   ;;  %s1302_s1 = inlined_call_operand.vmem [shape: bf16[640,128], index: 1, kind: input, shape index: {}]   ;;  %s1303_s2 = inlined_call_operand.vmem [shape: f32[1,128], index: 2, kind: input, shape index: {}]   ;;  %s1304_s3 = inlined_call_operand.vmem [shape: f32[1,128], index: 3, kind: input, shape index: {}]   ;;  %s1305_s4 = inlined_call_operand.vmem [shape: bf16[128,128], index: 4, kind: output, shape index: {}]  }
   0x1   :  { %s1152_s17 = smov 0   ;;  %s1154_s18 = smov 0  }
   0x2   :  { %s1156_s19 = smov 0  }
   0x3 LB: > { %s26_s20 = sadd.s32 1, %s1116_s18  ;;  %p49_p1 = scmp.ne.s32.totalorder %s1108_s16, %s1104_s15  ;;  %s1120_s19 = sphi %s1156_s19, %s14_s19   ;;  %s1116_s18 = sphi %s1154_s18, %s1309_s18   ;;  %s1112_s17 = sphi %s1152_s17, %s1308_s17   ;;  %s1108_s16 = sphi %s1150_s16, %s1307_s16   ;;  %s1104_s15 = sphi %s1148_s15, %s1306_s15  }
   0x4   : > { %p27_p0 = scmp.ge.s32.totalorder %s26_s20, 5  ;;  %p50_p2 = scmp.eq.s32.totalorder %s1120_s19, 0 }
   0x5   : > { %s42_s22 = sadd.s32 1, %s1108_s16  ;;  %p875_p5 = scmp.ge.s32.totalorder %s1120_s19, 5 }
   0x6   : > { %s1311_s20 = smov (%p27_p0, %s26_s20), 0  ;;  %p51_p3 = por %p50_p2, %p49_p1 }
   0x7   : > { %s38_s21 = ssub.s32 %s1116_s18, %s1311_s20  ;;  %195 = sbr.rel (%p875_p5) target bundleno = 32 (0x20), region = 24 }
   0x8   : > { %p40_p4 = scmp.eq.s32.totalorder %s38_s21, 0 }
   0xa   : > { %s1183_s23 = scalar_select %p40_p4, %s1108_s16, %s42_s22  }
   0xc   : > { %198 = sbr.rel (!%p51_p3) target bundleno = 32 (0x20), region = 28  ;;  %s200_s24 = sand.u32 (%p51_p3), 1, %s1108_s16  }
   0xd   : > { %s877_s25 = sshll.u32 (%p51_p3), %s1116_s18, 2  ;;  %s876_s26 = sshll.u32 (%p51_p3), %s200_s24, 6 }
   0xe   : > { %s1191_s29 = scalar_lea.vmem (%p51_p3), %s1301_s0, %s877_s25  ;;  %s202_s30 = scalar_lea.vmem (%p51_p3), [#allocation3], %s876_s26 }
   0xf   : > { %v224_v0 = vld [vmem:[%s1191_s29] sm:$0xf] (%p51_p3)  ;;  %v226_v1 = vld [vmem:[%s1191_s29 + $0x14] sm:$0xf] (%p51_p3)  ;;  %v228_v2 = vld [vmem:[%s1191_s29 + $0x28] sm:$0xf] (%p51_p3) }
  0x10   : > { %225 = vst [vmem:[%s202_s30] sm:$0xf] (%p51_p3), %v224_v0  ;;  %v230_v3 = vld [vmem:[%s1191_s29 + $0x3c] sm:$0xf] (%p51_p3)  ;;  %v232_v4 = vld [vmem:[%s1191_s29 + $0x50] sm:$0xf] (%p51_p3) }
  0x11   : > { %227 = vst [vmem:[%s202_s30 + $0x4] sm:$0xf] %v226_v1  ;;  %v234_v5 = vld [vmem:[%s1191_s29 + $0x64] sm:$0xf]  ;;  %v236_v6 = vld [vmem:[%s1191_s29 + $0x78] sm:$0xf] }
  0x12   : > { %229 = vst [vmem:[%s202_s30 + $0x8] sm:$0xf] %v228_v2  ;;  %v238_v7 = vld [vmem:[%s1191_s29 + $0x8c] sm:$0xf]  ;;  %v240_v8 = vld [vmem:[%s1191_s29 + $0xa0] sm:$0xf] }
  0x13   : > { %231 = vst [vmem:[%s202_s30 + $0xc] sm:$0xf] %v230_v3  ;;  %v242_v9 = vld [vmem:[%s1191_s29 + $0xb4] sm:$0xf]  ;;  %v244_v10 = vld [vmem:[%s1191_s29 + $0xc8] sm:$0xf] }
  0x14   : > { %233 = vst [vmem:[%s202_s30 + $0x10] sm:$0xf] %v232_v4  ;;  %v246_v11 = vld [vmem:[%s1191_s29 + $0xdc] sm:$0xf]  ;;  %v248_v12 = vld [vmem:[%s1191_s29 + $0xf0] sm:$0xf] }
  0x15   : > { %235 = vst [vmem:[%s202_s30 + $0x14] sm:$0xf] %v234_v5  ;;  %v250_v13 = vld [vmem:[%s1191_s29 + $0x104] sm:$0xf]  ;;  %v252_v14 = vld [vmem:[%s1191_s29 + $0x118] sm:$0xf] }
  0x16   : > { %237 = vst [vmem:[%s202_s30 + $0x18] sm:$0xf] %v236_v6  ;;  %v254_v15 = vld [vmem:[%s1191_s29 + $0x12c] sm:$0xf] }
  0x17   : > { %239 = vst [vmem:[%s202_s30 + $0x1c] sm:$0xf] %v238_v7 }
  0x18   : > { %241 = vst [vmem:[%s202_s30 + $0x20] sm:$0xf] %v240_v8 }
  0x19   : > { %243 = vst [vmem:[%s202_s30 + $0x24] sm:$0xf] %v242_v9 }
  0x1a   : > { %245 = vst [vmem:[%s202_s30 + $0x28] sm:$0xf] %v244_v10 }
  0x1b   : > { %247 = vst [vmem:[%s202_s30 + $0x2c] sm:$0xf] %v246_v11 }
  0x1c   : > { %249 = vst [vmem:[%s202_s30 + $0x30] sm:$0xf] %v248_v12 }
  0x1d   : > { %251 = vst [vmem:[%s202_s30 + $0x34] sm:$0xf] %v250_v13 }
  0x1e   : > { %253 = vst [vmem:[%s202_s30 + $0x38] sm:$0xf] %v252_v14 }
  0x1f   : > { %255 = vst [vmem:[%s202_s30 + $0x3c] sm:$0xf] %v254_v15 }
  0x20 PF: > { %p878_p6 = scmp.ge.s32.totalorder %s1120_s19, 1  ;;  %p322_p7 = scmp.lt.s32.totalorder %s1120_s19, 6 }
  0x22   : > { %p323_p8 = pnand %p878_p6, %p322_p7 }
  0x23   : > { %s329_s5 = sand.u32 (!%p323_p8), 1, %s1104_s15   ;;  %s880_s6 = sshll.u32 (!%p323_p8), %s1112_s17, 4 }
  0x24   : > { %326 = sbr.rel (%p323_p8) target bundleno = 277 (0x115), region = 73  ;;  %s879_s7 = sshll.u32 (!%p323_p8), %s329_s5, 6 }
  0x25   : > { %p373_p9 = scmp.lt.s32.totalorder (!%p323_p8), %s880_s6, 79  ;;  %s1218_s12 = scalar_lea.vmem (!%p323_p8), [#allocation3], %s879_s7 }
  0x26   : > { %p882_p10 = scmp.ne.s32.totalorder (!%p323_p8), %s1112_s17, 0 }
  0x29   : > { %s1313_s6 = smov (!%p373_p9, %s880_s6), 79  ;;  %399 = sbr.rel (%p882_p10) target bundleno = 63 (0x3f), region = 81 }
  0x2a   : > { %s881_s8 = sshll.u32 %s1313_s6, 2 }
  0x2b   : > { %s1216_s11 = scalar_lea.vmem %s1302_s1, %s881_s8 }
  0x2e   : > { %v1122_v16 = vmov 0.0  }
  0x2f   : > { %400 = vst [vmem:[#allocation2 + $0x30] sm:$0xff] %v1122_v16 }
  0x30   : > { %401 = vst [vmem:[#allocation2] sm:$0xff] %v1122_v16 }
  0x31   : > { %402 = vst [vmem:[#allocation2 + $0x58] sm:$0xff] %v1122_v16 }
  0x32   : > { %403 = vst [vmem:[#allocation2 + $0x18] sm:$0xff] %v1122_v16 }
  0x33   : > { %404 = vst [vmem:[#allocation2 + $0x50] sm:$0xff] %v1122_v16 }
  0x34   : > { %405 = vst [vmem:[#allocation2 + $0x68] sm:$0xff] %v1122_v16 }
  0x35   : > { %406 = vst [vmem:[#allocation2 + $0x8] sm:$0xff] %v1122_v16 }
  0x36   : > { %407 = vst [vmem:[#allocation2 + $0x48] sm:$0xff] %v1122_v16 }
  0x37   : > { %408 = vst [vmem:[#allocation2 + $0x40] sm:$0xff] %v1122_v16 }
  0x38   : > { %409 = vst [vmem:[#allocation2 + $0x20] sm:$0xff] %v1122_v16 }
  0x39   : > { %410 = vst [vmem:[#allocation2 + $0x10] sm:$0xff] %v1122_v16 }
  0x3a   : > { %411 = vst [vmem:[#allocation2 + $0x38] sm:$0xff] %v1122_v16 }
  0x3b   : > { %412 = vst [vmem:[#allocation2 + $0x60] sm:$0xff] %v1122_v16 }
  0x3c   : > { %413 = vst [vmem:[#allocation2 + $0x70] sm:$0xff] %v1122_v16 }
  0x3d   : > { %414 = vst [vmem:[#allocation2 + $0x78] sm:$0xff] %v1122_v16 }
  0x3e   : > { %415 = vst [vmem:[#allocation2 + $0x28] sm:$0xff] %v1122_v16 }
  0x3f PF: > { %v967_v17 = vld [vmem:[%s1216_s11 + $0x38] sm:$0xff]  ;;  %v966_v18 = vld [vmem:[%s1216_s11 + $0x30] sm:$0xff]  ;;  %v965_v19 = vld [vmem:[%s1216_s11 + $0x28] sm:$0xff]  ;;  %p947_p11 = scmp.ne.s32.totalorder %s1112_s17, 4 }
  0x40   : > { %560 = vmatpush.bf16.msra.mxu0 %v967_v17  ;;  %1015 = vmatpush.bf16.msra.mxu1 %v967_v17  ;;  %v964_v20 = vld [vmem:[%s1216_s11 + $0x20] sm:$0xff]  ;;  %v963_v21 = vld [vmem:[%s1216_s11 + $0x18] sm:$0xff]  ;;  %v962_v22 = vld [vmem:[%s1216_s11 + $0x10] sm:$0xff] }
  0x41   : > { %1016 = vmatpush.bf16.msra.mxu2 %v967_v17  ;;  %1017 = vmatpush.bf16.msra.mxu3 %v967_v17  ;;  %v961_v23 = vld [vmem:[%s1216_s11 + $0x8] sm:$0xff]  ;;  %v960_v24 = vld [vmem:[%s1216_s11] sm:$0xff]  ;;  %v954_v26 = vld [vmem:[%s1218_s12 + $0x10] sm:$0xff] }
  0x42   : > { %v952_v25 = vld [vmem:[%s1218_s12] sm:$0xff]  ;;  %v958_v28 = vld [vmem:[%s1218_s12 + $0x30] sm:$0xff]  ;;  %v953_v29 = vld [vmem:[%s1218_s12 + $0x8] sm:$0xff] }
  0x43   : > { %v956_v27 = vld [vmem:[%s1218_s12 + $0x20] sm:$0xff]  ;;  %v955_v30 = vld [vmem:[%s1218_s12 + $0x18] sm:$0xff]  ;;  %v957_v31 = vld [vmem:[%s1218_s12 + $0x28] sm:$0xff] }
  0x44   : > { %561 = vmatpush.bf16.msra.mxu0 %v966_v18  ;;  %1018 = vmatpush.bf16.msra.mxu1 %v966_v18  ;;  %v959_v32 = vld [vmem:[%s1218_s12 + $0x38] sm:$0xff]  ;;  %v416_v33 = vld [vmem:[#allocation2 + $0x30] sm:$0xff]  ;;  %v424_v39 = vld [vmem:[#allocation2 + $0x40] sm:$0xff] }
  0x45   : > { %1019 = vmatpush.bf16.msra.mxu2 %v966_v18  ;;  %1020 = vmatpush.bf16.msra.mxu3 %v966_v18  ;;  %v420_v34 = vld [vmem:[#allocation2 + $0x50] sm:$0xff]  ;;  %v428_v40 = vld [vmem:[#allocation2 + $0x60] sm:$0xff]  ;;  %v421_v42 = vld [vmem:[#allocation2 + $0x68] sm:$0xff] }
  0x46   : > { %v417_v41 = vld [vmem:[#allocation2] sm:$0xff]  ;;  %v429_v52 = vld [vmem:[#allocation2 + $0x70] sm:$0xff]  ;;  %v418_v53 = vld [vmem:[#allocation2 + $0x58] sm:$0xff] }
  0x47   : > { %v425_v51 = vld [vmem:[#allocation2 + $0x20] sm:$0xff]  ;;  %v422_v54 = vld [vmem:[#allocation2 + $0x8] sm:$0xff]  ;;  %v426_v63 = vld [vmem:[#allocation2 + $0x10] sm:$0xff] }
  0x48   : > { %562 = vmatpush.bf16.msra.mxu0 %v965_v19  ;;  %1021 = vmatpush.bf16.msra.mxu1 %v965_v19  ;;  %v430_v0 = vld [vmem:[#allocation2 + $0x78] sm:$0xff]  ;;  %v423_v2 = vld [vmem:[#allocation2 + $0x48] sm:$0xff] }
  0x49   : > { %1022 = vmatpush.bf16.msra.mxu2 %v965_v19  ;;  %1023 = vmatpush.bf16.msra.mxu3 %v965_v19  ;;  %v419_v1 = vld [vmem:[#allocation2 + $0x18] sm:$0xff]  ;;  %v431_v12 = vld [vmem:[#allocation2 + $0x28] sm:$0xff] }
  0x4a   : > { %v427_v11 = vld [vmem:[#allocation2 + $0x38] sm:$0xff] }
  0x4c   : > { %563 = vmatpush.bf16.msra.mxu0 %v964_v20  ;;  %1024 = vmatpush.bf16.msra.mxu1 %v964_v20 }
  0x4d   : > { %1025 = vmatpush.bf16.msra.mxu2 %v964_v20  ;;  %1026 = vmatpush.bf16.msra.mxu3 %v964_v20 }
  0x50   : > { %564 = vmatpush.bf16.msra.mxu0 %v963_v21  ;;  %1027 = vmatpush.bf16.msra.mxu1 %v963_v21 }
  0x51   : > { %1028 = vmatpush.bf16.msra.mxu2 %v963_v21  ;;  %1029 = vmatpush.bf16.msra.mxu3 %v963_v21 }
  0x54   : > { %565 = vmatpush.bf16.msra.mxu0 %v962_v22  ;;  %1030 = vmatpush.bf16.msra.mxu1 %v962_v22 }
  0x55   : > { %1031 = vmatpush.bf16.msra.mxu2 %v962_v22  ;;  %1032 = vmatpush.bf16.msra.mxu3 %v962_v22 }
  0x58   : > { %566 = vmatpush.bf16.msra.mxu0 %v961_v23  ;;  %1033 = vmatpush.bf16.msra.mxu1 %v961_v23 }
  0x59   : > { %1034 = vmatpush.bf16.msra.mxu2 %v961_v23  ;;  %1035 = vmatpush.bf16.msra.mxu3 %v961_v23 }
  0x5c   : > { %567 = vmatpush.bf16.msra.mxu0 %v960_v24  ;;  %1036 = vmatpush.bf16.msra.mxu1 %v960_v24 }
  0x5d   : > { %1037 = vmatpush.bf16.msra.mxu2 %v960_v24  ;;  %1038 = vmatpush.bf16.msra.mxu3 %v960_v24 }
  0x5f   : > { %568 = vmatmul.bf16.vlgmr.msra.gmra.mxu0 %v952_v25  ;;  %578 = vmatmul.bf16.vlgmr.msra.gmra.mxu1 %v954_v26 }
  0x60   : > { %588 = vmatmul.bf16.vlgmr.msra.gmra.mxu2 %v956_v27  ;;  %598 = vmatmul.bf16.vlgmr.msra.gmra.mxu3 %v958_v28 }
  0x6f   : > { %573 = vmatmul.bf16.gmra.mxu0 %v953_v29  ;;  %583 = vmatmul.bf16.gmra.mxu1 %v955_v30 }
  0x70   : > { %593 = vmatmul.bf16.gmra.mxu2 %v957_v31  ;;  %603 = vmatmul.bf16.gmra.mxu3 %v959_v32 }
  0xdc   : > { %v569_v35 = vpop.f32.mrf.mxu0  ;;  %v579_v36 = vpop.f32.mrf.mxu1 }
  0xdd   : > { %v609_v37 = vadd.f32 %v569_v35, %v416_v33  ;;  %v613_v38 = vadd.f32 %v579_v36, %v420_v34 }
  0xdf   : > { %625 = vst [vmem:[#allocation2 + $0x30] sm:$0xff] %v609_v37 }
  0xe0   : > { %629 = vst [vmem:[#allocation2 + $0x50] sm:$0xff] %v613_v38 }
  0xe3   : > { %v589_v43 = vpop.f32.mrf.mxu2  ;;  %v599_v44 = vpop.f32.mrf.mxu3 }
  0xe4   : > { %v617_v45 = vadd.f32 %v589_v43, %v424_v39  ;;  %v621_v46 = vadd.f32 %v599_v44, %v428_v40  ;;  %v571_v47 = vpop.f32.mrf.mxu0  ;;  %v581_v48 = vpop.f32.mrf.mxu1 }
  0xe5   : > { %v610_v49 = vadd.f32 %v571_v47, %v417_v41  ;;  %v614_v50 = vadd.f32 %v581_v48, %v421_v42 }
  0xe6   : > { %633 = vst [vmem:[#allocation2 + $0x40] sm:$0xff] %v617_v45 }
  0xe7   : > { %637 = vst [vmem:[#allocation2 + $0x60] sm:$0xff] %v621_v46 }
  0xe8   : > { %626 = vst [vmem:[#allocation2] sm:$0xff] %v610_v49 }
  0xe9   : > { %630 = vst [vmem:[#allocation2 + $0x68] sm:$0xff] %v614_v50 }
  0xeb   : > { %v591_v55 = vpop.f32.mrf.mxu2  ;;  %v601_v56 = vpop.f32.mrf.mxu3 }
  0xec   : > { %v618_v57 = vadd.f32 %v591_v55, %v425_v51  ;;  %v622_v58 = vadd.f32 %v601_v56, %v429_v52  ;;  %v574_v59 = vpop.f32.mrf.mxu0  ;;  %v584_v60 = vpop.f32.mrf.mxu1 }
  0xed   : > { %v611_v61 = vadd.f32 %v574_v59, %v418_v53  ;;  %v615_v62 = vadd.f32 %v584_v60, %v422_v54 }
  0xee   : > { %634 = vst [vmem:[#allocation2 + $0x20] sm:$0xff] %v618_v57 }
  0xef   : > { %638 = vst [vmem:[#allocation2 + $0x70] sm:$0xff] %v622_v58 }
  0xf0   : > { %627 = vst [vmem:[#allocation2 + $0x58] sm:$0xff] %v611_v61 }
  0xf1   : > { %631 = vst [vmem:[#allocation2 + $0x8] sm:$0xff] %v615_v62 }
  0xf3   : > { %v594_v3 = vpop.f32.mrf.mxu2  ;;  %v604_v4 = vpop.f32.mrf.mxu3 }
  0xf4   : > { %v619_v5 = vadd.f32 %v594_v3, %v426_v63  ;;  %v623_v6 = vadd.f32 %v604_v4, %v430_v0  ;;  %v576_v7 = vpop.f32.mrf.mxu0  ;;  %v586_v8 = vpop.f32.mrf.mxu1 }
  0xf5   : > { %v612_v9 = vadd.f32 %v576_v7, %v419_v1  ;;  %v616_v10 = vadd.f32 %v586_v8, %v423_v2 }
  0xf6   : > { %635 = vst [vmem:[#allocation2 + $0x10] sm:$0xff] %v619_v5 }
  0xf7   : > { %639 = vst [vmem:[#allocation2 + $0x78] sm:$0xff] %v623_v6 }
  0xf8   : > { %628 = vst [vmem:[#allocation2 + $0x18] sm:$0xff] %v612_v9 }
  0xf9   : > { %632 = vst [vmem:[#allocation2 + $0x48] sm:$0xff] %v616_v10 }
  0xfb   : > { %v596_v13 = vpop.f32.mrf.mxu2  ;;  %v606_v14 = vpop.f32.mrf.mxu3  ;;  %644 = sbr.rel (%p947_p11) target bundleno = 277 (0x115), region = 85 }
  0xfc   : > { %v620_v15 = vadd.f32 %v596_v13, %v427_v11  ;;  %v624_v16 = vadd.f32 %v606_v14, %v431_v12 }
  0xfe   : > { %636 = vst [vmem:[#allocation2 + $0x38] sm:$0xff] %v620_v15 }
  0xff   : > { %640 = vst [vmem:[#allocation2 + $0x28] sm:$0xff] %v624_v16 }
 0x100   : > { %v645_v17 = vld [vmem:[#allocation2 + $0x30] sm:$0xff]  ;;  %v646_v18 = vld [vmem:[#allocation2] sm:$0xff]  ;;  %v647_v21 = vld [vmem:[#allocation2 + $0x58] sm:$0xff] }
 0x101   : > { %v1080_v19 = vld [vmem:[%s1303_s2] ss:$0 sm:$0xff]  ;;  %v648_v22 = vld [vmem:[#allocation2 + $0x18] sm:$0xff]  ;;  %v649_v23 = vld [vmem:[#allocation2 + $0x50] sm:$0xff] }
 0x102   : > { %v1244_v20 = vld [vmem:[%s1304_s3] ss:$0 sm:$0xff]  ;;  %v665_v24 = vmul.f32 %v1080_v19, %v645_v17  ;;  %v666_v25 = vmul.f32 %v1080_v19, %v646_v18  ;;  %v667_v26 = vmul.f32 %v1080_v19, %v647_v21  ;;  %v668_v27 = vmul.f32 %v1080_v19, %v648_v22  ;;  %v650_v28 = vld [vmem:[#allocation2 + $0x68] sm:$0xff]  ;;  %v655_v49 = vld [vmem:[#allocation2 + $0x10] sm:$0xff] }
 0x103   : > { %v651_v29 = vld [vmem:[#allocation2 + $0x8] sm:$0xff]  ;;  %v669_v31 = vmul.f32 %v1080_v19, %v649_v23  ;;  %v670_v32 = vmul.f32 %v1080_v19, %v650_v28  ;;  %v653_v43 = vld [vmem:[#allocation2 + $0x40] sm:$0xff]  ;;  %v658_v56 = vld [vmem:[#allocation2 + $0x70] sm:$0xff]  ;;  %v675_v1 = vmul.f32 %v1080_v19, %v655_v49 }
 0x104   : > { %v652_v30 = vld [vmem:[#allocation2 + $0x48] sm:$0xff]  ;;  %v671_v33 = vmul.f32 %v1080_v19, %v651_v29  ;;  %v685_v35 = vadd.f32 %v1244_v20, %v665_v24  ;;  %v686_v36 = vadd.f32 %v1244_v20, %v666_v25  ;;  %v687_v37 = vadd.f32 %v1244_v20, %v667_v26  ;;  %v654_v44 = vld [vmem:[#allocation2 + $0x20] sm:$0xff]  ;;  %v659_v61 = vld [vmem:[#allocation2 + $0x78] sm:$0xff] }
 0x105   : > { %v672_v34 = vmul.f32 %v1080_v19, %v652_v30  ;;  %v688_v38 = vadd.f32 %v1244_v20, %v668_v27  ;;  %v689_v39 = vadd.f32 %v1244_v20, %v669_v31  ;;  %v690_v40 = vadd.f32 %v1244_v20, %v670_v32  ;;  %v656_v50 = vld [vmem:[#allocation2 + $0x38] sm:$0xff]  ;;  %v657_v55 = vld [vmem:[#allocation2 + $0x60] sm:$0xff] }
 0x106   : > { %v691_v41 = vadd.f32 %v1244_v20, %v671_v33  ;;  %v701_v45 = vmax.f32 %v685_v35, 0.0  ;;  %v702_v46 = vmax.f32 %v686_v36, 0.0  ;;  %v703_v47 = vmax.f32 %v687_v37, 0.0  ;;  %v660_v62 = vld [vmem:[#allocation2 + $0x28] sm:$0xff] }
 0x107   : > { %v692_v42 = vadd.f32 %v1244_v20, %v672_v34  ;;  %v704_v48 = vmax.f32 %v688_v38, 0.0  ;;  %v705_v51 = vmax.f32 %v689_v39, 0.0  ;;  %v706_v52 = vmax.f32 %v690_v40, 0.0 }
 0x108   : > { %v707_v53 = vmax.f32 %v691_v41, 0.0  ;;  %v971_v57 = vpack.c.bf16 %v702_v46, %v701_v45  ;;  %v673_v59 = vmul.f32 %v1080_v19, %v653_v43  ;;  %v674_v60 = vmul.f32 %v1080_v19, %v654_v44 }
 0x109   : > { %v708_v54 = vmax.f32 %v692_v42, 0.0  ;;  %v976_v58 = vpack.c.bf16 %v704_v48, %v703_v47  ;;  %v981_v63 = vpack.c.bf16 %v706_v52, %v705_v51  ;;  %v676_v2 = vmul.f32 %v1080_v19, %v656_v50 }
 0x10a   : > { %972 = vst [vmem:[%s1305_s4] sm:$0xff] %v971_v57   ;;  %v693_v3 = vadd.f32 %v1244_v20, %v673_v59  ;;  %v694_v4 = vadd.f32 %v1244_v20, %v674_v60  ;;  %v677_v5 = vmul.f32 %v1080_v19, %v657_v55  ;;  %v678_v6 = vmul.f32 %v1080_v19, %v658_v56 }
 0x10b   : > { %v986_v0 = vpack.c.bf16 %v708_v54, %v707_v53  ;;  %1008 = vst [vmem:[%s1305_s4 + $0x8] sm:$0xff] %v976_v58   ;;  %v695_v7 = vadd.f32 %v1244_v20, %v675_v1  ;;  %v696_v8 = vadd.f32 %v1244_v20, %v676_v2  ;;  %v679_v9 = vmul.f32 %v1080_v19, %v659_v61 }
 0x10c   : > { %v680_v10 = vmul.f32 %v1080_v19, %v660_v62  ;;  %1009 = vst [vmem:[%s1305_s4 + $0x10] sm:$0xff] %v981_v63   ;;  %v709_v11 = vmax.f32 %v693_v3, 0.0  ;;  %v710_v12 = vmax.f32 %v694_v4, 0.0  ;;  %v697_v13 = vadd.f32 %v1244_v20, %v677_v5 }
 0x10d   : > { %v698_v14 = vadd.f32 %v1244_v20, %v678_v6  ;;  %1010 = vst [vmem:[%s1305_s4 + $0x18] sm:$0xff] %v986_v0   ;;  %v711_v15 = vmax.f32 %v695_v7, 0.0  ;;  %v712_v16 = vmax.f32 %v696_v8, 0.0  ;;  %v699_v17 = vadd.f32 %v1244_v20, %v679_v9 }
 0x10e   : > { %v700_v18 = vadd.f32 %v1244_v20, %v680_v10  ;;  %v991_v19 = vpack.c.bf16 %v710_v12, %v709_v11  ;;  %v713_v21 = vmax.f32 %v697_v13, 0.0 }
 0x10f   : > { %v714_v22 = vmax.f32 %v698_v14, 0.0  ;;  %v996_v23 = vpack.c.bf16 %v712_v16, %v711_v15  ;;  %v715_v24 = vmax.f32 %v699_v17, 0.0 }
 0x110   : > { %v716_v25 = vmax.f32 %v700_v18, 0.0  ;;  %1011 = vst [vmem:[%s1305_s4 + $0x20] sm:$0xff] %v991_v19  }
 0x111   : > { %v1001_v26 = vpack.c.bf16 %v714_v22, %v713_v21  ;;  %1012 = vst [vmem:[%s1305_s4 + $0x28] sm:$0xff] %v996_v23  }
 0x112   : > { %v1006_v27 = vpack.c.bf16 %v716_v25, %v715_v24 }
 0x113   : > { %1013 = vst [vmem:[%s1305_s4 + $0x30] sm:$0xff] %v1001_v26  }
 0x114   : > { %1014 = vst [vmem:[%s1305_s4 + $0x38] sm:$0xff] %v1006_v27  }
 0x115 PF: > { %s14_s19 = sadd.s32 1, %s1120_s19   ;;  %s1306_s15 = smov %s1108_s16 }
 0x116   : > { %p11_p12 = scmp.ge.s32.totalorder %s14_s19, 7   ;;  %s1307_s16 = smov %s1183_s23 }
 0x117   : > { %s1308_s17 = smov %s1116_s18  ;;  %s1309_s18 = smov %s1311_s20 }
 0x118   :  { %13 = sbr.rel (!%p11_p12) target bundleno = 3 (0x3), region = 129 }

// kernel: _lambda_.18
= control target key start
LH: loop header
LB: loop body
LE: loop exit
PB: predicated region body
PF: predicated region fallthrough
CT: control target
= control target key end

     0   :  { %s1319_s18 = smov 0   ;;  %s1321_s19 = smov 0   ;;  %s1514_s0 = inlined_call_operand.vmem [shape: bf16[128,640], index: 0, kind: input, shape index: {}]   ;;  %s1515_s1 = inlined_call_operand.vmem [shape: bf16[640,128], index: 1, kind: input, shape index: {}]   ;;  %s1516_s2 = inlined_call_operand.vmem [shape: f32[1,128], index: 2, kind: input, shape index: {}]   ;;  %s1517_s3 = inlined_call_operand.vmem [shape: f32[1,128], index: 3, kind: input, shape index: {}]   ;;  %s1518_s4 = inlined_call_operand.vmem [shape: bf16[128,128], index: 4, kind: input, shape index: {}]   ;;  %s1519_s5 = inlined_call_operand.vmem [shape: bf16[128,128], index: 5, kind: output, shape index: {}]  }
   0x1   :  { %s1323_s20 = smov 0   ;;  %s1325_s21 = smov 0  }
   0x2   :  { %s1327_s22 = smov 0  }
   0x3 LB: > { %s27_s23 = sadd.s32 1, %s1282_s21  ;;  %p50_p1 = scmp.ne.s32.totalorder %s1274_s19, %s1270_s18  ;;  %s1286_s22 = sphi %s1327_s22, %s15_s22   ;;  %s1282_s21 = sphi %s1325_s21, %s1523_s21   ;;  %s1278_s20 = sphi %s1323_s20, %s1522_s20   ;;  %s1274_s19 = sphi %s1321_s19, %s1521_s19   ;;  %s1270_s18 = sphi %s1319_s18, %s1520_s18  }
   0x4   : > { %p28_p0 = scmp.ge.s32.totalorder %s27_s23, 5  ;;  %p51_p2 = scmp.eq.s32.totalorder %s1286_s22, 0 }
   0x5   : > { %s43_s25 = sadd.s32 1, %s1274_s19  ;;  %p1002_p5 = scmp.ge.s32.totalorder %s1286_s22, 5 }
   0x6   : > { %s1525_s23 = smov (%p28_p0, %s27_s23), 0  ;;  %p52_p3 = por %p51_p2, %p50_p1 }
   0x7   : > { %s39_s24 = ssub.s32 %s1282_s21, %s1525_s23  ;;  %236 = sbr.rel (%p1002_p5) target bundleno = 32 (0x20), region = 28 }
   0x8   : > { %p41_p4 = scmp.eq.s32.totalorder %s39_s24, 0 }
   0xa   : > { %s1354_s26 = scalar_select %p41_p4, %s1274_s19, %s43_s25  }
   0xc   : > { %239 = sbr.rel (!%p52_p3) target bundleno = 32 (0x20), region = 32  ;;  %s241_s27 = sand.u32 (%p52_p3), 1, %s1274_s19  }
   0xd   : > { %s1004_s28 = sshll.u32 (%p52_p3), %s1282_s21, 2  ;;  %s1003_s29 = sshll.u32 (%p52_p3), %s241_s27, 6 }
   0xe   : > { %s1362_s7 = scalar_lea.vmem (%p52_p3), %s1514_s0, %s1004_s28  ;;  %s243_s8 = scalar_lea.vmem (%p52_p3), [#allocation3], %s1003_s29 }
   0xf   : > { %v265_v0 = vld [vmem:[%s1362_s7] sm:$0xf] (%p52_p3)  ;;  %v267_v1 = vld [vmem:[%s1362_s7 + $0x14] sm:$0xf] (%p52_p3)  ;;  %v269_v2 = vld [vmem:[%s1362_s7 + $0x28] sm:$0xf] (%p52_p3) }
  0x10   : > { %266 = vst [vmem:[%s243_s8] sm:$0xf] (%p52_p3), %v265_v0  ;;  %v271_v3 = vld [vmem:[%s1362_s7 + $0x3c] sm:$0xf] (%p52_p3)  ;;  %v273_v4 = vld [vmem:[%s1362_s7 + $0x50] sm:$0xf] (%p52_p3) }
  0x11   : > { %268 = vst [vmem:[%s243_s8 + $0x4] sm:$0xf] %v267_v1  ;;  %v275_v5 = vld [vmem:[%s1362_s7 + $0x64] sm:$0xf]  ;;  %v277_v6 = vld [vmem:[%s1362_s7 + $0x78] sm:$0xf] }
  0x12   : > { %270 = vst [vmem:[%s243_s8 + $0x8] sm:$0xf] %v269_v2  ;;  %v279_v7 = vld [vmem:[%s1362_s7 + $0x8c] sm:$0xf]  ;;  %v281_v8 = vld [vmem:[%s1362_s7 + $0xa0] sm:$0xf] }
  0x13   : > { %272 = vst [vmem:[%s243_s8 + $0xc] sm:$0xf] %v271_v3  ;;  %v283_v9 = vld [vmem:[%s1362_s7 + $0xb4] sm:$0xf]  ;;  %v285_v10 = vld [vmem:[%s1362_s7 + $0xc8] sm:$0xf] }
  0x14   : > { %274 = vst [vmem:[%s243_s8 + $0x10] sm:$0xf] %v273_v4  ;;  %v287_v11 = vld [vmem:[%s1362_s7 + $0xdc] sm:$0xf]  ;;  %v289_v12 = vld [vmem:[%s1362_s7 + $0xf0] sm:$0xf] }
  0x15   : > { %276 = vst [vmem:[%s243_s8 + $0x14] sm:$0xf] %v275_v5  ;;  %v291_v13 = vld [vmem:[%s1362_s7 + $0x104] sm:$0xf]  ;;  %v293_v14 = vld [vmem:[%s1362_s7 + $0x118] sm:$0xf] }
  0x16   : > { %278 = vst [vmem:[%s243_s8 + $0x18] sm:$0xf] %v277_v6  ;;  %v295_v15 = vld [vmem:[%s1362_s7 + $0x12c] sm:$0xf] }
  0x17   : > { %280 = vst [vmem:[%s243_s8 + $0x1c] sm:$0xf] %v279_v7 }
  0x18   : > { %282 = vst [vmem:[%s243_s8 + $0x20] sm:$0xf] %v281_v8 }
  0x19   : > { %284 = vst [vmem:[%s243_s8 + $0x24] sm:$0xf] %v283_v9 }
  0x1a   : > { %286 = vst [vmem:[%s243_s8 + $0x28] sm:$0xf] %v285_v10 }
  0x1b   : > { %288 = vst [vmem:[%s243_s8 + $0x2c] sm:$0xf] %v287_v11 }
  0x1c   : > { %290 = vst [vmem:[%s243_s8 + $0x30] sm:$0xf] %v289_v12 }
  0x1d   : > { %292 = vst [vmem:[%s243_s8 + $0x34] sm:$0xf] %v291_v13 }
  0x1e   : > { %294 = vst [vmem:[%s243_s8 + $0x38] sm:$0xf] %v293_v14 }
  0x1f   : > { %296 = vst [vmem:[%s243_s8 + $0x3c] sm:$0xf] %v295_v15 }
  0x20 PF: > { %p1005_p6 = scmp.ge.s32.totalorder %s1286_s22, 1  ;;  %p363_p7 = scmp.lt.s32.totalorder %s1286_s22, 6 }
  0x22   : > { %p364_p8 = pnand %p1005_p6, %p363_p7 }
  0x23   : > { %s370_s9 = sand.u32 (!%p364_p8), 1, %s1270_s18   ;;  %s1007_s10 = sshll.u32 (!%p364_p8), %s1278_s20, 4 }
  0x24   : > { %367 = sbr.rel (%p364_p8) target bundleno = 286 (0x11e), region = 77  ;;  %s1006_s11 = sshll.u32 (!%p364_p8), %s370_s9, 6 }
  0x25   : > { %p424_p9 = scmp.lt.s32.totalorder (!%p364_p8), %s1007_s10, 79  ;;  %s1389_s16 = scalar_lea.vmem (!%p364_p8), [#allocation3], %s1006_s11 }
  0x26   : > { %p1009_p10 = scmp.ne.s32.totalorder (!%p364_p8), %s1278_s20, 0 }
  0x29   : > { %s1527_s10 = smov (!%p424_p9, %s1007_s10), 79  ;;  %459 = sbr.rel (%p1009_p10) target bundleno = 63 (0x3f), region = 85 }
  0x2a   : > { %s1008_s12 = sshll.u32 %s1527_s10, 2 }
  0x2b   : > { %s1387_s15 = scalar_lea.vmem %s1515_s1, %s1008_s12 }
  0x2e   : > { %v1288_v16 = vmov 0.0  }
  0x2f   : > { %460 = vst [vmem:[#allocation2 + $0x30] sm:$0xff] %v1288_v16 }
  0x30   : > { %461 = vst [vmem:[#allocation2] sm:$0xff] %v1288_v16 }
  0x31   : > { %462 = vst [vmem:[#allocation2 + $0x58] sm:$0xff] %v1288_v16 }
  0x32   : > { %463 = vst [vmem:[#allocation2 + $0x18] sm:$0xff] %v1288_v16 }
  0x33   : > { %464 = vst [vmem:[#allocation2 + $0x50] sm:$0xff] %v1288_v16 }
  0x34   : > { %465 = vst [vmem:[#allocation2 + $0x68] sm:$0xff] %v1288_v16 }
  0x35   : > { %466 = vst [vmem:[#allocation2 + $0x8] sm:$0xff] %v1288_v16 }
  0x36   : > { %467 = vst [vmem:[#allocation2 + $0x48] sm:$0xff] %v1288_v16 }
  0x37   : > { %468 = vst [vmem:[#allocation2 + $0x40] sm:$0xff] %v1288_v16 }
  0x38   : > { %469 = vst [vmem:[#allocation2 + $0x20] sm:$0xff] %v1288_v16 }
  0x39   : > { %470 = vst [vmem:[#allocation2 + $0x10] sm:$0xff] %v1288_v16 }
  0x3a   : > { %471 = vst [vmem:[#allocation2 + $0x38] sm:$0xff] %v1288_v16 }
  0x3b   : > { %472 = vst [vmem:[#allocation2 + $0x60] sm:$0xff] %v1288_v16 }
  0x3c   : > { %473 = vst [vmem:[#allocation2 + $0x70] sm:$0xff] %v1288_v16 }
  0x3d   : > { %474 = vst [vmem:[#allocation2 + $0x78] sm:$0xff] %v1288_v16 }
  0x3e   : > { %475 = vst [vmem:[#allocation2 + $0x28] sm:$0xff] %v1288_v16 }
  0x3f PF: > { %v1094_v17 = vld [vmem:[%s1387_s15 + $0x38] sm:$0xff]  ;;  %v1093_v18 = vld [vmem:[%s1387_s15 + $0x30] sm:$0xff]  ;;  %v1092_v19 = vld [vmem:[%s1387_s15 + $0x28] sm:$0xff]  ;;  %p1074_p11 = scmp.ne.s32.totalorder %s1278_s20, 4 }
  0x40   : > { %620 = vmatpush.bf16.msra.mxu0 %v1094_v17  ;;  %1181 = vmatpush.bf16.msra.mxu1 %v1094_v17  ;;  %v1091_v20 = vld [vmem:[%s1387_s15 + $0x20] sm:$0xff]  ;;  %v1090_v21 = vld [vmem:[%s1387_s15 + $0x18] sm:$0xff]  ;;  %v1089_v22 = vld [vmem:[%s1387_s15 + $0x10] sm:$0xff] }
  0x41   : > { %1182 = vmatpush.bf16.msra.mxu2 %v1094_v17  ;;  %1183 = vmatpush.bf16.msra.mxu3 %v1094_v17  ;;  %v1088_v23 = vld [vmem:[%s1387_s15 + $0x8] sm:$0xff]  ;;  %v1087_v24 = vld [vmem:[%s1387_s15] sm:$0xff]  ;;  %v1081_v26 = vld [vmem:[%s1389_s16 + $0x10] sm:$0xff] }
  0x42   : > { %v1079_v25 = vld [vmem:[%s1389_s16] sm:$0xff]  ;;  %v1085_v28 = vld [vmem:[%s1389_s16 + $0x30] sm:$0xff]  ;;  %v1080_v29 = vld [vmem:[%s1389_s16 + $0x8] sm:$0xff] }
  0x43   : > { %v1083_v27 = vld [vmem:[%s1389_s16 + $0x20] sm:$0xff]  ;;  %v1082_v30 = vld [vmem:[%s1389_s16 + $0x18] sm:$0xff]  ;;  %v1084_v31 = vld [vmem:[%s1389_s16 + $0x28] sm:$0xff] }
  0x44   : > { %621 = vmatpush.bf16.msra.mxu0 %v1093_v18  ;;  %1184 = vmatpush.bf16.msra.mxu1 %v1093_v18  ;;  %v1086_v32 = vld [vmem:[%s1389_s16 + $0x38] sm:$0xff]  ;;  %v476_v33 = vld [vmem:[#allocation2 + $0x30] sm:$0xff]  ;;  %v484_v39 = vld [vmem:[#allocation2 + $0x40] sm:$0xff] }
  0x45   : > { %1185 = vmatpush.bf16.msra.mxu2 %v1093_v18  ;;  %1186 = vmatpush.bf16.msra.mxu3 %v1093_v18  ;;  %v480_v34 = vld [vmem:[#allocation2 + $0x50] sm:$0xff]  ;;  %v488_v40 = vld [vmem:[#allocation2 + $0x60] sm:$0xff]  ;;  %v481_v42 = vld [vmem:[#allocation2 + $0x68] sm:$0xff] }
  0x46   : > { %v477_v41 = vld [vmem:[#allocation2] sm:$0xff]  ;;  %v489_v52 = vld [vmem:[#allocation2 + $0x70] sm:$0xff]  ;;  %v478_v53 = vld [vmem:[#allocation2 + $0x58] sm:$0xff] }
  0x47   : > { %v485_v51 = vld [vmem:[#allocation2 + $0x20] sm:$0xff]  ;;  %v482_v54 = vld [vmem:[#allocation2 + $0x8] sm:$0xff]  ;;  %v486_v63 = vld [vmem:[#allocation2 + $0x10] sm:$0xff] }
  0x48   : > { %622 = vmatpush.bf16.msra.mxu0 %v1092_v19  ;;  %1187 = vmatpush.bf16.msra.mxu1 %v1092_v19  ;;  %v490_v0 = vld [vmem:[#allocation2 + $0x78] sm:$0xff]  ;;  %v483_v2 = vld [vmem:[#allocation2 + $0x48] sm:$0xff] }
  0x49   : > { %1188 = vmatpush.bf16.msra.mxu2 %v1092_v19  ;;  %1189 = vmatpush.bf16.msra.mxu3 %v1092_v19  ;;  %v479_v1 = vld [vmem:[#allocation2 + $0x18] sm:$0xff]  ;;  %v491_v12 = vld [vmem:[#allocation2 + $0x28] sm:$0xff] }
  0x4a   : > { %v487_v11 = vld [vmem:[#allocation2 + $0x38] sm:$0xff] }
  0x4c   : > { %623 = vmatpush.bf16.msra.mxu0 %v1091_v20  ;;  %1190 = vmatpush.bf16.msra.mxu1 %v1091_v20 }
  0x4d   : > { %1191 = vmatpush.bf16.msra.mxu2 %v1091_v20  ;;  %1192 = vmatpush.bf16.msra.mxu3 %v1091_v20 }
  0x50   : > { %624 = vmatpush.bf16.msra.mxu0 %v1090_v21  ;;  %1193 = vmatpush.bf16.msra.mxu1 %v1090_v21 }
  0x51   : > { %1194 = vmatpush.bf16.msra.mxu2 %v1090_v21  ;;  %1195 = vmatpush.bf16.msra.mxu3 %v1090_v21 }
  0x54   : > { %625 = vmatpush.bf16.msra.mxu0 %v1089_v22  ;;  %1196 = vmatpush.bf16.msra.mxu1 %v1089_v22 }
  0x55   : > { %1197 = vmatpush.bf16.msra.mxu2 %v1089_v22  ;;  %1198 = vmatpush.bf16.msra.mxu3 %v1089_v22 }
  0x58   : > { %626 = vmatpush.bf16.msra.mxu0 %v1088_v23  ;;  %1199 = vmatpush.bf16.msra.mxu1 %v1088_v23 }
  0x59   : > { %1200 = vmatpush.bf16.msra.mxu2 %v1088_v23  ;;  %1201 = vmatpush.bf16.msra.mxu3 %v1088_v23 }
  0x5c   : > { %627 = vmatpush.bf16.msra.mxu0 %v1087_v24  ;;  %1202 = vmatpush.bf16.msra.mxu1 %v1087_v24 }
  0x5d   : > { %1203 = vmatpush.bf16.msra.mxu2 %v1087_v24  ;;  %1204 = vmatpush.bf16.msra.mxu3 %v1087_v24 }
  0x5f   : > { %628 = vmatmul.bf16.vlgmr.msra.gmra.mxu0 %v1079_v25  ;;  %638 = vmatmul.bf16.vlgmr.msra.gmra.mxu1 %v1081_v26 }
  0x60   : > { %648 = vmatmul.bf16.vlgmr.msra.gmra.mxu2 %v1083_v27  ;;  %658 = vmatmul.bf16.vlgmr.msra.gmra.mxu3 %v1085_v28 }
  0x6f   : > { %633 = vmatmul.bf16.gmra.mxu0 %v1080_v29  ;;  %643 = vmatmul.bf16.gmra.mxu1 %v1082_v30 }
  0x70   : > { %653 = vmatmul.bf16.gmra.mxu2 %v1084_v31  ;;  %663 = vmatmul.bf16.gmra.mxu3 %v1086_v32 }
  0xdc   : > { %v629_v35 = vpop.f32.mrf.mxu0  ;;  %v639_v36 = vpop.f32.mrf.mxu1 }
  0xdd   : > { %v669_v37 = vadd.f32 %v629_v35, %v476_v33  ;;  %v673_v38 = vadd.f32 %v639_v36, %v480_v34 }
  0xdf   : > { %685 = vst [vmem:[#allocation2 + $0x30] sm:$0xff] %v669_v37 }
  0xe0   : > { %689 = vst [vmem:[#allocation2 + $0x50] sm:$0xff] %v673_v38 }
  0xe3   : > { %v649_v43 = vpop.f32.mrf.mxu2  ;;  %v659_v44 = vpop.f32.mrf.mxu3 }
  0xe4   : > { %v677_v45 = vadd.f32 %v649_v43, %v484_v39  ;;  %v681_v46 = vadd.f32 %v659_v44, %v488_v40  ;;  %v631_v47 = vpop.f32.mrf.mxu0  ;;  %v641_v48 = vpop.f32.mrf.mxu1 }
  0xe5   : > { %v670_v49 = vadd.f32 %v631_v47, %v477_v41  ;;  %v674_v50 = vadd.f32 %v641_v48, %v481_v42 }
  0xe6   : > { %693 = vst [vmem:[#allocation2 + $0x40] sm:$0xff] %v677_v45 }
  0xe7   : > { %697 = vst [vmem:[#allocation2 + $0x60] sm:$0xff] %v681_v46 }
  0xe8   : > { %686 = vst [vmem:[#allocation2] sm:$0xff] %v670_v49 }
  0xe9   : > { %690 = vst [vmem:[#allocation2 + $0x68] sm:$0xff] %v674_v50 }
  0xeb   : > { %v651_v55 = vpop.f32.mrf.mxu2  ;;  %v661_v56 = vpop.f32.mrf.mxu3 }
  0xec   : > { %v678_v57 = vadd.f32 %v651_v55, %v485_v51  ;;  %v682_v58 = vadd.f32 %v661_v56, %v489_v52  ;;  %v634_v59 = vpop.f32.mrf.mxu0  ;;  %v644_v60 = vpop.f32.mrf.mxu1 }
  0xed   : > { %v671_v61 = vadd.f32 %v634_v59, %v478_v53  ;;  %v675_v62 = vadd.f32 %v644_v60, %v482_v54 }
  0xee   : > { %694 = vst [vmem:[#allocation2 + $0x20] sm:$0xff] %v678_v57 }
  0xef   : > { %698 = vst [vmem:[#allocation2 + $0x70] sm:$0xff] %v682_v58 }
  0xf0   : > { %687 = vst [vmem:[#allocation2 + $0x58] sm:$0xff] %v671_v61 }
  0xf1   : > { %691 = vst [vmem:[#allocation2 + $0x8] sm:$0xff] %v675_v62 }
  0xf3   : > { %v654_v3 = vpop.f32.mrf.mxu2  ;;  %v664_v4 = vpop.f32.mrf.mxu3 }
  0xf4   : > { %v679_v5 = vadd.f32 %v654_v3, %v486_v63  ;;  %v683_v6 = vadd.f32 %v664_v4, %v490_v0  ;;  %v636_v7 = vpop.f32.mrf.mxu0  ;;  %v646_v8 = vpop.f32.mrf.mxu1 }
  0xf5   : > { %v672_v9 = vadd.f32 %v636_v7, %v479_v1  ;;  %v676_v10 = vadd.f32 %v646_v8, %v483_v2 }
  0xf6   : > { %695 = vst [vmem:[#allocation2 + $0x10] sm:$0xff] %v679_v5 }
  0xf7   : > { %699 = vst [vmem:[#allocation2 + $0x78] sm:$0xff] %v683_v6 }
  0xf8   : > { %688 = vst [vmem:[#allocation2 + $0x18] sm:$0xff] %v672_v9 }
  0xf9   : > { %692 = vst [vmem:[#allocation2 + $0x48] sm:$0xff] %v676_v10 }
  0xfb   : > { %v656_v13 = vpop.f32.mrf.mxu2  ;;  %v666_v14 = vpop.f32.mrf.mxu3  ;;  %704 = sbr.rel (%p1074_p11) target bundleno = 286 (0x11e), region = 89 }
  0xfc   : > { %v680_v15 = vadd.f32 %v656_v13, %v487_v11  ;;  %v684_v16 = vadd.f32 %v666_v14, %v491_v12 }
  0xfe   : > { %696 = vst [vmem:[#allocation2 + $0x38] sm:$0xff] %v680_v15 }
  0xff   : > { %700 = vst [vmem:[#allocation2 + $0x28] sm:$0xff] %v684_v16 }
 0x100   : > { %v705_v17 = vld [vmem:[#allocation2 + $0x30] sm:$0xff]  ;;  %v706_v18 = vld [vmem:[#allocation2] sm:$0xff]  ;;  %v707_v22 = vld [vmem:[#allocation2 + $0x58] sm:$0xff] }
 0x101   : > { %v1412_v19 = vld [vmem:[%s1516_s2] ss:$0 sm:$0xff]  ;;  %v708_v23 = vld [vmem:[#allocation2 + $0x18] sm:$0xff]  ;;  %v1167_v28 = vld [vmem:[%s1518_s4 + $0x8] sm:$0xff]  }
 0x102   : > { %v1417_v20 = vld [vmem:[%s1517_s3] ss:$0 sm:$0xff]  ;;  %v725_v24 = vmul.f32 %v1412_v19, %v705_v17  ;;  %v726_v25 = vmul.f32 %v1412_v19, %v706_v18  ;;  %v709_v29 = vld [vmem:[#allocation2 + $0x50] sm:$0xff]  ;;  %v710_v30 = vld [vmem:[#allocation2 + $0x68] sm:$0xff]  ;;  %v727_v31 = vmul.f32 %v1412_v19, %v707_v22  ;;  %v728_v32 = vmul.f32 %v1412_v19, %v708_v23 }
 0x103   : > { %v1096_v21 = vld [vmem:[%s1518_s4] sm:$0xff]   ;;  %v1101_v33 = vunpack.c.l.bf16 %v1167_v28  ;;  %v1102_v34 = vunpack.c.h.bf16 %v1167_v28  ;;  %v1168_v35 = vld [vmem:[%s1518_s4 + $0x10] sm:$0xff]   ;;  %v729_v38 = vmul.f32 %v1412_v19, %v709_v29  ;;  %v730_v39 = vmul.f32 %v1412_v19, %v710_v30  ;;  %v711_v40 = vld [vmem:[#allocation2 + $0x8] sm:$0xff] }
 0x104   : > { %v1097_v26 = vunpack.c.l.bf16 %v1096_v21  ;;  %v1098_v27 = vunpack.c.h.bf16 %v1096_v21  ;;  %v745_v36 = vadd.f32 %v1417_v20, %v725_v24  ;;  %v746_v37 = vadd.f32 %v1417_v20, %v726_v25  ;;  %v712_v41 = vld [vmem:[#allocation2 + $0x48] sm:$0xff]  ;;  %v1169_v54 = vld [vmem:[%s1518_s4 + $0x18] sm:$0xff]   ;;  %v713_v59 = vld [vmem:[#allocation2 + $0x40] sm:$0xff] }
 0x105   : > { %v747_v42 = vadd.f32 %v1417_v20, %v727_v31  ;;  %v748_v43 = vadd.f32 %v1417_v20, %v728_v32  ;;  %v1105_v44 = vunpack.c.l.bf16 %v1168_v35  ;;  %v1106_v45 = vunpack.c.h.bf16 %v1168_v35  ;;  %v714_v60 = vld [vmem:[#allocation2 + $0x20] sm:$0xff]  ;;  %v715_v6 = vld [vmem:[#allocation2 + $0x10] sm:$0xff]  ;;  %v716_v11 = vld [vmem:[#allocation2 + $0x38] sm:$0xff] }
 0x106   : > { %v793_v46 = vadd.f32 %v1097_v26, %v745_v36  ;;  %v794_v47 = vadd.f32 %v1098_v27, %v746_v37  ;;  %v749_v48 = vadd.f32 %v1417_v20, %v729_v38  ;;  %v750_v49 = vadd.f32 %v1417_v20, %v730_v39  ;;  %v1170_v1 = vld [vmem:[%s1518_s4 + $0x20] sm:$0xff]   ;;  %v1171_v12 = vld [vmem:[%s1518_s4 + $0x28] sm:$0xff]   ;;  %v718_v24 = vld [vmem:[#allocation2 + $0x70] sm:$0xff] }
 0x107   : > { %v795_v50 = vadd.f32 %v1101_v33, %v747_v42  ;;  %v796_v51 = vadd.f32 %v1102_v34, %v748_v43  ;;  %v731_v52 = vmul.f32 %v1412_v19, %v711_v40  ;;  %v732_v53 = vmul.f32 %v1412_v19, %v712_v41  ;;  %v717_v23 = vld [vmem:[#allocation2 + $0x60] sm:$0xff]  ;;  %v1172_v25 = vld [vmem:[%s1518_s4 + $0x30] sm:$0xff]   ;;  %v719_v38 = vld [vmem:[#allocation2 + $0x78] sm:$0xff] }
 0x108   : > { %v809_v55 = vmax.f32 %v793_v46, 0.0  ;;  %v810_v56 = vmax.f32 %v794_v47, 0.0  ;;  %v797_v57 = vadd.f32 %v1105_v44, %v749_v48  ;;  %v798_v58 = vadd.f32 %v1106_v45, %v750_v49  ;;  %v720_v39 = vld [vmem:[#allocation2 + $0x28] sm:$0xff]  ;;  %v1173_v44 = vld [vmem:[%s1518_s4 + $0x38] sm:$0xff]  }
 0x109   : > { %v811_v61 = vmax.f32 %v795_v50, 0.0  ;;  %v812_v62 = vmax.f32 %v796_v51, 0.0  ;;  %v751_v63 = vadd.f32 %v1417_v20, %v731_v52  ;;  %v752_v0 = vadd.f32 %v1417_v20, %v732_v53 }
 0x10a   : > { %v1130_v2 = vpack.c.bf16 %v810_v56, %v809_v55  ;;  %v813_v3 = vmax.f32 %v797_v57, 0.0  ;;  %v814_v4 = vmax.f32 %v798_v58, 0.0  ;;  %v1109_v5 = vunpack.c.l.bf16 %v1169_v54 }
 0x10b   : > { %v1135_v7 = vpack.c.bf16 %v812_v62, %v811_v61  ;;  %v1110_v8 = vunpack.c.h.bf16 %v1169_v54  ;;  %v733_v9 = vmul.f32 %v1412_v19, %v713_v59  ;;  %v734_v10 = vmul.f32 %v1412_v19, %v714_v60 }
 0x10c   : > { %1131 = vst [vmem:[%s1519_s5] sm:$0xff] %v1130_v2   ;;  %v1140_v13 = vpack.c.bf16 %v814_v4, %v813_v3  ;;  %v799_v14 = vadd.f32 %v1109_v5, %v751_v63  ;;  %v1113_v15 = vunpack.c.l.bf16 %v1170_v1  ;;  %v1114_v16 = vunpack.c.h.bf16 %v1170_v1 }
 0x10d   : > { %1174 = vst [vmem:[%s1519_s5 + $0x8] sm:$0xff] %v1135_v7   ;;  %v800_v17 = vadd.f32 %v1110_v8, %v752_v0  ;;  %v753_v18 = vadd.f32 %v1417_v20, %v733_v9  ;;  %v754_v21 = vadd.f32 %v1417_v20, %v734_v10  ;;  %v735_v22 = vmul.f32 %v1412_v19, %v715_v6 }
 0x10e   : > { %1175 = vst [vmem:[%s1519_s5 + $0x10] sm:$0xff] %v1140_v13   ;;  %v815_v26 = vmax.f32 %v799_v14, 0.0  ;;  %v736_v27 = vmul.f32 %v1412_v19, %v716_v11  ;;  %v1117_v28 = vunpack.c.l.bf16 %v1171_v12  ;;  %v1118_v29 = vunpack.c.h.bf16 %v1171_v12 }
 0x10f   : > { %v816_v30 = vmax.f32 %v800_v17, 0.0  ;;  %v801_v31 = vadd.f32 %v1113_v15, %v753_v18  ;;  %v802_v32 = vadd.f32 %v1114_v16, %v754_v21  ;;  %v755_v33 = vadd.f32 %v1417_v20, %v735_v22 }
 0x110   : > { %v756_v34 = vadd.f32 %v1417_v20, %v736_v27  ;;  %v737_v35 = vmul.f32 %v1412_v19, %v717_v23  ;;  %v738_v36 = vmul.f32 %v1412_v19, %v718_v24  ;;  %v1121_v37 = vunpack.c.l.bf16 %v1172_v25 }
 0x111   : > { %v1145_v40 = vpack.c.bf16 %v816_v30, %v815_v26  ;;  %v817_v41 = vmax.f32 %v801_v31, 0.0  ;;  %v818_v42 = vmax.f32 %v802_v32, 0.0  ;;  %v803_v43 = vadd.f32 %v1117_v28, %v755_v33 }
 0x112   : > { %v804_v45 = vadd.f32 %v1118_v29, %v756_v34  ;;  %v757_v46 = vadd.f32 %v1417_v20, %v737_v35  ;;  %v758_v47 = vadd.f32 %v1417_v20, %v738_v36  ;;  %v1122_v48 = vunpack.c.h.bf16 %v1172_v25 }
 0x113   : > { %1176 = vst [vmem:[%s1519_s5 + $0x18] sm:$0xff] %v1145_v40   ;;  %v1150_v49 = vpack.c.bf16 %v818_v42, %v817_v41  ;;  %v819_v50 = vmax.f32 %v803_v43, 0.0  ;;  %v739_v51 = vmul.f32 %v1412_v19, %v719_v38  ;;  %v740_v52 = vmul.f32 %v1412_v19, %v720_v39 }
 0x114   : > { %v820_v53 = vmax.f32 %v804_v45, 0.0  ;;  %v805_v54 = vadd.f32 %v1121_v37, %v757_v46  ;;  %v806_v55 = vadd.f32 %v1122_v48, %v758_v47  ;;  %v1125_v56 = vunpack.c.l.bf16 %v1173_v44 }
 0x115   : > { %1177 = vst [vmem:[%s1519_s5 + $0x20] sm:$0xff] %v1150_v49   ;;  %v759_v57 = vadd.f32 %v1417_v20, %v739_v51  ;;  %v760_v58 = vadd.f32 %v1417_v20, %v740_v52  ;;  %v1126_v59 = vunpack.c.h.bf16 %v1173_v44 }
 0x116   : > { %v1155_v60 = vpack.c.bf16 %v820_v53, %v819_v50  ;;  %v821_v61 = vmax.f32 %v805_v54, 0.0  ;;  %v822_v62 = vmax.f32 %v806_v55, 0.0 }
 0x117   : > { %v807_v63 = vadd.f32 %v1125_v56, %v759_v57  ;;  %v808_v0 = vadd.f32 %v1126_v59, %v760_v58 }
 0x118   : > { %1178 = vst [vmem:[%s1519_s5 + $0x28] sm:$0xff] %v1155_v60   ;;  %v1160_v19 = vpack.c.bf16 %v822_v62, %v821_v61 }
 0x119   : > { %v823_v1 = vmax.f32 %v807_v63, 0.0  ;;  %v824_v2 = vmax.f32 %v808_v0, 0.0 }
 0x11a   : > { %1179 = vst [vmem:[%s1519_s5 + $0x30] sm:$0xff] %v1160_v19  }
 0x11b   : > { %v1165_v3 = vpack.c.bf16 %v824_v2, %v823_v1 }
 0x11d   : > { %1180 = vst [vmem:[%s1519_s5 + $0x38] sm:$0xff] %v1165_v3  }
 0x11e PF: > { %s15_s22 = sadd.s32 1, %s1286_s22   ;;  %s1520_s18 = smov %s1274_s19 }
 0x11f   : > { %p12_p12 = scmp.ge.s32.totalorder %s15_s22, 7   ;;  %s1521_s19 = smov %s1354_s26 }
 0x120   : > { %s1522_s20 = smov %s1282_s21  ;;  %s1523_s21 = smov %s1525_s23 }
 0x121   :  { %14 = sbr.rel (!%p12_p12) target bundleno = 3 (0x3), region = 136 }

// kernel: _lambda_.19
= control target key start
LH: loop header
LB: loop body
LE: loop exit
PB: predicated region body
PF: predicated region fallthrough
CT: control target
= control target key end

     0   :  { %s820_s15 = smov 0   ;;  %s822_s16 = smov 0   ;;  %s916_s0 = inlined_call_operand.vmem [shape: bf16[32,640], index: 0, kind: input, shape index: {}]   ;;  %s917_s1 = inlined_call_operand.vmem [shape: bf16[640,128], index: 1, kind: input, shape index: {}]   ;;  %s918_s2 = inlined_call_operand.vmem [shape: f32[1,128], index: 2, kind: input, shape index: {}]   ;;  %s919_s3 = inlined_call_operand.vmem [shape: f32[1,128], index: 3, kind: input, shape index: {}]   ;;  %s920_s4 = inlined_call_operand.vmem [shape: bf16[32,128], index: 4, kind: output, shape index: {}]  }
   0x1   :  { %s824_s17 = smov 0   ;;  %s826_s18 = smov 0  }
   0x2   :  { %s828_s19 = smov 0  }
   0x3 LB: > { %s26_s20 = sadd.s32 1, %s788_s18  ;;  %p49_p1 = scmp.ne.s32.totalorder %s780_s16, %s776_s15  ;;  %s792_s19 = sphi %s828_s19, %s14_s19   ;;  %s788_s18 = sphi %s826_s18, %s924_s18   ;;  %s784_s17 = sphi %s824_s17, %s923_s17   ;;  %s780_s16 = sphi %s822_s16, %s922_s16   ;;  %s776_s15 = sphi %s820_s15, %s921_s15  }
   0x4   : > { %p27_p0 = scmp.ge.s32.totalorder %s26_s20, 5  ;;  %p50_p2 = scmp.eq.s32.totalorder %s792_s19, 0 }
   0x5   : > { %s42_s22 = sadd.s32 1, %s780_s16  ;;  %p629_p5 = scmp.ge.s32.totalorder %s792_s19, 5 }
   0x6   : > { %s926_s20 = smov (%p27_p0, %s26_s20), 0  ;;  %p51_p3 = por %p50_p2, %p49_p1 }
   0x7   : > { %s38_s21 = ssub.s32 %s788_s18, %s926_s20  ;;  %195 = sbr.rel (%p629_p5) target bundleno = 20 (0x14), region = 24 }
   0x8   : > { %p40_p4 = scmp.eq.s32.totalorder %s38_s21, 0 }
   0xa   : > { %s855_s23 = scalar_select %p40_p4, %s780_s16, %s42_s22  }
   0xc   : > { %198 = sbr.rel (!%p51_p3) target bundleno = 20 (0x14), region = 28  ;;  %s200_s24 = sand.u32 (%p51_p3), 1, %s780_s16  }
   0xd   : > { %s631_s25 = sshll.u32 (%p51_p3), %s788_s18, 2  ;;  %s630_s26 = sshll.u32 (%p51_p3), %s200_s24, 4 }
   0xe   : > { %s207_s29 = scalar_lea.vmem (%p51_p3), %s916_s0, %s631_s25  ;;  %s202_s30 = scalar_lea.vmem (%p51_p3), [#allocation3], %s630_s26 }
   0xf   : > { %v224_v0 = vld [vmem:[%s207_s29] sm:$0xf] (%p51_p3)  ;;  %v226_v1 = vld [vmem:[%s207_s29 + $0x14] sm:$0xf] (%p51_p3)  ;;  %v228_v2 = vld [vmem:[%s207_s29 + $0x28] sm:$0xf] (%p51_p3) }
  0x10   : > { %225 = vst [vmem:[%s202_s30] sm:$0xf] (%p51_p3), %v224_v0  ;;  %v230_v3 = vld [vmem:[%s207_s29 + $0x3c] sm:$0xf] (%p51_p3) }
  0x11   : > { %227 = vst [vmem:[%s202_s30 + $0x4] sm:$0xf] %v226_v1 }
  0x12   : > { %229 = vst [vmem:[%s202_s30 + $0x8] sm:$0xf] %v228_v2 }
  0x13   : > { %231 = vst [vmem:[%s202_s30 + $0xc] sm:$0xf] %v230_v3 }
  0x14 PF: > { %p632_p6 = scmp.ge.s32.totalorder %s792_s19, 1  ;;  %p274_p7 = scmp.lt.s32.totalorder %s792_s19, 6 }
  0x16   : > { %p275_p8 = pnand %p632_p6, %p274_p7 }
  0x17   : > { %s281_s5 = sand.u32 (!%p275_p8), 1, %s776_s15   ;;  %s634_s6 = sshll.u32 (!%p275_p8), %s784_s17, 4 }
  0x18   : > { %278 = sbr.rel (%p275_p8) target bundleno = 225 (0xe1), region = 73  ;;  %s867_s7 = sshll.u32 (!%p275_p8), %s281_s5, 4 }
  0x19   : > { %p325_p9 = scmp.lt.s32.totalorder (!%p275_p8), %s634_s6, 79  ;;  %s283_s12 = scalar_lea.vmem (!%p275_p8), [#allocation3], %s867_s7 }
  0x1a   : > { %p636_p10 = scmp.ne.s32.totalorder (!%p275_p8), %s784_s17, 0 }
  0x1d   : > { %s928_s6 = smov (!%p325_p9, %s634_s6), 79  ;;  %351 = sbr.rel (%p636_p10) target bundleno = 39 (0x27), region = 81 }
  0x1e   : > { %s635_s8 = sshll.u32 %s928_s6, 2 }
  0x1f   : > { %s872_s11 = scalar_lea.vmem %s917_s1, %s635_s8 }
  0x22   : > { %v794_v4 = vmov 0.0  }
  0x23   : > { %352 = vst [vmem:[#allocation2 + $0x10] sm:$0xff] %v794_v4 }
  0x24   : > { %353 = vst [vmem:[#allocation2] sm:$0xff] %v794_v4 }
  0x25   : > { %354 = vst [vmem:[#allocation2 + $0x18] sm:$0xff] %v794_v4 }
  0x26   : > { %355 = vst [vmem:[#allocation2 + $0x8] sm:$0xff] %v794_v4 }
  0x27 PF: > { %v691_v5 = vld [vmem:[%s872_s11 + $0x38] sm:$0xff]  ;;  %v690_v6 = vld [vmem:[%s872_s11 + $0x30] sm:$0xff]  ;;  %v689_v7 = vld [vmem:[%s872_s11 + $0x28] sm:$0xff]  ;;  %p677_p11 = scmp.ne.s32.totalorder %s784_s17, 4 }
  0x28   : > { %440 = vmatpush.bf16.msra.mxu0 %v691_v5  ;;  %703 = vmatpush.bf16.msra.mxu1 %v691_v5  ;;  %v688_v8 = vld [vmem:[%s872_s11 + $0x20] sm:$0xff]  ;;  %v687_v9 = vld [vmem:[%s872_s11 + $0x18] sm:$0xff]  ;;  %v686_v10 = vld [vmem:[%s872_s11 + $0x10] sm:$0xff] }
  0x29   : > { %v685_v11 = vld [vmem:[%s872_s11 + $0x8] sm:$0xff]  ;;  %v684_v12 = vld [vmem:[%s872_s11] sm:$0xff] }
  0x2a   : > { %v682_v13 = vld [vmem:[%s283_s12] sm:$0xff]  ;;  %v683_v14 = vld [vmem:[%s283_s12 + $0x8] sm:$0xff] }
  0x2b   : > { %v356_v15 = vld [vmem:[#allocation2 + $0x10] sm:$0xff]  ;;  %v357_v21 = vld [vmem:[#allocation2] sm:$0xff] }
  0x2c   : > { %441 = vmatpush.bf16.msra.mxu0 %v690_v6  ;;  %704 = vmatpush.bf16.msra.mxu1 %v690_v6  ;;  %v358_v16 = vld [vmem:[#allocation2 + $0x18] sm:$0xff] }
  0x2d   : > { %v359_v22 = vld [vmem:[#allocation2 + $0x8] sm:$0xff] }
  0x30   : > { %442 = vmatpush.bf16.msra.mxu0 %v689_v7  ;;  %705 = vmatpush.bf16.msra.mxu1 %v689_v7 }
  0x34   : > { %443 = vmatpush.bf16.msra.mxu0 %v688_v8  ;;  %706 = vmatpush.bf16.msra.mxu1 %v688_v8 }
  0x38   : > { %444 = vmatpush.bf16.msra.mxu0 %v687_v9  ;;  %707 = vmatpush.bf16.msra.mxu1 %v687_v9 }
  0x3c   : > { %445 = vmatpush.bf16.msra.mxu0 %v686_v10  ;;  %708 = vmatpush.bf16.msra.mxu1 %v686_v10 }
  0x40   : > { %446 = vmatpush.bf16.msra.mxu0 %v685_v11  ;;  %709 = vmatpush.bf16.msra.mxu1 %v685_v11 }
  0x44   : > { %447 = vmatpush.bf16.msra.mxu0 %v684_v12  ;;  %710 = vmatpush.bf16.msra.mxu1 %v684_v12 }
  0x47   : > { %448 = vmatmul.bf16.vlgmr.msra.gmra.mxu0 %v682_v13  ;;  %453 = vmatmul.bf16.vlgmr.msra.gmra.mxu1 %v683_v14 }
  0xc4   : > { %v449_v17 = vpop.f32.mrf.mxu0  ;;  %v454_v18 = vpop.f32.mrf.mxu1 }
  0xc5   : > { %v459_v19 = vadd.f32 %v449_v17, %v356_v15  ;;  %v461_v20 = vadd.f32 %v454_v18, %v358_v16 }
  0xc7   : > { %463 = vst [vmem:[#allocation2 + $0x10] sm:$0xff] %v459_v19 }
  0xc8   : > { %465 = vst [vmem:[#allocation2 + $0x18] sm:$0xff] %v461_v20 }
  0xcc   : > { %v451_v23 = vpop.f32.mrf.mxu0  ;;  %v456_v24 = vpop.f32.mrf.mxu1  ;;  %470 = sbr.rel (%p677_p11) target bundleno = 225 (0xe1), region = 85 }
  0xcd   : > { %v460_v25 = vadd.f32 %v451_v23, %v357_v21  ;;  %v462_v26 = vadd.f32 %v456_v24, %v359_v22 }
  0xcf   : > { %464 = vst [vmem:[#allocation2] sm:$0xff] %v460_v25 }
  0xd0   : > { %466 = vst [vmem:[#allocation2 + $0x8] sm:$0xff] %v462_v26 }
  0xd1   : > { %v471_v27 = vld [vmem:[#allocation2 + $0x10] sm:$0xff]  ;;  %v752_v29 = vld [vmem:[%s918_s2] ss:$0 sm:$0xff]  ;;  %v473_v31 = vld [vmem:[#allocation2 + $0x18] sm:$0xff] }
  0xd2   : > { %v753_v30 = vld [vmem:[%s919_s3] ss:$0 sm:$0xff]  ;;  %v479_v33 = vmul.f32 %v752_v29, %v471_v27  ;;  %v481_v35 = vmul.f32 %v752_v29, %v473_v31 }
  0xd4   : > { %v487_v37 = vadd.f32 %v753_v30, %v479_v33  ;;  %v489_v39 = vadd.f32 %v753_v30, %v481_v35 }
  0xd6   : > { %v472_v28 = vld [vmem:[#allocation2] sm:$0xff]  ;;  %v491_v41 = vmax.f32 %v487_v37, 0.0  ;;  %v493_v43 = vmax.f32 %v489_v39, 0.0 }
  0xd7   : > { %v474_v32 = vld [vmem:[#allocation2 + $0x8] sm:$0xff]  ;;  %v480_v34 = vmul.f32 %v752_v29, %v472_v28 }
  0xd8   : > { %v482_v36 = vmul.f32 %v752_v29, %v474_v32 }
  0xd9   : > { %v488_v38 = vadd.f32 %v753_v30, %v480_v34 }
  0xda   : > { %v490_v40 = vadd.f32 %v753_v30, %v482_v36 }
  0xdb   : > { %v492_v42 = vmax.f32 %v488_v38, 0.0 }
  0xdc   : > { %v494_v44 = vmax.f32 %v490_v40, 0.0 }
  0xdd   : > { %v695_v45 = vpack.c.bf16 %v492_v42, %v491_v41 }
  0xde   : > { %v700_v46 = vpack.c.bf16 %v494_v44, %v493_v43 }
  0xdf   : > { %696 = vst [vmem:[%s920_s4] sm:$0xff] %v695_v45  }
  0xe0   : > { %702 = vst [vmem:[%s920_s4 + $0x8] sm:$0xff] %v700_v46  }
  0xe1 PF: > { %s14_s19 = sadd.s32 1, %s792_s19   ;;  %s921_s15 = smov %s780_s16 }
  0xe2   : > { %p11_p12 = scmp.ge.s32.totalorder %s14_s19, 7   ;;  %s922_s16 = smov %s855_s23 }
  0xe3   : > { %s923_s17 = smov %s788_s18  ;;  %s924_s18 = smov %s926_s20 }
  0xe4   :  { %13 = sbr.rel (!%p11_p12) target bundleno = 3 (0x3), region = 129 }

// kernel: _lambda_.21
= control target key start
LH: loop header
LB: loop body
LE: loop exit
PB: predicated region body
PF: predicated region fallthrough
CT: control target
= control target key end

     0   :  { %s925_s18 = smov 0   ;;  %s927_s19 = smov 0   ;;  %s1027_s0 = inlined_call_operand.vmem [shape: bf16[32,1152], index: 0, kind: input, shape index: {}]   ;;  %s1028_s1 = inlined_call_operand.vmem [shape: bf16[1152,128], index: 1, kind: input, shape index: {}]   ;;  %s1029_s2 = inlined_call_operand.vmem [shape: f32[1,128], index: 2, kind: input, shape index: {}]   ;;  %s1030_s3 = inlined_call_operand.vmem [shape: f32[1,128], index: 3, kind: input, shape index: {}]   ;;  %s1031_s4 = inlined_call_operand.vmem [shape: bf16[32,128], index: 4, kind: input, shape index: {}]   ;;  %s1032_s5 = inlined_call_operand.vmem [shape: bf16[32,128], index: 5, kind: output, shape index: {}]  }
   0x1   :  { %s929_s20 = smov 0   ;;  %s931_s21 = smov 0  }
   0x2   :  { %s933_s22 = smov 0  }
   0x3 LB: > { %s27_s23 = sadd.s32 1, %s888_s21  ;;  %p50_p1 = scmp.ne.s32.totalorder %s880_s19, %s876_s18  ;;  %s892_s22 = sphi %s933_s22, %s15_s22   ;;  %s888_s21 = sphi %s931_s21, %s1036_s21   ;;  %s884_s20 = sphi %s929_s20, %s1035_s20   ;;  %s880_s19 = sphi %s927_s19, %s1034_s19   ;;  %s876_s18 = sphi %s925_s18, %s1033_s18  }
   0x4   : > { %p28_p0 = scmp.ge.s32.totalorder %s27_s23, 9  ;;  %p51_p2 = scmp.eq.s32.totalorder %s892_s22, 0 }
   0x5   : > { %s43_s25 = sadd.s32 1, %s880_s19  ;;  %p720_p5 = scmp.ge.s32.totalorder %s892_s22, 9 }
   0x6   : > { %s1038_s23 = smov (%p28_p0, %s27_s23), 0  ;;  %p52_p3 = por %p51_p2, %p50_p1 }
   0x7   : > { %s39_s24 = ssub.s32 %s888_s21, %s1038_s23  ;;  %236 = sbr.rel (%p720_p5) target bundleno = 20 (0x14), region = 28 }
   0x8   : > { %p41_p4 = scmp.eq.s32.totalorder %s39_s24, 0 }
   0xa   : > { %s960_s26 = scalar_select %p41_p4, %s880_s19, %s43_s25  }
   0xc   : > { %239 = sbr.rel (!%p52_p3) target bundleno = 20 (0x14), region = 32  ;;  %s241_s27 = sand.u32 (%p52_p3), 1, %s880_s19  }
   0xd   : > { %s722_s28 = sshll.u32 (%p52_p3), %s888_s21, 2  ;;  %s721_s29 = sshll.u32 (%p52_p3), %s241_s27, 4 }
   0xe   : > { %s248_s7 = scalar_lea.vmem (%p52_p3), %s1027_s0, %s722_s28  ;;  %s243_s8 = scalar_lea.vmem (%p52_p3), [#allocation3], %s721_s29 }
   0xf   : > { %v265_v0 = vld [vmem:[%s248_s7] sm:$0xf] (%p52_p3)  ;;  %v267_v1 = vld [vmem:[%s248_s7 + $0x24] sm:$0xf] (%p52_p3)  ;;  %v269_v2 = vld [vmem:[%s248_s7 + $0x48] sm:$0xf] (%p52_p3) }
  0x10   : > { %266 = vst [vmem:[%s243_s8] sm:$0xf] (%p52_p3), %v265_v0  ;;  %v271_v3 = vld [vmem:[%s248_s7 + $0x6c] sm:$0xf] (%p52_p3) }
  0x11   : > { %268 = vst [vmem:[%s243_s8 + $0x4] sm:$0xf] %v267_v1 }
  0x12   : > { %270 = vst [vmem:[%s243_s8 + $0x8] sm:$0xf] %v269_v2 }
  0x13   : > { %272 = vst [vmem:[%s243_s8 + $0xc] sm:$0xf] %v271_v3 }
  0x14 PF: > { %p723_p6 = scmp.ge.s32.totalorder %s892_s22, 1  ;;  %p315_p7 = scmp.lt.s32.totalorder %s892_s22, 10 }
  0x16   : > { %p316_p8 = pnand %p723_p6, %p315_p7 }
  0x17   : > { %s322_s9 = sand.u32 (!%p316_p8), 1, %s876_s18   ;;  %s725_s10 = sshll.u32 (!%p316_p8), %s884_s20, 4 }
  0x18   : > { %319 = sbr.rel (%p316_p8) target bundleno = 227 (0xe3), region = 77  ;;  %s972_s11 = sshll.u32 (!%p316_p8), %s322_s9, 4 }
  0x19   : > { %p376_p9 = scmp.lt.s32.totalorder (!%p316_p8), %s725_s10, 143  ;;  %s324_s16 = scalar_lea.vmem (!%p316_p8), [#allocation3], %s972_s11 }
  0x1a   : > { %p727_p10 = scmp.ne.s32.totalorder (!%p316_p8), %s884_s20, 0 }
  0x1d   : > { %s1040_s10 = smov (!%p376_p9, %s725_s10), 143  ;;  %411 = sbr.rel (%p727_p10) target bundleno = 39 (0x27), region = 85 }
  0x1e   : > { %s726_s12 = sshll.u32 %s1040_s10, 2 }
  0x1f   : > { %s977_s15 = scalar_lea.vmem %s1028_s1, %s726_s12 }
  0x22   : > { %v894_v4 = vmov 0.0  }
  0x23   : > { %412 = vst [vmem:[#allocation2 + $0x10] sm:$0xff] %v894_v4 }
  0x24   : > { %413 = vst [vmem:[#allocation2] sm:$0xff] %v894_v4 }
  0x25   : > { %414 = vst [vmem:[#allocation2 + $0x18] sm:$0xff] %v894_v4 }
  0x26   : > { %415 = vst [vmem:[#allocation2 + $0x8] sm:$0xff] %v894_v4 }
  0x27 PF: > { %v782_v5 = vld [vmem:[%s977_s15 + $0x38] sm:$0xff]  ;;  %v781_v6 = vld [vmem:[%s977_s15 + $0x30] sm:$0xff]  ;;  %v780_v7 = vld [vmem:[%s977_s15 + $0x28] sm:$0xff]  ;;  %p768_p11 = scmp.ne.s32.totalorder %s884_s20, 8 }
  0x28   : > { %500 = vmatpush.bf16.msra.mxu0 %v782_v5  ;;  %803 = vmatpush.bf16.msra.mxu1 %v782_v5  ;;  %v779_v8 = vld [vmem:[%s977_s15 + $0x20] sm:$0xff]  ;;  %v778_v9 = vld [vmem:[%s977_s15 + $0x18] sm:$0xff]  ;;  %v777_v10 = vld [vmem:[%s977_s15 + $0x10] sm:$0xff] }
  0x29   : > { %v776_v11 = vld [vmem:[%s977_s15 + $0x8] sm:$0xff]  ;;  %v775_v12 = vld [vmem:[%s977_s15] sm:$0xff] }
  0x2a   : > { %v773_v13 = vld [vmem:[%s324_s16] sm:$0xff]  ;;  %v774_v14 = vld [vmem:[%s324_s16 + $0x8] sm:$0xff] }
  0x2b   : > { %v416_v15 = vld [vmem:[#allocation2 + $0x10] sm:$0xff]  ;;  %v417_v21 = vld [vmem:[#allocation2] sm:$0xff] }
  0x2c   : > { %501 = vmatpush.bf16.msra.mxu0 %v781_v6  ;;  %804 = vmatpush.bf16.msra.mxu1 %v781_v6  ;;  %v418_v16 = vld [vmem:[#allocation2 + $0x18] sm:$0xff] }
  0x2d   : > { %v419_v22 = vld [vmem:[#allocation2 + $0x8] sm:$0xff] }
  0x30   : > { %502 = vmatpush.bf16.msra.mxu0 %v780_v7  ;;  %805 = vmatpush.bf16.msra.mxu1 %v780_v7 }
  0x34   : > { %503 = vmatpush.bf16.msra.mxu0 %v779_v8  ;;  %806 = vmatpush.bf16.msra.mxu1 %v779_v8 }
  0x38   : > { %504 = vmatpush.bf16.msra.mxu0 %v778_v9  ;;  %807 = vmatpush.bf16.msra.mxu1 %v778_v9 }
  0x3c   : > { %505 = vmatpush.bf16.msra.mxu0 %v777_v10  ;;  %808 = vmatpush.bf16.msra.mxu1 %v777_v10 }
  0x40   : > { %506 = vmatpush.bf16.msra.mxu0 %v776_v11  ;;  %809 = vmatpush.bf16.msra.mxu1 %v776_v11 }
  0x44   : > { %507 = vmatpush.bf16.msra.mxu0 %v775_v12  ;;  %810 = vmatpush.bf16.msra.mxu1 %v775_v12 }
  0x47   : > { %508 = vmatmul.bf16.vlgmr.msra.gmra.mxu0 %v773_v13  ;;  %513 = vmatmul.bf16.vlgmr.msra.gmra.mxu1 %v774_v14 }
  0xc4   : > { %v509_v17 = vpop.f32.mrf.mxu0  ;;  %v514_v18 = vpop.f32.mrf.mxu1 }
  0xc5   : > { %v519_v19 = vadd.f32 %v509_v17, %v416_v15  ;;  %v521_v20 = vadd.f32 %v514_v18, %v418_v16 }
  0xc7   : > { %523 = vst [vmem:[#allocation2 + $0x10] sm:$0xff] %v519_v19 }
  0xc8   : > { %525 = vst [vmem:[#allocation2 + $0x18] sm:$0xff] %v521_v20 }
  0xcc   : > { %v511_v23 = vpop.f32.mrf.mxu0  ;;  %v516_v24 = vpop.f32.mrf.mxu1  ;;  %530 = sbr.rel (%p768_p11) target bundleno = 227 (0xe3), region = 89 }
  0xcd   : > { %v520_v25 = vadd.f32 %v511_v23, %v417_v21  ;;  %v522_v26 = vadd.f32 %v516_v24, %v419_v22 }
  0xcf   : > { %524 = vst [vmem:[#allocation2] sm:$0xff] %v520_v25 }
  0xd0   : > { %526 = vst [vmem:[#allocation2 + $0x8] sm:$0xff] %v522_v26 }
  0xd1   : > { %v531_v27 = vld [vmem:[#allocation2 + $0x10] sm:$0xff]  ;;  %v852_v29 = vld [vmem:[%s1029_s2] ss:$0 sm:$0xff]  ;;  %v533_v32 = vld [vmem:[#allocation2 + $0x18] sm:$0xff] }
  0xd2   : > { %v853_v30 = vld [vmem:[%s1030_s3] ss:$0 sm:$0xff]  ;;  %v539_v34 = vmul.f32 %v852_v29, %v531_v27  ;;  %v801_v38 = vld [vmem:[%s1031_s4 + $0x8] sm:$0xff]   ;;  %v541_v39 = vmul.f32 %v852_v29, %v533_v32 }
  0xd3   : > { %v784_v31 = vld [vmem:[%s1031_s4] sm:$0xff]   ;;  %v789_v41 = vunpack.c.l.bf16 %v801_v38  ;;  %v790_v42 = vunpack.c.h.bf16 %v801_v38 }
  0xd4   : > { %v785_v36 = vunpack.c.l.bf16 %v784_v31  ;;  %v786_v37 = vunpack.c.h.bf16 %v784_v31  ;;  %v547_v43 = vadd.f32 %v853_v30, %v539_v34  ;;  %v549_v45 = vadd.f32 %v853_v30, %v541_v39 }
  0xd6   : > { %v532_v28 = vld [vmem:[#allocation2] sm:$0xff]  ;;  %v559_v47 = vadd.f32 %v785_v36, %v547_v43  ;;  %v561_v49 = vadd.f32 %v789_v41, %v549_v45 }
  0xd7   : > { %v534_v33 = vld [vmem:[#allocation2 + $0x8] sm:$0xff]  ;;  %v540_v35 = vmul.f32 %v852_v29, %v532_v28 }
  0xd8   : > { %v542_v40 = vmul.f32 %v852_v29, %v534_v33  ;;  %v563_v51 = vmax.f32 %v559_v47, 0.0  ;;  %v565_v53 = vmax.f32 %v561_v49, 0.0 }
  0xd9   : > { %v548_v44 = vadd.f32 %v853_v30, %v540_v35 }
  0xda   : > { %v550_v46 = vadd.f32 %v853_v30, %v542_v40 }
  0xdb   : > { %v560_v48 = vadd.f32 %v786_v37, %v548_v44 }
  0xdc   : > { %v562_v50 = vadd.f32 %v790_v42, %v550_v46 }
  0xdd   : > { %v564_v52 = vmax.f32 %v560_v48, 0.0 }
  0xde   : > { %v566_v54 = vmax.f32 %v562_v50, 0.0 }
  0xdf   : > { %v794_v55 = vpack.c.bf16 %v564_v52, %v563_v51 }
  0xe0   : > { %v799_v56 = vpack.c.bf16 %v566_v54, %v565_v53 }
  0xe1   : > { %795 = vst [vmem:[%s1032_s5] sm:$0xff] %v794_v55  }
  0xe2   : > { %802 = vst [vmem:[%s1032_s5 + $0x8] sm:$0xff] %v799_v56  }
  0xe3 PF: > { %s15_s22 = sadd.s32 1, %s892_s22   ;;  %s1033_s18 = smov %s880_s19 }
  0xe4   : > { %p12_p12 = scmp.ge.s32.totalorder %s15_s22, 11   ;;  %s1034_s19 = smov %s960_s26 }
  0xe5   : > { %s1035_s20 = smov %s888_s21  ;;  %s1036_s21 = smov %s1038_s23 }
  0xe6   :  { %14 = sbr.rel (!%p12_p12) target bundleno = 3 (0x3), region = 136 }

// kernel: _lambda_.20
= control target key start
LH: loop header
LB: loop body
LE: loop exit
PB: predicated region body
PF: predicated region fallthrough
CT: control target
= control target key end

     0   :  { %s309_s1 = inlined_call_operand.vmem [shape: bf16[128,128], index: 1, kind: input, shape index: {}]   ;;  %s310_s2 = inlined_call_operand.vmem [shape: f32[1,128], index: 2, kind: input, shape index: {}]   ;;  %s311_s3 = inlined_call_operand.vmem [shape: f32[1,128], index: 3, kind: input, shape index: {}]   ;;  %s312_s0 = inlined_call_operand.vmem [shape: bf16[32,128], index: 0, kind: input, shape index: {}]   ;;  %s313_s4 = inlined_call_operand.vmem [shape: bf16[32,128], index: 4, kind: output, shape index: {}]  }
   0x1   :  { %v220_v0 = vld [vmem:[%s309_s1 + $0x38] sm:$0xff]  ;;  %v219_v1 = vld [vmem:[%s309_s1 + $0x30] sm:$0xff]  ;;  %v218_v2 = vld [vmem:[%s309_s1 + $0x28] sm:$0xff] }
   0x2   :  { %109 = vmatpush.bf16.msra.mxu0 %v220_v0  ;;  %232 = vmatpush.bf16.msra.mxu1 %v220_v0  ;;  %v217_v3 = vld [vmem:[%s309_s1 + $0x20] sm:$0xff]  ;;  %v216_v4 = vld [vmem:[%s309_s1 + $0x18] sm:$0xff]  ;;  %v215_v5 = vld [vmem:[%s309_s1 + $0x10] sm:$0xff] }
   0x3   :  { %v214_v6 = vld [vmem:[%s309_s1 + $0x8] sm:$0xff]  ;;  %v213_v7 = vld [vmem:[%s309_s1] sm:$0xff] }
   0x4   :  { %v211_v8 = vld [vmem:[%s312_s0] sm:$0xff]  ;;  %v212_v9 = vld [vmem:[%s312_s0 + $0x8] sm:$0xff] }
   0x5   :  { %v240_v12 = vld [vmem:[%s310_s2] ss:$0 sm:$0xff] }
   0x6   :  { %110 = vmatpush.bf16.msra.mxu0 %v219_v1  ;;  %233 = vmatpush.bf16.msra.mxu1 %v219_v1  ;;  %v241_v14 = vld [vmem:[%s311_s3] ss:$0 sm:$0xff] }
   0xa   :  { %111 = vmatpush.bf16.msra.mxu0 %v218_v2  ;;  %234 = vmatpush.bf16.msra.mxu1 %v218_v2 }
   0xe   :  { %112 = vmatpush.bf16.msra.mxu0 %v217_v3  ;;  %235 = vmatpush.bf16.msra.mxu1 %v217_v3 }
  0x12   :  { %113 = vmatpush.bf16.msra.mxu0 %v216_v4  ;;  %236 = vmatpush.bf16.msra.mxu1 %v216_v4 }
  0x16   :  { %114 = vmatpush.bf16.msra.mxu0 %v215_v5  ;;  %237 = vmatpush.bf16.msra.mxu1 %v215_v5 }
  0x1a   :  { %115 = vmatpush.bf16.msra.mxu0 %v214_v6  ;;  %238 = vmatpush.bf16.msra.mxu1 %v214_v6 }
  0x1e   :  { %116 = vmatpush.bf16.msra.mxu0 %v213_v7  ;;  %239 = vmatpush.bf16.msra.mxu1 %v213_v7 }
  0x21   :  { %117 = vmatmul.bf16.vlgmr.msra.gmra.mxu0 %v211_v8  ;;  %122 = vmatmul.bf16.vlgmr.msra.gmra.mxu1 %v212_v9 }
  0x9e   :  { %v118_v10 = vpop.f32.mrf.mxu0  ;;  %v123_v11 = vpop.f32.mrf.mxu1 }
  0x9f   :  { %v147_v13 = vmul.f32 %v240_v12, %v118_v10  ;;  %v149_v15 = vmul.f32 %v240_v12, %v123_v11 }
  0xa1   :  { %v155_v20 = vadd.f32 %v241_v14, %v147_v13  ;;  %v157_v21 = vadd.f32 %v241_v14, %v149_v15 }
  0xa6   :  { %v120_v16 = vpop.f32.mrf.mxu0  ;;  %v125_v17 = vpop.f32.mrf.mxu1 }
  0xa7   :  { %v148_v18 = vmul.f32 %v240_v12, %v120_v16  ;;  %v150_v19 = vmul.f32 %v240_v12, %v125_v17 }
  0xa9   :  { %v156_v22 = vadd.f32 %v241_v14, %v148_v18  ;;  %v158_v23 = vadd.f32 %v241_v14, %v150_v19 }
  0xab   :  { %v224_v24 = vpack.c.bf16 %v156_v22, %v155_v20  ;;  %v229_v25 = vpack.c.bf16 %v158_v23, %v157_v21 }
  0xad   :  { %225 = vst [vmem:[%s313_s4] sm:$0xff] %v224_v24  }
  0xae   :  { %231 = vst [vmem:[%s313_s4 + $0x8] sm:$0xff] %v229_v25  }

// kernel: _lambda_.22
= control target key start
LH: loop header
LB: loop body
LE: loop exit
PB: predicated region body
PF: predicated region fallthrough
CT: control target
= control target key end

     0   :  { %s780_s15 = smov 0   ;;  %s782_s16 = smov 0   ;;  %s866_s0 = inlined_call_operand.vmem [shape: bf16[8,1152], index: 0, kind: input, shape index: {}]   ;;  %s867_s1 = inlined_call_operand.vmem [shape: bf16[1152,256], index: 1, kind: input, shape index: {}]   ;;  %s868_s2 = inlined_call_operand.vmem [shape: f32[1,256], index: 2, kind: input, shape index: {}]   ;;  %s869_s3 = inlined_call_operand.vmem [shape: f32[1,256], index: 3, kind: input, shape index: {}]   ;;  %s870_s4 = inlined_call_operand.vmem [shape: bf16[8,256], index: 4, kind: output, shape index: {}]  }
   0x1   :  { %s784_s17 = smov 0  }
   0x2 LB: > { %s26_s18 = sadd.s32 1, %s748_s16  ;;  %p613_p0 = scmp.ge.s32.totalorder %s752_s17, 1  ;;  %s752_s17 = sphi %s784_s17, %s14_s17   ;;  %s748_s16 = sphi %s782_s16, %s872_s16   ;;  %s744_s15 = sphi %s780_s15, %s871_s15  }
   0x3   : > { %p27_p1 = scmp.ge.s32.totalorder %s26_s18, 9  ;;  %p227_p2 = scmp.lt.s32.totalorder %s752_s17, 10 }
   0x5   : > { %s874_s18 = smov (%p27_p1, %s26_s18), 0  ;;  %p228_p3 = pnand %p613_p0, %p227_p2 }
   0x6   : > { %p280_p4 = scmp.lt.s32.totalorder (!%p228_p3), %s744_s15, 8  ;;  %s615_s19 = sshll.u32 (!%p228_p3), %s744_s15, 4 }
   0x7   : > { %231 = sbr.rel (%p228_p3) target bundleno = 203 (0xcb), region = 36  ;;  %p288_p5 = scmp.lt.s32.totalorder (!%p228_p3), %s615_s19, 143 }
   0x8   : > { %p618_p6 = scmp.ne.s32.totalorder (!%p228_p3), %s744_s15, 0 }
   0xc   : > { %s281_s20 = scalar_select %p280_p4, %s744_s15, 8 }
   0xd   : > { %s876_s19 = smov (!%p288_p5, %s615_s19), 143  ;;  %321 = sbr.rel (%p618_p6) target bundleno = 21 (0x15), region = 40 }
   0xe   : > { %s614_s21 = sshll.u32 %s281_s20, 2  ;;  %s688_s25 = sshll.u32 %s876_s19, 3 }
   0xf   : > { %s806_s24 = scalar_lea.vmem %s866_s0, %s614_s21  ;;  %s811_s28 = scalar_lea.vmem %s867_s1, %s688_s25 }
  0x12   : > { %v754_v0 = vmov 0.0  }
  0x13   : > { %322 = vst [vmem:[#allocation2] sm:$0xff] %v754_v0 }
  0x14   : > { %323 = vst [vmem:[#allocation2 + $0x8] sm:$0xff] %v754_v0 }
  0x15 PF: > { %v677_v1 = vld [vmem:[%s811_s28 + $0x70] sm:$0xf]  ;;  %v704_v2 = vld [vmem:[%s811_s28 + $0x74] sm:$0xf0]  ;;  %v703_v3 = vld [vmem:[%s811_s28 + $0x74] sm:$0xf] }
  0x16   : > { %v678_v4 = vor.u32 %v704_v2, %v677_v1  ;;  %v679_v5 = vld [vmem:[%s811_s28 + $0x78] sm:$0xf0]  ;;  %v669_v6 = vld [vmem:[%s811_s28 + $0x60] sm:$0xf]  ;;  %v702_v7 = vld [vmem:[%s811_s28 + $0x64] sm:$0xf0] }
  0x17   : > { %v682_v8 = vor.u32 %v703_v3, %v679_v5  ;;  %v701_v9 = vld [vmem:[%s811_s28 + $0x64] sm:$0xf]  ;;  %v671_v10 = vld [vmem:[%s811_s28 + $0x68] sm:$0xf0]  ;;  %v670_v11 = vor.u32 %v702_v7, %v669_v6  ;;  %v661_v13 = vld [vmem:[%s811_s28 + $0x50] sm:$0xf] }
  0x18   : > { %423 = vmatpush.bf16.msra.mxu0 %v678_v4  ;;  %v674_v12 = vor.u32 %v701_v9, %v671_v10  ;;  %v700_v14 = vld [vmem:[%s811_s28 + $0x54] sm:$0xf0]  ;;  %v699_v15 = vld [vmem:[%s811_s28 + $0x54] sm:$0xf]  ;;  %v663_v16 = vld [vmem:[%s811_s28 + $0x58] sm:$0xf0] }
  0x19   : > { %436 = vmatpush.bf16.msra.mxu1 %v682_v8  ;;  %v662_v17 = vor.u32 %v700_v14, %v661_v13  ;;  %v666_v18 = vor.u32 %v699_v15, %v663_v16  ;;  %v653_v19 = vld [vmem:[%s811_s28 + $0x40] sm:$0xf]  ;;  %v698_v20 = vld [vmem:[%s811_s28 + $0x44] sm:$0xf0]  ;;  %v697_v21 = vld [vmem:[%s811_s28 + $0x44] sm:$0xf] }
  0x1a   : > { %v655_v22 = vld [vmem:[%s811_s28 + $0x48] sm:$0xf0]  ;;  %v654_v23 = vor.u32 %v698_v20, %v653_v19  ;;  %v645_v25 = vld [vmem:[%s811_s28 + $0x30] sm:$0xf]  ;;  %v696_v26 = vld [vmem:[%s811_s28 + $0x34] sm:$0xf0] }
  0x1b   : > { %v658_v24 = vor.u32 %v697_v21, %v655_v22  ;;  %v695_v27 = vld [vmem:[%s811_s28 + $0x34] sm:$0xf]  ;;  %v647_v28 = vld [vmem:[%s811_s28 + $0x38] sm:$0xf0]  ;;  %v646_v29 = vor.u32 %v696_v26, %v645_v25  ;;  %v637_v31 = vld [vmem:[%s811_s28 + $0x20] sm:$0xf] }
  0x1c   : > { %424 = vmatpush.bf16.msra.mxu0 %v670_v11  ;;  %v650_v30 = vor.u32 %v695_v27, %v647_v28  ;;  %v694_v32 = vld [vmem:[%s811_s28 + $0x24] sm:$0xf0]  ;;  %v693_v33 = vld [vmem:[%s811_s28 + $0x24] sm:$0xf]  ;;  %v639_v34 = vld [vmem:[%s811_s28 + $0x28] sm:$0xf0] }
  0x1d   : > { %437 = vmatpush.bf16.msra.mxu1 %v674_v12  ;;  %v638_v35 = vor.u32 %v694_v32, %v637_v31  ;;  %v642_v36 = vor.u32 %v693_v33, %v639_v34  ;;  %v629_v37 = vld [vmem:[%s811_s28 + $0x10] sm:$0xf]  ;;  %v692_v38 = vld [vmem:[%s811_s28 + $0x14] sm:$0xf0]  ;;  %v691_v39 = vld [vmem:[%s811_s28 + $0x14] sm:$0xf] }
  0x1e   : > { %v631_v40 = vld [vmem:[%s811_s28 + $0x18] sm:$0xf0]  ;;  %v630_v41 = vor.u32 %v692_v38, %v629_v37  ;;  %v621_v43 = vld [vmem:[%s811_s28] sm:$0xf]  ;;  %v690_v44 = vld [vmem:[%s811_s28 + $0x4] sm:$0xf0] }
  0x1f   : > { %v634_v42 = vor.u32 %v691_v39, %v631_v40  ;;  %v689_v45 = vld [vmem:[%s811_s28 + $0x4] sm:$0xf]  ;;  %v623_v46 = vld [vmem:[%s811_s28 + $0x8] sm:$0xf0]  ;;  %v622_v47 = vor.u32 %v690_v44, %v621_v43  ;;  %v326_v49 = vld [vmem:[%s806_s24] sm:$0xf] }
  0x20   : > { %425 = vmatpush.bf16.msra.mxu0 %v662_v17  ;;  %v626_v48 = vor.u32 %v689_v45, %v623_v46  ;;  %v324_v50 = vld [vmem:[#allocation2] sm:$0xff]  ;;  %v325_v51 = vld [vmem:[#allocation2 + $0x8] sm:$0xff]  ;;  %p683_p7 = scmp.ne.s32.totalorder %s744_s15, 8 }
  0x21   : > { %438 = vmatpush.bf16.msra.mxu1 %v666_v18 }
  0x24   : > { %426 = vmatpush.bf16.msra.mxu0 %v654_v23 }
  0x25   : > { %439 = vmatpush.bf16.msra.mxu1 %v658_v24 }
  0x28   : > { %427 = vmatpush.bf16.msra.mxu0 %v646_v29 }
  0x29   : > { %440 = vmatpush.bf16.msra.mxu1 %v650_v30 }
  0x2c   : > { %428 = vmatpush.bf16.msra.mxu0 %v638_v35 }
  0x2d   : > { %441 = vmatpush.bf16.msra.mxu1 %v642_v36 }
  0x30   : > { %429 = vmatpush.bf16.msra.mxu0 %v630_v41 }
  0x31   : > { %442 = vmatpush.bf16.msra.mxu1 %v634_v42 }
  0x34   : > { %430 = vmatpush.bf16.msra.mxu0 %v622_v47 }
  0x35   : > { %443 = vmatpush.bf16.msra.mxu1 %v626_v48 }
  0x37   : > { %431 = vmatmul.bf16.vlgmr.msra.gmra.mxu0 %v326_v49 }
  0x38   : > { %444 = vmatmul.bf16.vlgmr.msra.gmra.mxu1 %v326_v49 }
  0xb4   : > { %v432_v52 = vpop.f32.mrf.mxu0 }
  0xb5   : > { %v449_v53 = vadd.f32 %v432_v52, %v324_v50  ;;  %v445_v54 = vpop.f32.mrf.mxu1 }
  0xb6   : > { %v450_v55 = vadd.f32 %v445_v54, %v325_v51 }
  0xb7   : > { %451 = vst [vmem:[#allocation2] sm:$0xff] %v449_v53 }
  0xb8   : > { %452 = vst [vmem:[#allocation2 + $0x8] sm:$0xff] %v450_v55 }
  0xb9   : > { %456 = sbr.rel (%p683_p7) target bundleno = 203 (0xcb), region = 44 }
  0xbc   : > { %v434_v56 = vpop.f32.mrf.mxu0 }
  0xbd   : > { %v447_v57 = vpop.f32.mrf.mxu1 }
  0xbe   : > { %v457_v58 = vld [vmem:[#allocation2] sm:$0xff] }
  0xbf   : > { %v458_v59 = vld [vmem:[#allocation2 + $0x8] sm:$0xff]  ;;  %v459_v60 = vld [vmem:[%s868_s2] sm:$0x3] }
  0xc0   : > { %v461_v61 = vperm.slane %v459_v60, 0  ;;  %v462_v62 = vperm.slane %v459_v60, 1  ;;  %v467_v63 = vld [vmem:[%s869_s3] sm:$0x3] }
  0xc1   : > { %v469_v0 = vperm.slane %v467_v63, 0  ;;  %v470_v1 = vperm.slane %v467_v63, 1 }
  0xc2   : > { %v465_v2 = vmul.f32 %v461_v61, %v457_v58  ;;  %v466_v3 = vmul.f32 %v462_v62, %v458_v59 }
  0xc4   : > { %v473_v4 = vadd.f32 %v469_v0, %v465_v2  ;;  %v474_v5 = vadd.f32 %v470_v1, %v466_v3 }
  0xc6   : > { %v475_v6 = vmax.f32 %v473_v4, 0.0  ;;  %v476_v7 = vmax.f32 %v474_v5, 0.0 }
  0xc8   : > { %v477_v8 = vpack.c.bf16 %v476_v7, %v475_v6 }
  0xca   : > { %478 = vst [vmem:[%s870_s4] sm:$0xff] %v477_v8 }
  0xcb PF: > { %s14_s17 = sadd.s32 1, %s752_s17   ;;  %s871_s15 = smov %s748_s16 }
  0xcc   : > { %p11_p8 = scmp.ge.s32.totalorder %s14_s17, 11   ;;  %s872_s16 = smov %s874_s18 }
  0xce   :  { %13 = sbr.rel (!%p11_p8) target bundleno = 2 (0x2), region = 83 }

// kernel: _lambda_.23
= control target key start
LH: loop header
LB: loop body
LE: loop exit
PB: predicated region body
PF: predicated region fallthrough
CT: control target
= control target key end

     0   :  { %s392_s1 = inlined_call_operand.vmem [shape: bf16[128,256], index: 1, kind: input, shape index: {}]   ;;  %s393_s0 = inlined_call_operand.vmem [shape: bf16[8,128], index: 0, kind: input, shape index: {}]   ;;  %s394_s2 = inlined_call_operand.vmem [shape: f32[1,256], index: 2, kind: input, shape index: {}]   ;;  %s395_s3 = inlined_call_operand.vmem [shape: f32[1,256], index: 3, kind: input, shape index: {}]   ;;  %s396_s4 = inlined_call_operand.vmem [shape: bf16[8,256], index: 4, kind: output, shape index: {}]  }
   0x1   :  { %v237_v0 = vld [vmem:[%s392_s1 + $0x70] sm:$0xf]  ;;  %v258_v1 = vld [vmem:[%s392_s1 + $0x74] sm:$0xf0]  ;;  %v257_v2 = vld [vmem:[%s392_s1 + $0x74] sm:$0xf] }
   0x2   :  { %v238_v3 = vor.u32 %v258_v1, %v237_v0  ;;  %v239_v4 = vld [vmem:[%s392_s1 + $0x78] sm:$0xf0]  ;;  %v229_v5 = vld [vmem:[%s392_s1 + $0x60] sm:$0xf]  ;;  %v256_v6 = vld [vmem:[%s392_s1 + $0x64] sm:$0xf0] }
   0x3   :  { %v242_v7 = vor.u32 %v257_v2, %v239_v4  ;;  %v255_v8 = vld [vmem:[%s392_s1 + $0x64] sm:$0xf]  ;;  %v231_v9 = vld [vmem:[%s392_s1 + $0x68] sm:$0xf0]  ;;  %v230_v10 = vor.u32 %v256_v6, %v229_v5  ;;  %v221_v12 = vld [vmem:[%s392_s1 + $0x50] sm:$0xf] }
   0x4   :  { %122 = vmatpush.bf16.msra.mxu0 %v238_v3  ;;  %v234_v11 = vor.u32 %v255_v8, %v231_v9  ;;  %v254_v13 = vld [vmem:[%s392_s1 + $0x54] sm:$0xf0]  ;;  %v253_v14 = vld [vmem:[%s392_s1 + $0x54] sm:$0xf]  ;;  %v223_v15 = vld [vmem:[%s392_s1 + $0x58] sm:$0xf0] }
   0x5   :  { %135 = vmatpush.bf16.msra.mxu1 %v242_v7  ;;  %v222_v16 = vor.u32 %v254_v13, %v221_v12  ;;  %v226_v17 = vor.u32 %v253_v14, %v223_v15  ;;  %v213_v18 = vld [vmem:[%s392_s1 + $0x40] sm:$0xf]  ;;  %v252_v19 = vld [vmem:[%s392_s1 + $0x44] sm:$0xf0]  ;;  %v251_v20 = vld [vmem:[%s392_s1 + $0x44] sm:$0xf] }
   0x6   :  { %v215_v21 = vld [vmem:[%s392_s1 + $0x48] sm:$0xf0]  ;;  %v214_v22 = vor.u32 %v252_v19, %v213_v18  ;;  %v205_v24 = vld [vmem:[%s392_s1 + $0x30] sm:$0xf]  ;;  %v250_v25 = vld [vmem:[%s392_s1 + $0x34] sm:$0xf0] }
   0x7   :  { %v218_v23 = vor.u32 %v251_v20, %v215_v21  ;;  %v249_v26 = vld [vmem:[%s392_s1 + $0x34] sm:$0xf]  ;;  %v207_v27 = vld [vmem:[%s392_s1 + $0x38] sm:$0xf0]  ;;  %v206_v28 = vor.u32 %v250_v25, %v205_v24  ;;  %v197_v30 = vld [vmem:[%s392_s1 + $0x20] sm:$0xf] }
   0x8   :  { %123 = vmatpush.bf16.msra.mxu0 %v230_v10  ;;  %v210_v29 = vor.u32 %v249_v26, %v207_v27  ;;  %v248_v31 = vld [vmem:[%s392_s1 + $0x24] sm:$0xf0]  ;;  %v247_v32 = vld [vmem:[%s392_s1 + $0x24] sm:$0xf]  ;;  %v199_v33 = vld [vmem:[%s392_s1 + $0x28] sm:$0xf0] }
   0x9   :  { %136 = vmatpush.bf16.msra.mxu1 %v234_v11  ;;  %v198_v34 = vor.u32 %v248_v31, %v197_v30  ;;  %v202_v35 = vor.u32 %v247_v32, %v199_v33  ;;  %v189_v36 = vld [vmem:[%s392_s1 + $0x10] sm:$0xf]  ;;  %v246_v37 = vld [vmem:[%s392_s1 + $0x14] sm:$0xf0]  ;;  %v245_v38 = vld [vmem:[%s392_s1 + $0x14] sm:$0xf] }
   0xa   :  { %v191_v39 = vld [vmem:[%s392_s1 + $0x18] sm:$0xf0]  ;;  %v190_v40 = vor.u32 %v246_v37, %v189_v36  ;;  %v181_v42 = vld [vmem:[%s392_s1] sm:$0xf]  ;;  %v244_v43 = vld [vmem:[%s392_s1 + $0x4] sm:$0xf0] }
   0xb   :  { %v194_v41 = vor.u32 %v245_v38, %v191_v39  ;;  %v243_v44 = vld [vmem:[%s392_s1 + $0x4] sm:$0xf]  ;;  %v183_v45 = vld [vmem:[%s392_s1 + $0x8] sm:$0xf0]  ;;  %v182_v46 = vor.u32 %v244_v43, %v181_v42  ;;  %v25_v48 = vld [vmem:[%s393_s0] sm:$0xf] }
   0xc   :  { %124 = vmatpush.bf16.msra.mxu0 %v222_v16  ;;  %v186_v47 = vor.u32 %v243_v44, %v183_v45  ;;  %v157_v49 = vld [vmem:[%s394_s2] sm:$0x3] }
   0xd   :  { %137 = vmatpush.bf16.msra.mxu1 %v226_v17  ;;  %v165_v50 = vld [vmem:[%s395_s3] sm:$0x3]  ;;  %v159_v51 = vperm.slane %v157_v49, 0  ;;  %v160_v52 = vperm.slane %v157_v49, 1 }
   0xe   :  { %v167_v53 = vperm.slane %v165_v50, 0  ;;  %v168_v55 = vperm.slane %v165_v50, 1 }
  0x10   :  { %125 = vmatpush.bf16.msra.mxu0 %v214_v22 }
  0x11   :  { %138 = vmatpush.bf16.msra.mxu1 %v218_v23 }
  0x14   :  { %126 = vmatpush.bf16.msra.mxu0 %v206_v28 }
  0x15   :  { %139 = vmatpush.bf16.msra.mxu1 %v210_v29 }
  0x18   :  { %127 = vmatpush.bf16.msra.mxu0 %v198_v34 }
  0x19   :  { %140 = vmatpush.bf16.msra.mxu1 %v202_v35 }
  0x1c   :  { %128 = vmatpush.bf16.msra.mxu0 %v190_v40 }
  0x1d   :  { %141 = vmatpush.bf16.msra.mxu1 %v194_v41 }
  0x20   :  { %129 = vmatpush.bf16.msra.mxu0 %v182_v46 }
  0x21   :  { %142 = vmatpush.bf16.msra.mxu1 %v186_v47 }
  0x23   :  { %130 = vmatmul.bf16.vlgmr.msra.gmra.mxu0 %v25_v48 }
  0x24   :  { %143 = vmatmul.bf16.vlgmr.msra.gmra.mxu1 %v25_v48 }
  0xa0   :  { %v131_v54 = vpop.f32.mrf.mxu0 }
  0xa1   :  { %v163_v56 = vmul.f32 %v159_v51, %v131_v54  ;;  %v144_v57 = vpop.f32.mrf.mxu1 }
  0xa2   :  { %v164_v58 = vmul.f32 %v160_v52, %v144_v57 }
  0xa3   :  { %v171_v59 = vadd.f32 %v167_v53, %v163_v56 }
  0xa4   :  { %v172_v60 = vadd.f32 %v168_v55, %v164_v58 }
  0xa6   :  { %v173_v61 = vpack.c.bf16 %v172_v60, %v171_v59 }
  0xa8   :  { %174 = vst [vmem:[%s396_s4] sm:$0xff] %v173_v61  ;;  %v133_v62 = vpop.f32.mrf.mxu0 }
  0xa9   :  { %v146_v63 = vpop.f32.mrf.mxu1 }

// kernel: _lambda_.24
= control target key start
LH: loop header
LB: loop body
LE: loop exit
PB: predicated region body
PF: predicated region fallthrough
CT: control target
= control target key end

     0   :  { %s1090_s18 = smov 0   ;;  %s1092_s19 = smov 0   ;;  %s1210_s0 = inlined_call_operand.vmem [shape: bf16[8,2304], index: 0, kind: input, shape index: {}]   ;;  %s1211_s1 = inlined_call_operand.vmem [shape: bf16[2304,256], index: 1, kind: input, shape index: {}]   ;;  %s1212_s2 = inlined_call_operand.vmem [shape: f32[1,256], index: 2, kind: input, shape index: {}]   ;;  %s1213_s3 = inlined_call_operand.vmem [shape: f32[1,256], index: 3, kind: input, shape index: {}]   ;;  %s1214_s4 = inlined_call_operand.vmem [shape: bf16[8,256], index: 4, kind: input, shape index: {}]   ;;  %s1215_s5 = inlined_call_operand.vmem [shape: bf16[8,256], index: 5, kind: output, shape index: {}]  }
   0x1   :  { %s1094_s20 = smov 0  }
   0x2 LB: > { %s27_s21 = sadd.s32 1, %s1053_s19  ;;  %p837_p0 = scmp.ge.s32.totalorder %s1057_s20, 1  ;;  %s1057_s20 = sphi %s1094_s20, %s15_s20   ;;  %s1053_s19 = sphi %s1092_s19, %s1217_s19   ;;  %s1049_s18 = sphi %s1090_s18, %s1216_s18  }
   0x3   : > { %p28_p1 = scmp.ge.s32.totalorder %s27_s21, 9  ;;  %p271_p2 = scmp.lt.s32.totalorder %s1057_s20, 10 }
   0x5   : > { %s1219_s21 = smov (%p28_p1, %s27_s21), 0  ;;  %p272_p3 = pnand %p837_p0, %p271_p2 }
   0x6   : > { %s838_s22 = sshll.u32 (!%p272_p3), %s1049_s18, 1  ;;  %s840_s23 = sshll.u32 (!%p272_p3), %s1049_s18, 5 }
   0x7   : > { %275 = sbr.rel (%p272_p3) target bundleno = 214 (0xd6), region = 40  ;;  %p337_p4 = scmp.lt.s32.totalorder (!%p272_p3), %s838_s22, 17 }
   0x8   : > { %p346_p5 = scmp.lt.s32.totalorder (!%p272_p3), %s840_s23, 287  ;;  %p843_p6 = scmp.ne.s32.totalorder (!%p272_p3), %s1049_s18, 0 }
   0xc   : > { %s1221_s22 = smov (!%p337_p4, %s838_s22), 17  ;;  %s1223_s23 = smov (!%p346_p5, %s840_s23), 287 }
   0xd   : > { %s839_s24 = sshll.u32 %s1221_s22, 2  ;;  %s977_s28 = sshll.u32 %s1223_s23, 3 }
   0xe   : > { %s1115_s27 = scalar_lea.vmem %s1210_s0, %s839_s24  ;;  %s1120_s6 = scalar_lea.vmem %s1211_s1, %s977_s28 }
   0xf   : > { %389 = sbr.rel (%p843_p6) target bundleno = 23 (0x17), region = 44 }
  0x14   : > { %v1059_v0 = vmov 0.0  }
  0x15   : > { %390 = vst [vmem:[#allocation2] sm:$0xff] %v1059_v0 }
  0x16   : > { %391 = vst [vmem:[#allocation2 + $0x8] sm:$0xff] %v1059_v0 }
  0x17 PF: > { %v902_v1 = vld [vmem:[%s1120_s6 + $0x70] sm:$0xf]  ;;  %v993_v2 = vld [vmem:[%s1120_s6 + $0x74] sm:$0xf0]  ;;  %v992_v6 = vld [vmem:[%s1120_s6 + $0x74] sm:$0xf] }
  0x18   : > { %v966_v3 = vld [vmem:[%s1120_s6 + $0xf0] sm:$0xf]  ;;  %v903_v4 = vor.u32 %v993_v2, %v902_v1  ;;  %v1009_v5 = vld [vmem:[%s1120_s6 + $0xf4] sm:$0xf0]  ;;  %v904_v7 = vld [vmem:[%s1120_s6 + $0x78] sm:$0xf0] }
  0x19   : > { %v967_v8 = vor.u32 %v1009_v5, %v966_v3  ;;  %v907_v9 = vor.u32 %v992_v6, %v904_v7  ;;  %v1008_v10 = vld [vmem:[%s1120_s6 + $0xf4] sm:$0xf]  ;;  %v968_v11 = vld [vmem:[%s1120_s6 + $0xf8] sm:$0xf0]  ;;  %v894_v12 = vld [vmem:[%s1120_s6 + $0x60] sm:$0xf] }
  0x1a   : > { %594 = vmatpush.bf16.msra.mxu0 %v903_v4  ;;  %v971_v13 = vor.u32 %v1008_v10, %v968_v11  ;;  %v991_v14 = vld [vmem:[%s1120_s6 + $0x64] sm:$0xf0]  ;;  %v958_v15 = vld [vmem:[%s1120_s6 + $0xe0] sm:$0xf]  ;;  %v990_v19 = vld [vmem:[%s1120_s6 + $0x64] sm:$0xf] }
  0x1b   : > { %v1007_v16 = vld [vmem:[%s1120_s6 + $0xe4] sm:$0xf0]  ;;  %607 = vmatpush.bf16.msra.mxu1 %v967_v8  ;;  %620 = vmatpush.bf16.msra.mxu2 %v907_v9  ;;  %v895_v17 = vor.u32 %v991_v14, %v894_v12  ;;  %v896_v20 = vld [vmem:[%s1120_s6 + $0x68] sm:$0xf0]  ;;  %v1006_v21 = vld [vmem:[%s1120_s6 + $0xe4] sm:$0xf] }
  0x1c   : > { %v959_v18 = vor.u32 %v1007_v16, %v958_v15  ;;  %633 = vmatpush.bf16.msra.mxu3 %v971_v13  ;;  %v899_v22 = vor.u32 %v990_v19, %v896_v20  ;;  %v960_v23 = vld [vmem:[%s1120_s6 + $0xe8] sm:$0xf0]  ;;  %v886_v24 = vld [vmem:[%s1120_s6 + $0x50] sm:$0xf]  ;;  %v989_v25 = vld [vmem:[%s1120_s6 + $0x54] sm:$0xf0] }
  0x1d   : > { %v963_v26 = vor.u32 %v1006_v21, %v960_v23  ;;  %v950_v27 = vld [vmem:[%s1120_s6 + $0xd0] sm:$0xf]  ;;  %v1005_v28 = vld [vmem:[%s1120_s6 + $0xd4] sm:$0xf0]  ;;  %v988_v29 = vld [vmem:[%s1120_s6 + $0x54] sm:$0xf]  ;;  %v887_v30 = vor.u32 %v989_v25, %v886_v24 }
  0x1e   : > { %595 = vmatpush.bf16.msra.mxu0 %v895_v17  ;;  %v888_v31 = vld [vmem:[%s1120_s6 + $0x58] sm:$0xf0]  ;;  %v1004_v32 = vld [vmem:[%s1120_s6 + $0xd4] sm:$0xf]  ;;  %v951_v34 = vor.u32 %v1005_v28, %v950_v27  ;;  %v878_v36 = vld [vmem:[%s1120_s6 + $0x40] sm:$0xf] }
  0x1f   : > { %v952_v33 = vld [vmem:[%s1120_s6 + $0xd8] sm:$0xf0]  ;;  %608 = vmatpush.bf16.msra.mxu1 %v959_v18  ;;  %621 = vmatpush.bf16.msra.mxu2 %v899_v22  ;;  %v891_v35 = vor.u32 %v988_v29, %v888_v31  ;;  %v987_v37 = vld [vmem:[%s1120_s6 + $0x44] sm:$0xf0]  ;;  %v942_v38 = vld [vmem:[%s1120_s6 + $0xc0] sm:$0xf] }
  0x20   : > { %634 = vmatpush.bf16.msra.mxu3 %v963_v26  ;;  %v955_v39 = vor.u32 %v1004_v32, %v952_v33  ;;  %v1003_v40 = vld [vmem:[%s1120_s6 + $0xc4] sm:$0xf0]  ;;  %v986_v41 = vld [vmem:[%s1120_s6 + $0x44] sm:$0xf]  ;;  %v880_v42 = vld [vmem:[%s1120_s6 + $0x48] sm:$0xf0]  ;;  %v879_v45 = vor.u32 %v987_v37, %v878_v36 }
  0x21   : > { %v1002_v43 = vld [vmem:[%s1120_s6 + $0xc4] sm:$0xf]  ;;  %v944_v44 = vld [vmem:[%s1120_s6 + $0xc8] sm:$0xf0]  ;;  %v943_v46 = vor.u32 %v1003_v40, %v942_v38  ;;  %v883_v47 = vor.u32 %v986_v41, %v880_v42  ;;  %v870_v48 = vld [vmem:[%s1120_s6 + $0x30] sm:$0xf] }
  0x22   : > { %596 = vmatpush.bf16.msra.mxu0 %v887_v30  ;;  %v985_v49 = vld [vmem:[%s1120_s6 + $0x34] sm:$0xf0]  ;;  %v934_v50 = vld [vmem:[%s1120_s6 + $0xb0] sm:$0xf]  ;;  %v947_v51 = vor.u32 %v1002_v43, %v944_v44  ;;  %v984_v53 = vld [vmem:[%s1120_s6 + $0x34] sm:$0xf] }
  0x23   : > { %609 = vmatpush.bf16.msra.mxu1 %v951_v34  ;;  %622 = vmatpush.bf16.msra.mxu2 %v891_v35  ;;  %v1001_v52 = vld [vmem:[%s1120_s6 + $0xb4] sm:$0xf0]  ;;  %v872_v54 = vld [vmem:[%s1120_s6 + $0x38] sm:$0xf0]  ;;  %v1000_v55 = vld [vmem:[%s1120_s6 + $0xb4] sm:$0xf]  ;;  %v871_v57 = vor.u32 %v985_v49, %v870_v48 }
  0x24   : > { %635 = vmatpush.bf16.msra.mxu3 %v955_v39  ;;  %v936_v56 = vld [vmem:[%s1120_s6 + $0xb8] sm:$0xf0]  ;;  %v935_v58 = vor.u32 %v1001_v52, %v934_v50  ;;  %v875_v59 = vor.u32 %v984_v53, %v872_v54  ;;  %v862_v60 = vld [vmem:[%s1120_s6 + $0x20] sm:$0xf]  ;;  %v983_v61 = vld [vmem:[%s1120_s6 + $0x24] sm:$0xf0] }
  0x25   : > { %v926_v62 = vld [vmem:[%s1120_s6 + $0xa0] sm:$0xf]  ;;  %v939_v63 = vor.u32 %v1000_v55, %v936_v56  ;;  %v999_v0 = vld [vmem:[%s1120_s6 + $0xa4] sm:$0xf0]  ;;  %v982_v1 = vld [vmem:[%s1120_s6 + $0x24] sm:$0xf]  ;;  %v863_v5 = vor.u32 %v983_v61, %v862_v60 }
  0x26   : > { %597 = vmatpush.bf16.msra.mxu0 %v879_v45  ;;  %v864_v2 = vld [vmem:[%s1120_s6 + $0x28] sm:$0xf0]  ;;  %v998_v3 = vld [vmem:[%s1120_s6 + $0xa4] sm:$0xf]  ;;  %v927_v6 = vor.u32 %v999_v0, %v926_v62  ;;  %v854_v8 = vld [vmem:[%s1120_s6 + $0x10] sm:$0xf] }
  0x27   : > { %610 = vmatpush.bf16.msra.mxu1 %v943_v46  ;;  %623 = vmatpush.bf16.msra.mxu2 %v883_v47  ;;  %v928_v4 = vld [vmem:[%s1120_s6 + $0xa8] sm:$0xf0]  ;;  %v867_v7 = vor.u32 %v982_v1, %v864_v2  ;;  %v981_v9 = vld [vmem:[%s1120_s6 + $0x14] sm:$0xf0]  ;;  %v918_v10 = vld [vmem:[%s1120_s6 + $0x90] sm:$0xf] }
  0x28   : > { %636 = vmatpush.bf16.msra.mxu3 %v947_v51  ;;  %v931_v11 = vor.u32 %v998_v3, %v928_v4  ;;  %v997_v12 = vld [vmem:[%s1120_s6 + $0x94] sm:$0xf0]  ;;  %v980_v13 = vld [vmem:[%s1120_s6 + $0x14] sm:$0xf]  ;;  %v856_v14 = vld [vmem:[%s1120_s6 + $0x18] sm:$0xf0]  ;;  %v855_v17 = vor.u32 %v981_v9, %v854_v8 }
  0x29   : > { %v996_v15 = vld [vmem:[%s1120_s6 + $0x94] sm:$0xf]  ;;  %v920_v16 = vld [vmem:[%s1120_s6 + $0x98] sm:$0xf0]  ;;  %v394_v18 = vld [vmem:[%s1115_s27] sm:$0xff]  ;;  %v919_v19 = vor.u32 %v997_v12, %v918_v10  ;;  %v859_v20 = vor.u32 %v980_v13, %v856_v14  ;;  %p972_p7 = scmp.ne.s32.totalorder %s1049_s18, 8 }
  0x2a   : > { %598 = vmatpush.bf16.msra.mxu0 %v871_v57  ;;  %v846_v21 = vld [vmem:[%s1120_s6] sm:$0xf]  ;;  %v979_v22 = vld [vmem:[%s1120_s6 + $0x4] sm:$0xf0]  ;;  %v923_v24 = vor.u32 %v996_v15, %v920_v16  ;;  %v978_v26 = vld [vmem:[%s1120_s6 + $0x4] sm:$0xf]  ;;  %v428_v30 = vunpack.c.l.b16 %v394_v18  ;;  %v429_v32 = vunpack.c.h.b16 %v394_v18 }
  0x2b   : > { %611 = vmatpush.bf16.msra.mxu1 %v935_v58  ;;  %624 = vmatpush.bf16.msra.mxu2 %v875_v59  ;;  %v910_v23 = vld [vmem:[%s1120_s6 + $0x80] sm:$0xf]  ;;  %v995_v25 = vld [vmem:[%s1120_s6 + $0x84] sm:$0xf0]  ;;  %v848_v27 = vld [vmem:[%s1120_s6 + $0x8] sm:$0xf0]  ;;  %v847_v31 = vor.u32 %v979_v22, %v846_v21 }
  0x2c   : > { %637 = vmatpush.bf16.msra.mxu3 %v939_v63  ;;  %v994_v28 = vld [vmem:[%s1120_s6 + $0x84] sm:$0xf]  ;;  %v912_v29 = vld [vmem:[%s1120_s6 + $0x88] sm:$0xf0]  ;;  %v911_v33 = vor.u32 %v995_v25, %v910_v23  ;;  %v851_v34 = vor.u32 %v978_v26, %v848_v27  ;;  %v430_v36 = vpack.c.b16 %v428_v30, %v428_v30  ;;  %v431_v37 = vpack.c.b16 %v429_v32, %v429_v32 }
  0x2d   : > { %v915_v35 = vor.u32 %v994_v28, %v912_v29  ;;  %v392_v39 = vld [vmem:[#allocation2] sm:$0xff]  ;;  %v393_v44 = vld [vmem:[#allocation2 + $0x8] sm:$0xff] }
  0x2e   : > { %599 = vmatpush.bf16.msra.mxu0 %v863_v5 }
  0x2f   : > { %612 = vmatpush.bf16.msra.mxu1 %v927_v6  ;;  %625 = vmatpush.bf16.msra.mxu2 %v867_v7 }
  0x30   : > { %638 = vmatpush.bf16.msra.mxu3 %v931_v11 }
  0x32   : > { %600 = vmatpush.bf16.msra.mxu0 %v855_v17 }
  0x33   : > { %613 = vmatpush.bf16.msra.mxu1 %v919_v19  ;;  %626 = vmatpush.bf16.msra.mxu2 %v859_v20 }
  0x34   : > { %639 = vmatpush.bf16.msra.mxu3 %v923_v24 }
  0x36   : > { %601 = vmatpush.bf16.msra.mxu0 %v847_v31 }
  0x37   : > { %614 = vmatpush.bf16.msra.mxu1 %v911_v33  ;;  %627 = vmatpush.bf16.msra.mxu2 %v851_v34 }
  0x38   : > { %640 = vmatpush.bf16.msra.mxu3 %v915_v35 }
  0x39   : > { %602 = vmatmul.bf16.vlgmr.msra.gmra.mxu0 %v430_v36 }
  0x3a   : > { %615 = vmatmul.bf16.vlgmr.msra.gmra.mxu1 %v431_v37  ;;  %628 = vmatmul.bf16.vlgmr.msra.gmra.mxu2 %v430_v36 }
  0x3b   : > { %641 = vmatmul.bf16.vlgmr.msra.gmra.mxu3 %v431_v37 }
  0xb6   : > { %v603_v38 = vpop.f32.mrf.mxu0 }
  0xb7   : > { %v616_v40 = vpop.f32.mrf.mxu1 }
  0xb8   : > { %v617_v41 = vadd.f32 %v616_v40, %v603_v38 }
  0xba   : > { %v646_v42 = vadd.f32 %v617_v41, %v392_v39 }
  0xbc   : > { %648 = vst [vmem:[#allocation2] sm:$0xff] %v646_v42 }
  0xbd   : > { %v629_v43 = vpop.f32.mrf.mxu2 }
  0xbe   : > { %v642_v45 = vpop.f32.mrf.mxu3  ;;  %v605_v46 = vpop.f32.mrf.mxu0 }
  0xbf   : > { %v643_v47 = vadd.f32 %v642_v45, %v629_v43  ;;  %v618_v48 = vpop.f32.mrf.mxu1 }
  0xc1   : > { %v647_v49 = vadd.f32 %v643_v47, %v393_v44 }
  0xc2   : > { %653 = sbr.rel (%p972_p7) target bundleno = 214 (0xd6), region = 48 }
  0xc3   : > { %649 = vst [vmem:[#allocation2 + $0x8] sm:$0xff] %v647_v49 }
  0xc5   : > { %v631_v50 = vpop.f32.mrf.mxu2 }
  0xc6   : > { %v644_v51 = vpop.f32.mrf.mxu3 }
  0xc7   : > { %v654_v52 = vld [vmem:[#allocation2] sm:$0xff] }
  0xc8   : > { %v656_v54 = vld [vmem:[%s1212_s2] sm:$0x3] }
  0xc9   : > { %v658_v55 = vperm.slane %v656_v54, 0  ;;  %v659_v56 = vperm.slane %v656_v54, 1  ;;  %v664_v57 = vld [vmem:[%s1213_s3] sm:$0x3] }
  0xca   : > { %v655_v53 = vld [vmem:[#allocation2 + $0x8] sm:$0xff]  ;;  %v672_v58 = vld [vmem:[%s1214_s4] sm:$0xff]  ;;  %v666_v59 = vperm.slane %v664_v57, 0  ;;  %v667_v60 = vperm.slane %v664_v57, 1 }
  0xcb   : > { %v662_v61 = vmul.f32 %v658_v55, %v654_v52  ;;  %v663_v62 = vmul.f32 %v659_v56, %v655_v53  ;;  %v673_v63 = vunpack.c.l.bf16 %v672_v58  ;;  %v674_v0 = vunpack.c.h.bf16 %v672_v58 }
  0xcd   : > { %v670_v1 = vadd.f32 %v666_v59, %v662_v61  ;;  %v671_v2 = vadd.f32 %v667_v60, %v663_v62 }
  0xcf   : > { %v675_v3 = vadd.f32 %v673_v63, %v670_v1  ;;  %v676_v4 = vadd.f32 %v674_v0, %v671_v2 }
  0xd1   : > { %v677_v5 = vmax.f32 %v675_v3, 0.0  ;;  %v678_v6 = vmax.f32 %v676_v4, 0.0 }
  0xd3   : > { %v679_v7 = vpack.c.bf16 %v678_v6, %v677_v5 }
  0xd5   : > { %680 = vst [vmem:[%s1215_s5] sm:$0xff] %v679_v7 }
  0xd6 PF: > { %s15_s20 = sadd.s32 1, %s1057_s20   ;;  %s1216_s18 = smov %s1053_s19 }
  0xd7   : > { %p12_p8 = scmp.ge.s32.totalorder %s15_s20, 11   ;;  %s1217_s19 = smov %s1219_s21 }
  0xd9   :  { %14 = sbr.rel (!%p12_p8) target bundleno = 2 (0x2), region = 90 }

// kernel: _lambda_.25
= control target key start
LH: loop header
LB: loop body
LE: loop exit
PB: predicated region body
PF: predicated region fallthrough
CT: control target
= control target key end

     0   :  { %s1212_s15 = smov 0   ;;  %s1214_s16 = smov 0   ;;  %s1467_s0 = inlined_call_operand.vmem [shape: bf16[8,2304], index: 0, kind: input, shape index: {}]   ;;  %s1468_s1 = inlined_call_operand.vmem [shape: bf16[2304,512], index: 1, kind: input, shape index: {}]   ;;  %s1469_s2 = inlined_call_operand.vmem [shape: f32[1,512], index: 2, kind: input, shape index: {}]   ;;  %s1470_s3 = inlined_call_operand.vmem [shape: f32[1,512], index: 3, kind: input, shape index: {}]   ;;  %s1471_s4 = inlined_call_operand.vmem [shape: bf16[8,512], index: 4, kind: output, shape index: {}]  }
   0x1   :  { %s1216_s17 = smov 0   ;;  %s1218_s18 = smov 0  }
   0x2   :  { %s1220_s19 = smov 0   ;;  %s1222_s20 = smov 0  }
   0x3   :  { %s1224_s21 = smov 0  }
   0x4 LB: > { %s26_s22 = sadd.s32 1, %s1176_s19  ;;  %s29_s23 = sadd.s32 1, %s1180_s20  ;;  %s1184_s21 = sphi %s1224_s21, %s14_s21   ;;  %s1180_s20 = sphi %s1222_s20, %s1477_s20   ;;  %s1176_s19 = sphi %s1220_s19, %s1476_s19   ;;  %s1172_s18 = sphi %s1218_s18, %s1475_s18   ;;  %s1168_s17 = sphi %s1216_s17, %s1474_s17   ;;  %s1164_s16 = sphi %s1214_s16, %s1473_s16   ;;  %s1160_s15 = sphi %s1212_s15, %s1472_s15  }
   0x5   : > { %p27_p0 = scmp.ge.s32.totalorder %s26_s22, 9  ;;  %p77_p1 = scmp.ne.s32.totalorder %s1164_s16, %s1160_s15 }
   0x6   : > { %p78_p2 = scmp.eq.s32.totalorder %s1184_s21, 0  ;;  %s70_s27 = sadd.s32 1, %s1164_s16 }
   0x7   : > { %s1479_s22 = smov (%p27_p0, %s26_s22), 0  ;;  %s1481_s23 = smov (!%p27_p0, %s29_s23), %s1180_s20 }
   0x8   : > { %p79_p3 = por %p78_p2, %p77_p1  ;;  %p31_p4 = scmp.ge.s32.totalorder %s1481_s23, 2 }
   0x9   : > { %s65_s24 = ssub.s32 %s1176_s19, %s1479_s22  ;;  %p894_p6 = scmp.ge.s32.totalorder %s1184_s21, 18 }
   0xa   : > { %s1483_s23 = smov (%p31_p4, %s1481_s23), 0 }
   0xb   : > { %s66_s25 = ssub.s32 %s1180_s20, %s1483_s23  ;;  %183 = sbr.rel (%p894_p6) target bundleno = 55 (0x37), region = 16 }
   0xc   : > { %s67_s26 = sor.u32 %s66_s25, %s65_s24 }
   0xd   : > { %p68_p5 = scmp.eq.s32.totalorder %s67_s26, 0 }
   0xf   : > { %s1263_s28 = scalar_select %p68_p5, %s1164_s16, %s70_s27  }
  0x10   : > { %199 = sbr.rel (!%p79_p3) target bundleno = 55 (0x37), region = 24  ;;  %s201_s29 = sand.u32 (%p79_p3), 1, %s1164_s16  }
  0x11   : > { %s897_s30 = sshll.u32 (%p79_p3), %s1180_s20, 1  ;;  %s895_s5 = sshll.u32 (%p79_p3), %s201_s29, 8 }
  0x12   : > { %s1040_s6 = sshll.u32 (%p79_p3), %s1176_s19, 7  ;;  %s1277_s12 = scalar_lea.vmem (%p79_p3), [#allocation3], %s895_s5 }
  0x13   : > { %s207_s7 = sadd.s32 (%p79_p3), %s1040_s6, %s897_s30 }
  0x14   : > { %s899_s8 = sshll.u32 (%p79_p3), %s207_s7, 2 }
  0x15   : > { %s1272_s11 = scalar_lea.vmem %s1468_s1, %s899_s8 }
  0x16   : > { %v300_v0 = vld [vmem:[%s1272_s11] sm:$0xff]  ;;  %v302_v1 = vld [vmem:[%s1272_s11 + $0x10] sm:$0xff] }
  0x17   : > { %v304_v2 = vld [vmem:[%s1272_s11 + $0x20] sm:$0xff]  ;;  %301 = vst [vmem:[%s1277_s12] sm:$0xff] %v300_v0  ;;  %v306_v3 = vld [vmem:[%s1272_s11 + $0x30] sm:$0xff] }
  0x18   : > { %303 = vst [vmem:[%s1277_s12 + $0x8] sm:$0xff] %v302_v1  ;;  %v308_v4 = vld [vmem:[%s1272_s11 + $0x40] sm:$0xff]  ;;  %v310_v5 = vld [vmem:[%s1272_s11 + $0x50] sm:$0xff] }
  0x19   : > { %305 = vst [vmem:[%s1277_s12 + $0x10] sm:$0xff] %v304_v2  ;;  %v312_v6 = vld [vmem:[%s1272_s11 + $0x60] sm:$0xff]  ;;  %v314_v7 = vld [vmem:[%s1272_s11 + $0x70] sm:$0xff] }
  0x1a   : > { %307 = vst [vmem:[%s1277_s12 + $0x18] sm:$0xff] %v306_v3  ;;  %v316_v8 = vld [vmem:[%s1272_s11 + $0x80] sm:$0xff]  ;;  %v318_v9 = vld [vmem:[%s1272_s11 + $0x90] sm:$0xff] }
  0x1b   : > { %309 = vst [vmem:[%s1277_s12 + $0x20] sm:$0xff] %v308_v4  ;;  %v320_v10 = vld [vmem:[%s1272_s11 + $0xa0] sm:$0xff]  ;;  %v322_v11 = vld [vmem:[%s1272_s11 + $0xb0] sm:$0xff] }
  0x1c   : > { %311 = vst [vmem:[%s1277_s12 + $0x28] sm:$0xff] %v310_v5  ;;  %v324_v12 = vld [vmem:[%s1272_s11 + $0xc0] sm:$0xff]  ;;  %v326_v13 = vld [vmem:[%s1272_s11 + $0xd0] sm:$0xff] }
  0x1d   : > { %313 = vst [vmem:[%s1277_s12 + $0x30] sm:$0xff] %v312_v6  ;;  %v328_v14 = vld [vmem:[%s1272_s11 + $0xe0] sm:$0xff]  ;;  %v330_v15 = vld [vmem:[%s1272_s11 + $0xf0] sm:$0xff] }
  0x1e   : > { %315 = vst [vmem:[%s1277_s12 + $0x38] sm:$0xff] %v314_v7  ;;  %v332_v16 = vld [vmem:[%s1272_s11 + $0x100] sm:$0xff]  ;;  %v334_v17 = vld [vmem:[%s1272_s11 + $0x110] sm:$0xff] }
  0x1f   : > { %317 = vst [vmem:[%s1277_s12 + $0x40] sm:$0xff] %v316_v8  ;;  %v336_v18 = vld [vmem:[%s1272_s11 + $0x120] sm:$0xff]  ;;  %v338_v19 = vld [vmem:[%s1272_s11 + $0x130] sm:$0xff] }
  0x20   : > { %319 = vst [vmem:[%s1277_s12 + $0x48] sm:$0xff] %v318_v9  ;;  %v340_v20 = vld [vmem:[%s1272_s11 + $0x140] sm:$0xff]  ;;  %v342_v21 = vld [vmem:[%s1272_s11 + $0x150] sm:$0xff] }
  0x21   : > { %321 = vst [vmem:[%s1277_s12 + $0x50] sm:$0xff] %v320_v10  ;;  %v344_v22 = vld [vmem:[%s1272_s11 + $0x160] sm:$0xff]  ;;  %v346_v23 = vld [vmem:[%s1272_s11 + $0x170] sm:$0xff] }
  0x22   : > { %323 = vst [vmem:[%s1277_s12 + $0x58] sm:$0xff] %v322_v11  ;;  %v348_v24 = vld [vmem:[%s1272_s11 + $0x180] sm:$0xff]  ;;  %v350_v25 = vld [vmem:[%s1272_s11 + $0x190] sm:$0xff] }
  0x23   : > { %325 = vst [vmem:[%s1277_s12 + $0x60] sm:$0xff] %v324_v12  ;;  %v352_v26 = vld [vmem:[%s1272_s11 + $0x1a0] sm:$0xff]  ;;  %v354_v27 = vld [vmem:[%s1272_s11 + $0x1b0] sm:$0xff] }
  0x24   : > { %327 = vst [vmem:[%s1277_s12 + $0x68] sm:$0xff] %v326_v13  ;;  %v356_v28 = vld [vmem:[%s1272_s11 + $0x1c0] sm:$0xff]  ;;  %v358_v29 = vld [vmem:[%s1272_s11 + $0x1d0] sm:$0xff] }
  0x25   : > { %329 = vst [vmem:[%s1277_s12 + $0x70] sm:$0xff] %v328_v14  ;;  %v360_v30 = vld [vmem:[%s1272_s11 + $0x1e0] sm:$0xff]  ;;  %v362_v31 = vld [vmem:[%s1272_s11 + $0x1f0] sm:$0xff] }
  0x26   : > { %331 = vst [vmem:[%s1277_s12 + $0x78] sm:$0xff] %v330_v15 }
  0x27   : > { %333 = vst [vmem:[%s1277_s12 + $0x80] sm:$0xff] %v332_v16 }
  0x28   : > { %335 = vst [vmem:[%s1277_s12 + $0x88] sm:$0xff] %v334_v17 }
  0x29   : > { %337 = vst [vmem:[%s1277_s12 + $0x90] sm:$0xff] %v336_v18 }
  0x2a   : > { %339 = vst [vmem:[%s1277_s12 + $0x98] sm:$0xff] %v338_v19 }
  0x2b   : > { %341 = vst [vmem:[%s1277_s12 + $0xa0] sm:$0xff] %v340_v20 }
  0x2c   : > { %343 = vst [vmem:[%s1277_s12 + $0xa8] sm:$0xff] %v342_v21 }
  0x2d   : > { %345 = vst [vmem:[%s1277_s12 + $0xb0] sm:$0xff] %v344_v22 }
  0x2e   : > { %347 = vst [vmem:[%s1277_s12 + $0xb8] sm:$0xff] %v346_v23 }
  0x2f   : > { %349 = vst [vmem:[%s1277_s12 + $0xc0] sm:$0xff] %v348_v24 }
  0x30   : > { %351 = vst [vmem:[%s1277_s12 + $0xc8] sm:$0xff] %v350_v25 }
  0x31   : > { %353 = vst [vmem:[%s1277_s12 + $0xd0] sm:$0xff] %v352_v26 }
  0x32   : > { %355 = vst [vmem:[%s1277_s12 + $0xd8] sm:$0xff] %v354_v27 }
  0x33   : > { %357 = vst [vmem:[%s1277_s12 + $0xe0] sm:$0xff] %v356_v28 }
  0x34   : > { %359 = vst [vmem:[%s1277_s12 + $0xe8] sm:$0xff] %v358_v29 }
  0x35   : > { %361 = vst [vmem:[%s1277_s12 + $0xf0] sm:$0xff] %v360_v30 }
  0x36   : > { %363 = vst [vmem:[%s1277_s12 + $0xf8] sm:$0xff] %v362_v31 }
  0x37 PF: > { %p900_p7 = scmp.ge.s32.totalorder %s1184_s21, 1  ;;  %p384_p8 = scmp.lt.s32.totalorder %s1184_s21, 19 }
  0x39   : > { %p385_p9 = pnand %p900_p7, %p384_p8 }
  0x3a   : > { %s391_s13 = sand.u32 (!%p385_p9), 1, %s1160_s15   ;;  %s902_s14 = sshll.u32 (!%p385_p9), %s1168_s17, 1 }
  0x3b   : > { %388 = sbr.rel (%p385_p9) target bundleno = 264 (0x108), region = 70  ;;  %s901_s24 = sshll.u32 (!%p385_p9), %s391_s13, 8 }
  0x3c   : > { %p440_p10 = scmp.lt.s32.totalorder (!%p385_p9), %s902_s14, 17  ;;  %s904_s25 = sshll.u32 (!%p385_p9), %s1172_s18, 1 }
  0x3d   : > { %p450_p11 = scmp.lt.s32.totalorder (!%p385_p9), %s904_s25, 3  ;;  %s1366_s13 = scalar_lea.vmem (!%p385_p9), [#allocation3], %s901_s24 }
  0x3e   : > { %p908_p12 = scmp.ne.s32.totalorder (!%p385_p9), %s1168_s17, 0 }
  0x40   : > { %s1485_s14 = smov (!%p440_p10, %s902_s14), 17  ;;  %s1487_s25 = smov (!%p450_p11, %s904_s25), 3 }
  0x41   : > { %s903_s26 = sshll.u32 %s1485_s14, 2  ;;  %s452_s15 = scalar_lea.vmem %s1469_s2, %s1487_s25 }
  0x42   : > { %s1348_s30 = scalar_lea.vmem %s1467_s0, %s903_s26  ;;  %s457_s18 = scalar_lea.vmem %s1470_s3, %s1487_s25 }
  0x43   : > { %s907_s9 = sshll.u32 %s1487_s25, 2  ;;  %472 = sbr.rel (%p908_p12) target bundleno = 75 (0x4b), region = 78 }
  0x44   : > { %s1364_s12 = scalar_lea.vmem %s1471_s4, %s907_s9 }
  0x48   : > { %v1186_v32 = vmov 0.0  }
  0x49   : > { %473 = vst [vmem:[#allocation2] sm:$0xff] %v1186_v32 }
  0x4a   : > { %474 = vst [vmem:[#allocation2 + $0x8] sm:$0xff] %v1186_v32 }
  0x4b PF: > { %v967_v33 = vld [vmem:[%s1366_s13 + $0x70] sm:$0xf]  ;;  %v1056_v34 = vld [vmem:[%s1366_s13 + $0x74] sm:$0xf0]  ;;  %v1055_v38 = vld [vmem:[%s1366_s13 + $0x74] sm:$0xf] }
  0x4c   : > { %v1031_v35 = vld [vmem:[%s1366_s13 + $0xf0] sm:$0xf]  ;;  %v968_v36 = vor.u32 %v1056_v34, %v967_v33  ;;  %v1072_v37 = vld [vmem:[%s1366_s13 + $0xf4] sm:$0xf0]  ;;  %v969_v39 = vld [vmem:[%s1366_s13 + $0x78] sm:$0xf0] }
  0x4d   : > { %v1032_v40 = vor.u32 %v1072_v37, %v1031_v35  ;;  %v972_v41 = vor.u32 %v1055_v38, %v969_v39  ;;  %v1071_v42 = vld [vmem:[%s1366_s13 + $0xf4] sm:$0xf]  ;;  %v1033_v43 = vld [vmem:[%s1366_s13 + $0xf8] sm:$0xf0]  ;;  %v959_v44 = vld [vmem:[%s1366_s13 + $0x60] sm:$0xf] }
  0x4e   : > { %677 = vmatpush.bf16.msra.mxu0 %v968_v36  ;;  %v1036_v45 = vor.u32 %v1071_v42, %v1033_v43  ;;  %v1054_v46 = vld [vmem:[%s1366_s13 + $0x64] sm:$0xf0]  ;;  %v1023_v47 = vld [vmem:[%s1366_s13 + $0xe0] sm:$0xf]  ;;  %v1053_v51 = vld [vmem:[%s1366_s13 + $0x64] sm:$0xf] }
  0x4f   : > { %v1070_v48 = vld [vmem:[%s1366_s13 + $0xe4] sm:$0xf0]  ;;  %690 = vmatpush.bf16.msra.mxu1 %v1032_v40  ;;  %703 = vmatpush.bf16.msra.mxu2 %v972_v41  ;;  %v960_v49 = vor.u32 %v1054_v46, %v959_v44  ;;  %v961_v52 = vld [vmem:[%s1366_s13 + $0x68] sm:$0xf0]  ;;  %v1069_v53 = vld [vmem:[%s1366_s13 + $0xe4] sm:$0xf] }
  0x50   : > { %v1024_v50 = vor.u32 %v1070_v48, %v1023_v47  ;;  %716 = vmatpush.bf16.msra.mxu3 %v1036_v45  ;;  %v964_v54 = vor.u32 %v1053_v51, %v961_v52  ;;  %v1025_v55 = vld [vmem:[%s1366_s13 + $0xe8] sm:$0xf0]  ;;  %v951_v56 = vld [vmem:[%s1366_s13 + $0x50] sm:$0xf]  ;;  %v1052_v57 = vld [vmem:[%s1366_s13 + $0x54] sm:$0xf0] }
  0x51   : > { %v1028_v58 = vor.u32 %v1069_v53, %v1025_v55  ;;  %v1015_v59 = vld [vmem:[%s1366_s13 + $0xd0] sm:$0xf]  ;;  %v1068_v60 = vld [vmem:[%s1366_s13 + $0xd4] sm:$0xf0]  ;;  %v1051_v61 = vld [vmem:[%s1366_s13 + $0x54] sm:$0xf]  ;;  %v952_v62 = vor.u32 %v1052_v57, %v951_v56 }
  0x52   : > { %678 = vmatpush.bf16.msra.mxu0 %v960_v49  ;;  %v953_v63 = vld [vmem:[%s1366_s13 + $0x58] sm:$0xf0]  ;;  %v1067_v0 = vld [vmem:[%s1366_s13 + $0xd4] sm:$0xf]  ;;  %v1016_v2 = vor.u32 %v1068_v60, %v1015_v59  ;;  %v943_v4 = vld [vmem:[%s1366_s13 + $0x40] sm:$0xf] }
  0x53   : > { %v1017_v1 = vld [vmem:[%s1366_s13 + $0xd8] sm:$0xf0]  ;;  %691 = vmatpush.bf16.msra.mxu1 %v1024_v50  ;;  %704 = vmatpush.bf16.msra.mxu2 %v964_v54  ;;  %v956_v3 = vor.u32 %v1051_v61, %v953_v63  ;;  %v1050_v5 = vld [vmem:[%s1366_s13 + $0x44] sm:$0xf0]  ;;  %v1007_v6 = vld [vmem:[%s1366_s13 + $0xc0] sm:$0xf] }
  0x54   : > { %717 = vmatpush.bf16.msra.mxu3 %v1028_v58  ;;  %v1020_v7 = vor.u32 %v1067_v0, %v1017_v1  ;;  %v1066_v8 = vld [vmem:[%s1366_s13 + $0xc4] sm:$0xf0]  ;;  %v1049_v9 = vld [vmem:[%s1366_s13 + $0x44] sm:$0xf]  ;;  %v945_v10 = vld [vmem:[%s1366_s13 + $0x48] sm:$0xf0]  ;;  %v944_v13 = vor.u32 %v1050_v5, %v943_v4 }
  0x55   : > { %v1065_v11 = vld [vmem:[%s1366_s13 + $0xc4] sm:$0xf]  ;;  %v1009_v12 = vld [vmem:[%s1366_s13 + $0xc8] sm:$0xf0]  ;;  %v1008_v14 = vor.u32 %v1066_v8, %v1007_v6  ;;  %v948_v15 = vor.u32 %v1049_v9, %v945_v10  ;;  %v935_v16 = vld [vmem:[%s1366_s13 + $0x30] sm:$0xf] }
  0x56   : > { %679 = vmatpush.bf16.msra.mxu0 %v952_v62  ;;  %v1048_v17 = vld [vmem:[%s1366_s13 + $0x34] sm:$0xf0]  ;;  %v999_v18 = vld [vmem:[%s1366_s13 + $0xb0] sm:$0xf]  ;;  %v1012_v19 = vor.u32 %v1065_v11, %v1009_v12  ;;  %v1047_v21 = vld [vmem:[%s1366_s13 + $0x34] sm:$0xf] }
  0x57   : > { %692 = vmatpush.bf16.msra.mxu1 %v1016_v2  ;;  %705 = vmatpush.bf16.msra.mxu2 %v956_v3  ;;  %v1064_v20 = vld [vmem:[%s1366_s13 + $0xb4] sm:$0xf0]  ;;  %v937_v22 = vld [vmem:[%s1366_s13 + $0x38] sm:$0xf0]  ;;  %v1063_v23 = vld [vmem:[%s1366_s13 + $0xb4] sm:$0xf]  ;;  %v936_v25 = vor.u32 %v1048_v17, %v935_v16 }
  0x58   : > { %718 = vmatpush.bf16.msra.mxu3 %v1020_v7  ;;  %v1001_v24 = vld [vmem:[%s1366_s13 + $0xb8] sm:$0xf0]  ;;  %v1000_v26 = vor.u32 %v1064_v20, %v999_v18  ;;  %v940_v27 = vor.u32 %v1047_v21, %v937_v22  ;;  %v927_v28 = vld [vmem:[%s1366_s13 + $0x20] sm:$0xf]  ;;  %v1046_v29 = vld [vmem:[%s1366_s13 + $0x24] sm:$0xf0] }
  0x59   : > { %v991_v30 = vld [vmem:[%s1366_s13 + $0xa0] sm:$0xf]  ;;  %v1004_v31 = vor.u32 %v1063_v23, %v1001_v24  ;;  %v1062_v32 = vld [vmem:[%s1366_s13 + $0xa4] sm:$0xf0]  ;;  %v1045_v33 = vld [vmem:[%s1366_s13 + $0x24] sm:$0xf]  ;;  %v928_v37 = vor.u32 %v1046_v29, %v927_v28 }
  0x5a   : > { %680 = vmatpush.bf16.msra.mxu0 %v944_v13  ;;  %v929_v34 = vld [vmem:[%s1366_s13 + $0x28] sm:$0xf0]  ;;  %v1061_v35 = vld [vmem:[%s1366_s13 + $0xa4] sm:$0xf]  ;;  %v992_v38 = vor.u32 %v1062_v32, %v991_v30  ;;  %v919_v40 = vld [vmem:[%s1366_s13 + $0x10] sm:$0xf] }
  0x5b   : > { %693 = vmatpush.bf16.msra.mxu1 %v1008_v14  ;;  %706 = vmatpush.bf16.msra.mxu2 %v948_v15  ;;  %v993_v36 = vld [vmem:[%s1366_s13 + $0xa8] sm:$0xf0]  ;;  %v932_v39 = vor.u32 %v1045_v33, %v929_v34  ;;  %v1044_v41 = vld [vmem:[%s1366_s13 + $0x14] sm:$0xf0]  ;;  %v983_v42 = vld [vmem:[%s1366_s13 + $0x90] sm:$0xf] }
  0x5c   : > { %719 = vmatpush.bf16.msra.mxu3 %v1012_v19  ;;  %v996_v43 = vor.u32 %v1061_v35, %v993_v36  ;;  %v1060_v44 = vld [vmem:[%s1366_s13 + $0x94] sm:$0xf0]  ;;  %v1043_v45 = vld [vmem:[%s1366_s13 + $0x14] sm:$0xf]  ;;  %v921_v46 = vld [vmem:[%s1366_s13 + $0x18] sm:$0xf0]  ;;  %v920_v49 = vor.u32 %v1044_v41, %v919_v40 }
  0x5d   : > { %v1059_v47 = vld [vmem:[%s1366_s13 + $0x94] sm:$0xf]  ;;  %v985_v48 = vld [vmem:[%s1366_s13 + $0x98] sm:$0xf0]  ;;  %v984_v51 = vor.u32 %v1060_v44, %v983_v42  ;;  %v924_v52 = vor.u32 %v1043_v45, %v921_v46  ;;  %v911_v53 = vld [vmem:[%s1366_s13] sm:$0xf] }
  0x5e   : > { %681 = vmatpush.bf16.msra.mxu0 %v936_v25  ;;  %v477_v50 = vld [vmem:[%s1348_s30] sm:$0xff]  ;;  %v1042_v54 = vld [vmem:[%s1366_s13 + $0x4] sm:$0xf0]  ;;  %v975_v55 = vld [vmem:[%s1366_s13 + $0x80] sm:$0xf]  ;;  %v988_v56 = vor.u32 %v1059_v47, %v985_v48  ;;  %p1037_p13 = scmp.ne.s32.totalorder %s1168_s17, 8 }
  0x5f   : > { %694 = vmatpush.bf16.msra.mxu1 %v1000_v26  ;;  %707 = vmatpush.bf16.msra.mxu2 %v940_v27  ;;  %v1058_v57 = vld [vmem:[%s1366_s13 + $0x84] sm:$0xf0]  ;;  %v1041_v58 = vld [vmem:[%s1366_s13 + $0x4] sm:$0xf]  ;;  %v913_v59 = vld [vmem:[%s1366_s13 + $0x8] sm:$0xf0]  ;;  %v511_v62 = vunpack.c.l.b16 %v477_v50  ;;  %v912_v63 = vor.u32 %v1042_v54, %v911_v53  ;;  %v512_v0 = vunpack.c.h.b16 %v477_v50 }
  0x60   : > { %720 = vmatpush.bf16.msra.mxu3 %v1004_v31  ;;  %v1057_v60 = vld [vmem:[%s1366_s13 + $0x84] sm:$0xf]  ;;  %v977_v61 = vld [vmem:[%s1366_s13 + $0x88] sm:$0xf0]  ;;  %v976_v1 = vor.u32 %v1058_v57, %v975_v55  ;;  %v916_v2 = vor.u32 %v1041_v58, %v913_v59  ;;  %v475_v7 = vld [vmem:[#allocation2] sm:$0xff] }
  0x61   : > { %v980_v3 = vor.u32 %v1057_v60, %v977_v61  ;;  %v513_v4 = vpack.c.b16 %v511_v62, %v511_v62  ;;  %v514_v5 = vpack.c.b16 %v512_v0, %v512_v0  ;;  %v476_v12 = vld [vmem:[#allocation2 + $0x8] sm:$0xff] }
  0x62   : > { %682 = vmatpush.bf16.msra.mxu0 %v928_v37 }
  0x63   : > { %695 = vmatpush.bf16.msra.mxu1 %v992_v38  ;;  %708 = vmatpush.bf16.msra.mxu2 %v932_v39 }
  0x64   : > { %721 = vmatpush.bf16.msra.mxu3 %v996_v43 }
  0x66   : > { %683 = vmatpush.bf16.msra.mxu0 %v920_v49 }
  0x67   : > { %696 = vmatpush.bf16.msra.mxu1 %v984_v51  ;;  %709 = vmatpush.bf16.msra.mxu2 %v924_v52 }
  0x68   : > { %722 = vmatpush.bf16.msra.mxu3 %v988_v56 }
  0x6a   : > { %684 = vmatpush.bf16.msra.mxu0 %v912_v63 }
  0x6b   : > { %697 = vmatpush.bf16.msra.mxu1 %v976_v1  ;;  %710 = vmatpush.bf16.msra.mxu2 %v916_v2 }
  0x6c   : > { %723 = vmatpush.bf16.msra.mxu3 %v980_v3 }
  0x6d   : > { %685 = vmatmul.bf16.vlgmr.msra.gmra.mxu0 %v513_v4 }
  0x6e   : > { %698 = vmatmul.bf16.vlgmr.msra.gmra.mxu1 %v514_v5  ;;  %711 = vmatmul.bf16.vlgmr.msra.gmra.mxu2 %v513_v4 }
  0x6f   : > { %724 = vmatmul.bf16.vlgmr.msra.gmra.mxu3 %v514_v5 }
  0xea   : > { %v686_v6 = vpop.f32.mrf.mxu0 }
  0xeb   : > { %v699_v8 = vpop.f32.mrf.mxu1 }
  0xec   : > { %v700_v9 = vadd.f32 %v699_v8, %v686_v6 }
  0xee   : > { %v729_v10 = vadd.f32 %v700_v9, %v475_v7 }
  0xf0   : > { %731 = vst [vmem:[#allocation2] sm:$0xff] %v729_v10 }
  0xf1   : > { %v712_v11 = vpop.f32.mrf.mxu2 }
  0xf2   : > { %v725_v13 = vpop.f32.mrf.mxu3  ;;  %v688_v14 = vpop.f32.mrf.mxu0 }
  0xf3   : > { %v726_v15 = vadd.f32 %v725_v13, %v712_v11  ;;  %v701_v16 = vpop.f32.mrf.mxu1 }
  0xf5   : > { %v730_v17 = vadd.f32 %v726_v15, %v476_v12 }
  0xf6   : > { %736 = sbr.rel (%p1037_p13) target bundleno = 264 (0x108), region = 82 }
  0xf7   : > { %732 = vst [vmem:[#allocation2 + $0x8] sm:$0xff] %v730_v17 }
  0xf9   : > { %v714_v18 = vpop.f32.mrf.mxu2 }
  0xfa   : > { %v727_v19 = vpop.f32.mrf.mxu3 }
  0xfb   : > { %v737_v20 = vld [vmem:[#allocation2] sm:$0xff] }
  0xfc   : > { %v739_v22 = vld [vmem:[%s452_s15] sm:$0x3] }
  0xfd   : > { %v741_v23 = vperm.slane %v739_v22, 0  ;;  %v742_v24 = vperm.slane %v739_v22, 1  ;;  %v747_v25 = vld [vmem:[%s457_s18] sm:$0x3] }
  0xfe   : > { %v738_v21 = vld [vmem:[#allocation2 + $0x8] sm:$0xff]  ;;  %v749_v26 = vperm.slane %v747_v25, 0  ;;  %v750_v27 = vperm.slane %v747_v25, 1 }
  0xff   : > { %v745_v28 = vmul.f32 %v741_v23, %v737_v20  ;;  %v746_v29 = vmul.f32 %v742_v24, %v738_v21 }
 0x101   : > { %v753_v30 = vadd.f32 %v749_v26, %v745_v28  ;;  %v754_v31 = vadd.f32 %v750_v27, %v746_v29 }
 0x103   : > { %v755_v32 = vmax.f32 %v753_v30, 0.0  ;;  %v756_v33 = vmax.f32 %v754_v31, 0.0 }
 0x105   : > { %v757_v34 = vpack.c.bf16 %v756_v33, %v755_v32 }
 0x107   : > { %758 = vst [vmem:[%s1364_s12] sm:$0xff] %v757_v34 }
 0x108 PF: > { %s14_s21 = sadd.s32 1, %s1184_s21   ;;  %s1472_s15 = smov %s1164_s16 }
 0x109   : > { %p11_p0 = scmp.ge.s32.totalorder %s14_s21, 20   ;;  %s1473_s16 = smov %s1263_s28 }
 0x10a   : > { %s1474_s17 = smov %s1176_s19  ;;  %s1475_s18 = smov %s1180_s20 }
 0x10b   : > { %s1476_s19 = smov %s1479_s22  ;;  %s1477_s20 = smov %s1483_s23 }
 0x10c   :  { %13 = sbr.rel (!%p11_p0) target bundleno = 4 (0x4), region = 126 }

// kernel: _lambda_.27
= control target key start
LH: loop header
LB: loop body
LE: loop exit
PB: predicated region body
PF: predicated region fallthrough
CT: control target
= control target key end

     0   :  { %s1845_s18 = smov 0   ;;  %s1847_s19 = smov 0   ;;  %s2251_s0 = inlined_call_operand.vmem [shape: bf16[8,4608], index: 0, kind: input, shape index: {}]   ;;  %s2252_s1 = inlined_call_operand.vmem [shape: bf16[4608,512], index: 1, kind: input, shape index: {}]   ;;  %s2253_s2 = inlined_call_operand.vmem [shape: f32[1,512], index: 2, kind: input, shape index: {}]   ;;  %s2254_s3 = inlined_call_operand.vmem [shape: f32[1,512], index: 3, kind: input, shape index: {}]   ;;  %s2255_s4 = inlined_call_operand.vmem [shape: bf16[8,512], index: 4, kind: input, shape index: {}]   ;;  %s2256_s5 = inlined_call_operand.vmem [shape: bf16[8,512], index: 5, kind: output, shape index: {}]  }
   0x1   :  { %s1849_s20 = smov 0   ;;  %s1851_s21 = smov 0  }
   0x2   :  { %s1853_s22 = smov 0   ;;  %s1855_s23 = smov 0  }
   0x3   :  { %s1857_s24 = smov 0  }
   0x4 LB: > { %s27_s25 = sadd.s32 1, %s1804_s22  ;;  %s30_s26 = sadd.s32 1, %s1808_s23  ;;  %s1812_s24 = sphi %s1857_s24, %s15_s24   ;;  %s1808_s23 = sphi %s1855_s23, %s2262_s23   ;;  %s1804_s22 = sphi %s1853_s22, %s2261_s22   ;;  %s1800_s21 = sphi %s1851_s21, %s2260_s21   ;;  %s1796_s20 = sphi %s1849_s20, %s2259_s20   ;;  %s1792_s19 = sphi %s1847_s19, %s2258_s19   ;;  %s1788_s18 = sphi %s1845_s18, %s2257_s18  }
   0x5   : > { %p28_p0 = scmp.ge.s32.totalorder %s27_s25, 9  ;;  %p78_p1 = scmp.ne.s32.totalorder %s1792_s19, %s1788_s18 }
   0x6   : > { %p79_p2 = scmp.eq.s32.totalorder %s1812_s24, 0  ;;  %s71_s30 = sadd.s32 1, %s1792_s19 }
   0x7   : > { %s2264_s25 = smov (%p28_p0, %s27_s25), 0  ;;  %s2266_s26 = smov (!%p28_p0, %s30_s26), %s1808_s23 }
   0x8   : > { %p80_p3 = por %p79_p2, %p78_p1  ;;  %p32_p4 = scmp.ge.s32.totalorder %s2266_s26, 2 }
   0x9   : > { %s66_s27 = ssub.s32 %s1804_s22, %s2264_s25  ;;  %p1360_p6 = scmp.ge.s32.totalorder %s1812_s24, 18 }
   0xa   : > { %s2268_s26 = smov (%p32_p4, %s2266_s26), 0 }
   0xb   : > { %s67_s28 = ssub.s32 %s1808_s23, %s2268_s26  ;;  %212 = sbr.rel (%p1360_p6) target bundleno = 87 (0x57), region = 16 }
   0xc   : > { %s68_s29 = sor.u32 %s67_s28, %s66_s27 }
   0xd   : > { %p69_p5 = scmp.eq.s32.totalorder %s68_s29, 0 }
   0xf   : > { %s1896_s6 = scalar_select %p69_p5, %s1792_s19, %s71_s30  }
  0x10   : > { %228 = sbr.rel (!%p80_p3) target bundleno = 87 (0x57), region = 24  ;;  %s230_s7 = sand.u32 (%p80_p3), 1, %s1792_s19  }
  0x11   : > { %s1363_s8 = sshll.u32 (%p80_p3), %s1808_s23, 1  ;;  %s1361_s9 = sshll.u32 (%p80_p3), %s230_s7, 9 }
  0x12   : > { %s1636_s10 = sshll.u32 (%p80_p3), %s1804_s22, 8  ;;  %s1910_s16 = scalar_lea.vmem (%p80_p3), [#allocation3], %s1361_s9 }
  0x13   : > { %s236_s11 = sadd.s32 (%p80_p3), %s1636_s10, %s1363_s8 }
  0x14   : > { %s1365_s12 = sshll.u32 (%p80_p3), %s236_s11, 2 }
  0x15   : > { %s1905_s15 = scalar_lea.vmem %s2252_s1, %s1365_s12 }
  0x16   : > { %v393_v0 = vld [vmem:[%s1905_s15] sm:$0xff]  ;;  %v395_v1 = vld [vmem:[%s1905_s15 + $0x10] sm:$0xff] }
  0x17   : > { %v397_v2 = vld [vmem:[%s1905_s15 + $0x20] sm:$0xff]  ;;  %394 = vst [vmem:[%s1910_s16] sm:$0xff] %v393_v0  ;;  %v399_v3 = vld [vmem:[%s1905_s15 + $0x30] sm:$0xff] }
  0x18   : > { %396 = vst [vmem:[%s1910_s16 + $0x8] sm:$0xff] %v395_v1  ;;  %v401_v4 = vld [vmem:[%s1905_s15 + $0x40] sm:$0xff]  ;;  %v403_v5 = vld [vmem:[%s1905_s15 + $0x50] sm:$0xff] }
  0x19   : > { %398 = vst [vmem:[%s1910_s16 + $0x10] sm:$0xff] %v397_v2  ;;  %v405_v6 = vld [vmem:[%s1905_s15 + $0x60] sm:$0xff]  ;;  %v407_v7 = vld [vmem:[%s1905_s15 + $0x70] sm:$0xff] }
  0x1a   : > { %400 = vst [vmem:[%s1910_s16 + $0x18] sm:$0xff] %v399_v3  ;;  %v409_v8 = vld [vmem:[%s1905_s15 + $0x80] sm:$0xff]  ;;  %v411_v9 = vld [vmem:[%s1905_s15 + $0x90] sm:$0xff] }
  0x1b   : > { %402 = vst [vmem:[%s1910_s16 + $0x20] sm:$0xff] %v401_v4  ;;  %v413_v10 = vld [vmem:[%s1905_s15 + $0xa0] sm:$0xff]  ;;  %v415_v11 = vld [vmem:[%s1905_s15 + $0xb0] sm:$0xff] }
  0x1c   : > { %404 = vst [vmem:[%s1910_s16 + $0x28] sm:$0xff] %v403_v5  ;;  %v417_v12 = vld [vmem:[%s1905_s15 + $0xc0] sm:$0xff]  ;;  %v419_v13 = vld [vmem:[%s1905_s15 + $0xd0] sm:$0xff] }
  0x1d   : > { %406 = vst [vmem:[%s1910_s16 + $0x30] sm:$0xff] %v405_v6  ;;  %v421_v14 = vld [vmem:[%s1905_s15 + $0xe0] sm:$0xff]  ;;  %v423_v15 = vld [vmem:[%s1905_s15 + $0xf0] sm:$0xff] }
  0x1e   : > { %408 = vst [vmem:[%s1910_s16 + $0x38] sm:$0xff] %v407_v7  ;;  %v425_v16 = vld [vmem:[%s1905_s15 + $0x100] sm:$0xff]  ;;  %v427_v17 = vld [vmem:[%s1905_s15 + $0x110] sm:$0xff] }
  0x1f   : > { %410 = vst [vmem:[%s1910_s16 + $0x40] sm:$0xff] %v409_v8  ;;  %v429_v18 = vld [vmem:[%s1905_s15 + $0x120] sm:$0xff]  ;;  %v431_v19 = vld [vmem:[%s1905_s15 + $0x130] sm:$0xff] }
  0x20   : > { %412 = vst [vmem:[%s1910_s16 + $0x48] sm:$0xff] %v411_v9  ;;  %v433_v20 = vld [vmem:[%s1905_s15 + $0x140] sm:$0xff]  ;;  %v435_v21 = vld [vmem:[%s1905_s15 + $0x150] sm:$0xff] }
  0x21   : > { %414 = vst [vmem:[%s1910_s16 + $0x50] sm:$0xff] %v413_v10  ;;  %v437_v22 = vld [vmem:[%s1905_s15 + $0x160] sm:$0xff]  ;;  %v439_v23 = vld [vmem:[%s1905_s15 + $0x170] sm:$0xff] }
  0x22   : > { %416 = vst [vmem:[%s1910_s16 + $0x58] sm:$0xff] %v415_v11  ;;  %v441_v24 = vld [vmem:[%s1905_s15 + $0x180] sm:$0xff]  ;;  %v443_v25 = vld [vmem:[%s1905_s15 + $0x190] sm:$0xff] }
  0x23   : > { %418 = vst [vmem:[%s1910_s16 + $0x60] sm:$0xff] %v417_v12  ;;  %v445_v26 = vld [vmem:[%s1905_s15 + $0x1a0] sm:$0xff]  ;;  %v447_v27 = vld [vmem:[%s1905_s15 + $0x1b0] sm:$0xff] }
  0x24   : > { %420 = vst [vmem:[%s1910_s16 + $0x68] sm:$0xff] %v419_v13  ;;  %v449_v28 = vld [vmem:[%s1905_s15 + $0x1c0] sm:$0xff]  ;;  %v451_v29 = vld [vmem:[%s1905_s15 + $0x1d0] sm:$0xff] }
  0x25   : > { %422 = vst [vmem:[%s1910_s16 + $0x70] sm:$0xff] %v421_v14  ;;  %v453_v30 = vld [vmem:[%s1905_s15 + $0x1e0] sm:$0xff]  ;;  %v455_v31 = vld [vmem:[%s1905_s15 + $0x1f0] sm:$0xff] }
  0x26   : > { %424 = vst [vmem:[%s1910_s16 + $0x78] sm:$0xff] %v423_v15  ;;  %v457_v32 = vld [vmem:[%s1905_s15 + $0x200] sm:$0xff]  ;;  %v459_v33 = vld [vmem:[%s1905_s15 + $0x210] sm:$0xff] }
  0x27   : > { %426 = vst [vmem:[%s1910_s16 + $0x80] sm:$0xff] %v425_v16  ;;  %v461_v34 = vld [vmem:[%s1905_s15 + $0x220] sm:$0xff]  ;;  %v463_v35 = vld [vmem:[%s1905_s15 + $0x230] sm:$0xff] }
  0x28   : > { %428 = vst [vmem:[%s1910_s16 + $0x88] sm:$0xff] %v427_v17  ;;  %v465_v36 = vld [vmem:[%s1905_s15 + $0x240] sm:$0xff]  ;;  %v467_v37 = vld [vmem:[%s1905_s15 + $0x250] sm:$0xff] }
  0x29   : > { %430 = vst [vmem:[%s1910_s16 + $0x90] sm:$0xff] %v429_v18  ;;  %v469_v38 = vld [vmem:[%s1905_s15 + $0x260] sm:$0xff]  ;;  %v471_v39 = vld [vmem:[%s1905_s15 + $0x270] sm:$0xff] }
  0x2a   : > { %432 = vst [vmem:[%s1910_s16 + $0x98] sm:$0xff] %v431_v19  ;;  %v473_v40 = vld [vmem:[%s1905_s15 + $0x280] sm:$0xff]  ;;  %v475_v41 = vld [vmem:[%s1905_s15 + $0x290] sm:$0xff] }
  0x2b   : > { %434 = vst [vmem:[%s1910_s16 + $0xa0] sm:$0xff] %v433_v20  ;;  %v477_v42 = vld [vmem:[%s1905_s15 + $0x2a0] sm:$0xff]  ;;  %v479_v43 = vld [vmem:[%s1905_s15 + $0x2b0] sm:$0xff] }
  0x2c   : > { %436 = vst [vmem:[%s1910_s16 + $0xa8] sm:$0xff] %v435_v21  ;;  %v481_v44 = vld [vmem:[%s1905_s15 + $0x2c0] sm:$0xff]  ;;  %v483_v45 = vld [vmem:[%s1905_s15 + $0x2d0] sm:$0xff] }
  0x2d   : > { %438 = vst [vmem:[%s1910_s16 + $0xb0] sm:$0xff] %v437_v22  ;;  %v485_v46 = vld [vmem:[%s1905_s15 + $0x2e0] sm:$0xff]  ;;  %v487_v47 = vld [vmem:[%s1905_s15 + $0x2f0] sm:$0xff] }
  0x2e   : > { %440 = vst [vmem:[%s1910_s16 + $0xb8] sm:$0xff] %v439_v23  ;;  %v489_v48 = vld [vmem:[%s1905_s15 + $0x300] sm:$0xff]  ;;  %v491_v49 = vld [vmem:[%s1905_s15 + $0x310] sm:$0xff] }
  0x2f   : > { %442 = vst [vmem:[%s1910_s16 + $0xc0] sm:$0xff] %v441_v24  ;;  %v493_v50 = vld [vmem:[%s1905_s15 + $0x320] sm:$0xff]  ;;  %v495_v51 = vld [vmem:[%s1905_s15 + $0x330] sm:$0xff] }
  0x30   : > { %444 = vst [vmem:[%s1910_s16 + $0xc8] sm:$0xff] %v443_v25  ;;  %v497_v52 = vld [vmem:[%s1905_s15 + $0x340] sm:$0xff]  ;;  %v499_v53 = vld [vmem:[%s1905_s15 + $0x350] sm:$0xff] }
  0x31   : > { %446 = vst [vmem:[%s1910_s16 + $0xd0] sm:$0xff] %v445_v26  ;;  %v501_v54 = vld [vmem:[%s1905_s15 + $0x360] sm:$0xff]  ;;  %v503_v55 = vld [vmem:[%s1905_s15 + $0x370] sm:$0xff] }
  0x32   : > { %448 = vst [vmem:[%s1910_s16 + $0xd8] sm:$0xff] %v447_v27  ;;  %v505_v56 = vld [vmem:[%s1905_s15 + $0x380] sm:$0xff]  ;;  %v507_v57 = vld [vmem:[%s1905_s15 + $0x390] sm:$0xff] }
  0x33   : > { %450 = vst [vmem:[%s1910_s16 + $0xe0] sm:$0xff] %v449_v28  ;;  %v509_v58 = vld [vmem:[%s1905_s15 + $0x3a0] sm:$0xff]  ;;  %v511_v59 = vld [vmem:[%s1905_s15 + $0x3b0] sm:$0xff] }
  0x34   : > { %452 = vst [vmem:[%s1910_s16 + $0xe8] sm:$0xff] %v451_v29  ;;  %v513_v60 = vld [vmem:[%s1905_s15 + $0x3c0] sm:$0xff]  ;;  %v515_v61 = vld [vmem:[%s1905_s15 + $0x3d0] sm:$0xff] }
  0x35   : > { %454 = vst [vmem:[%s1910_s16 + $0xf0] sm:$0xff] %v453_v30  ;;  %v517_v62 = vld [vmem:[%s1905_s15 + $0x3e0] sm:$0xff]  ;;  %v519_v63 = vld [vmem:[%s1905_s15 + $0x3f0] sm:$0xff] }
  0x36   : > { %456 = vst [vmem:[%s1910_s16 + $0xf8] sm:$0xff] %v455_v31 }
  0x37   : > { %458 = vst [vmem:[%s1910_s16 + $0x100] sm:$0xff] %v457_v32 }
  0x38   : > { %460 = vst [vmem:[%s1910_s16 + $0x108] sm:$0xff] %v459_v33 }
  0x39   : > { %462 = vst [vmem:[%s1910_s16 + $0x110] sm:$0xff] %v461_v34 }
  0x3a   : > { %464 = vst [vmem:[%s1910_s16 + $0x118] sm:$0xff] %v463_v35 }
  0x3b   : > { %466 = vst [vmem:[%s1910_s16 + $0x120] sm:$0xff] %v465_v36 }
  0x3c   : > { %468 = vst [vmem:[%s1910_s16 + $0x128] sm:$0xff] %v467_v37 }
  0x3d   : > { %470 = vst [vmem:[%s1910_s16 + $0x130] sm:$0xff] %v469_v38 }
  0x3e   : > { %472 = vst [vmem:[%s1910_s16 + $0x138] sm:$0xff] %v471_v39 }
  0x3f   : > { %474 = vst [vmem:[%s1910_s16 + $0x140] sm:$0xff] %v473_v40 }
  0x40   : > { %476 = vst [vmem:[%s1910_s16 + $0x148] sm:$0xff] %v475_v41 }
  0x41   : > { %478 = vst [vmem:[%s1910_s16 + $0x150] sm:$0xff] %v477_v42 }
  0x42   : > { %480 = vst [vmem:[%s1910_s16 + $0x158] sm:$0xff] %v479_v43 }
  0x43   : > { %482 = vst [vmem:[%s1910_s16 + $0x160] sm:$0xff] %v481_v44 }
  0x44   : > { %484 = vst [vmem:[%s1910_s16 + $0x168] sm:$0xff] %v483_v45 }
  0x45   : > { %486 = vst [vmem:[%s1910_s16 + $0x170] sm:$0xff] %v485_v46 }
  0x46   : > { %488 = vst [vmem:[%s1910_s16 + $0x178] sm:$0xff] %v487_v47 }
  0x47   : > { %490 = vst [vmem:[%s1910_s16 + $0x180] sm:$0xff] %v489_v48 }
  0x48   : > { %492 = vst [vmem:[%s1910_s16 + $0x188] sm:$0xff] %v491_v49 }
  0x49   : > { %494 = vst [vmem:[%s1910_s16 + $0x190] sm:$0xff] %v493_v50 }
  0x4a   : > { %496 = vst [vmem:[%s1910_s16 + $0x198] sm:$0xff] %v495_v51 }
  0x4b   : > { %498 = vst [vmem:[%s1910_s16 + $0x1a0] sm:$0xff] %v497_v52 }
  0x4c   : > { %500 = vst [vmem:[%s1910_s16 + $0x1a8] sm:$0xff] %v499_v53 }
  0x4d   : > { %502 = vst [vmem:[%s1910_s16 + $0x1b0] sm:$0xff] %v501_v54 }
  0x4e   : > { %504 = vst [vmem:[%s1910_s16 + $0x1b8] sm:$0xff] %v503_v55 }
  0x4f   : > { %506 = vst [vmem:[%s1910_s16 + $0x1c0] sm:$0xff] %v505_v56 }
  0x50   : > { %508 = vst [vmem:[%s1910_s16 + $0x1c8] sm:$0xff] %v507_v57 }
  0x51   : > { %510 = vst [vmem:[%s1910_s16 + $0x1d0] sm:$0xff] %v509_v58 }
  0x52   : > { %512 = vst [vmem:[%s1910_s16 + $0x1d8] sm:$0xff] %v511_v59 }
  0x53   : > { %514 = vst [vmem:[%s1910_s16 + $0x1e0] sm:$0xff] %v513_v60 }
  0x54   : > { %516 = vst [vmem:[%s1910_s16 + $0x1e8] sm:$0xff] %v515_v61 }
  0x55   : > { %518 = vst [vmem:[%s1910_s16 + $0x1f0] sm:$0xff] %v517_v62 }
  0x56   : > { %520 = vst [vmem:[%s1910_s16 + $0x1f8] sm:$0xff] %v519_v63 }
  0x57 PF: > { %p1366_p7 = scmp.ge.s32.totalorder %s1812_s24, 1  ;;  %p554_p8 = scmp.lt.s32.totalorder %s1812_s24, 19 }
  0x59   : > { %p555_p9 = pnand %p1366_p7, %p554_p8 }
  0x5a   : > { %s561_s17 = sand.u32 (!%p555_p9), 1, %s1788_s18   ;;  %s1368_s27 = sshll.u32 (!%p555_p9), %s1796_s20, 2 }
  0x5b   : > { %558 = sbr.rel (%p555_p9) target bundleno = 332 (0x14c), region = 74  ;;  %s1367_s28 = sshll.u32 (!%p555_p9), %s561_s17, 9 }
  0x5c   : > { %p621_p10 = scmp.lt.s32.totalorder (!%p555_p9), %s1368_s27, 35  ;;  %s1370_s29 = sshll.u32 (!%p555_p9), %s1800_s21, 1 }
  0x5d   : > { %p631_p11 = scmp.lt.s32.totalorder (!%p555_p9), %s1370_s29, 3  ;;  %s2068_s8 = scalar_lea.vmem (!%p555_p9), [#allocation3], %s1367_s28 }
  0x5e   : > { %p1376_p12 = scmp.ne.s32.totalorder (!%p555_p9), %s1796_s20, 0 }
  0x60   : > { %s2270_s27 = smov (!%p621_p10, %s1368_s27), 35  ;;  %s2272_s29 = smov (!%p631_p11, %s1370_s29), 3 }
  0x61   : > { %s1369_s30 = sshll.u32 %s2270_s27, 2  ;;  %s633_s18 = scalar_lea.vmem %s2253_s2, %s2272_s29 }
  0x62   : > { %s2045_s9 = scalar_lea.vmem %s2251_s0, %s1369_s30  ;;  %s638_s21 = scalar_lea.vmem %s2254_s3, %s2272_s29 }
  0x63   : > { %s1373_s14 = sshll.u32 %s2272_s29, 2  ;;  %663 = sbr.rel (%p1376_p12) target bundleno = 107 (0x6b), region = 82 }
  0x64   : > { %s2061_s17 = scalar_lea.vmem %s2255_s4, %s1373_s14  ;;  %s2066_s7 = scalar_lea.vmem %s2256_s5, %s1373_s14 }
  0x68   : > { %v1814_v0 = vmov 0.0  }
  0x69   : > { %664 = vst [vmem:[#allocation2] sm:$0xff] %v1814_v0 }
  0x6a   : > { %665 = vst [vmem:[#allocation2 + $0x8] sm:$0xff] %v1814_v0 }
  0x6b PF: > { %v1435_v1 = vld [vmem:[%s2068_s8 + $0x70] sm:$0xf]  ;;  %v1652_v2 = vld [vmem:[%s2068_s8 + $0x74] sm:$0xf0]  ;;  %v1427_v12 = vld [vmem:[%s2068_s8 + $0x60] sm:$0xf] }
  0x6c   : > { %v1499_v3 = vld [vmem:[%s2068_s8 + $0xf0] sm:$0xf]  ;;  %v1436_v4 = vor.u32 %v1652_v2, %v1435_v1  ;;  %v1668_v5 = vld [vmem:[%s2068_s8 + $0xf4] sm:$0xf0]  ;;  %v1650_v14 = vld [vmem:[%s2068_s8 + $0x64] sm:$0xf0] }
  0x6d   : > { %v1563_v6 = vld [vmem:[%s2068_s8 + $0x170] sm:$0xf]  ;;  %v1684_v7 = vld [vmem:[%s2068_s8 + $0x174] sm:$0xf0]  ;;  %v1500_v8 = vor.u32 %v1668_v5, %v1499_v3  ;;  %v1491_v15 = vld [vmem:[%s2068_s8 + $0xe0] sm:$0xf]  ;;  %v1428_v17 = vor.u32 %v1650_v14, %v1427_v12 }
  0x6e   : > { %v1564_v9 = vor.u32 %v1684_v7, %v1563_v6  ;;  %v1627_v10 = vld [vmem:[%s2068_s8 + $0x1f0] sm:$0xf]  ;;  %v1700_v11 = vld [vmem:[%s2068_s8 + $0x1f4] sm:$0xf0]  ;;  %1068 = vmatpush.bf16.msra.mxu0 %v1436_v4  ;;  %v1666_v16 = vld [vmem:[%s2068_s8 + $0xe4] sm:$0xf0] }
  0x6f   : > { %v1628_v13 = vor.u32 %v1700_v11, %v1627_v10  ;;  %1081 = vmatpush.bf16.msra.mxu1 %v1500_v8  ;;  %v1492_v18 = vor.u32 %v1666_v16, %v1491_v15  ;;  %v1555_v19 = vld [vmem:[%s2068_s8 + $0x160] sm:$0xf]  ;;  %v1682_v20 = vld [vmem:[%s2068_s8 + $0x164] sm:$0xf0]  ;;  %v1419_v24 = vld [vmem:[%s2068_s8 + $0x50] sm:$0xf] }
  0x70   : > { %1094 = vmatpush.bf16.msra.mxu2 %v1564_v9  ;;  %v1619_v21 = vld [vmem:[%s2068_s8 + $0x1e0] sm:$0xf]  ;;  %v1556_v22 = vor.u32 %v1682_v20, %v1555_v19  ;;  %v1698_v23 = vld [vmem:[%s2068_s8 + $0x1e4] sm:$0xf0]  ;;  %v1648_v25 = vld [vmem:[%s2068_s8 + $0x54] sm:$0xf0] }
  0x71   : > { %1107 = vmatpush.bf16.msra.mxu3 %v1628_v13  ;;  %v1620_v26 = vor.u32 %v1698_v23, %v1619_v21  ;;  %v1483_v27 = vld [vmem:[%s2068_s8 + $0xd0] sm:$0xf]  ;;  %v1664_v28 = vld [vmem:[%s2068_s8 + $0xd4] sm:$0xf0]  ;;  %v1420_v30 = vor.u32 %v1648_v25, %v1419_v24  ;;  %v1411_v36 = vld [vmem:[%s2068_s8 + $0x40] sm:$0xf] }
  0x72   : > { %v1547_v29 = vld [vmem:[%s2068_s8 + $0x150] sm:$0xf]  ;;  %1069 = vmatpush.bf16.msra.mxu0 %v1428_v17  ;;  %v1680_v31 = vld [vmem:[%s2068_s8 + $0x154] sm:$0xf0]  ;;  %v1484_v34 = vor.u32 %v1664_v28, %v1483_v27  ;;  %v1646_v37 = vld [vmem:[%s2068_s8 + $0x44] sm:$0xf0] }
  0x73   : > { %v1611_v32 = vld [vmem:[%s2068_s8 + $0x1d0] sm:$0xf]  ;;  %v1696_v33 = vld [vmem:[%s2068_s8 + $0x1d4] sm:$0xf0]  ;;  %1082 = vmatpush.bf16.msra.mxu1 %v1492_v18  ;;  %v1548_v35 = vor.u32 %v1680_v31, %v1547_v29  ;;  %v1475_v38 = vld [vmem:[%s2068_s8 + $0xc0] sm:$0xf]  ;;  %v1412_v45 = vor.u32 %v1646_v37, %v1411_v36 }
  0x74   : > { %1095 = vmatpush.bf16.msra.mxu2 %v1556_v22  ;;  %v1612_v39 = vor.u32 %v1696_v33, %v1611_v32  ;;  %v1662_v40 = vld [vmem:[%s2068_s8 + $0xc4] sm:$0xf0]  ;;  %v1539_v41 = vld [vmem:[%s2068_s8 + $0x140] sm:$0xf]  ;;  %v1403_v48 = vld [vmem:[%s2068_s8 + $0x30] sm:$0xf] }
  0x75   : > { %1108 = vmatpush.bf16.msra.mxu3 %v1620_v26  ;;  %v1678_v42 = vld [vmem:[%s2068_s8 + $0x144] sm:$0xf0]  ;;  %v1603_v43 = vld [vmem:[%s2068_s8 + $0x1c0] sm:$0xf]  ;;  %v1476_v46 = vor.u32 %v1662_v40, %v1475_v38  ;;  %v1644_v49 = vld [vmem:[%s2068_s8 + $0x34] sm:$0xf0] }
  0x76   : > { %v1694_v44 = vld [vmem:[%s2068_s8 + $0x1c4] sm:$0xf0]  ;;  %1070 = vmatpush.bf16.msra.mxu0 %v1420_v30  ;;  %v1540_v47 = vor.u32 %v1678_v42, %v1539_v41  ;;  %v1467_v50 = vld [vmem:[%s2068_s8 + $0xb0] sm:$0xf]  ;;  %v1660_v52 = vld [vmem:[%s2068_s8 + $0xb4] sm:$0xf0]  ;;  %v1404_v57 = vor.u32 %v1644_v49, %v1403_v48 }
  0x77   : > { %1083 = vmatpush.bf16.msra.mxu1 %v1484_v34  ;;  %v1604_v51 = vor.u32 %v1694_v44, %v1603_v43  ;;  %v1531_v53 = vld [vmem:[%s2068_s8 + $0x130] sm:$0xf]  ;;  %v1676_v54 = vld [vmem:[%s2068_s8 + $0x134] sm:$0xf0]  ;;  %v1468_v58 = vor.u32 %v1660_v52, %v1467_v50  ;;  %v1395_v60 = vld [vmem:[%s2068_s8 + $0x20] sm:$0xf] }
  0x78   : > { %1096 = vmatpush.bf16.msra.mxu2 %v1548_v35  ;;  %v1595_v55 = vld [vmem:[%s2068_s8 + $0x1b0] sm:$0xf]  ;;  %v1692_v56 = vld [vmem:[%s2068_s8 + $0x1b4] sm:$0xf0]  ;;  %v1532_v59 = vor.u32 %v1676_v54, %v1531_v53  ;;  %v1642_v61 = vld [vmem:[%s2068_s8 + $0x24] sm:$0xf0] }
  0x79   : > { %1109 = vmatpush.bf16.msra.mxu3 %v1612_v39  ;;  %v1459_v62 = vld [vmem:[%s2068_s8 + $0xa0] sm:$0xf]  ;;  %v1596_v63 = vor.u32 %v1692_v56, %v1595_v55  ;;  %v1658_v0 = vld [vmem:[%s2068_s8 + $0xa4] sm:$0xf0]  ;;  %v1396_v5 = vor.u32 %v1642_v61, %v1395_v60  ;;  %v1387_v8 = vld [vmem:[%s2068_s8 + $0x10] sm:$0xf] }
  0x7a   : > { %1071 = vmatpush.bf16.msra.mxu0 %v1412_v45  ;;  %v1523_v1 = vld [vmem:[%s2068_s8 + $0x120] sm:$0xf]  ;;  %v1674_v2 = vld [vmem:[%s2068_s8 + $0x124] sm:$0xf0]  ;;  %v1460_v6 = vor.u32 %v1658_v0, %v1459_v62  ;;  %v1640_v9 = vld [vmem:[%s2068_s8 + $0x14] sm:$0xf0] }
  0x7b   : > { %1084 = vmatpush.bf16.msra.mxu1 %v1476_v46  ;;  %v1587_v3 = vld [vmem:[%s2068_s8 + $0x1a0] sm:$0xf]  ;;  %v1690_v4 = vld [vmem:[%s2068_s8 + $0x1a4] sm:$0xf0]  ;;  %v1524_v7 = vor.u32 %v1674_v2, %v1523_v1  ;;  %v1451_v10 = vld [vmem:[%s2068_s8 + $0x90] sm:$0xf]  ;;  %v1388_v17 = vor.u32 %v1640_v9, %v1387_v8 }
  0x7c   : > { %1097 = vmatpush.bf16.msra.mxu2 %v1540_v47  ;;  %v1588_v11 = vor.u32 %v1690_v4, %v1587_v3  ;;  %v1656_v12 = vld [vmem:[%s2068_s8 + $0x94] sm:$0xf0]  ;;  %v1515_v13 = vld [vmem:[%s2068_s8 + $0x110] sm:$0xf]  ;;  %v1379_v18 = vld [vmem:[%s2068_s8] sm:$0xf] }
  0x7d   : > { %1110 = vmatpush.bf16.msra.mxu3 %v1604_v51  ;;  %v1672_v14 = vld [vmem:[%s2068_s8 + $0x114] sm:$0xf0]  ;;  %v1579_v15 = vld [vmem:[%s2068_s8 + $0x190] sm:$0xf]  ;;  %v1638_v19 = vld [vmem:[%s2068_s8 + $0x4] sm:$0xf0]  ;;  %v1452_v21 = vor.u32 %v1656_v12, %v1451_v10 }
  0x7e   : > { %1072 = vmatpush.bf16.msra.mxu0 %v1404_v57  ;;  %v1688_v16 = vld [vmem:[%s2068_s8 + $0x194] sm:$0xf0]  ;;  %v1443_v20 = vld [vmem:[%s2068_s8 + $0x80] sm:$0xf]  ;;  %v1516_v22 = vor.u32 %v1672_v14, %v1515_v13  ;;  %v1654_v23 = vld [vmem:[%s2068_s8 + $0x84] sm:$0xf0]  ;;  %v1380_v33 = vor.u32 %v1638_v19, %v1379_v18 }
  0x7f   : > { %1085 = vmatpush.bf16.msra.mxu1 %v1468_v58  ;;  %v1507_v24 = vld [vmem:[%s2068_s8 + $0x100] sm:$0xf]  ;;  %v1670_v25 = vld [vmem:[%s2068_s8 + $0x104] sm:$0xf0]  ;;  %v1580_v26 = vor.u32 %v1688_v16, %v1579_v15  ;;  %v1651_v29 = vld [vmem:[%s2068_s8 + $0x74] sm:$0xf]  ;;  %v1444_v38 = vor.u32 %v1654_v23, %v1443_v20 }
  0x80   : > { %1098 = vmatpush.bf16.msra.mxu2 %v1532_v59  ;;  %v1571_v27 = vld [vmem:[%s2068_s8 + $0x180] sm:$0xf]  ;;  %v1686_v28 = vld [vmem:[%s2068_s8 + $0x184] sm:$0xf0]  ;;  %v1437_v30 = vld [vmem:[%s2068_s8 + $0x78] sm:$0xf0]  ;;  %v1508_v39 = vor.u32 %v1670_v25, %v1507_v24 }
  0x81   : > { %1111 = vmatpush.bf16.msra.mxu3 %v1596_v63  ;;  %v1667_v31 = vld [vmem:[%s2068_s8 + $0xf4] sm:$0xf]  ;;  %v669_v32 = vld [vmem:[%s2045_s9 + $0x8] sm:$0xff]  ;;  %v1572_v43 = vor.u32 %v1686_v28, %v1571_v27  ;;  %v1440_v44 = vor.u32 %v1651_v29, %v1437_v30  ;;  %v1649_v48 = vld [vmem:[%s2068_s8 + $0x64] sm:$0xf]  ;;  %p1633_p13 = scmp.ne.s32.totalorder %s1796_s20, 8 }
  0x82   : > { %1073 = vmatpush.bf16.msra.mxu0 %v1396_v5  ;;  %v1501_v34 = vld [vmem:[%s2068_s8 + $0xf8] sm:$0xf0]  ;;  %v1683_v35 = vld [vmem:[%s2068_s8 + $0x174] sm:$0xf]  ;;  %v738_v37 = vunpack.c.l.b16 %v669_v32  ;;  %v739_v42 = vunpack.c.h.b16 %v669_v32  ;;  %v1429_v49 = vld [vmem:[%s2068_s8 + $0x68] sm:$0xf0] }
  0x83   : > { %1086 = vmatpush.bf16.msra.mxu1 %v1460_v6  ;;  %v1565_v36 = vld [vmem:[%s2068_s8 + $0x178] sm:$0xf0]  ;;  %v1699_v40 = vld [vmem:[%s2068_s8 + $0x1f4] sm:$0xf]  ;;  %v1504_v46 = vor.u32 %v1667_v31, %v1501_v34  ;;  %v1665_v50 = vld [vmem:[%s2068_s8 + $0xe4] sm:$0xf]  ;;  %v1432_v62 = vor.u32 %v1649_v48, %v1429_v49 }
  0x84   : > { %1099 = vmatpush.bf16.msra.mxu2 %v1524_v7  ;;  %v1629_v41 = vld [vmem:[%s2068_s8 + $0x1f8] sm:$0xf0]  ;;  %v668_v45 = vld [vmem:[%s2045_s9] sm:$0xff]  ;;  %v1568_v47 = vor.u32 %v1683_v35, %v1565_v36  ;;  %v1493_v54 = vld [vmem:[%s2068_s8 + $0xe8] sm:$0xf0]  ;;  %v2151_v57 = vpack.c.b16 %v738_v37, %v738_v37  ;;  %v2155_v60 = vpack.c.b16 %v739_v42, %v739_v42 }
  0x85   : > { %1112 = vmatpush.bf16.msra.mxu3 %v1588_v11  ;;  %v736_v51 = vunpack.c.l.b16 %v668_v45  ;;  %v737_v52 = vunpack.c.h.b16 %v668_v45  ;;  %v1632_v53 = vor.u32 %v1699_v40, %v1629_v41  ;;  %v1681_v55 = vld [vmem:[%s2068_s8 + $0x164] sm:$0xf]  ;;  %v1557_v56 = vld [vmem:[%s2068_s8 + $0x168] sm:$0xf0]  ;;  %v1496_v0 = vor.u32 %v1665_v50, %v1493_v54  ;;  %v1647_v2 = vld [vmem:[%s2068_s8 + $0x54] sm:$0xf] }
  0x86   : > { %1074 = vmatpush.bf16.msra.mxu0 %v1388_v17  ;;  %v1697_v58 = vld [vmem:[%s2068_s8 + $0x1e4] sm:$0xf]  ;;  %v1621_v59 = vld [vmem:[%s2068_s8 + $0x1e8] sm:$0xf0]  ;;  %v1560_v1 = vor.u32 %v1681_v55, %v1557_v56  ;;  %v1421_v3 = vld [vmem:[%s2068_s8 + $0x58] sm:$0xf0] }
  0x87   : > { %1087 = vmatpush.bf16.msra.mxu1 %v1452_v21  ;;  %v2157_v61 = vpack.c.b16 %v736_v51, %v736_v51  ;;  %v2159_v63 = vpack.c.b16 %v737_v52, %v737_v52  ;;  %v1663_v4 = vld [vmem:[%s2068_s8 + $0xd4] sm:$0xf]  ;;  %v1624_v5 = vor.u32 %v1697_v58, %v1621_v59  ;;  %v1485_v6 = vld [vmem:[%s2068_s8 + $0xd8] sm:$0xf0]  ;;  %v1424_v11 = vor.u32 %v1647_v2, %v1421_v3  ;;  %v1645_v14 = vld [vmem:[%s2068_s8 + $0x44] sm:$0xf] }
  0x88   : > { %1100 = vmatpush.bf16.msra.mxu2 %v1516_v22  ;;  %v1679_v7 = vld [vmem:[%s2068_s8 + $0x154] sm:$0xf]  ;;  %v1549_v8 = vld [vmem:[%s2068_s8 + $0x158] sm:$0xf0]  ;;  %v1488_v12 = vor.u32 %v1663_v4, %v1485_v6  ;;  %v1413_v15 = vld [vmem:[%s2068_s8 + $0x48] sm:$0xf0] }
  0x89   : > { %1113 = vmatpush.bf16.msra.mxu3 %v1580_v26  ;;  %v1695_v9 = vld [vmem:[%s2068_s8 + $0x1d4] sm:$0xf]  ;;  %v1613_v10 = vld [vmem:[%s2068_s8 + $0x1d8] sm:$0xf0]  ;;  %v1552_v13 = vor.u32 %v1679_v7, %v1549_v8  ;;  %v1661_v16 = vld [vmem:[%s2068_s8 + $0xc4] sm:$0xf]  ;;  %v1416_v23 = vor.u32 %v1645_v14, %v1413_v15 }
  0x8a   : > { %1075 = vmatpush.bf16.msra.mxu0 %v1380_v33  ;;  %v1616_v17 = vor.u32 %v1695_v9, %v1613_v10  ;;  %v1477_v18 = vld [vmem:[%s2068_s8 + $0xc8] sm:$0xf0]  ;;  %v1677_v19 = vld [vmem:[%s2068_s8 + $0x144] sm:$0xf]  ;;  %v1643_v26 = vld [vmem:[%s2068_s8 + $0x34] sm:$0xf] }
  0x8b   : > { %1088 = vmatpush.bf16.msra.mxu1 %v1444_v38  ;;  %v1541_v20 = vld [vmem:[%s2068_s8 + $0x148] sm:$0xf0]  ;;  %v1693_v21 = vld [vmem:[%s2068_s8 + $0x1c4] sm:$0xf]  ;;  %v1480_v24 = vor.u32 %v1661_v16, %v1477_v18  ;;  %v1405_v27 = vld [vmem:[%s2068_s8 + $0x38] sm:$0xf0] }
  0x8c   : > { %1101 = vmatpush.bf16.msra.mxu2 %v1508_v39  ;;  %v1605_v22 = vld [vmem:[%s2068_s8 + $0x1c8] sm:$0xf0]  ;;  %v1544_v25 = vor.u32 %v1677_v19, %v1541_v20  ;;  %v1659_v28 = vld [vmem:[%s2068_s8 + $0xb4] sm:$0xf]  ;;  %v1469_v30 = vld [vmem:[%s2068_s8 + $0xb8] sm:$0xf0]  ;;  %v1408_v35 = vor.u32 %v1643_v26, %v1405_v27 }
  0x8d   : > { %1114 = vmatpush.bf16.msra.mxu3 %v1572_v43  ;;  %1076 = vmatmul.bf16.vlgmr.msra.gmra.mxu0 %v2157_v61  ;;  %v1608_v29 = vor.u32 %v1693_v21, %v1605_v22  ;;  %v1675_v31 = vld [vmem:[%s2068_s8 + $0x134] sm:$0xf]  ;;  %v1533_v32 = vld [vmem:[%s2068_s8 + $0x138] sm:$0xf0]  ;;  %v1472_v36 = vor.u32 %v1659_v28, %v1469_v30  ;;  %v1641_v38 = vld [vmem:[%s2068_s8 + $0x24] sm:$0xf] }
  0x8e   : > { %1120 = vmatpush.bf16.msrb.mxu0 %v1440_v44  ;;  %1089 = vmatmul.bf16.vlgmr.msra.gmra.mxu1 %v2159_v63  ;;  %v1691_v33 = vld [vmem:[%s2068_s8 + $0x1b4] sm:$0xf]  ;;  %v1597_v34 = vld [vmem:[%s2068_s8 + $0x1b8] sm:$0xf0]  ;;  %v1536_v37 = vor.u32 %v1675_v31, %v1533_v32  ;;  %v1397_v39 = vld [vmem:[%s2068_s8 + $0x28] sm:$0xf0] }
  0x8f   : > { %1133 = vmatpush.bf16.msrb.mxu1 %v1504_v46  ;;  %1102 = vmatmul.bf16.vlgmr.msra.gmra.mxu2 %v2151_v57  ;;  %v1657_v40 = vld [vmem:[%s2068_s8 + $0xa4] sm:$0xf]  ;;  %v1600_v41 = vor.u32 %v1691_v33, %v1597_v34  ;;  %v1461_v42 = vld [vmem:[%s2068_s8 + $0xa8] sm:$0xf0]  ;;  %v1639_v50 = vld [vmem:[%s2068_s8 + $0x14] sm:$0xf] }
  0x90   : > { %1146 = vmatpush.bf16.msrb.mxu2 %v1568_v47  ;;  %1115 = vmatmul.bf16.vlgmr.msra.gmra.mxu3 %v2155_v60  ;;  %v1673_v43 = vld [vmem:[%s2068_s8 + $0x124] sm:$0xf]  ;;  %v1525_v44 = vld [vmem:[%s2068_s8 + $0x128] sm:$0xf0]  ;;  %v1400_v47 = vor.u32 %v1641_v38, %v1397_v39  ;;  %v1464_v48 = vor.u32 %v1657_v40, %v1461_v42  ;;  %v1389_v51 = vld [vmem:[%s2068_s8 + $0x18] sm:$0xf0] }
  0x91   : > { %1159 = vmatpush.bf16.msrb.mxu3 %v1632_v53  ;;  %v1689_v45 = vld [vmem:[%s2068_s8 + $0x1a4] sm:$0xf]  ;;  %v1589_v46 = vld [vmem:[%s2068_s8 + $0x1a8] sm:$0xf0]  ;;  %v1528_v49 = vor.u32 %v1673_v43, %v1525_v44  ;;  %v1655_v52 = vld [vmem:[%s2068_s8 + $0x94] sm:$0xf] }
  0x92   : > { %1121 = vmatpush.bf16.msrb.mxu0 %v1432_v62  ;;  %v1592_v53 = vor.u32 %v1689_v45, %v1589_v46  ;;  %v1453_v54 = vld [vmem:[%s2068_s8 + $0x98] sm:$0xf0]  ;;  %v1671_v55 = vld [vmem:[%s2068_s8 + $0x114] sm:$0xf]  ;;  %v1392_v62 = vor.u32 %v1639_v50, %v1389_v51  ;;  %v1637_v2 = vld [vmem:[%s2068_s8 + $0x4] sm:$0xf] }
  0x93   : > { %1134 = vmatpush.bf16.msrb.mxu1 %v1496_v0  ;;  %v1517_v56 = vld [vmem:[%s2068_s8 + $0x118] sm:$0xf0]  ;;  %v1687_v58 = vld [vmem:[%s2068_s8 + $0x194] sm:$0xf]  ;;  %v1456_v0 = vor.u32 %v1655_v52, %v1453_v54  ;;  %v1381_v3 = vld [vmem:[%s2068_s8 + $0x8] sm:$0xf0] }
  0x94   : > { %1147 = vmatpush.bf16.msrb.mxu2 %v1560_v1  ;;  %v1581_v59 = vld [vmem:[%s2068_s8 + $0x198] sm:$0xf0]  ;;  %v1520_v1 = vor.u32 %v1671_v55, %v1517_v56  ;;  %v1653_v4 = vld [vmem:[%s2068_s8 + $0x84] sm:$0xf]  ;;  %v1445_v6 = vld [vmem:[%s2068_s8 + $0x88] sm:$0xf0] }
  0x95   : > { %1160 = vmatpush.bf16.msrb.mxu3 %v1624_v5  ;;  %v1584_v5 = vor.u32 %v1687_v58, %v1581_v59  ;;  %v1669_v7 = vld [vmem:[%s2068_s8 + $0x104] sm:$0xf]  ;;  %v1509_v8 = vld [vmem:[%s2068_s8 + $0x108] sm:$0xf0]  ;;  %v666_v21 = vld [vmem:[#allocation2] sm:$0xff] }
  0x96   : > { %1122 = vmatpush.bf16.msrb.mxu0 %v1424_v11  ;;  %v1685_v9 = vld [vmem:[%s2068_s8 + $0x184] sm:$0xf]  ;;  %v1573_v10 = vld [vmem:[%s2068_s8 + $0x188] sm:$0xf0]  ;;  %v1384_v11 = vor.u32 %v1637_v2, %v1381_v3  ;;  %v667_v31 = vld [vmem:[#allocation2 + $0x8] sm:$0xff] }
  0x97   : > { %1135 = vmatpush.bf16.msrb.mxu1 %v1488_v12  ;;  %v1448_v12 = vor.u32 %v1653_v4, %v1445_v6  ;;  %v1576_v14 = vor.u32 %v1685_v9, %v1573_v10 }
  0x98   : > { %1148 = vmatpush.bf16.msrb.mxu2 %v1552_v13  ;;  %v1512_v13 = vor.u32 %v1669_v7, %v1509_v8 }
  0x99   : > { %1161 = vmatpush.bf16.msrb.mxu3 %v1616_v17 }
  0x9a   : > { %1123 = vmatpush.bf16.msrb.mxu0 %v1416_v23 }
  0x9b   : > { %1136 = vmatpush.bf16.msrb.mxu1 %v1480_v24 }
  0x9c   : > { %1149 = vmatpush.bf16.msrb.mxu2 %v1544_v25 }
  0x9d   : > { %1162 = vmatpush.bf16.msrb.mxu3 %v1608_v29 }
  0x9e   : > { %1124 = vmatpush.bf16.msrb.mxu0 %v1408_v35 }
  0x9f   : > { %1137 = vmatpush.bf16.msrb.mxu1 %v1472_v36 }
  0xa0   : > { %1150 = vmatpush.bf16.msrb.mxu2 %v1536_v37 }
  0xa1   : > { %1163 = vmatpush.bf16.msrb.mxu3 %v1600_v41 }
  0xa2   : > { %1125 = vmatpush.bf16.msrb.mxu0 %v1400_v47 }
  0xa3   : > { %1138 = vmatpush.bf16.msrb.mxu1 %v1464_v48 }
  0xa4   : > { %1151 = vmatpush.bf16.msrb.mxu2 %v1528_v49 }
  0xa5   : > { %1164 = vmatpush.bf16.msrb.mxu3 %v1592_v53 }
  0xa6   : > { %1126 = vmatpush.bf16.msrb.mxu0 %v1392_v62 }
  0xa7   : > { %1139 = vmatpush.bf16.msrb.mxu1 %v1456_v0 }
  0xa8   : > { %1152 = vmatpush.bf16.msrb.mxu2 %v1520_v1 }
  0xa9   : > { %1165 = vmatpush.bf16.msrb.mxu3 %v1584_v5 }
  0xaa   : > { %1127 = vmatpush.bf16.msrb.mxu0 %v1384_v11 }
  0xab   : > { %1140 = vmatpush.bf16.msrb.mxu1 %v1448_v12 }
  0xac   : > { %1153 = vmatpush.bf16.msrb.mxu2 %v1512_v13 }
  0xad   : > { %1166 = vmatpush.bf16.msrb.mxu3 %v1576_v14  ;;  %1128 = vmatmul.bf16.vlgmr.msrb.gmra.mxu0 %v2157_v61 }
  0xae   : > { %1141 = vmatmul.bf16.vlgmr.msrb.gmra.mxu1 %v2159_v63 }
  0xaf   : > { %1154 = vmatmul.bf16.vlgmr.msrb.gmra.mxu2 %v2151_v57 }
  0xb0   : > { %1167 = vmatmul.bf16.vlgmr.msrb.gmra.mxu3 %v2155_v60 }
 0x10a   : > { %v1077_v15 = vpop.f32.mrf.mxu0 }
 0x10b   : > { %v1090_v16 = vpop.f32.mrf.mxu1 }
 0x10c   : > { %v1091_v17 = vadd.f32 %v1090_v16, %v1077_v15 }
 0x112   : > { %v1103_v18 = vpop.f32.mrf.mxu2  ;;  %v1079_v23 = vpop.f32.mrf.mxu0 }
 0x113   : > { %v1104_v19 = vadd.f32 %v1103_v18, %v1091_v17  ;;  %v1116_v20 = vpop.f32.mrf.mxu3  ;;  %v1092_v24 = vpop.f32.mrf.mxu1 }
 0x115   : > { %v1117_v22 = vadd.f32 %v1116_v20, %v1104_v19 }
 0x117   : > { %v1172_v25 = vadd.f32 %v1117_v22, %v666_v21 }
 0x119   : > { %1174 = vst [vmem:[#allocation2] sm:$0xff] %v1172_v25 }
 0x11a   : > { %v1105_v26 = vpop.f32.mrf.mxu2 }
 0x11b   : > { %v1118_v61 = vpop.f32.mrf.mxu3 }
 0x12a   : > { %v1129_v27 = vpop.f32.mrf.mxu0 }
 0x12b   : > { %v1142_v63 = vpop.f32.mrf.mxu1 }
 0x12c   : > { %v1143_v28 = vadd.f32 %v1142_v63, %v1129_v27 }
 0x132   : > { %v1155_v57 = vpop.f32.mrf.mxu2  ;;  %v1131_v30 = vpop.f32.mrf.mxu0 }
 0x133   : > { %v1156_v29 = vadd.f32 %v1155_v57, %v1143_v28  ;;  %v1168_v60 = vpop.f32.mrf.mxu3  ;;  %v1144_v32 = vpop.f32.mrf.mxu1 }
 0x135   : > { %v1169_v33 = vadd.f32 %v1168_v60, %v1156_v29 }
 0x137   : > { %v1173_v34 = vadd.f32 %v1169_v33, %v667_v31  ;;  %1179 = sbr.rel (%p1633_p13) target bundleno = 332 (0x14c), region = 86 }
 0x139   : > { %1175 = vst [vmem:[#allocation2 + $0x8] sm:$0xff] %v1173_v34 }
 0x13a   : > { %v1157_v35 = vpop.f32.mrf.mxu2 }
 0x13b   : > { %v1170_v36 = vpop.f32.mrf.mxu3 }
 0x13c   : > { %v1180_v37 = vld [vmem:[#allocation2] sm:$0xff] }
 0x13d   : > { %v1182_v39 = vld [vmem:[%s633_s18] sm:$0x3] }
 0x13e   : > { %v1184_v40 = vperm.slane %v1182_v39, 0  ;;  %v1185_v41 = vperm.slane %v1182_v39, 1  ;;  %v1190_v42 = vld [vmem:[%s638_s21] sm:$0x3] }
 0x13f   : > { %v1198_v43 = vld [vmem:[%s2061_s17] sm:$0xff]  ;;  %v1192_v44 = vperm.slane %v1190_v42, 0  ;;  %v1193_v45 = vperm.slane %v1190_v42, 1 }
 0x140   : > { %v1181_v38 = vld [vmem:[#allocation2 + $0x8] sm:$0xff]  ;;  %v1188_v46 = vmul.f32 %v1184_v40, %v1180_v37  ;;  %v1199_v48 = vunpack.c.l.bf16 %v1198_v43  ;;  %v1200_v49 = vunpack.c.h.bf16 %v1198_v43 }
 0x141   : > { %v1189_v47 = vmul.f32 %v1185_v41, %v1181_v38 }
 0x142   : > { %v1196_v50 = vadd.f32 %v1192_v44, %v1188_v46 }
 0x143   : > { %v1197_v51 = vadd.f32 %v1193_v45, %v1189_v47 }
 0x144   : > { %v1201_v52 = vadd.f32 %v1199_v48, %v1196_v50 }
 0x145   : > { %v1202_v53 = vadd.f32 %v1200_v49, %v1197_v51 }
 0x146   : > { %v1203_v54 = vmax.f32 %v1201_v52, 0.0 }
 0x147   : > { %v1204_v55 = vmax.f32 %v1202_v53, 0.0 }
 0x149   : > { %v1205_v56 = vpack.c.bf16 %v1204_v55, %v1203_v54 }
 0x14b   : > { %1206 = vst [vmem:[%s2066_s7] sm:$0xff] %v1205_v56 }
 0x14c PF: > { %s15_s24 = sadd.s32 1, %s1812_s24   ;;  %s2257_s18 = smov %s1792_s19 }
 0x14d   : > { %p12_p0 = scmp.ge.s32.totalorder %s15_s24, 20   ;;  %s2258_s19 = smov %s1896_s6 }
 0x14e   : > { %s2259_s20 = smov %s1804_s22  ;;  %s2260_s21 = smov %s1808_s23 }
 0x14f   : > { %s2261_s22 = smov %s2264_s25  ;;  %s2262_s23 = smov %s2268_s26 }
 0x150   :  { %14 = sbr.rel (!%p12_p0) target bundleno = 4 (0x4), region = 133 }

// kernel: _lambda_.26
= control target key start
LH: loop header
LB: loop body
LE: loop exit
PB: predicated region body
PF: predicated region fallthrough
CT: control target
= control target key end

     0   :  { %s1170_s15 = smov 0   ;;  %s1172_s16 = smov 0   ;;  %s1378_s0 = inlined_call_operand.vmem [shape: bf16[8,256], index: 0, kind: input, shape index: {}]   ;;  %s1379_s1 = inlined_call_operand.vmem [shape: bf16[256,512], index: 1, kind: input, shape index: {}]   ;;  %s1380_s2 = inlined_call_operand.vmem [shape: f32[1,512], index: 2, kind: input, shape index: {}]   ;;  %s1381_s3 = inlined_call_operand.vmem [shape: f32[1,512], index: 3, kind: input, shape index: {}]   ;;  %s1382_s4 = inlined_call_operand.vmem [shape: bf16[8,512], index: 4, kind: output, shape index: {}]  }
   0x1   :  { %s1174_s17 = smov 0   ;;  %s1176_s18 = smov 0  }
   0x2   :  { %s1178_s19 = smov 0  }
   0x3 LB: > { %s29_s20 = sadd.s32 1, %s1139_s18  ;;  %p77_p1 = scmp.ne.s32.totalorder %s1131_s16, %s1127_s15  ;;  %s1143_s19 = sphi %s1178_s19, %s14_s19   ;;  %s1139_s18 = sphi %s1176_s18, %s1386_s18   ;;  %s1135_s17 = sphi %s1174_s17, %s1385_s17   ;;  %s1131_s16 = sphi %s1172_s16, %s1384_s16   ;;  %s1127_s15 = sphi %s1170_s15, %s1383_s15  }
   0x4   : > { %p31_p0 = scmp.ge.s32.totalorder %s29_s20, 2  ;;  %p78_p2 = scmp.eq.s32.totalorder %s1143_s19, 0 }
   0x5   : > { %s70_s22 = sadd.s32 1, %s1131_s16  ;;  %p892_p5 = scmp.ge.s32.totalorder %s1143_s19, 2 }
   0x6   : > { %s1388_s20 = smov (%p31_p0, %s29_s20), 0  ;;  %p79_p3 = por %p78_p2, %p77_p1 }
   0x7   : > { %s66_s21 = ssub.s32 %s1139_s18, %s1388_s20  ;;  %196 = sbr.rel (%p892_p5) target bundleno = 48 (0x30), region = 20 }
   0x8   : > { %p68_p4 = scmp.eq.s32.totalorder %s66_s21, 0 }
   0xa   : > { %s1205_s23 = scalar_select %p68_p4, %s1131_s16, %s70_s22  }
   0xc   : > { %199 = sbr.rel (!%p79_p3) target bundleno = 48 (0x30), region = 24  ;;  %s201_s24 = sand.u32 (%p79_p3), 1, %s1131_s16  }
   0xd   : > { %s1032_s25 = sshll.u32 (%p79_p3), %s1139_s18, 3  ;;  %s893_s26 = sshll.u32 (%p79_p3), %s201_s24, 8 }
   0xe   : > { %s1213_s29 = scalar_lea.vmem (%p79_p3), %s1379_s1, %s1032_s25  ;;  %s1218_s30 = scalar_lea.vmem (%p79_p3), [#allocation3], %s893_s26 }
   0xf   : > { %v300_v0 = vld [vmem:[%s1213_s29] sm:$0xff] (%p79_p3)  ;;  %v302_v1 = vld [vmem:[%s1213_s29 + $0x10] sm:$0xff] (%p79_p3) }
  0x10   : > { %v304_v2 = vld [vmem:[%s1213_s29 + $0x20] sm:$0xff] (%p79_p3)  ;;  %301 = vst [vmem:[%s1218_s30] sm:$0xff] (%p79_p3), %v300_v0  ;;  %v306_v3 = vld [vmem:[%s1213_s29 + $0x30] sm:$0xff] (%p79_p3) }
  0x11   : > { %303 = vst [vmem:[%s1218_s30 + $0x8] sm:$0xff] %v302_v1  ;;  %v308_v4 = vld [vmem:[%s1213_s29 + $0x40] sm:$0xff]  ;;  %v310_v5 = vld [vmem:[%s1213_s29 + $0x50] sm:$0xff] }
  0x12   : > { %305 = vst [vmem:[%s1218_s30 + $0x10] sm:$0xff] %v304_v2  ;;  %v312_v6 = vld [vmem:[%s1213_s29 + $0x60] sm:$0xff]  ;;  %v314_v7 = vld [vmem:[%s1213_s29 + $0x70] sm:$0xff] }
  0x13   : > { %307 = vst [vmem:[%s1218_s30 + $0x18] sm:$0xff] %v306_v3  ;;  %v316_v8 = vld [vmem:[%s1213_s29 + $0x80] sm:$0xff]  ;;  %v318_v9 = vld [vmem:[%s1213_s29 + $0x90] sm:$0xff] }
  0x14   : > { %309 = vst [vmem:[%s1218_s30 + $0x20] sm:$0xff] %v308_v4  ;;  %v320_v10 = vld [vmem:[%s1213_s29 + $0xa0] sm:$0xff]  ;;  %v322_v11 = vld [vmem:[%s1213_s29 + $0xb0] sm:$0xff] }
  0x15   : > { %311 = vst [vmem:[%s1218_s30 + $0x28] sm:$0xff] %v310_v5  ;;  %v324_v12 = vld [vmem:[%s1213_s29 + $0xc0] sm:$0xff]  ;;  %v326_v13 = vld [vmem:[%s1213_s29 + $0xd0] sm:$0xff] }
  0x16   : > { %313 = vst [vmem:[%s1218_s30 + $0x30] sm:$0xff] %v312_v6  ;;  %v328_v14 = vld [vmem:[%s1213_s29 + $0xe0] sm:$0xff]  ;;  %v330_v15 = vld [vmem:[%s1213_s29 + $0xf0] sm:$0xff] }
  0x17   : > { %315 = vst [vmem:[%s1218_s30 + $0x38] sm:$0xff] %v314_v7  ;;  %v332_v16 = vld [vmem:[%s1213_s29 + $0x100] sm:$0xff]  ;;  %v334_v17 = vld [vmem:[%s1213_s29 + $0x110] sm:$0xff] }
  0x18   : > { %317 = vst [vmem:[%s1218_s30 + $0x40] sm:$0xff] %v316_v8  ;;  %v336_v18 = vld [vmem:[%s1213_s29 + $0x120] sm:$0xff]  ;;  %v338_v19 = vld [vmem:[%s1213_s29 + $0x130] sm:$0xff] }
  0x19   : > { %319 = vst [vmem:[%s1218_s30 + $0x48] sm:$0xff] %v318_v9  ;;  %v340_v20 = vld [vmem:[%s1213_s29 + $0x140] sm:$0xff]  ;;  %v342_v21 = vld [vmem:[%s1213_s29 + $0x150] sm:$0xff] }
  0x1a   : > { %321 = vst [vmem:[%s1218_s30 + $0x50] sm:$0xff] %v320_v10  ;;  %v344_v22 = vld [vmem:[%s1213_s29 + $0x160] sm:$0xff]  ;;  %v346_v23 = vld [vmem:[%s1213_s29 + $0x170] sm:$0xff] }
  0x1b   : > { %323 = vst [vmem:[%s1218_s30 + $0x58] sm:$0xff] %v322_v11  ;;  %v348_v24 = vld [vmem:[%s1213_s29 + $0x180] sm:$0xff]  ;;  %v350_v25 = vld [vmem:[%s1213_s29 + $0x190] sm:$0xff] }
  0x1c   : > { %325 = vst [vmem:[%s1218_s30 + $0x60] sm:$0xff] %v324_v12  ;;  %v352_v26 = vld [vmem:[%s1213_s29 + $0x1a0] sm:$0xff]  ;;  %v354_v27 = vld [vmem:[%s1213_s29 + $0x1b0] sm:$0xff] }
  0x1d   : > { %327 = vst [vmem:[%s1218_s30 + $0x68] sm:$0xff] %v326_v13  ;;  %v356_v28 = vld [vmem:[%s1213_s29 + $0x1c0] sm:$0xff]  ;;  %v358_v29 = vld [vmem:[%s1213_s29 + $0x1d0] sm:$0xff] }
  0x1e   : > { %329 = vst [vmem:[%s1218_s30 + $0x70] sm:$0xff] %v328_v14  ;;  %v360_v30 = vld [vmem:[%s1213_s29 + $0x1e0] sm:$0xff]  ;;  %v362_v31 = vld [vmem:[%s1213_s29 + $0x1f0] sm:$0xff] }
  0x1f   : > { %331 = vst [vmem:[%s1218_s30 + $0x78] sm:$0xff] %v330_v15 }
  0x20   : > { %333 = vst [vmem:[%s1218_s30 + $0x80] sm:$0xff] %v332_v16 }
  0x21   : > { %335 = vst [vmem:[%s1218_s30 + $0x88] sm:$0xff] %v334_v17 }
  0x22   : > { %337 = vst [vmem:[%s1218_s30 + $0x90] sm:$0xff] %v336_v18 }
  0x23   : > { %339 = vst [vmem:[%s1218_s30 + $0x98] sm:$0xff] %v338_v19 }
  0x24   : > { %341 = vst [vmem:[%s1218_s30 + $0xa0] sm:$0xff] %v340_v20 }
  0x25   : > { %343 = vst [vmem:[%s1218_s30 + $0xa8] sm:$0xff] %v342_v21 }
  0x26   : > { %345 = vst [vmem:[%s1218_s30 + $0xb0] sm:$0xff] %v344_v22 }
  0x27   : > { %347 = vst [vmem:[%s1218_s30 + $0xb8] sm:$0xff] %v346_v23 }
  0x28   : > { %349 = vst [vmem:[%s1218_s30 + $0xc0] sm:$0xff] %v348_v24 }
  0x29   : > { %351 = vst [vmem:[%s1218_s30 + $0xc8] sm:$0xff] %v350_v25 }
  0x2a   : > { %353 = vst [vmem:[%s1218_s30 + $0xd0] sm:$0xff] %v352_v26 }
  0x2b   : > { %355 = vst [vmem:[%s1218_s30 + $0xd8] sm:$0xff] %v354_v27 }
  0x2c   : > { %357 = vst [vmem:[%s1218_s30 + $0xe0] sm:$0xff] %v356_v28 }
  0x2d   : > { %359 = vst [vmem:[%s1218_s30 + $0xe8] sm:$0xff] %v358_v29 }
  0x2e   : > { %361 = vst [vmem:[%s1218_s30 + $0xf0] sm:$0xff] %v360_v30 }
  0x2f   : > { %363 = vst [vmem:[%s1218_s30 + $0xf8] sm:$0xff] %v362_v31 }
  0x30 PF: > { %p896_p6 = scmp.ge.s32.totalorder %s1143_s19, 1  ;;  %p384_p7 = scmp.lt.s32.totalorder %s1143_s19, 3 }
  0x32   : > { %p385_p8 = pnand %p896_p6, %p384_p7 }
  0x33   : > { %s391_s5 = sand.u32 (!%p385_p8), 1, %s1127_s15   ;;  %s898_s10 = sshll.u32 (!%p385_p8), %s1135_s17, 1 }
  0x34   : > { %388 = sbr.rel (%p385_p8) target bundleno = 234 (0xea), region = 70  ;;  %s897_s6 = sshll.u32 (!%p385_p8), %s391_s5, 8 }
  0x35   : > { %s1284_s7 = scalar_lea.vmem (!%p385_p8), [#allocation3], %s897_s6  ;;  %p450_p9 = scmp.lt.s32.totalorder (!%p385_p8), %s898_s10, 3 }
  0x39   : > { %v960_v32 = vld [vmem:[%s1284_s7 + $0x70] sm:$0xf]  ;;  %v1048_v33 = vld [vmem:[%s1284_s7 + $0x74] sm:$0xf0]  ;;  %v1047_v37 = vld [vmem:[%s1284_s7 + $0x74] sm:$0xf] }
  0x3a   : > { %v1024_v34 = vld [vmem:[%s1284_s7 + $0xf0] sm:$0xf]  ;;  %v961_v35 = vor.u32 %v1048_v33, %v960_v32  ;;  %v1064_v36 = vld [vmem:[%s1284_s7 + $0xf4] sm:$0xf0]  ;;  %v962_v38 = vld [vmem:[%s1284_s7 + $0x78] sm:$0xf0] }
  0x3b   : > { %v1025_v39 = vor.u32 %v1064_v36, %v1024_v34  ;;  %v965_v40 = vor.u32 %v1047_v37, %v962_v38  ;;  %v1063_v41 = vld [vmem:[%s1284_s7 + $0xf4] sm:$0xf]  ;;  %v1026_v42 = vld [vmem:[%s1284_s7 + $0xf8] sm:$0xf0]  ;;  %v952_v43 = vld [vmem:[%s1284_s7 + $0x60] sm:$0xf] }
  0x3c   : > { %677 = vmatpush.bf16.msra.mxu0 %v961_v35  ;;  %v1029_v44 = vor.u32 %v1063_v41, %v1026_v42  ;;  %v1046_v45 = vld [vmem:[%s1284_s7 + $0x64] sm:$0xf0]  ;;  %v1016_v46 = vld [vmem:[%s1284_s7 + $0xe0] sm:$0xf]  ;;  %v1045_v50 = vld [vmem:[%s1284_s7 + $0x64] sm:$0xf] }
  0x3d   : > { %v1062_v47 = vld [vmem:[%s1284_s7 + $0xe4] sm:$0xf0]  ;;  %690 = vmatpush.bf16.msra.mxu1 %v1025_v39  ;;  %703 = vmatpush.bf16.msra.mxu2 %v965_v40  ;;  %v953_v48 = vor.u32 %v1046_v45, %v952_v43  ;;  %v954_v51 = vld [vmem:[%s1284_s7 + $0x68] sm:$0xf0]  ;;  %v1061_v52 = vld [vmem:[%s1284_s7 + $0xe4] sm:$0xf] }
  0x3e   : > { %v1017_v49 = vor.u32 %v1062_v47, %v1016_v46  ;;  %716 = vmatpush.bf16.msra.mxu3 %v1029_v44  ;;  %v957_v53 = vor.u32 %v1045_v50, %v954_v51  ;;  %v1018_v54 = vld [vmem:[%s1284_s7 + $0xe8] sm:$0xf0]  ;;  %v944_v55 = vld [vmem:[%s1284_s7 + $0x50] sm:$0xf]  ;;  %v1044_v56 = vld [vmem:[%s1284_s7 + $0x54] sm:$0xf0] }
  0x3f   : > { %v1021_v57 = vor.u32 %v1061_v52, %v1018_v54  ;;  %v1008_v58 = vld [vmem:[%s1284_s7 + $0xd0] sm:$0xf]  ;;  %v1060_v59 = vld [vmem:[%s1284_s7 + $0xd4] sm:$0xf0]  ;;  %v1043_v60 = vld [vmem:[%s1284_s7 + $0x54] sm:$0xf]  ;;  %v945_v61 = vor.u32 %v1044_v56, %v944_v55 }
  0x40   : > { %678 = vmatpush.bf16.msra.mxu0 %v953_v48  ;;  %v946_v62 = vld [vmem:[%s1284_s7 + $0x58] sm:$0xf0]  ;;  %v1059_v63 = vld [vmem:[%s1284_s7 + $0xd4] sm:$0xf]  ;;  %v1009_v1 = vor.u32 %v1060_v59, %v1008_v58  ;;  %v936_v3 = vld [vmem:[%s1284_s7 + $0x40] sm:$0xf] }
  0x41   : > { %v1010_v0 = vld [vmem:[%s1284_s7 + $0xd8] sm:$0xf0]  ;;  %691 = vmatpush.bf16.msra.mxu1 %v1017_v49  ;;  %704 = vmatpush.bf16.msra.mxu2 %v957_v53  ;;  %v949_v2 = vor.u32 %v1043_v60, %v946_v62  ;;  %v1042_v4 = vld [vmem:[%s1284_s7 + $0x44] sm:$0xf0]  ;;  %v1000_v5 = vld [vmem:[%s1284_s7 + $0xc0] sm:$0xf] }
  0x42   : > { %717 = vmatpush.bf16.msra.mxu3 %v1021_v57  ;;  %v1013_v6 = vor.u32 %v1059_v63, %v1010_v0  ;;  %v1058_v7 = vld [vmem:[%s1284_s7 + $0xc4] sm:$0xf0]  ;;  %v1041_v8 = vld [vmem:[%s1284_s7 + $0x44] sm:$0xf]  ;;  %v938_v9 = vld [vmem:[%s1284_s7 + $0x48] sm:$0xf0]  ;;  %v937_v12 = vor.u32 %v1042_v4, %v936_v3 }
  0x43   : > { %v1057_v10 = vld [vmem:[%s1284_s7 + $0xc4] sm:$0xf]  ;;  %v1002_v11 = vld [vmem:[%s1284_s7 + $0xc8] sm:$0xf0]  ;;  %v1001_v13 = vor.u32 %v1058_v7, %v1000_v5  ;;  %v941_v14 = vor.u32 %v1041_v8, %v938_v9  ;;  %v928_v15 = vld [vmem:[%s1284_s7 + $0x30] sm:$0xf] }
  0x44   : > { %679 = vmatpush.bf16.msra.mxu0 %v945_v61  ;;  %v1040_v16 = vld [vmem:[%s1284_s7 + $0x34] sm:$0xf0]  ;;  %v992_v17 = vld [vmem:[%s1284_s7 + $0xb0] sm:$0xf]  ;;  %v1005_v18 = vor.u32 %v1057_v10, %v1002_v11  ;;  %v1039_v20 = vld [vmem:[%s1284_s7 + $0x34] sm:$0xf] }
  0x45   : > { %692 = vmatpush.bf16.msra.mxu1 %v1009_v1  ;;  %705 = vmatpush.bf16.msra.mxu2 %v949_v2  ;;  %v1056_v19 = vld [vmem:[%s1284_s7 + $0xb4] sm:$0xf0]  ;;  %v930_v21 = vld [vmem:[%s1284_s7 + $0x38] sm:$0xf0]  ;;  %v1055_v22 = vld [vmem:[%s1284_s7 + $0xb4] sm:$0xf]  ;;  %v929_v24 = vor.u32 %v1040_v16, %v928_v15 }
  0x46   : > { %718 = vmatpush.bf16.msra.mxu3 %v1013_v6  ;;  %v994_v23 = vld [vmem:[%s1284_s7 + $0xb8] sm:$0xf0]  ;;  %v993_v25 = vor.u32 %v1056_v19, %v992_v17  ;;  %v933_v26 = vor.u32 %v1039_v20, %v930_v21  ;;  %v920_v27 = vld [vmem:[%s1284_s7 + $0x20] sm:$0xf]  ;;  %v1038_v28 = vld [vmem:[%s1284_s7 + $0x24] sm:$0xf0] }
  0x47   : > { %v984_v29 = vld [vmem:[%s1284_s7 + $0xa0] sm:$0xf]  ;;  %v997_v30 = vor.u32 %v1055_v22, %v994_v23  ;;  %v1054_v31 = vld [vmem:[%s1284_s7 + $0xa4] sm:$0xf0]  ;;  %v1037_v32 = vld [vmem:[%s1284_s7 + $0x24] sm:$0xf]  ;;  %v921_v36 = vor.u32 %v1038_v28, %v920_v27 }
  0x48   : > { %680 = vmatpush.bf16.msra.mxu0 %v937_v12  ;;  %v922_v33 = vld [vmem:[%s1284_s7 + $0x28] sm:$0xf0]  ;;  %v1053_v34 = vld [vmem:[%s1284_s7 + $0xa4] sm:$0xf]  ;;  %v985_v37 = vor.u32 %v1054_v31, %v984_v29  ;;  %v912_v39 = vld [vmem:[%s1284_s7 + $0x10] sm:$0xf] }
  0x49   : > { %693 = vmatpush.bf16.msra.mxu1 %v1001_v13  ;;  %706 = vmatpush.bf16.msra.mxu2 %v941_v14  ;;  %v986_v35 = vld [vmem:[%s1284_s7 + $0xa8] sm:$0xf0]  ;;  %v925_v38 = vor.u32 %v1037_v32, %v922_v33  ;;  %v1036_v40 = vld [vmem:[%s1284_s7 + $0x14] sm:$0xf0]  ;;  %v976_v41 = vld [vmem:[%s1284_s7 + $0x90] sm:$0xf] }
  0x4a   : > { %719 = vmatpush.bf16.msra.mxu3 %v1005_v18  ;;  %v989_v42 = vor.u32 %v1053_v34, %v986_v35  ;;  %v1052_v43 = vld [vmem:[%s1284_s7 + $0x94] sm:$0xf0]  ;;  %v1035_v44 = vld [vmem:[%s1284_s7 + $0x14] sm:$0xf]  ;;  %v914_v45 = vld [vmem:[%s1284_s7 + $0x18] sm:$0xf0]  ;;  %v913_v48 = vor.u32 %v1036_v40, %v912_v39 }
  0x4b   : > { %v1051_v46 = vld [vmem:[%s1284_s7 + $0x94] sm:$0xf]  ;;  %v978_v47 = vld [vmem:[%s1284_s7 + $0x98] sm:$0xf0]  ;;  %v477_v49 = vld [vmem:[%s1378_s0] sm:$0xff]  ;;  %v977_v50 = vor.u32 %v1052_v43, %v976_v41  ;;  %v917_v51 = vor.u32 %v1035_v44, %v914_v45  ;;  %s1390_s10 = smov (!%p450_p9, %s898_s10), 3 }
  0x4c   : > { %681 = vmatpush.bf16.msra.mxu0 %v929_v24  ;;  %v904_v52 = vld [vmem:[%s1284_s7] sm:$0xf]  ;;  %v1034_v53 = vld [vmem:[%s1284_s7 + $0x4] sm:$0xf0]  ;;  %v981_v55 = vor.u32 %v1051_v46, %v978_v47  ;;  %v1033_v57 = vld [vmem:[%s1284_s7 + $0x4] sm:$0xf]  ;;  %v511_v61 = vunpack.c.l.b16 %v477_v49  ;;  %v512_v63 = vunpack.c.h.b16 %v477_v49  ;;  %s452_s13 = scalar_lea.vmem %s1380_s2, %s1390_s10  ;;  %s457_s21 = scalar_lea.vmem %s1381_s3, %s1390_s10 }
  0x4d   : > { %694 = vmatpush.bf16.msra.mxu1 %v993_v25  ;;  %707 = vmatpush.bf16.msra.mxu2 %v933_v26  ;;  %v968_v54 = vld [vmem:[%s1284_s7 + $0x80] sm:$0xf]  ;;  %v1050_v56 = vld [vmem:[%s1284_s7 + $0x84] sm:$0xf0]  ;;  %v906_v58 = vld [vmem:[%s1284_s7 + $0x8] sm:$0xf0]  ;;  %v905_v62 = vor.u32 %v1034_v53, %v904_v52 }
  0x4e   : > { %720 = vmatpush.bf16.msra.mxu3 %v997_v30  ;;  %v1049_v59 = vld [vmem:[%s1284_s7 + $0x84] sm:$0xf]  ;;  %v970_v60 = vld [vmem:[%s1284_s7 + $0x88] sm:$0xf0]  ;;  %v969_v0 = vor.u32 %v1050_v56, %v968_v54  ;;  %v909_v1 = vor.u32 %v1033_v57, %v906_v58  ;;  %v513_v3 = vpack.c.b16 %v511_v61, %v511_v61  ;;  %v514_v4 = vpack.c.b16 %v512_v63, %v512_v63  ;;  %v738_v6 = vld [vmem:[%s452_s13] sm:$0x3] }
  0x4f   : > { %v973_v2 = vor.u32 %v1049_v59, %v970_v60  ;;  %v740_v9 = vperm.slane %v738_v6, 0  ;;  %v746_v10 = vld [vmem:[%s457_s21] sm:$0x3]  ;;  %v741_v14 = vperm.slane %v738_v6, 1  ;;  %s901_s17 = sshll.u32 %s1390_s10, 2 }
  0x50   : > { %682 = vmatpush.bf16.msra.mxu0 %v921_v36  ;;  %v748_v12 = vperm.slane %v746_v10, 0  ;;  %v749_v18 = vperm.slane %v746_v10, 1  ;;  %s467_s25 = scalar_lea.vmem %s1382_s4, %s901_s17 }
  0x51   : > { %695 = vmatpush.bf16.msra.mxu1 %v985_v37  ;;  %708 = vmatpush.bf16.msra.mxu2 %v925_v38 }
  0x52   : > { %721 = vmatpush.bf16.msra.mxu3 %v989_v42 }
  0x54   : > { %683 = vmatpush.bf16.msra.mxu0 %v913_v48 }
  0x55   : > { %696 = vmatpush.bf16.msra.mxu1 %v977_v50  ;;  %709 = vmatpush.bf16.msra.mxu2 %v917_v51 }
  0x56   : > { %722 = vmatpush.bf16.msra.mxu3 %v981_v55 }
  0x58   : > { %684 = vmatpush.bf16.msra.mxu0 %v905_v62 }
  0x59   : > { %697 = vmatpush.bf16.msra.mxu1 %v969_v0  ;;  %710 = vmatpush.bf16.msra.mxu2 %v909_v1 }
  0x5a   : > { %723 = vmatpush.bf16.msra.mxu3 %v973_v2 }
  0x5b   : > { %685 = vmatmul.bf16.vlgmr.msra.gmra.mxu0 %v513_v3 }
  0x5c   : > { %698 = vmatmul.bf16.vlgmr.msra.gmra.mxu1 %v514_v4  ;;  %711 = vmatmul.bf16.vlgmr.msra.gmra.mxu2 %v513_v3 }
  0x5d   : > { %724 = vmatmul.bf16.vlgmr.msra.gmra.mxu3 %v514_v4 }
  0xd8   : > { %v686_v5 = vpop.f32.mrf.mxu0 }
  0xd9   : > { %v699_v7 = vpop.f32.mrf.mxu1 }
  0xda   : > { %v700_v8 = vadd.f32 %v699_v7, %v686_v5 }
  0xdc   : > { %v744_v11 = vmul.f32 %v740_v9, %v700_v8 }
  0xde   : > { %v752_v20 = vadd.f32 %v748_v12, %v744_v11 }
  0xdf   : > { %v712_v13 = vpop.f32.mrf.mxu2 }
  0xe0   : > { %v725_v15 = vpop.f32.mrf.mxu3  ;;  %v688_v16 = vpop.f32.mrf.mxu0 }
  0xe1   : > { %v726_v17 = vadd.f32 %v725_v15, %v712_v13  ;;  %v701_v19 = vpop.f32.mrf.mxu1 }
  0xe3   : > { %v745_v21 = vmul.f32 %v741_v14, %v726_v17 }
  0xe5   : > { %v753_v22 = vadd.f32 %v749_v18, %v745_v21 }
  0xe7   : > { %v754_v23 = vpack.c.bf16 %v753_v22, %v752_v20  ;;  %v714_v24 = vpop.f32.mrf.mxu2 }
  0xe8   : > { %v727_v25 = vpop.f32.mrf.mxu3 }
  0xe9   : > { %755 = vst [vmem:[%s467_s25] sm:$0xff] %v754_v23 }
  0xea PF: > { %s14_s19 = sadd.s32 1, %s1143_s19   ;;  %s1383_s15 = smov %s1131_s16 }
  0xeb   : > { %p11_p10 = scmp.ge.s32.totalorder %s14_s19, 4   ;;  %s1384_s16 = smov %s1205_s23 }
  0xec   : > { %s1385_s17 = smov %s1139_s18  ;;  %s1386_s18 = smov %s1388_s20 }
  0xed   :  { %13 = sbr.rel (!%p11_p10) target bundleno = 3 (0x3), region = 126 }

// kernel: _lambda_.28
= control target key start
LH: loop header
LB: loop body
LE: loop exit
PB: predicated region body
PF: predicated region fallthrough
CT: control target
= control target key end

     0   :  { %s193_s6 = smov 0   ;;  %s213_s0 = inlined_call_operand.vmem [shape: f32[2,1,512], index: 0, kind: input, shape index: {}]   ;;  %s214_s1 = inlined_call_operand.vmem [shape: f32[2,1,512], index: 1, kind: output, shape index: {}]  }
   0x1 LB: > { %s172_s7 = sadd.s32 4294967295, %s195_s6   ;;  %p176_p0 = scmp.ge.s32.totalorder %s195_s6, 1  ;;  %s195_s6 = sphi %s193_s6, %s11_s6  }
   0x2   : > { %p86_p1 = scmp.lt.s32.totalorder %s195_s6, 3 }
   0x4   : > { %p87_p2 = pnand %p176_p0, %p86_p1 }
   0x5   : > { %p104_p3 = scmp.lt.s32.totalorder (!%p87_p2), %s172_s7, 1 }
   0x6   : > { %90 = sbr.rel (%p87_p2) target bundleno = 16 (0x10), region = 24 }
   0xb   : > { %v114_v0 = vlaneseq  ;;  %s216_s7 = smov (!%p104_p3, %s172_s7), 1 }
   0xc   : > { %s177_s8 = sshll.u32 %s216_s7, 2 }
   0xd   : > { %vm116_vm0 = vcmp.lt.s32.totalorder %v114_v0, 512  ;;  %s107_s11 = scalar_lea.vmem %s213_s0, %s177_s8  ;;  %s111_s14 = scalar_lea.vmem %s214_s1, %s177_s8 }
   0xe   : > { %v112_v1 = vld [vmem:[%s107_s11] sm:$0xf] }
   0xf   : > { %118 = vst.msk [vmem:[%s111_s14] sm:$0xf] %vm116_vm0, %v112_v1 }
  0x10 PF: > { %s11_s6 = sadd.s32 1, %s195_s6  }
  0x11   : > { %p8_p4 = scmp.ge.s32.totalorder %s11_s6, 4  }
  0x13   :  { %10 = sbr.rel (!%p8_p4) target bundleno = 1 (0x1), region = 54 }

// kernel: _lambda_.29
= control target key start
LH: loop header
LB: loop body
LE: loop exit
PB: predicated region body
PF: predicated region fallthrough
CT: control target
= control target key end

     0   :  { %s666_s1 = inlined_call_operand.vmem [shape: bf16[512,128], index: 1, kind: input, shape index: {}]   ;;  %s667_s0 = inlined_call_operand.vmem [shape: bf16[8,512], index: 0, kind: input, shape index: {}]   ;;  %s668_s2 = inlined_call_operand.vmem [shape: f32[1,128], index: 2, kind: input, shape index: {}]   ;;  %s669_s3 = inlined_call_operand.vmem [shape: f32[1,128], index: 3, kind: input, shape index: {}]   ;;  %s670_s4 = inlined_call_operand.vmem [shape: f32[8,128], index: 4, kind: output, shape index: {}]  }
   0x1   :  { %v503_v0 = vld [vmem:[%s666_s1 + $0x38] sm:$0xff]  ;;  %v502_v4 = vld [vmem:[%s666_s1 + $0x30] sm:$0xff]  ;;  %v501_v8 = vld [vmem:[%s666_s1 + $0x28] sm:$0xff] }
   0x2   :  { %v511_v1 = vld [vmem:[%s666_s1 + $0x78] sm:$0xff]  ;;  %295 = vmatpush.bf16.msra.mxu0 %v503_v0  ;;  %v510_v5 = vld [vmem:[%s666_s1 + $0x70] sm:$0xff]  ;;  %v509_v9 = vld [vmem:[%s666_s1 + $0x68] sm:$0xff] }
   0x3   :  { %v519_v2 = vld [vmem:[%s666_s1 + $0xb8] sm:$0xff]  ;;  %308 = vmatpush.bf16.msra.mxu1 %v511_v1  ;;  %v518_v6 = vld [vmem:[%s666_s1 + $0xb0] sm:$0xff]  ;;  %v517_v10 = vld [vmem:[%s666_s1 + $0xa8] sm:$0xff] }
   0x4   :  { %v527_v3 = vld [vmem:[%s666_s1 + $0xf8] sm:$0xff]  ;;  %321 = vmatpush.bf16.msra.mxu2 %v519_v2  ;;  %v526_v7 = vld [vmem:[%s666_s1 + $0xf0] sm:$0xff]  ;;  %v525_v11 = vld [vmem:[%s666_s1 + $0xe8] sm:$0xff] }
   0x5   :  { %334 = vmatpush.bf16.msra.mxu3 %v527_v3  ;;  %v500_v12 = vld [vmem:[%s666_s1 + $0x20] sm:$0xff]  ;;  %v499_v16 = vld [vmem:[%s666_s1 + $0x18] sm:$0xff]  ;;  %v498_v20 = vld [vmem:[%s666_s1 + $0x10] sm:$0xff] }
   0x6   :  { %296 = vmatpush.bf16.msra.mxu0 %v502_v4  ;;  %v508_v13 = vld [vmem:[%s666_s1 + $0x60] sm:$0xff]  ;;  %v507_v17 = vld [vmem:[%s666_s1 + $0x58] sm:$0xff]  ;;  %v506_v21 = vld [vmem:[%s666_s1 + $0x50] sm:$0xff] }
   0x7   :  { %309 = vmatpush.bf16.msra.mxu1 %v510_v5  ;;  %v516_v14 = vld [vmem:[%s666_s1 + $0xa0] sm:$0xff]  ;;  %v515_v18 = vld [vmem:[%s666_s1 + $0x98] sm:$0xff]  ;;  %v514_v22 = vld [vmem:[%s666_s1 + $0x90] sm:$0xff] }
   0x8   :  { %322 = vmatpush.bf16.msra.mxu2 %v518_v6  ;;  %v524_v15 = vld [vmem:[%s666_s1 + $0xe0] sm:$0xff]  ;;  %v523_v19 = vld [vmem:[%s666_s1 + $0xd8] sm:$0xff]  ;;  %v522_v23 = vld [vmem:[%s666_s1 + $0xd0] sm:$0xff] }
   0x9   :  { %335 = vmatpush.bf16.msra.mxu3 %v526_v7  ;;  %v497_v24 = vld [vmem:[%s666_s1 + $0x8] sm:$0xff]  ;;  %v23_v26 = vld [vmem:[%s667_s0] sm:$0xff] }
   0xa   :  { %297 = vmatpush.bf16.msra.mxu0 %v501_v8  ;;  %v505_v25 = vld [vmem:[%s666_s1 + $0x48] sm:$0xff]  ;;  %v91_v30 = vunpack.c.l.b16 %v23_v26  ;;  %v92_v31 = vunpack.c.h.b16 %v23_v26  ;;  %v496_v32 = vld [vmem:[%s666_s1] sm:$0xff] }
   0xb   :  { %310 = vmatpush.bf16.msra.mxu1 %v509_v9  ;;  %v513_v27 = vld [vmem:[%s666_s1 + $0x88] sm:$0xff]  ;;  %v504_v33 = vld [vmem:[%s666_s1 + $0x40] sm:$0xff] }
   0xc   :  { %323 = vmatpush.bf16.msra.mxu2 %v517_v10  ;;  %v521_v28 = vld [vmem:[%s666_s1 + $0xc8] sm:$0xff]  ;;  %v512_v36 = vld [vmem:[%s666_s1 + $0x80] sm:$0xff]  ;;  %v95_v38 = vpack.c.b16 %v91_v30, %v91_v30  ;;  %v96_v39 = vpack.c.b16 %v92_v31, %v92_v31 }
   0xd   :  { %336 = vmatpush.bf16.msra.mxu3 %v525_v11  ;;  %v24_v29 = vld [vmem:[%s667_s0 + $0x8] sm:$0xff]  ;;  %v520_v37 = vld [vmem:[%s666_s1 + $0xc0] sm:$0xff] }
   0xe   :  { %298 = vmatpush.bf16.msra.mxu0 %v500_v12  ;;  %v93_v34 = vunpack.c.l.b16 %v24_v29  ;;  %v94_v35 = vunpack.c.h.b16 %v24_v29  ;;  %v528_v48 = vld [vmem:[%s668_s2] ss:$0 sm:$0xff] }
   0xf   :  { %311 = vmatpush.bf16.msra.mxu1 %v508_v13  ;;  %v529_v52 = vld [vmem:[%s669_s3] ss:$0 sm:$0xff] }
  0x10   :  { %324 = vmatpush.bf16.msra.mxu2 %v516_v14  ;;  %v97_v40 = vpack.c.b16 %v93_v34, %v93_v34  ;;  %v98_v41 = vpack.c.b16 %v94_v35, %v94_v35 }
  0x11   :  { %337 = vmatpush.bf16.msra.mxu3 %v524_v15 }
  0x12   :  { %299 = vmatpush.bf16.msra.mxu0 %v499_v16 }
  0x13   :  { %312 = vmatpush.bf16.msra.mxu1 %v507_v17 }
  0x14   :  { %325 = vmatpush.bf16.msra.mxu2 %v515_v18 }
  0x15   :  { %338 = vmatpush.bf16.msra.mxu3 %v523_v19 }
  0x16   :  { %300 = vmatpush.bf16.msra.mxu0 %v498_v20 }
  0x17   :  { %313 = vmatpush.bf16.msra.mxu1 %v506_v21 }
  0x18   :  { %326 = vmatpush.bf16.msra.mxu2 %v514_v22 }
  0x19   :  { %339 = vmatpush.bf16.msra.mxu3 %v522_v23 }
  0x1a   :  { %301 = vmatpush.bf16.msra.mxu0 %v497_v24 }
  0x1b   :  { %314 = vmatpush.bf16.msra.mxu1 %v505_v25 }
  0x1c   :  { %327 = vmatpush.bf16.msra.mxu2 %v513_v27 }
  0x1d   :  { %340 = vmatpush.bf16.msra.mxu3 %v521_v28 }
  0x1e   :  { %302 = vmatpush.bf16.msra.mxu0 %v496_v32 }
  0x1f   :  { %315 = vmatpush.bf16.msra.mxu1 %v504_v33 }
  0x20   :  { %328 = vmatpush.bf16.msra.mxu2 %v512_v36 }
  0x21   :  { %341 = vmatpush.bf16.msra.mxu3 %v520_v37  ;;  %303 = vmatmul.bf16.vlgmr.msra.gmra.mxu0 %v95_v38 }
  0x22   :  { %316 = vmatmul.bf16.vlgmr.msra.gmra.mxu1 %v96_v39 }
  0x23   :  { %329 = vmatmul.bf16.vlgmr.msra.gmra.mxu2 %v97_v40 }
  0x24   :  { %342 = vmatmul.bf16.vlgmr.msra.gmra.mxu3 %v98_v41 }
  0x9e   :  { %v304_v42 = vpop.f32.mrf.mxu0 }
  0x9f   :  { %v317_v43 = vpop.f32.mrf.mxu1 }
  0xa0   :  { %v318_v44 = vadd.f32 %v317_v43, %v304_v42 }
  0xa6   :  { %v330_v45 = vpop.f32.mrf.mxu2  ;;  %v306_v49 = vpop.f32.mrf.mxu0 }
  0xa7   :  { %v343_v46 = vpop.f32.mrf.mxu3  ;;  %v331_v47 = vadd.f32 %v330_v45, %v318_v44  ;;  %v319_v50 = vpop.f32.mrf.mxu1 }
  0xa9   :  { %v344_v51 = vadd.f32 %v343_v46, %v331_v47 }
  0xab   :  { %v357_v53 = vmul.f32 %v528_v48, %v344_v51 }
  0xad   :  { %v362_v54 = vadd.f32 %v529_v52, %v357_v53 }
  0xae   :  { %v332_v55 = vpop.f32.mrf.mxu2 }
  0xaf   :  { %v345_v56 = vpop.f32.mrf.mxu3  ;;  %363 = vst [vmem:[%s670_s4] sm:$0xff] %v362_v54 }

</bundles_post_ra>
